<compile_context>
chip_gen: v6e
topology: v6e:2x2x1
jax: 0.10.0
libtpu: 0.0.40
codegen_flags: <defaults>
</compile_context>

<pallas_src>
import jax
import jax.numpy as jnp
from jax.experimental import pallas as pl
from jax.experimental.pallas import tpu as pltpu

IN_DIM = 4096       # hard-coded in the PyTorch module
NEW_SIZE = 128      # args.new_size (bottleneck width)


def _autoencoder_kernel(x_ref, w1_ref, b1_ref, w2_ref, b2_ref, o_ref):
    """Fused encoder -> ReLU -> decoder for one batch tile.

    x_ref : (TB, IN_DIM)        f32  (cast to bf16 in-kernel)
    w1_ref: (IN_DIM, new_size)  bf16 (resident across all grid steps)
    b1_ref: (1, new_size)       f32
    w2_ref: (new_size, IN_DIM)  bf16 (resident)
    b2_ref: (1, IN_DIM)         f32
    o_ref : (TB, IN_DIM)        out dtype
    """
    # f32 -> bf16 on the VPU inside the kernel (free: kernel is HBM-bound).
    x = x_ref[...].astype(w1_ref.dtype)
    # Encoder matmul on the MXU, f32 accumulation, f32 bias + ReLU.
    h = jnp.dot(x, w1_ref[...], preferred_element_type=jnp.float32) + b1_ref[...]
    h = jnp.maximum(h, 0.0)
    # Decoder matmul: bf16 activations into the MXU, f32 accumulation.
    y = jnp.dot(h.astype(w2_ref.dtype), w2_ref[...],
                preferred_element_type=jnp.float32) + b2_ref[...]
    o_ref[...] = y.astype(o_ref.dtype)


def _round_up(n, m):
    return ((n + m - 1) // m) * m


def _device_defaults():
    """(batch_tile, vmem_limit_bytes) tuned per TPU generation."""
    kind = ""
    try:
        kind = jax.devices()[0].device_kind.lower()
    except Exception:
        pass
    if "v7" in kind or "7x" in kind:
        # v7x: only 64 MiB VMEM per TensorCore -> keep the working set well under it.
        return 384, 56 * 1024 * 1024
    # v5e / v6e: 128 MiB physical VMEM (scoped default is only 16 / 32 MiB).
    return 512, 96 * 1024 * 1024


def _pallas_forward(x, w1, b1, w2, b2, *, tb, vmem_limit_bytes, out_dtype,
                    single_buffer_resident):
    B, _ = x.shape
    new_size = w1.shape[1]
    num_tiles = pl.cdiv(B, tb)   # ragged last block is masked by Pallas

    resident_kw = {}
    if single_buffer_resident:
        # Weights/biases never change across grid steps -> one VMEM buffer is
        # enough; saves ~2-4 MiB (matters on v7x's 64 MiB VMEM per core).
        resident_kw = dict(pipeline_mode=pl.Buffered(buffer_count=1))

    cost = pl.CostEstimate(
        flops=2 * 2 * B * IN_DIM * new_size,                          # two matmuls
        transcendentals=0,
        bytes_accessed=(B * IN_DIM * x.dtype.itemsize                 # x read (f32)
                        + B * IN_DIM * jnp.dtype(out_dtype).itemsize  # output write
                        + 2 * IN_DIM * new_size * w1.dtype.itemsize   # W1 + W2 (bf16)
                        + (new_size + IN_DIM) * 4),                   # biases (f32)
    )

    return pl.pallas_call(
        _autoencoder_kernel,
        out_shape=jax.ShapeDtypeStruct((B, IN_DIM), out_dtype),
        grid_spec=pltpu.PrefetchScalarGridSpec(
            num_scalar_prefetch=0,
            grid=(num_tiles,),
            in_specs=[
                pl.BlockSpec((tb, IN_DIM), lambda i: (i, 0)),                      # x tile (f32)
                pl.BlockSpec((IN_DIM, new_size), lambda i: (0, 0), **resident_kw),  # W1
                pl.BlockSpec((1, new_size), lambda i: (0, 0), **resident_kw),       # b1
                pl.BlockSpec((new_size, IN_DIM), lambda i: (0, 0), **resident_kw),  # W2
                pl.BlockSpec((1, IN_DIM), lambda i: (0, 0), **resident_kw),         # b2
            ],
            out_specs=pl.BlockSpec((tb, IN_DIM), lambda i: (i, 0)),
        ),
        compiler_params=pltpu.CompilerParams(
            # Batch tiles are independent -> megacore-shardable on v7x.
            dimension_semantics=("parallel",),
            vmem_limit_bytes=vmem_limit_bytes,
        ),
        cost_estimate=cost,
    )(x, w1, b1, w2, b2)


def autoencoder_forward(x, w1, b1, w2, b2, *, tb=None, vmem_limit_bytes=None,
                        out_dtype=None):
    """x: [B, 4096] -> [B, 4096].

    Expects parameters already prepared by `prepare_params` (x @ W layout,
    bf16 weights, f32 row-vector biases).  x stays f32 in HBM; the f32->bf16
    cast happens inside the kernel.  No padding / slicing copies are made for
    ragged batches.
    """
    B, D = x.shape
    assert D == IN_DIM, f"expected last dim {IN_DIM}, got {D}"
    new_size = w1.shape[1]
    assert w1.shape == (IN_DIM, new_size)
    assert w2.shape == (new_size, IN_DIM)
    assert b1.shape == (1, new_size) and b2.shape == (1, IN_DIM)

    dflt_tb, dflt_vmem = _device_defaults()
    if tb is None:
        tb = dflt_tb
    if vmem_limit_bytes is None:
        vmem_limit_bytes = dflt_vmem
    # Clamp the tile for small batches; keep it a multiple of 8 (sublane rule).
    tb = max(8, min(int(tb), _round_up(B, 8)))
    tb = _round_up(tb, 8)
    if out_dtype is None:
        out_dtype = x.dtype   # module returns f32, matching the input

    kwargs = dict(tb=tb, vmem_limit_bytes=vmem_limit_bytes, out_dtype=out_dtype)
    try:
        return _pallas_forward(x, w1, b1, w2, b2,
                               single_buffer_resident=True, **kwargs)
    except Exception:
        # pipeline_mode=pl.Buffered(1) not supported on this jax/libtpu build:
        # fall back to default double buffering (costs only a few MiB of VMEM).
        return _pallas_forward(x, w1, b1, w2, b2,
                               single_buffer_resident=False, **kwargs)


def init_params(key, new_size=NEW_SIZE):
    """Deterministic synthetic parameters with nn.Linear's shapes / init.

    Shapes follow the PyTorch convention:
      w1: [new_size, 4096], b1: [new_size]   (encoder)
      w2: [4096, new_size], b2: [4096]       (decoder)
    """
    k1, k2, k3, k4 = jax.random.split(key, 4)
    bound1 = IN_DIM ** -0.5
    bound2 = new_size ** -0.5
    w1 = jax.random.uniform(k1, (new_size, IN_DIM), jnp.float32, -bound1, bound1)
    b1 = jax.random.uniform(k2, (new_size,), jnp.float32, -bound1, bound1)
    w2 = jax.random.uniform(k3, (IN_DIM, new_size), jnp.float32, -bound2, bound2)
    b2 = jax.random.uniform(k4, (IN_DIM,), jnp.float32, -bound2, bound2)
    return w1, b1, w2, b2


def prepare_params(w1, b1, w2, b2, compute_dtype=jnp.bfloat16):
    """One-time prep (amortized across calls): transpose to x @ W layout, cast
    the weights to the MXU-native compute dtype, keep biases as f32 rows."""
    return (jnp.asarray(w1.T, compute_dtype),
            jnp.asarray(b1, jnp.float32).reshape(1, -1),
            jnp.asarray(w2.T, compute_dtype),
            jnp.asarray(b2, jnp.float32).reshape(1, -1))


def reference_forward_f32(x, w1, b1, w2, b2):
    """Exact PyTorch forward in f32: relu(x @ W1^T + b1) @ W2^T + b2."""
    h = jnp.maximum(x @ w1.T + b1[None, :], 0.0)
    return h @ w2.T + b2[None, :]


def reference_forward_bf16(x, w1, b1, w2, b2):
    """Mirrors the kernel numerics: bf16 matmul operands, f32 accumulation."""
    cd = jnp.bfloat16
    h = jnp.dot(x.astype(cd), w1.T.astype(cd),
                preferred_element_type=jnp.float32) + b1[None, :]
    h = jnp.maximum(h, 0.0)
    return jnp.dot(h.astype(cd), w2.T.astype(cd),
                   preferred_element_type=jnp.float32) + b2[None, :]


if __name__ == "__main__":
    key = jax.random.PRNGKey(0)
    k_x, k_p = jax.random.split(key)

    new_size = NEW_SIZE   # args.new_size
    # Small batch (feature dims are fixed at 4096 by the module).  B=50 is not
    # a multiple of the tile -> exercises the masked partial last block
    # (no pad / slice HBM copies anywhere).
    B = 50
    x = jax.random.normal(k_x, (B, IN_DIM), jnp.float32)
    w1, b1, w2, b2 = init_params(k_p, new_size)
    params = prepare_params(w1, b1, w2, b2)

    # Small tile so the test runs a multi-step, pipelined grid: ceil(50/16)=4 steps.
    out = jax.block_until_ready(autoencoder_forward(x, *params, tb=16))
    assert out.shape == (B, IN_DIM) and out.dtype == x.dtype

    ref16 = reference_forward_bf16(x, w1, b1, w2, b2)
    ref32 = reference_forward_f32(x, w1, b1, w2, b2)
    # Kernel matches the bf16-operand reference tightly (same math, f32 accum)...
    assert jnp.allclose(out, ref16, atol=1e-2, rtol=1e-2), "mismatch vs bf16 reference"
    # ...and stays close to the full-f32 PyTorch-equivalent reference.
    assert jnp.allclose(out, ref32, atol=8e-2, rtol=8e-2), "mismatch vs f32 reference"

    # Also exercise the device-default (large-tile, single-step) path once.
    out2 = jax.block_until_ready(autoencoder_forward(x, *params))
    assert jnp.allclose(out2, ref16, atol=1e-2, rtol=1e-2), "mismatch (default tile)"

    print("KERNEL_OK")
</pallas_src>

<mosaic_0001>
module attributes {stable_mosaic.version = 11 : i64} {
  func.func @_autoencoder_kernel(%arg0: i32, %arg1: memref<16x4096xf32, #tpu.memory_space<vmem>>, %arg2: memref<4096x128xbf16, #tpu.memory_space<vmem>>, %arg3: memref<1x128xf32, #tpu.memory_space<vmem>>, %arg4: memref<128x4096xbf16, #tpu.memory_space<vmem>>, %arg5: memref<1x4096xf32, #tpu.memory_space<vmem>>, %arg6: memref<16x4096xf32, #tpu.memory_space<vmem>>) attributes {dimension_semantics = [#tpu.dimension_semantics<parallel>], iteration_bounds = array<i64: 4>, scalar_prefetch = 0 : i64, scratch_operands = 0 : i64, tpu.core_type = #tpu.core_type<tc>, window_params = [{transform_indices = @transform_0, window_bounds = array<i64: 16, 4096>}, {pipeline_mode = #tpu.pipeline_mode<synchronous>, transform_indices = @transform_1, window_bounds = array<i64: 4096, 128>}, {pipeline_mode = #tpu.pipeline_mode<synchronous>, transform_indices = @transform_2, window_bounds = array<i64: 1, 128>}, {pipeline_mode = #tpu.pipeline_mode<synchronous>, transform_indices = @transform_3, window_bounds = array<i64: 128, 4096>}, {pipeline_mode = #tpu.pipeline_mode<synchronous>, transform_indices = @transform_4, window_bounds = array<i64: 1, 4096>}, {transform_indices = @transform_5, window_bounds = array<i64: 16, 4096>}]} {
    %c0 = arith.constant 0 : index
    %c0_0 = arith.constant 0 : index
    %0 = vector.load %arg1[%c0, %c0_0] : memref<16x4096xf32, #tpu.memory_space<vmem>>, vector<16x4096xf32>
    %1 = arith.truncf %0 : vector<16x4096xf32> to vector<16x4096xbf16>
    %c0_1 = arith.constant 0 : index
    %c0_2 = arith.constant 0 : index
    %2 = vector.load %arg2[%c0_1, %c0_2] : memref<4096x128xbf16, #tpu.memory_space<vmem>>, vector<4096x128xbf16>
    %cst = arith.constant dense<0.000000e+00> : vector<16x128xf32>
    %3 = tpu.matmul %1, %2, %cst {dimension_numbers = #tpu.dot_dimension_numbers<[1], [0], [0], [1], [0, 0, 1, 1], [], []>} : vector<16x4096xbf16>, vector<4096x128xbf16>, vector<16x128xf32> -> vector<16x128xf32>
    %c0_3 = arith.constant 0 : index
    %c0_4 = arith.constant 0 : index
    %4 = vector.load %arg3[%c0_3, %c0_4] : memref<1x128xf32, #tpu.memory_space<vmem>>, vector<1x128xf32>
    %5 = vector.broadcast %4 : vector<1x128xf32> to vector<16x128xf32>
    %6 = arith.addf %3, %5 : vector<16x128xf32>
    %cst_5 = arith.constant 0.000000e+00 : f32
    %7 = vector.broadcast %cst_5 : f32 to vector<16x128xf32>
    %8 = arith.maximumf %6, %7 : vector<16x128xf32>
    %9 = arith.truncf %8 : vector<16x128xf32> to vector<16x128xbf16>
    %c0_6 = arith.constant 0 : index
    %c0_7 = arith.constant 0 : index
    %10 = vector.load %arg4[%c0_6, %c0_7] : memref<128x4096xbf16, #tpu.memory_space<vmem>>, vector<128x4096xbf16>
    %cst_8 = arith.constant dense<0.000000e+00> : vector<16x4096xf32>
    %11 = tpu.matmul %9, %10, %cst_8 {dimension_numbers = #tpu.dot_dimension_numbers<[1], [0], [0], [1], [0, 0, 1, 1], [], []>} : vector<16x128xbf16>, vector<128x4096xbf16>, vector<16x4096xf32> -> vector<16x4096xf32>
    %c0_9 = arith.constant 0 : index
    %c0_10 = arith.constant 0 : index
    %12 = vector.load %arg5[%c0_9, %c0_10] : memref<1x4096xf32, #tpu.memory_space<vmem>>, vector<1x4096xf32>
    %13 = vector.broadcast %12 : vector<1x4096xf32> to vector<16x4096xf32>
    %14 = arith.addf %11, %13 : vector<16x4096xf32>
    %c0_11 = arith.constant 0 : index
    %c0_12 = arith.constant 0 : index
    %15 = vector.load %arg6[%c0_11, %c0_12] : memref<16x4096xf32, #tpu.memory_space<vmem>>, vector<16x4096xf32>
    tpu.vector_store %arg6[%c0_11, %c0_12], %14 {strides = array<i32>} : memref<16x4096xf32, #tpu.memory_space<vmem>>, vector<16x4096xf32>,
    return
  }
  func.func @transform_0(%arg0: i32) -> (i32, i32) {
    %c0_i32 = arith.constant 0 : i32
    %c0_i32_0 = arith.constant 0 : i32
    return %arg0, %c0_i32 : i32, i32
  }
  func.func @transform_1(%arg0: i32) -> (i32, i32) {
    %c0_i32 = arith.constant 0 : i32
    %c0_i32_0 = arith.constant 0 : i32
    %c0_i32_1 = arith.constant 0 : i32
    return %c0_i32, %c0_i32_0 : i32, i32
  }
  func.func @transform_2(%arg0: i32) -> (i32, i32) {
    %c0_i32 = arith.constant 0 : i32
    %c0_i32_0 = arith.constant 0 : i32
    %c0_i32_1 = arith.constant 0 : i32
    return %c0_i32, %c0_i32_0 : i32, i32
  }
  func.func @transform_3(%arg0: i32) -> (i32, i32) {
    %c0_i32 = arith.constant 0 : i32
    %c0_i32_0 = arith.constant 0 : i32
    %c0_i32_1 = arith.constant 0 : i32
    return %c0_i32, %c0_i32_0 : i32, i32
  }
  func.func @transform_4(%arg0: i32) -> (i32, i32) {
    %c0_i32 = arith.constant 0 : i32
    %c0_i32_0 = arith.constant 0 : i32
    %c0_i32_1 = arith.constant 0 : i32
    return %c0_i32, %c0_i32_0 : i32, i32
  }
  func.func @transform_5(%arg0: i32) -> (i32, i32) {
    %c0_i32 = arith.constant 0 : i32
    %c0_i32_0 = arith.constant 0 : i32
    return %arg0, %c0_i32 : i32, i32
  }
}

module attributes {stable_mosaic.version = 11 : i64} {
  func.func @_autoencoder_kernel(%arg0: i32, %arg1: memref<16x4096xf32, #tpu.memory_space<vmem>>, %arg2: memref<4096x128xbf16, #tpu.memory_space<vmem>>, %arg3: memref<1x128xf32, #tpu.memory_space<vmem>>, %arg4: memref<128x4096xbf16, #tpu.memory_space<vmem>>, %arg5: memref<1x4096xf32, #tpu.memory_space<vmem>>, %arg6: memref<16x4096xf32, #tpu.memory_space<vmem>>) attributes {dimension_semantics = [#tpu.dimension_semantics<parallel>], iteration_bounds = array<i64: 4>, scalar_prefetch = 0 : i64, scratch_operands = 0 : i64, tpu.core_type = #tpu.core_type<tc>, window_params = [{transform_indices = @transform_0, window_bounds = array<i64: 16, 4096>}, {pipeline_mode = #tpu.pipeline_mode<synchronous>, transform_indices = @transform_1, window_bounds = array<i64: 4096, 128>}, {pipeline_mode = #tpu.pipeline_mode<synchronous>, transform_indices = @transform_2, window_bounds = array<i64: 1, 128>}, {pipeline_mode = #tpu.pipeline_mode<synchronous>, transform_indices = @transform_3, window_bounds = array<i64: 128, 4096>}, {pipeline_mode = #tpu.pipeline_mode<synchronous>, transform_indices = @transform_4, window_bounds = array<i64: 1, 4096>}, {transform_indices = @transform_5, window_bounds = array<i64: 16, 4096>}]} {
    %c0 = arith.constant 0 : index
    %c0_0 = arith.constant 0 : index
    %0 = vector.load %arg1[%c0, %c0_0] : memref<16x4096xf32, #tpu.memory_space<vmem>>, vector<16x4096xf32>
    %1 = arith.truncf %0 : vector<16x4096xf32> to vector<16x4096xbf16>
    %c0_1 = arith.constant 0 : index
    %c0_2 = arith.constant 0 : index
    %2 = vector.load %arg2[%c0_1, %c0_2] : memref<4096x128xbf16, #tpu.memory_space<vmem>>, vector<4096x128xbf16>
    %cst = arith.constant dense<0.000000e+00> : vector<16x128xf32>
    %3 = tpu.matmul %1, %2, %cst {dimension_numbers = #tpu.dot_dimension_numbers<[1], [0], [0], [1], [0, 0, 1, 1], [], []>} : vector<16x4096xbf16>, vector<4096x128xbf16>, vector<16x128xf32> -> vector<16x128xf32>
    %c0_3 = arith.constant 0 : index
    %c0_4 = arith.constant 0 : index
    %4 = vector.load %arg3[%c0_3, %c0_4] : memref<1x128xf32, #tpu.memory_space<vmem>>, vector<1x128xf32>
    %5 = vector.broadcast %4 : vector<1x128xf32> to vector<16x128xf32>
    %6 = arith.addf %3, %5 : vector<16x128xf32>
    %cst_5 = arith.constant 0.000000e+00 : f32
    %7 = vector.broadcast %cst_5 : f32 to vector<16x128xf32>
    %8 = arith.maximumf %6, %7 : vector<16x128xf32>
    %9 = arith.truncf %8 : vector<16x128xf32> to vector<16x128xbf16>
    %c0_6 = arith.constant 0 : index
    %c0_7 = arith.constant 0 : index
    %10 = vector.load %arg4[%c0_6, %c0_7] : memref<128x4096xbf16, #tpu.memory_space<vmem>>, vector<128x4096xbf16>
    %cst_8 = arith.constant dense<0.000000e+00> : vector<16x4096xf32>
    %11 = tpu.matmul %9, %10, %cst_8 {dimension_numbers = #tpu.dot_dimension_numbers<[1], [0], [0], [1], [0, 0, 1, 1], [], []>} : vector<16x128xbf16>, vector<128x4096xbf16>, vector<16x4096xf32> -> vector<16x4096xf32>
    %c0_9 = arith.constant 0 : index
    %c0_10 = arith.constant 0 : index
    %12 = vector.load %arg5[%c0_9, %c0_10] : memref<1x4096xf32, #tpu.memory_space<vmem>>, vector<1x4096xf32>
    %13 = vector.broadcast %12 : vector<1x4096xf32> to vector<16x4096xf32>
    %14 = arith.addf %11, %13 : vector<16x4096xf32>
    %c0_11 = arith.constant 0 : index
    %c0_12 = arith.constant 0 : index
    %15 = vector.load %arg6[%c0_11, %c0_12] : memref<16x4096xf32, #tpu.memory_space<vmem>>, vector<16x4096xf32>
    tpu.vector_store %arg6[%c0_11, %c0_12], %14 {strides = array<i32>} : memref<16x4096xf32, #tpu.memory_space<vmem>>, vector<16x4096xf32>,
    return
  }
  func.func @transform_0(%arg0: i32) -> (i32, i32) {
    %c0_i32 = arith.constant 0 : i32
    %c0_i32_0 = arith.constant 0 : i32
    return %arg0, %c0_i32 : i32, i32
  }
  func.func @transform_1(%arg0: i32) -> (i32, i32) {
    %c0_i32 = arith.constant 0 : i32
    %c0_i32_0 = arith.constant 0 : i32
    %c0_i32_1 = arith.constant 0 : i32
    return %c0_i32, %c0_i32_0 : i32, i32
  }
  func.func @transform_2(%arg0: i32) -> (i32, i32) {
    %c0_i32 = arith.constant 0 : i32
    %c0_i32_0 = arith.constant 0 : i32
    %c0_i32_1 = arith.constant 0 : i32
    return %c0_i32, %c0_i32_0 : i32, i32
  }
  func.func @transform_3(%arg0: i32) -> (i32, i32) {
    %c0_i32 = arith.constant 0 : i32
    %c0_i32_0 = arith.constant 0 : i32
    %c0_i32_1 = arith.constant 0 : i32
    return %c0_i32, %c0_i32_0 : i32, i32
  }
  func.func @transform_4(%arg0: i32) -> (i32, i32) {
    %c0_i32 = arith.constant 0 : i32
    %c0_i32_0 = arith.constant 0 : i32
    %c0_i32_1 = arith.constant 0 : i32
    return %c0_i32, %c0_i32_0 : i32, i32
  }
  func.func @transform_5(%arg0: i32) -> (i32, i32) {
    %c0_i32 = arith.constant 0 : i32
    %c0_i32_0 = arith.constant 0 : i32
    return %arg0, %c0_i32 : i32, i32
  }
}

</mosaic_0001>

<bundles_post_ra>
// kernel: tpu_custom_call.1
= control target key start
LH: loop header
LB: loop body
LE: loop exit
PB: predicated region body
PF: predicated region fallthrough
CT: control target
= control target key end

     0   :  { %10 = vsyncpa [#allocation3], 0  ;;  %s7641_s0 = inlined_call_operand.hbm [shape: f32[50,4096], index: 0, kind: input, shape index: {}]   ;;  %s7642_s1 = inlined_call_operand.hbm [shape: bf16[4096,128], index: 1, kind: input, shape index: {}]   ;;  %s7643_s2 = inlined_call_operand.vmem [shape: f32[1,128], index: 2, kind: input, shape index: {}]   ;;  %s7644_s3 = inlined_call_operand.hbm [shape: bf16[128,4096], index: 3, kind: input, shape index: {}]   ;;  %s7645_s4 = inlined_call_operand.hbm [shape: f32[1,4096], index: 4, kind: input, shape index: {}]   ;;  %s7646_s5 = inlined_call_operand.hbm [shape: f32[50,4096], index: 5, kind: output, shape index: {}]  }
   0x1   :  { %12 = vsyncpa [#allocation3 + $0x1], 0 }
   0x2   :  { %13 = vsyncpa [#allocation6], 0 }
   0x3   :  { %14 = vsyncpa [#allocation9], 0 }
   0x4   :  { %15 = vsyncpa [#allocation4], 0 }
   0x5   :  { %17 = vsyncpa [#allocation4 + $0x1], 0  ;;  %s7156_s18 = smov 0   ;;  %s7158_s19 = smov 0  }
   0x6   :  { %s7160_s20 = smov 0   ;;  %s7162_s21 = smov 0  }
   0x7 LB: > { %s7177_s22 = sadd.s32 4294967295, %s7110_s21   ;;  %s5696_s23 = sadd.s32 4294967294, %s7110_s21   ;;  %s7110_s21 = sphi %s7162_s21, %s7665_s21   ;;  %s7106_s20 = sphi %s7160_s20, %s7664_s20   ;;  %s7102_s19 = sphi %s7158_s19, %s7663_s19   ;;  %s7098_s18 = sphi %s7156_s18, %s7662_s18  }
   0x8   : > { %s7181_s24 = sadd.s32 1, %s7110_s21   ;;  %s30_s25 = sadd.s32 1, %s7106_s20 }
   0x9   : > { %s27_s26 = ssub.s32 %s7110_s21, %s7181_s24  ;;  %p37_p0 = scmp.ne.s32.totalorder %s7106_s20, %s7102_s19 }
   0xa   : > { %p28_p1 = scmp.eq.s32.totalorder %s27_s26, 0  ;;  %p38_p2 = scmp.eq.s32.totalorder %s7110_s21, 0 }
   0xb   : > { %p43_p3 = scmp.ne.s32.totalorder %s7102_s19, %s7098_s18  ;;  %p7647_p4 = scmp.eq.s32.totalorder %s7177_s22, 0 }
   0xc   : > { %s7193_s27 = scalar_select %p28_p1, %s7106_s20, %s30_s25  }
   0xd   : > { %p7195_p5 = por %p38_p2, %p37_p0  ;;  %p7201_p6 = por %p7647_p4, %p43_p3 }
   0xe   : > { %p151_p7 = scmp.eq.s32.totalorder %s7177_s22, 3  ;;  %p157_p8 = scmp.eq.s32.totalorder %s5696_s23, 3 }
   0xf   : > { %s7650_s29 = scalar_select %p7201_p6, 1, 0 }
  0x10   : > { %p5697_p9 = scmp.ge.s32.totalorder %s7110_s21, 1  ;;  %p164_p10 = scmp.lt.s32.totalorder %s7110_s21, 5 }
  0x11   : > { %p7208_p11 = por %p151_p7, %p37_p0  ;;  %p7212_p12 = por %p157_p8, %p43_p3 }
  0x12   : > { %p7216_p13 = pnand %p5697_p9, %p164_p10  ;;  %s7112_s8 = smov [#allocation5]  }
  0x13   : > { %s7651_s30 = scalar_select %p7208_p11, 1, 0 }
  0x14   : > { %s7652_s6 = scalar_select %p7212_p12, 1, 0 }
  0x15   : > { %p6613_p1 = pneg %p7216_p13  ;;  %s176_s9 = sshll.u32 %s7112_s8, 4  ;;  %s177_s9 = int_to_ptr.vmem [resolvable:$true] %s176_s9 }
  0x16   : > { %s7113_s11 = smov [#allocation7]   ;;  %s6945_s13 = scalar_lea.vmem %s177_s9, 32768 }
  0x17   : > { %p7224_p2 = pnand %p6613_p1, %p7647_p4  ;;  %s192_s12 = sshll.u32 %s7113_s11, 4  ;;  %s193_s12 = int_to_ptr.vmem [resolvable:$true] %s192_s12 }
  0x18   : > { %p6946_p3 = scmp.ne.s32.totalorder %s177_s9, %s6945_s13  ;;  %p6953_p9 = scmp.lt.s32.totalorder %s177_s9, %s177_s9 }
  0x19   : > { %p6936_p0 = pneg %p7224_p2  ;;  %p6954_p10 = scmp.lt.s32.totalorder %s6945_s13, %s6945_s13 }
  0x1b   : > { %p6948_p7 = pnand %p6946_p3, %p6936_p0  ;;  %p6955_p12 = por %p6954_p10, %p6953_p9 }
  0x1d   : > { %p6949_p8 = pneg %p6948_p7 }
  0x1f   : > { %p6956_p1 = pnand %p6955_p12, %p6949_p8 }
  0x21   : > { %6959 = shalt.err (!%p6956_p1)
}
  0x22   : > { %s7114_s14 = smov 64   ;;  %s7115_s15 = smov 4  }
  0x23   : > { %6616 = dma.hbm_to_vmem [thread:$0]  (!%p7224_p2), %s7642_s1, 32768, %s177_s9, [#allocation6], %s7114_s14, %s7114_s14, %s7115_s15  }
  0x24   : > { %s6971_s23 = scalar_lea.vmem %s193_s12, 32768  ;;  %p6979_p11 = scmp.lt.s32.totalorder %s193_s12, %s193_s12 }
  0x25   : > { %p6972_p4 = scmp.ne.s32.totalorder %s193_s12, %s6971_s23  ;;  %p6980_p6 = scmp.lt.s32.totalorder %s6971_s23, %s6971_s23 }
  0x27   : > { %p6974_p3 = pnand %p6972_p4, %p6936_p0  ;;  %p6981_p9 = por %p6980_p6, %p6979_p11 }
  0x29   : > { %p6975_p7 = pneg %p6974_p3 }
  0x2b   : > { %p6982_p12 = pnand %p6981_p9, %p6975_p7 }
  0x2d   : > { %6985 = shalt.err (!%p6982_p12)
}
  0x2e   : > { %s7116_s25 = smov 2048   ;;  %s7117_s26 = smov 128  }
  0x2f   : > { %6619 = dma.hbm_to_vmem [thread:$0]  (!%p7224_p2), %s7644_s3, 32768, %s193_s12, [#allocation6], %s7116_s25, %s7116_s25, %s7117_s26  }
  0x30   : > { %s7118_s9 = smov [#allocation8]  }
  0x31   : > { %s206_s13 = sshll.u32 %s7118_s9, 4  ;;  %s207_s13 = int_to_ptr.vmem [resolvable:$true] %s206_s13 }
  0x32   : > { %s6997_s14 = scalar_lea.vmem %s207_s13, 512  ;;  %p7005_p11 = scmp.lt.s32.totalorder %s207_s13, %s207_s13 }
  0x33   : > { %p6998_p4 = scmp.ne.s32.totalorder %s207_s13, %s6997_s14  ;;  %p7006_p10 = scmp.lt.s32.totalorder %s6997_s14, %s6997_s14 }
  0x35   : > { %p7000_p8 = pnand %p6998_p4, %p6936_p0  ;;  %p7007_p1 = por %p7006_p10, %p7005_p11 }
  0x37   : > { %p7001_p6 = pneg %p7000_p8 }
  0x39   : > { %p7008_p3 = pnand %p7007_p1, %p7001_p6 }
  0x3b   : > { %7011 = shalt.err (!%p7008_p3)
}
  0x3c   : > { %6622 = dma.hbm_to_vmem [thread:$0]  (!%p7224_p2), %s7645_s4, 512, %s207_s13, [#allocation9]  }
  0x3d   : > { %p5701_p7 = scmp.ge.s32.totalorder %s7110_s21, 4 }
  0x3f   : > { %213 = sbr.rel (%p5701_p7) target bundleno = 100 (0x64), region = 32 }
  0x44   : > { %216 = sbr.rel (!%p7195_p5) target bundleno = 100 (0x64), region = 36  ;;  %s217_s12 = sand.u32 (%p7195_p5), 1, %s7106_s20  }
  0x45   : > { %s5703_s17 = sshll.u32 (%p7195_p5), %s7110_s21, 1  ;;  %s5702_s23 = sshll.u32 (%p7195_p5), %s217_s12, 9 }
  0x46   : > { %s223_s25 = ssub.s32 (%p7195_p5), 7, %s5703_s17  ;;  %s7262_s8 = scalar_lea.sflag (%p7195_p5), [#allocation3], %s217_s12 }
  0x47   : > { %p224_p0 = scmp.lt.s32.totalorder (%p7195_p5), %s223_s25, 2  ;;  %s221_s11 = scalar_lea.vmem (%p7195_p5), [#allocation2], %s5702_s23 }
  0x49   : > { %s7667_s25 = smov (!%p224_p0, %s223_s25), 2 }
  0x4a   : > { %s7259_s26 = sshll.u32 %s7667_s25, 12 }
  0x4b   : > { %s229_s10 = ssub.s32 8192, %s7259_s26 }
  0x4c   : > { %230 = vsyncadd %s7262_s8, %s229_s10  ;;  %p5706_p5 = scmp.ne.s32.totalorder %s7259_s26, 0  ;;  %s6243_s28 = sshll.u32 %s7110_s21, 13 }
  0x4d   : > { %s7270_s14 = scalar_lea.hbm %s7641_s0, %s6243_s28  ;;  %s236_s15 = sshll.u32 %s221_s11, 4  ;;  %s7272_s15 = int_to_ptr.vmem [resolvable:$true] %s236_s15 }
  0x4e   : > { %s7012_s16 = scalar_lea.hbm %s7270_s14, %s7259_s26  ;;  %s7016_s23 = scalar_lea.hbm %s7641_s0, 28672 }
  0x4f   : > { %p7013_p2 = scmp.ne.s32.totalorder %s7270_s14, %s7012_s16  ;;  %p7017_p4 = scmp.lt.s32.totalorder %s7270_s14, %s7641_s0 }
  0x50   : > { %p7018_p8 = scmp.lt.s32.totalorder %s7016_s23, %s7012_s16 }
  0x51   : > { %p7014_p9 = pnand %p7013_p2, %p5706_p5 }
  0x52   : > { %p7019_p6 = por %p7018_p8, %p7017_p4 }
  0x53   : > { %p7015_p12 = pneg %p7014_p9 }
  0x55   : > { %p7020_p11 = pnand %p7019_p6, %p7015_p12 }
  0x57   : > { %7023 = shalt.err (!%p7020_p11)
}
  0x58   : > { %s7024_s11 = scalar_lea.vmem %s7272_s15, %s7259_s26  ;;  %s7119_s28 = smov [#allocation2]  }
  0x59   : > { %p7025_p10 = scmp.ne.s32.totalorder %s7272_s15, %s7024_s11  ;;  %s7028_s9 = sshll.u32 %s7119_s28, 4  ;;  %s7029_s9 = int_to_ptr.vmem [resolvable:$false] %s7028_s9 }
  0x5a   : > { %s7030_s13 = scalar_lea.vmem %s7029_s9, 16384  ;;  %p7031_p7 = scmp.lt.s32.totalorder %s7272_s15, %s7029_s9 }
  0x5b   : > { %p7026_p1 = pnand %p7025_p10, %p5706_p5  ;;  %p7032_p0 = scmp.lt.s32.totalorder %s7030_s13, %s7024_s11 }
  0x5d   : > { %p7027_p3 = pneg %p7026_p1  ;;  %p7033_p2 = por %p7032_p0, %p7031_p7 }
  0x5f   : > { %p7034_p9 = pnand %p7033_p2, %p7027_p3 }
  0x61   : > { %7037 = shalt.err (!%p7034_p9)
}
  0x62   : > { %s7120_s16 = smov 4096   ;;  %s7121_s12 = smov 256  }
  0x63   : > { %242 = dma.hbm_to_vmem [thread:$0]  (%p5706_p5), %s7270_s14, %s7259_s26, %s7272_s15, %s7262_s8, %s7120_s16, %s7120_s16, %s7121_s12  }
  0x64 PF: > { %248 = sbr.rel (%p7216_p13) target bundleno = 1032 (0x408), region = 40  ;;  %s7301_s17 = sand.u32 (!%p7216_p13), 1, %s7102_s19  }
  0x65   : > { %s5712_s23 = sshll.u32 (!%p7216_p13), %s7301_s17, 9  ;;  %s251_s25 = scalar_lea.sflag (!%p7216_p13), [#allocation3], %s7301_s17 }
  0x66   : > { %s7307_s10 = scalar_lea.vmem (!%p7216_p13), [#allocation2], %s5712_s23  ;;  %p7655_p12 = scmp.ne.s32.totalorder (!%p7216_p13), %s7650_s29, 0 }
  0x69   : > { %7081 = dma.done.wait (%p7655_p12), %s251_s25, 8192  }
  0x6a   : > { %7083 = vsyncadd (%p7655_p12), %s251_s25, 4294959104  ;;  %p7656_p5 = scmp.eq.s32.totalorder %s7177_s22, 0 }
  0x6c   : > { %7085 = dma.done.wait (%p7656_p5), [#allocation6], 65536   ;;  %p7657_p13 = pmov %p7656_p5 }
  0x6d   : > { %p7658_p4 = pmov %p7656_p5 }
  0x6e   : > { %7087 = vsyncadd (%p7657_p13), [#allocation6], 4294901760 }
  0x6f   : > { %7089 = dma.done.wait (%p7658_p4), [#allocation9], 512   ;;  %p7659_p8 = pmov %p7658_p4 }
  0x70   : > { %v6678_v0 = vld [vmem:[#allocation5 + $0x78] sm:$0xff]   ;;  %v6682_v4 = vld [vmem:[#allocation5 + $0x70] sm:$0xff]   ;;  %v6686_v8 = vld [vmem:[#allocation5 + $0x68] sm:$0xff]   ;;  %s7466_s26 = scalar_lea.vmem [#allocation10], %s5712_s23  ;;  %s5573_s8 = scalar_lea.sflag [#allocation4], %s7301_s17 }
  0x71   : > { %7091 = vsyncadd (%p7659_p8), [#allocation9], 4294966784  ;;  %v6679_v1 = vld [vmem:[#allocation5 + $0xf8] sm:$0xff]   ;;  %6247 = vmatprep.subr.bf16.mxu0 %v6678_v0  ;;  %v6683_v5 = vld [vmem:[#allocation5 + $0xf0] sm:$0xff]   ;;  %p7660_p6 = scmp.ne.s32.totalorder %s7651_s30, 0 }
  0x72   : > { %v6680_v2 = vld [vmem:[#allocation5 + $0x38] sm:$0xff]   ;;  %6269 = vmatprep.subr.bf16.mxu1 %v6679_v1  ;;  %v6684_v6 = vld [vmem:[#allocation5 + $0x30] sm:$0xff]   ;;  %v6687_v9 = vld [vmem:[#allocation5 + $0xe8] sm:$0xff]   ;;  %s6231_s14 = sshll.u32 (%p7660_p6), %s7177_s22, 1 }
  0x73   : > { %v6681_v3 = vld [vmem:[#allocation5 + $0xb8] sm:$0xff]   ;;  %6248 = vmatpush3.bf16.msra.mxu0 %v6680_v2  ;;  %v6685_v7 = vld [vmem:[#allocation5 + $0xb0] sm:$0xff]   ;;  %v6688_v10 = vld [vmem:[#allocation5 + $0x28] sm:$0xff]   ;;  %s5581_s15 = ssub.s32 (%p7660_p6), 7, %s6231_s14 }
  0x74   : > { %6270 = vmatpush3.bf16.msra.mxu1 %v6681_v3  ;;  %6249 = vmatprep.subr.bf16.mxu0 %v6682_v4  ;;  %v6689_v11 = vld [vmem:[#allocation5 + $0xa8] sm:$0xff]   ;;  %v6690_v12 = vld [vmem:[#allocation5 + $0x60] sm:$0xff]   ;;  %v6694_v16 = vld [vmem:[#allocation5 + $0x58] sm:$0xff]   ;;  %p5582_p11 = scmp.lt.s32.totalorder (%p7660_p6), %s5581_s15, 2 }
  0x75   : > { %6271 = vmatprep.subr.bf16.mxu1 %v6683_v5  ;;  %v6691_v13 = vld [vmem:[#allocation5 + $0xe0] sm:$0xff]   ;;  %v6695_v17 = vld [vmem:[#allocation5 + $0xd8] sm:$0xff]   ;;  %v6698_v20 = vld [vmem:[#allocation5 + $0x50] sm:$0xff]  }
  0x76   : > { %v6692_v14 = vld [vmem:[#allocation5 + $0x20] sm:$0xff]   ;;  %v6696_v18 = vld [vmem:[#allocation5 + $0x18] sm:$0xff]   ;;  %v6699_v21 = vld [vmem:[#allocation5 + $0xd0] sm:$0xff]  }
  0x77   : > { %6250 = vmatpush3.bf16.msra.mxu0 %v6684_v6  ;;  %v6693_v15 = vld [vmem:[#allocation5 + $0xa0] sm:$0xff]   ;;  %v6697_v19 = vld [vmem:[#allocation5 + $0x98] sm:$0xff]   ;;  %v6700_v22 = vld [vmem:[#allocation5 + $0x10] sm:$0xff]  }
  0x78   : > { %6272 = vmatpush3.bf16.msra.mxu1 %v6685_v7  ;;  %6251 = vmatprep.subr.bf16.mxu0 %v6686_v8  ;;  %v6701_v23 = vld [vmem:[#allocation5 + $0x90] sm:$0xff]   ;;  %v6702_v24 = vld [vmem:[#allocation5 + $0x48] sm:$0xff]   ;;  %v6706_v28 = vld [vmem:[#allocation5 + $0x40] sm:$0xff]  }
  0x79   : > { %6273 = vmatprep.subr.bf16.mxu1 %v6687_v9  ;;  %v6703_v25 = vld [vmem:[#allocation5 + $0xc8] sm:$0xff]   ;;  %v6707_v29 = vld [vmem:[#allocation5 + $0xc0] sm:$0xff]   ;;  %v309_v34 = vld [vmem:[%s7307_s10 + $0x18] sm:$0xff] }
  0x7a   : > { %v6704_v26 = vld [vmem:[#allocation5 + $0x8] sm:$0xff]   ;;  %v6708_v30 = vld [vmem:[#allocation5] sm:$0xff]   ;;  %v341_v36 = vld [vmem:[%s7307_s10 + $0x118] sm:$0xff] }
  0x7b   : > { %6252 = vmatpush3.bf16.msra.mxu0 %v6688_v10  ;;  %v6705_v27 = vld [vmem:[#allocation5 + $0x88] sm:$0xff]   ;;  %v6709_v31 = vld [vmem:[#allocation5 + $0x80] sm:$0xff]   ;;  %v373_v39 = vpack.c.bf16 %v341_v36, %v309_v34  ;;  %v308_v41 = vld [vmem:[%s7307_s10 + $0x10] sm:$0xff] }
  0x7c   : > { %6274 = vmatpush3.bf16.msra.mxu1 %v6689_v11  ;;  %6253 = vmatprep.subr.bf16.mxu0 %v6690_v12  ;;  %v307_v32 = vld [vmem:[%s7307_s10 + $0x8] sm:$0xff]  ;;  %v306_v37 = vld [vmem:[%s7307_s10] sm:$0xff]  ;;  %v340_v42 = vld [vmem:[%s7307_s10 + $0x110] sm:$0xff] }
  0x7d   : > { %6275 = vmatprep.subr.bf16.mxu1 %v6691_v13  ;;  %v339_v33 = vld [vmem:[%s7307_s10 + $0x108] sm:$0xff]  ;;  %v338_v38 = vld [vmem:[%s7307_s10 + $0x100] sm:$0xff]  ;;  %v372_v43 = vpack.c.bf16 %v340_v42, %v308_v41  ;;  %v6710_v44 = vld [vmem:[#allocation5 + $0x178] sm:$0xff]   ;;  %2530 = vmatprep.mubr.bf16.mxu1 %v373_v39 }
  0x7e   : > { %v371_v35 = vpack.c.bf16 %v339_v33, %v307_v32  ;;  %v370_v40 = vpack.c.bf16 %v338_v38, %v306_v37  ;;  %v6711_v45 = vld [vmem:[#allocation5 + $0x1f8] sm:$0xff]   ;;  %v6714_v48 = vld [vmem:[#allocation5 + $0x170] sm:$0xff]   ;;  %v6718_v52 = vld [vmem:[#allocation5 + $0x168] sm:$0xff]  }
  0x7f   : > { %6254 = vmatpush3.bf16.msra.mxu0 %v6692_v14  ;;  %v6712_v46 = vld [vmem:[#allocation5 + $0x138] sm:$0xff]   ;;  %v6715_v49 = vld [vmem:[#allocation5 + $0x1f0] sm:$0xff]   ;;  %v6719_v53 = vld [vmem:[#allocation5 + $0x1e8] sm:$0xff]  }
  0x80   : > { %6276 = vmatpush3.bf16.msra.mxu1 %v6693_v15  ;;  %6255 = vmatprep.subr.bf16.mxu0 %v6694_v16  ;;  %v6713_v47 = vld [vmem:[#allocation5 + $0x1b8] sm:$0xff]   ;;  %v6716_v50 = vld [vmem:[#allocation5 + $0x130] sm:$0xff]   ;;  %v6720_v54 = vld [vmem:[#allocation5 + $0x128] sm:$0xff]  }
  0x81   : > { %6277 = vmatprep.subr.bf16.mxu1 %v6695_v17  ;;  %2489 = vmatprep.mubr.bf16.mxu0 %v371_v35  ;;  %v6717_v51 = vld [vmem:[#allocation5 + $0x1b0] sm:$0xff]   ;;  %v6721_v55 = vld [vmem:[#allocation5 + $0x1a8] sm:$0xff]   ;;  %v6722_v56 = vld [vmem:[#allocation5 + $0x160] sm:$0xff]  }
  0x82   : > { %v6723_v57 = vld [vmem:[#allocation5 + $0x1e0] sm:$0xff]   ;;  %v6726_v60 = vld [vmem:[#allocation5 + $0x158] sm:$0xff]   ;;  %v6730_v0 = vld [vmem:[#allocation5 + $0x150] sm:$0xff]  }
  0x83   : > { %6256 = vmatpush3.bf16.msra.mxu0 %v6696_v18  ;;  %v6724_v58 = vld [vmem:[#allocation5 + $0x120] sm:$0xff]   ;;  %v6727_v61 = vld [vmem:[#allocation5 + $0x1d8] sm:$0xff]   ;;  %v6731_v1 = vld [vmem:[#allocation5 + $0x1d0] sm:$0xff]  }
  0x84   : > { %6278 = vmatpush3.bf16.msra.mxu1 %v6697_v19  ;;  %6257 = vmatprep.subr.bf16.mxu0 %v6698_v20  ;;  %v6725_v59 = vld [vmem:[#allocation5 + $0x1a0] sm:$0xff]   ;;  %v6728_v62 = vld [vmem:[#allocation5 + $0x118] sm:$0xff]   ;;  %v6732_v2 = vld [vmem:[#allocation5 + $0x110] sm:$0xff]  }
  0x85   : > { %6279 = vmatprep.subr.bf16.mxu1 %v6699_v21  ;;  %v6729_v63 = vld [vmem:[#allocation5 + $0x198] sm:$0xff]   ;;  %v6733_v3 = vld [vmem:[#allocation5 + $0x190] sm:$0xff]   ;;  %v6734_v4 = vld [vmem:[#allocation5 + $0x148] sm:$0xff]  }
  0x86   : > { %v6735_v5 = vld [vmem:[#allocation5 + $0x1c8] sm:$0xff]   ;;  %v6738_v8 = vld [vmem:[#allocation5 + $0x140] sm:$0xff]   ;;  %v313_v14 = vld [vmem:[%s7307_s10 + $0x38] sm:$0xff] }
  0x87   : > { %6258 = vmatpush3.bf16.msra.mxu0 %v6700_v22  ;;  %v6736_v6 = vld [vmem:[#allocation5 + $0x108] sm:$0xff]   ;;  %v6739_v9 = vld [vmem:[#allocation5 + $0x1c0] sm:$0xff]   ;;  %v345_v15 = vld [vmem:[%s7307_s10 + $0x138] sm:$0xff] }
  0x88   : > { %6280 = vmatpush3.bf16.msra.mxu1 %v6701_v23  ;;  %6259 = vmatprep.subr.bf16.mxu0 %v6702_v24  ;;  %v6737_v7 = vld [vmem:[#allocation5 + $0x188] sm:$0xff]   ;;  %v6740_v10 = vld [vmem:[#allocation5 + $0x100] sm:$0xff]   ;;  %v377_v17 = vpack.c.bf16 %v345_v15, %v313_v14  ;;  %v312_v20 = vld [vmem:[%s7307_s10 + $0x30] sm:$0xff] }
  0x89   : > { %6281 = vmatprep.subr.bf16.mxu1 %v6703_v25  ;;  %v6741_v11 = vld [vmem:[#allocation5 + $0x180] sm:$0xff]   ;;  %v311_v12 = vld [vmem:[%s7307_s10 + $0x28] sm:$0xff]  ;;  %v344_v22 = vld [vmem:[%s7307_s10 + $0x130] sm:$0xff] }
  0x8a   : > { %v343_v13 = vld [vmem:[%s7307_s10 + $0x128] sm:$0xff]  ;;  %v310_v18 = vld [vmem:[%s7307_s10 + $0x20] sm:$0xff]  ;;  %v376_v23 = vpack.c.bf16 %v344_v22, %v312_v20  ;;  %v6742_v24 = vld [vmem:[#allocation5 + $0x278] sm:$0xff]  }
  0x8b   : > { %6260 = vmatpush3.bf16.msra.mxu0 %v6704_v26  ;;  %v375_v16 = vpack.c.bf16 %v343_v13, %v311_v12  ;;  %v342_v19 = vld [vmem:[%s7307_s10 + $0x120] sm:$0xff]  ;;  %v6743_v25 = vld [vmem:[#allocation5 + $0x2f8] sm:$0xff]   ;;  %v6750_v32 = vld [vmem:[#allocation5 + $0x268] sm:$0xff]  }
  0x8c   : > { %6282 = vmatpush3.bf16.msra.mxu1 %v6705_v27  ;;  %6261 = vmatprep.subr.bf16.mxu0 %v6706_v28  ;;  %v374_v21 = vpack.c.bf16 %v342_v19, %v310_v18  ;;  %v6744_v26 = vld [vmem:[#allocation5 + $0x238] sm:$0xff]   ;;  %v6746_v28 = vld [vmem:[#allocation5 + $0x270] sm:$0xff]   ;;  %v6751_v33 = vld [vmem:[#allocation5 + $0x2e8] sm:$0xff]  }
  0x8d   : > { %6283 = vmatprep.subr.bf16.mxu1 %v6707_v29  ;;  %v6745_v27 = vld [vmem:[#allocation5 + $0x2b8] sm:$0xff]   ;;  %v6747_v29 = vld [vmem:[#allocation5 + $0x2f0] sm:$0xff]   ;;  %v6752_v34 = vld [vmem:[#allocation5 + $0x228] sm:$0xff]  }
  0x8e   : > { %v6753_v35 = vld [vmem:[#allocation5 + $0x2a8] sm:$0xff]   ;;  %v6754_v36 = vld [vmem:[#allocation5 + $0x260] sm:$0xff]   ;;  %v6759_v41 = vld [vmem:[#allocation5 + $0x2d8] sm:$0xff]  }
  0x8f   : > { %6262 = vmatpush3.bf16.msra.mxu0 %v6708_v30  ;;  %v6748_v30 = vld [vmem:[#allocation5 + $0x230] sm:$0xff]   ;;  %v6755_v37 = vld [vmem:[#allocation5 + $0x2e0] sm:$0xff]   ;;  %v6760_v42 = vld [vmem:[#allocation5 + $0x218] sm:$0xff]  }
  0x90   : > { %6284 = vmatpush3.bf16.msra.mxu1 %v6709_v31  ;;  %6291 = vmatprep.subr.bf16.mxu0 %v6710_v44  ;;  %v6749_v31 = vld [vmem:[#allocation5 + $0x2b0] sm:$0xff]   ;;  %v6756_v38 = vld [vmem:[#allocation5 + $0x220] sm:$0xff]   ;;  %v6782_v12 = vld [vmem:[#allocation5 + $0x368] sm:$0xff]  }
  0x91   : > { %6313 = vmatprep.subr.bf16.mxu1 %v6711_v45  ;;  %v6757_v39 = vld [vmem:[#allocation5 + $0x2a0] sm:$0xff]   ;;  %v6762_v44 = vld [vmem:[#allocation5 + $0x250] sm:$0xff]   ;;  %v6783_v13 = vld [vmem:[#allocation5 + $0x3e8] sm:$0xff]  }
  0x92   : > { %2490 = vmatmul.mubr.bf16.vlgmr.msra.gmra.mxu0 %v370_v40  ;;  %v6758_v40 = vld [vmem:[#allocation5 + $0x258] sm:$0xff]   ;;  %v6763_v45 = vld [vmem:[#allocation5 + $0x2d0] sm:$0xff]   ;;  %v6784_v14 = vld [vmem:[#allocation5 + $0x328] sm:$0xff]  }
  0x93   : > { %2531 = vmatmul.mubr.bf16.vlgmr.msra.gmra.mxu1 %v372_v43  ;;  %6292 = vmatpush3.bf16.msra.mxu0 %v6712_v46  ;;  %v6761_v43 = vld [vmem:[#allocation5 + $0x298] sm:$0xff]   ;;  %v6764_v46 = vld [vmem:[#allocation5 + $0x210] sm:$0xff]   ;;  %v6785_v15 = vld [vmem:[#allocation5 + $0x3a8] sm:$0xff]  }
  0x94   : > { %6314 = vmatpush3.bf16.msra.mxu1 %v6713_v47  ;;  %6293 = vmatprep.subr.bf16.mxu0 %v6714_v48  ;;  %v6765_v47 = vld [vmem:[#allocation5 + $0x290] sm:$0xff]   ;;  %v6766_v48 = vld [vmem:[#allocation5 + $0x248] sm:$0xff]   ;;  %v6788_v18 = vld [vmem:[#allocation5 + $0x320] sm:$0xff]  }
  0x95   : > { %6315 = vmatprep.subr.bf16.mxu1 %v6715_v49  ;;  %2571 = vmatprep.mubr.bf16.mxu0 %v375_v16  ;;  %v6767_v49 = vld [vmem:[#allocation5 + $0x2c8] sm:$0xff]   ;;  %v6786_v16 = vld [vmem:[#allocation5 + $0x360] sm:$0xff]   ;;  %v6790_v20 = vld [vmem:[#allocation5 + $0x358] sm:$0xff]  }
  0x96   : > { %2612 = vmatprep.mubr.bf16.mxu1 %v377_v17  ;;  %v6787_v17 = vld [vmem:[#allocation5 + $0x3e0] sm:$0xff]   ;;  %v6792_v22 = vld [vmem:[#allocation5 + $0x318] sm:$0xff]  }
  0x97   : > { %6294 = vmatpush3.bf16.msra.mxu0 %v6716_v50  ;;  %v6768_v50 = vld [vmem:[#allocation5 + $0x208] sm:$0xff]   ;;  %v6789_v19 = vld [vmem:[#allocation5 + $0x3a0] sm:$0xff]  }
  0x98   : > { %6316 = vmatpush3.bf16.msra.mxu1 %v6717_v51  ;;  %6295 = vmatprep.subr.bf16.mxu0 %v6718_v52  ;;  %v6769_v51 = vld [vmem:[#allocation5 + $0x288] sm:$0xff]   ;;  %v6770_v52 = vld [vmem:[#allocation5 + $0x240] sm:$0xff]  }
  0x99   : > { %6317 = vmatprep.subr.bf16.mxu1 %v6719_v53  ;;  %v6771_v53 = vld [vmem:[#allocation5 + $0x2c0] sm:$0xff]  }
  0x9b   : > { %6296 = vmatpush3.bf16.msra.mxu0 %v6720_v54  ;;  %v6772_v54 = vld [vmem:[#allocation5 + $0x200] sm:$0xff]  }
  0x9c   : > { %6318 = vmatpush3.bf16.msra.mxu1 %v6721_v55  ;;  %6297 = vmatprep.subr.bf16.mxu0 %v6722_v56  ;;  %v6773_v55 = vld [vmem:[#allocation5 + $0x280] sm:$0xff]   ;;  %v315_v56 = vld [vmem:[%s7307_s10 + $0x48] sm:$0xff] }
  0x9d   : > { %6319 = vmatprep.subr.bf16.mxu1 %v6723_v57  ;;  %v347_v57 = vld [vmem:[%s7307_s10 + $0x148] sm:$0xff] }
  0x9f   : > { %6298 = vmatpush3.bf16.msra.mxu0 %v6724_v58  ;;  %v379_v58 = vpack.c.bf16 %v347_v57, %v315_v56  ;;  %v6814_v56 = vld [vmem:[#allocation5 + $0x468] sm:$0xff]  }
  0xa0   : > { %6320 = vmatpush3.bf16.msra.mxu1 %v6725_v59  ;;  %6299 = vmatprep.subr.bf16.mxu0 %v6726_v60  ;;  %v317_v59 = vld [vmem:[%s7307_s10 + $0x58] sm:$0xff]  ;;  %v6815_v57 = vld [vmem:[#allocation5 + $0x4e8] sm:$0xff]  }
  0xa1   : > { %6321 = vmatprep.subr.bf16.mxu1 %v6727_v61  ;;  %v349_v60 = vld [vmem:[%s7307_s10 + $0x158] sm:$0xff]  ;;  %v314_v61 = vld [vmem:[%s7307_s10 + $0x40] sm:$0xff] }
  0xa3   : > { %6300 = vmatpush3.bf16.msra.mxu0 %v6728_v62  ;;  %v381_v62 = vpack.c.bf16 %v349_v60, %v317_v59  ;;  %v6817_v59 = vld [vmem:[#allocation5 + $0x4a8] sm:$0xff]   ;;  %v6818_v60 = vld [vmem:[#allocation5 + $0x460] sm:$0xff]  }
  0xa4   : > { %6322 = vmatpush3.bf16.msra.mxu1 %v6729_v63  ;;  %6301 = vmatprep.subr.bf16.mxu0 %v6730_v0  ;;  %v346_v63 = vld [vmem:[%s7307_s10 + $0x140] sm:$0xff]  ;;  %v316_v0 = vld [vmem:[%s7307_s10 + $0x50] sm:$0xff] }
  0xa5   : > { %6323 = vmatprep.subr.bf16.mxu1 %v6731_v1  ;;  %v348_v1 = vld [vmem:[%s7307_s10 + $0x150] sm:$0xff] }
  0xa7   : > { %6302 = vmatpush3.bf16.msra.mxu0 %v6732_v2  ;;  %v378_v2 = vpack.c.bf16 %v346_v63, %v314_v61  ;;  %v6819_v61 = vld [vmem:[#allocation5 + $0x4e0] sm:$0xff]  }
  0xa8   : > { %6324 = vmatpush3.bf16.msra.mxu1 %v6733_v3  ;;  %6303 = vmatprep.subr.bf16.mxu0 %v6734_v4  ;;  %v380_v3 = vpack.c.bf16 %v348_v1, %v316_v0  ;;  %v6774_v4 = vld [vmem:[#allocation5 + $0x378] sm:$0xff]   ;;  %v6821_v63 = vld [vmem:[#allocation5 + $0x4a0] sm:$0xff]  }
  0xa9   : > { %6325 = vmatprep.subr.bf16.mxu1 %v6735_v5  ;;  %v6775_v5 = vld [vmem:[#allocation5 + $0x3f8] sm:$0xff]  }
  0xaa   : > { %v6822_v0 = vld [vmem:[#allocation5 + $0x458] sm:$0xff]  }
  0xab   : > { %6304 = vmatpush3.bf16.msra.mxu0 %v6736_v6  ;;  %v6776_v6 = vld [vmem:[#allocation5 + $0x338] sm:$0xff]  }
  0xac   : > { %6326 = vmatpush3.bf16.msra.mxu1 %v6737_v7  ;;  %6305 = vmatprep.subr.bf16.mxu0 %v6738_v8  ;;  %v6777_v7 = vld [vmem:[#allocation5 + $0x3b8] sm:$0xff]   ;;  %v6778_v8 = vld [vmem:[#allocation5 + $0x370] sm:$0xff]  }
  0xad   : > { %6327 = vmatprep.subr.bf16.mxu1 %v6739_v9  ;;  %v6779_v9 = vld [vmem:[#allocation5 + $0x3f0] sm:$0xff]   ;;  %v6823_v1 = vld [vmem:[#allocation5 + $0x4d8] sm:$0xff]  }
  0xaf   : > { %6306 = vmatpush3.bf16.msra.mxu0 %v6740_v10  ;;  %v6780_v10 = vld [vmem:[#allocation5 + $0x330] sm:$0xff]  }
  0xb0   : > { %6328 = vmatpush3.bf16.msra.mxu1 %v6741_v11  ;;  %6335 = vmatprep.subr.bf16.mxu0 %v6742_v24  ;;  %v6781_v11 = vld [vmem:[#allocation5 + $0x3b0] sm:$0xff]  }
  0xb1   : > { %6357 = vmatprep.subr.bf16.mxu1 %v6743_v25  ;;  %v6794_v24 = vld [vmem:[#allocation5 + $0x350] sm:$0xff]  }
  0xb2   : > { %2572 = vmatmul.mubr.bf16.vlgmr.msra.gmra.mxu0 %v374_v21  ;;  %v6791_v21 = vld [vmem:[#allocation5 + $0x3d8] sm:$0xff]   ;;  %v6795_v25 = vld [vmem:[#allocation5 + $0x3d0] sm:$0xff]  }
  0xb3   : > { %2613 = vmatmul.mubr.bf16.vlgmr.msra.gmra.mxu1 %v376_v23  ;;  %6336 = vmatpush3.bf16.msra.mxu0 %v6744_v26  ;;  %v6793_v23 = vld [vmem:[#allocation5 + $0x398] sm:$0xff]   ;;  %v6796_v26 = vld [vmem:[#allocation5 + $0x310] sm:$0xff]  }
  0xb4   : > { %6358 = vmatpush3.bf16.msra.mxu1 %v6745_v27  ;;  %6337 = vmatprep.subr.bf16.mxu0 %v6746_v28  ;;  %v6797_v27 = vld [vmem:[#allocation5 + $0x390] sm:$0xff]   ;;  %v6798_v28 = vld [vmem:[#allocation5 + $0x348] sm:$0xff]  }
  0xb5   : > { %6359 = vmatprep.subr.bf16.mxu1 %v6747_v29  ;;  %2653 = vmatprep.mubr.bf16.mxu0 %v379_v58  ;;  %v6799_v29 = vld [vmem:[#allocation5 + $0x3c8] sm:$0xff]  }
  0xb6   : > { %2694 = vmatprep.mubr.bf16.mxu1 %v381_v62  ;;  %v6816_v58 = vld [vmem:[#allocation5 + $0x428] sm:$0xff]   ;;  %v6820_v62 = vld [vmem:[#allocation5 + $0x420] sm:$0xff]  }
  0xb7   : > { %6338 = vmatpush3.bf16.msra.mxu0 %v6748_v30  ;;  %v6800_v30 = vld [vmem:[#allocation5 + $0x308] sm:$0xff]  }
  0xb8   : > { %6360 = vmatpush3.bf16.msra.mxu1 %v6749_v31  ;;  %6339 = vmatprep.subr.bf16.mxu0 %v6750_v32  ;;  %v6801_v31 = vld [vmem:[#allocation5 + $0x388] sm:$0xff]   ;;  %v6802_v32 = vld [vmem:[#allocation5 + $0x340] sm:$0xff]  }
  0xb9   : > { %6361 = vmatprep.subr.bf16.mxu1 %v6751_v33  ;;  %v6803_v33 = vld [vmem:[#allocation5 + $0x3c0] sm:$0xff]  }
  0xbb   : > { %6340 = vmatpush3.bf16.msra.mxu0 %v6752_v34  ;;  %v6804_v34 = vld [vmem:[#allocation5 + $0x300] sm:$0xff]  }
  0xbc   : > { %6362 = vmatpush3.bf16.msra.mxu1 %v6753_v35  ;;  %6341 = vmatprep.subr.bf16.mxu0 %v6754_v36  ;;  %v6805_v35 = vld [vmem:[#allocation5 + $0x380] sm:$0xff]   ;;  %v319_v36 = vld [vmem:[%s7307_s10 + $0x68] sm:$0xff] }
  0xbd   : > { %6363 = vmatprep.subr.bf16.mxu1 %v6755_v37  ;;  %v351_v37 = vld [vmem:[%s7307_s10 + $0x168] sm:$0xff] }
  0xbf   : > { %6342 = vmatpush3.bf16.msra.mxu0 %v6756_v38  ;;  %v321_v38 = vld [vmem:[%s7307_s10 + $0x78] sm:$0xff] }
  0xc0   : > { %6364 = vmatpush3.bf16.msra.mxu1 %v6757_v39  ;;  %6343 = vmatprep.subr.bf16.mxu0 %v6758_v40  ;;  %v383_v39 = vpack.c.bf16 %v351_v37, %v319_v36  ;;  %v353_v40 = vld [vmem:[%s7307_s10 + $0x178] sm:$0xff]  ;;  %v6846_v36 = vld [vmem:[#allocation5 + $0x568] sm:$0xff]  }
  0xc1   : > { %6365 = vmatprep.subr.bf16.mxu1 %v6759_v41  ;;  %v318_v41 = vld [vmem:[%s7307_s10 + $0x60] sm:$0xff]  ;;  %v6847_v37 = vld [vmem:[#allocation5 + $0x5e8] sm:$0xff]  }
  0xc3   : > { %6344 = vmatpush3.bf16.msra.mxu0 %v6760_v42  ;;  %v350_v42 = vld [vmem:[%s7307_s10 + $0x160] sm:$0xff] }
  0xc4   : > { %6366 = vmatpush3.bf16.msra.mxu1 %v6761_v43  ;;  %6345 = vmatprep.subr.bf16.mxu0 %v6762_v44  ;;  %v385_v43 = vpack.c.bf16 %v353_v40, %v321_v38  ;;  %v382_v44 = vpack.c.bf16 %v350_v42, %v318_v41  ;;  %v6848_v38 = vld [vmem:[#allocation5 + $0x528] sm:$0xff]   ;;  %v6850_v40 = vld [vmem:[#allocation5 + $0x560] sm:$0xff]  }
  0xc5   : > { %6367 = vmatprep.subr.bf16.mxu1 %v6763_v45  ;;  %v320_v45 = vld [vmem:[%s7307_s10 + $0x70] sm:$0xff]  ;;  %v6851_v41 = vld [vmem:[#allocation5 + $0x5e0] sm:$0xff]  }
  0xc6   : > { %v6852_v42 = vld [vmem:[#allocation5 + $0x520] sm:$0xff]  }
  0xc7   : > { %6346 = vmatpush3.bf16.msra.mxu0 %v6764_v46  ;;  %v352_v46 = vld [vmem:[%s7307_s10 + $0x170] sm:$0xff] }
  0xc8   : > { %6368 = vmatpush3.bf16.msra.mxu1 %v6765_v47  ;;  %6347 = vmatprep.subr.bf16.mxu0 %v6766_v48  ;;  %v384_v47 = vpack.c.bf16 %v352_v46, %v320_v45  ;;  %v6806_v48 = vld [vmem:[#allocation5 + $0x478] sm:$0xff]  }
  0xc9   : > { %6369 = vmatprep.subr.bf16.mxu1 %v6767_v49  ;;  %v6807_v49 = vld [vmem:[#allocation5 + $0x4f8] sm:$0xff]  }
  0xca   : > { %v6855_v45 = vld [vmem:[#allocation5 + $0x5d8] sm:$0xff]  }
  0xcb   : > { %6348 = vmatpush3.bf16.msra.mxu0 %v6768_v50  ;;  %v6808_v50 = vld [vmem:[#allocation5 + $0x438] sm:$0xff]  }
  0xcc   : > { %6370 = vmatpush3.bf16.msra.mxu1 %v6769_v51  ;;  %6349 = vmatprep.subr.bf16.mxu0 %v6770_v52  ;;  %v6809_v51 = vld [vmem:[#allocation5 + $0x4b8] sm:$0xff]   ;;  %v6810_v52 = vld [vmem:[#allocation5 + $0x470] sm:$0xff]  }
  0xcd   : > { %6371 = vmatprep.subr.bf16.mxu1 %v6771_v53  ;;  %v6811_v53 = vld [vmem:[#allocation5 + $0x4f0] sm:$0xff]   ;;  %v6856_v46 = vld [vmem:[#allocation5 + $0x518] sm:$0xff]  }
  0xcf   : > { %6350 = vmatpush3.bf16.msra.mxu0 %v6772_v54  ;;  %v6812_v54 = vld [vmem:[#allocation5 + $0x430] sm:$0xff]  }
  0xd0   : > { %6372 = vmatpush3.bf16.msra.mxu1 %v6773_v55  ;;  %6379 = vmatprep.subr.bf16.mxu0 %v6774_v4  ;;  %v6813_v55 = vld [vmem:[#allocation5 + $0x4b0] sm:$0xff]  }
  0xd1   : > { %6401 = vmatprep.subr.bf16.mxu1 %v6775_v5  ;;  %v6826_v4 = vld [vmem:[#allocation5 + $0x450] sm:$0xff]  }
  0xd2   : > { %2654 = vmatmul.mubr.bf16.vlgmr.msra.gmra.mxu0 %v378_v2  ;;  %v6824_v2 = vld [vmem:[#allocation5 + $0x418] sm:$0xff]   ;;  %v6827_v5 = vld [vmem:[#allocation5 + $0x4d0] sm:$0xff]  }
  0xd3   : > { %2695 = vmatmul.mubr.bf16.vlgmr.msra.gmra.mxu1 %v380_v3  ;;  %6380 = vmatpush3.bf16.msra.mxu0 %v6776_v6  ;;  %v6825_v3 = vld [vmem:[#allocation5 + $0x498] sm:$0xff]   ;;  %v6828_v6 = vld [vmem:[#allocation5 + $0x410] sm:$0xff]  }
  0xd4   : > { %6402 = vmatpush3.bf16.msra.mxu1 %v6777_v7  ;;  %6381 = vmatprep.subr.bf16.mxu0 %v6778_v8  ;;  %v6829_v7 = vld [vmem:[#allocation5 + $0x490] sm:$0xff]   ;;  %v6830_v8 = vld [vmem:[#allocation5 + $0x448] sm:$0xff]  }
  0xd5   : > { %6403 = vmatprep.subr.bf16.mxu1 %v6779_v9  ;;  %2735 = vmatprep.mubr.bf16.mxu0 %v383_v39  ;;  %v6831_v9 = vld [vmem:[#allocation5 + $0x4c8] sm:$0xff]  }
  0xd6   : > { %2776 = vmatprep.mubr.bf16.mxu1 %v385_v43  ;;  %v6849_v39 = vld [vmem:[#allocation5 + $0x5a8] sm:$0xff]   ;;  %v6853_v43 = vld [vmem:[#allocation5 + $0x5a0] sm:$0xff]  }
  0xd7   : > { %6382 = vmatpush3.bf16.msra.mxu0 %v6780_v10  ;;  %v6832_v10 = vld [vmem:[#allocation5 + $0x408] sm:$0xff]  }
  0xd8   : > { %6404 = vmatpush3.bf16.msra.mxu1 %v6781_v11  ;;  %6383 = vmatprep.subr.bf16.mxu0 %v6782_v12  ;;  %v6833_v11 = vld [vmem:[#allocation5 + $0x488] sm:$0xff]   ;;  %v6834_v12 = vld [vmem:[#allocation5 + $0x440] sm:$0xff]  }
  0xd9   : > { %6405 = vmatprep.subr.bf16.mxu1 %v6783_v13  ;;  %v6835_v13 = vld [vmem:[#allocation5 + $0x4c0] sm:$0xff]  }
  0xdb   : > { %6384 = vmatpush3.bf16.msra.mxu0 %v6784_v14  ;;  %v6836_v14 = vld [vmem:[#allocation5 + $0x400] sm:$0xff]  }
  0xdc   : > { %6406 = vmatpush3.bf16.msra.mxu1 %v6785_v15  ;;  %6385 = vmatprep.subr.bf16.mxu0 %v6786_v16  ;;  %v6837_v15 = vld [vmem:[#allocation5 + $0x480] sm:$0xff]   ;;  %v323_v16 = vld [vmem:[%s7307_s10 + $0x88] sm:$0xff] }
  0xdd   : > { %6407 = vmatprep.subr.bf16.mxu1 %v6787_v17  ;;  %v355_v17 = vld [vmem:[%s7307_s10 + $0x188] sm:$0xff] }
  0xdf   : > { %6386 = vmatpush3.bf16.msra.mxu0 %v6788_v18  ;;  %v325_v18 = vld [vmem:[%s7307_s10 + $0x98] sm:$0xff] }
  0xe0   : > { %6408 = vmatpush3.bf16.msra.mxu1 %v6789_v19  ;;  %6387 = vmatprep.subr.bf16.mxu0 %v6790_v20  ;;  %v357_v19 = vld [vmem:[%s7307_s10 + $0x198] sm:$0xff]  ;;  %v387_v20 = vpack.c.bf16 %v355_v17, %v323_v16  ;;  %v6878_v16 = vld [vmem:[#allocation5 + $0x668] sm:$0xff]  }
  0xe1   : > { %6409 = vmatprep.subr.bf16.mxu1 %v6791_v21  ;;  %v389_v21 = vpack.c.bf16 %v357_v19, %v325_v18  ;;  %v6879_v17 = vld [vmem:[#allocation5 + $0x6e8] sm:$0xff]  }
  0xe2   : > { %v6880_v18 = vld [vmem:[#allocation5 + $0x628] sm:$0xff]  }
  0xe3   : > { %6388 = vmatpush3.bf16.msra.mxu0 %v6792_v22  ;;  %v322_v22 = vld [vmem:[%s7307_s10 + $0x80] sm:$0xff]  ;;  %v6881_v19 = vld [vmem:[#allocation5 + $0x6a8] sm:$0xff]  }
  0xe4   : > { %6410 = vmatpush3.bf16.msra.mxu1 %v6793_v23  ;;  %6389 = vmatprep.subr.bf16.mxu0 %v6794_v24  ;;  %v354_v23 = vld [vmem:[%s7307_s10 + $0x180] sm:$0xff]  ;;  %v324_v24 = vld [vmem:[%s7307_s10 + $0x90] sm:$0xff] }
  0xe5   : > { %6411 = vmatprep.subr.bf16.mxu1 %v6795_v25  ;;  %v386_v25 = vpack.c.bf16 %v354_v23, %v322_v22  ;;  %v6884_v22 = vld [vmem:[#allocation5 + $0x620] sm:$0xff]  }
  0xe6   : > { %v6885_v23 = vld [vmem:[#allocation5 + $0x6a0] sm:$0xff]  }
  0xe7   : > { %6390 = vmatpush3.bf16.msra.mxu0 %v6796_v26  ;;  %v356_v26 = vld [vmem:[%s7307_s10 + $0x190] sm:$0xff] }
  0xe8   : > { %6412 = vmatpush3.bf16.msra.mxu1 %v6797_v27  ;;  %6391 = vmatprep.subr.bf16.mxu0 %v6798_v28  ;;  %v388_v27 = vpack.c.bf16 %v356_v26, %v324_v24  ;;  %v6838_v28 = vld [vmem:[#allocation5 + $0x578] sm:$0xff]  }
  0xe9   : > { %6413 = vmatprep.subr.bf16.mxu1 %v6799_v29  ;;  %v6839_v29 = vld [vmem:[#allocation5 + $0x5f8] sm:$0xff]  }
  0xea   : > { %v6886_v24 = vld [vmem:[#allocation5 + $0x658] sm:$0xff]  }
  0xeb   : > { %6392 = vmatpush3.bf16.msra.mxu0 %v6800_v30  ;;  %v6840_v30 = vld [vmem:[#allocation5 + $0x538] sm:$0xff]  }
  0xec   : > { %6414 = vmatpush3.bf16.msra.mxu1 %v6801_v31  ;;  %6393 = vmatprep.subr.bf16.mxu0 %v6802_v32  ;;  %v6841_v31 = vld [vmem:[#allocation5 + $0x5b8] sm:$0xff]   ;;  %v6842_v32 = vld [vmem:[#allocation5 + $0x570] sm:$0xff]  }
  0xed   : > { %6415 = vmatprep.subr.bf16.mxu1 %v6803_v33  ;;  %v6843_v33 = vld [vmem:[#allocation5 + $0x5f0] sm:$0xff]   ;;  %v6888_v26 = vld [vmem:[#allocation5 + $0x618] sm:$0xff]  }
  0xef   : > { %6394 = vmatpush3.bf16.msra.mxu0 %v6804_v34  ;;  %v6844_v34 = vld [vmem:[#allocation5 + $0x530] sm:$0xff]  }
  0xf0   : > { %6416 = vmatpush3.bf16.msra.mxu1 %v6805_v35  ;;  %6423 = vmatprep.subr.bf16.mxu0 %v6806_v48  ;;  %v6845_v35 = vld [vmem:[#allocation5 + $0x5b0] sm:$0xff]  }
  0xf1   : > { %6445 = vmatprep.subr.bf16.mxu1 %v6807_v49  ;;  %v6858_v48 = vld [vmem:[#allocation5 + $0x550] sm:$0xff]  }
  0xf2   : > { %2736 = vmatmul.mubr.bf16.vlgmr.msra.gmra.mxu0 %v382_v44  ;;  %v6854_v44 = vld [vmem:[#allocation5 + $0x558] sm:$0xff]   ;;  %v6859_v49 = vld [vmem:[#allocation5 + $0x5d0] sm:$0xff]  }
  0xf3   : > { %2777 = vmatmul.mubr.bf16.vlgmr.msra.gmra.mxu1 %v384_v47  ;;  %6424 = vmatpush3.bf16.msra.mxu0 %v6808_v50  ;;  %v6857_v47 = vld [vmem:[#allocation5 + $0x598] sm:$0xff]   ;;  %v6860_v50 = vld [vmem:[#allocation5 + $0x510] sm:$0xff]  }
  0xf4   : > { %6446 = vmatpush3.bf16.msra.mxu1 %v6809_v51  ;;  %6425 = vmatprep.subr.bf16.mxu0 %v6810_v52  ;;  %v6861_v51 = vld [vmem:[#allocation5 + $0x590] sm:$0xff]   ;;  %v6862_v52 = vld [vmem:[#allocation5 + $0x548] sm:$0xff]  }
  0xf5   : > { %6447 = vmatprep.subr.bf16.mxu1 %v6811_v53  ;;  %2817 = vmatprep.mubr.bf16.mxu0 %v387_v20  ;;  %v6863_v53 = vld [vmem:[#allocation5 + $0x5c8] sm:$0xff]   ;;  %v6882_v20 = vld [vmem:[#allocation5 + $0x660] sm:$0xff]  }
  0xf6   : > { %2858 = vmatprep.mubr.bf16.mxu1 %v389_v21  ;;  %v6883_v21 = vld [vmem:[#allocation5 + $0x6e0] sm:$0xff]  }
  0xf7   : > { %6426 = vmatpush3.bf16.msra.mxu0 %v6812_v54  ;;  %v6864_v54 = vld [vmem:[#allocation5 + $0x508] sm:$0xff]  }
  0xf8   : > { %6448 = vmatpush3.bf16.msra.mxu1 %v6813_v55  ;;  %6427 = vmatprep.subr.bf16.mxu0 %v6814_v56  ;;  %v6865_v55 = vld [vmem:[#allocation5 + $0x588] sm:$0xff]   ;;  %v6866_v56 = vld [vmem:[#allocation5 + $0x540] sm:$0xff]  }
  0xf9   : > { %6449 = vmatprep.subr.bf16.mxu1 %v6815_v57  ;;  %v6867_v57 = vld [vmem:[#allocation5 + $0x5c0] sm:$0xff]  }
  0xfb   : > { %6428 = vmatpush3.bf16.msra.mxu0 %v6816_v58  ;;  %v6868_v58 = vld [vmem:[#allocation5 + $0x500] sm:$0xff]  }
  0xfc   : > { %6450 = vmatpush3.bf16.msra.mxu1 %v6817_v59  ;;  %6429 = vmatprep.subr.bf16.mxu0 %v6818_v60  ;;  %v6869_v59 = vld [vmem:[#allocation5 + $0x580] sm:$0xff]   ;;  %v327_v60 = vld [vmem:[%s7307_s10 + $0xa8] sm:$0xff] }
  0xfd   : > { %6451 = vmatprep.subr.bf16.mxu1 %v6819_v61  ;;  %v359_v61 = vld [vmem:[%s7307_s10 + $0x1a8] sm:$0xff] }
  0xff   : > { %6430 = vmatpush3.bf16.msra.mxu0 %v6820_v62  ;;  %v391_v62 = vpack.c.bf16 %v359_v61, %v327_v60  ;;  %v6910_v60 = vld [vmem:[#allocation5 + $0x768] sm:$0xff]  }
 0x100   : > { %6452 = vmatpush3.bf16.msra.mxu1 %v6821_v63  ;;  %6431 = vmatprep.subr.bf16.mxu0 %v6822_v0  ;;  %v329_v63 = vld [vmem:[%s7307_s10 + $0xb8] sm:$0xff]  ;;  %v6911_v61 = vld [vmem:[#allocation5 + $0x7e8] sm:$0xff]  }
 0x101   : > { %6453 = vmatprep.subr.bf16.mxu1 %v6823_v1  ;;  %v361_v0 = vld [vmem:[%s7307_s10 + $0x1b8] sm:$0xff]  ;;  %v326_v1 = vld [vmem:[%s7307_s10 + $0xa0] sm:$0xff] }
 0x103   : > { %6432 = vmatpush3.bf16.msra.mxu0 %v6824_v2  ;;  %v393_v2 = vpack.c.bf16 %v361_v0, %v329_v63  ;;  %v6913_v63 = vld [vmem:[#allocation5 + $0x7a8] sm:$0xff]   ;;  %v6914_v0 = vld [vmem:[#allocation5 + $0x760] sm:$0xff]  }
 0x104   : > { %6454 = vmatpush3.bf16.msra.mxu1 %v6825_v3  ;;  %6433 = vmatprep.subr.bf16.mxu0 %v6826_v4  ;;  %v358_v3 = vld [vmem:[%s7307_s10 + $0x1a0] sm:$0xff]  ;;  %v328_v4 = vld [vmem:[%s7307_s10 + $0xb0] sm:$0xff] }
 0x105   : > { %6455 = vmatprep.subr.bf16.mxu1 %v6827_v5  ;;  %v360_v5 = vld [vmem:[%s7307_s10 + $0x1b0] sm:$0xff] }
 0x107   : > { %6434 = vmatpush3.bf16.msra.mxu0 %v6828_v6  ;;  %v390_v6 = vpack.c.bf16 %v358_v3, %v326_v1  ;;  %v6915_v1 = vld [vmem:[#allocation5 + $0x7e0] sm:$0xff]  }
 0x108   : > { %6456 = vmatpush3.bf16.msra.mxu1 %v6829_v7  ;;  %6435 = vmatprep.subr.bf16.mxu0 %v6830_v8  ;;  %v392_v7 = vpack.c.bf16 %v360_v5, %v328_v4  ;;  %v6870_v8 = vld [vmem:[#allocation5 + $0x678] sm:$0xff]   ;;  %v6917_v3 = vld [vmem:[#allocation5 + $0x7a0] sm:$0xff]  }
 0x109   : > { %6457 = vmatprep.subr.bf16.mxu1 %v6831_v9  ;;  %v6871_v9 = vld [vmem:[#allocation5 + $0x6f8] sm:$0xff]  }
 0x10a   : > { %v6918_v4 = vld [vmem:[#allocation5 + $0x758] sm:$0xff]  }
 0x10b   : > { %6436 = vmatpush3.bf16.msra.mxu0 %v6832_v10  ;;  %v6872_v10 = vld [vmem:[#allocation5 + $0x638] sm:$0xff]  }
 0x10c   : > { %6458 = vmatpush3.bf16.msra.mxu1 %v6833_v11  ;;  %6437 = vmatprep.subr.bf16.mxu0 %v6834_v12  ;;  %v6873_v11 = vld [vmem:[#allocation5 + $0x6b8] sm:$0xff]   ;;  %v6874_v12 = vld [vmem:[#allocation5 + $0x670] sm:$0xff]  }
 0x10d   : > { %6459 = vmatprep.subr.bf16.mxu1 %v6835_v13  ;;  %v6875_v13 = vld [vmem:[#allocation5 + $0x6f0] sm:$0xff]   ;;  %v6919_v5 = vld [vmem:[#allocation5 + $0x7d8] sm:$0xff]  }
 0x10f   : > { %6438 = vmatpush3.bf16.msra.mxu0 %v6836_v14  ;;  %v6876_v14 = vld [vmem:[#allocation5 + $0x630] sm:$0xff]  }
 0x110   : > { %6460 = vmatpush3.bf16.msra.mxu1 %v6837_v15  ;;  %6467 = vmatprep.subr.bf16.mxu0 %v6838_v28  ;;  %v6877_v15 = vld [vmem:[#allocation5 + $0x6b0] sm:$0xff]  }
 0x111   : > { %6489 = vmatprep.subr.bf16.mxu1 %v6839_v29  ;;  %v6890_v28 = vld [vmem:[#allocation5 + $0x650] sm:$0xff]  }
 0x112   : > { %2818 = vmatmul.mubr.bf16.vlgmr.msra.gmra.mxu0 %v386_v25  ;;  %v6887_v25 = vld [vmem:[#allocation5 + $0x6d8] sm:$0xff]   ;;  %v6891_v29 = vld [vmem:[#allocation5 + $0x6d0] sm:$0xff]  }
 0x113   : > { %2859 = vmatmul.mubr.bf16.vlgmr.msra.gmra.mxu1 %v388_v27  ;;  %6468 = vmatpush3.bf16.msra.mxu0 %v6840_v30  ;;  %v6889_v27 = vld [vmem:[#allocation5 + $0x698] sm:$0xff]   ;;  %v6892_v30 = vld [vmem:[#allocation5 + $0x610] sm:$0xff]  }
 0x114   : > { %6490 = vmatpush3.bf16.msra.mxu1 %v6841_v31  ;;  %6469 = vmatprep.subr.bf16.mxu0 %v6842_v32  ;;  %v6893_v31 = vld [vmem:[#allocation5 + $0x690] sm:$0xff]   ;;  %v6894_v32 = vld [vmem:[#allocation5 + $0x648] sm:$0xff]  }
 0x115   : > { %6491 = vmatprep.subr.bf16.mxu1 %v6843_v33  ;;  %2899 = vmatprep.mubr.bf16.mxu0 %v391_v62  ;;  %v6895_v33 = vld [vmem:[#allocation5 + $0x6c8] sm:$0xff]  }
 0x116   : > { %2940 = vmatprep.mubr.bf16.mxu1 %v393_v2  ;;  %v6912_v62 = vld [vmem:[#allocation5 + $0x728] sm:$0xff]   ;;  %v6916_v2 = vld [vmem:[#allocation5 + $0x720] sm:$0xff]  }
 0x117   : > { %6470 = vmatpush3.bf16.msra.mxu0 %v6844_v34  ;;  %v6896_v34 = vld [vmem:[#allocation5 + $0x608] sm:$0xff]  }
 0x118   : > { %6492 = vmatpush3.bf16.msra.mxu1 %v6845_v35  ;;  %6471 = vmatprep.subr.bf16.mxu0 %v6846_v36  ;;  %v6897_v35 = vld [vmem:[#allocation5 + $0x688] sm:$0xff]   ;;  %v6898_v36 = vld [vmem:[#allocation5 + $0x640] sm:$0xff]  }
 0x119   : > { %6493 = vmatprep.subr.bf16.mxu1 %v6847_v37  ;;  %v6899_v37 = vld [vmem:[#allocation5 + $0x6c0] sm:$0xff]  }
 0x11b   : > { %6472 = vmatpush3.bf16.msra.mxu0 %v6848_v38  ;;  %v6900_v38 = vld [vmem:[#allocation5 + $0x600] sm:$0xff]  }
 0x11c   : > { %6494 = vmatpush3.bf16.msra.mxu1 %v6849_v39  ;;  %6473 = vmatprep.subr.bf16.mxu0 %v6850_v40  ;;  %v6901_v39 = vld [vmem:[#allocation5 + $0x680] sm:$0xff]   ;;  %v331_v40 = vld [vmem:[%s7307_s10 + $0xc8] sm:$0xff] }
 0x11d   : > { %6495 = vmatprep.subr.bf16.mxu1 %v6851_v41  ;;  %v363_v41 = vld [vmem:[%s7307_s10 + $0x1c8] sm:$0xff] }
 0x11f   : > { %6474 = vmatpush3.bf16.msra.mxu0 %v6852_v42  ;;  %v333_v42 = vld [vmem:[%s7307_s10 + $0xd8] sm:$0xff] }
 0x120   : > { %6496 = vmatpush3.bf16.msra.mxu1 %v6853_v43  ;;  %6475 = vmatprep.subr.bf16.mxu0 %v6854_v44  ;;  %v395_v43 = vpack.c.bf16 %v363_v41, %v331_v40  ;;  %v365_v44 = vld [vmem:[%s7307_s10 + $0x1d8] sm:$0xff] }
 0x121   : > { %6497 = vmatprep.subr.bf16.mxu1 %v6855_v45  ;;  %v330_v45 = vld [vmem:[%s7307_s10 + $0xc0] sm:$0xff] }
 0x123   : > { %6476 = vmatpush3.bf16.msra.mxu0 %v6856_v46  ;;  %v362_v46 = vld [vmem:[%s7307_s10 + $0x1c0] sm:$0xff] }
 0x124   : > { %6498 = vmatpush3.bf16.msra.mxu1 %v6857_v47  ;;  %6477 = vmatprep.subr.bf16.mxu0 %v6858_v48  ;;  %v397_v47 = vpack.c.bf16 %v365_v44, %v333_v42  ;;  %v394_v48 = vpack.c.bf16 %v362_v46, %v330_v45  ;;  %v3325_v44 = vld [vmem:[#allocation7 + $0x688] sm:$0xff]  ;;  %v3276_v45 = vld [vmem:[#allocation7 + $0x500] sm:$0xff] }
 0x125   : > { %6499 = vmatprep.subr.bf16.mxu1 %v6859_v49  ;;  %v332_v49 = vld [vmem:[%s7307_s10 + $0xd0] sm:$0xff] }
 0x127   : > { %6478 = vmatpush3.bf16.msra.mxu0 %v6860_v50  ;;  %v364_v50 = vld [vmem:[%s7307_s10 + $0x1d0] sm:$0xff] }
 0x128   : > { %6500 = vmatpush3.bf16.msra.mxu1 %v6861_v51  ;;  %6479 = vmatprep.subr.bf16.mxu0 %v6862_v52  ;;  %v396_v51 = vpack.c.bf16 %v364_v50, %v332_v49  ;;  %v6902_v52 = vld [vmem:[#allocation5 + $0x778] sm:$0xff]   ;;  %v3293_v49 = vld [vmem:[#allocation7 + $0x588] sm:$0xff] }
 0x129   : > { %6501 = vmatprep.subr.bf16.mxu1 %v6863_v53  ;;  %v6903_v53 = vld [vmem:[#allocation5 + $0x7f8] sm:$0xff]  }
 0x12b   : > { %6480 = vmatpush3.bf16.msra.mxu0 %v6864_v54  ;;  %v6904_v54 = vld [vmem:[#allocation5 + $0x738] sm:$0xff]  }
 0x12c   : > { %6502 = vmatpush3.bf16.msra.mxu1 %v6865_v55  ;;  %6481 = vmatprep.subr.bf16.mxu0 %v6866_v56  ;;  %v6905_v55 = vld [vmem:[#allocation5 + $0x7b8] sm:$0xff]   ;;  %v6906_v56 = vld [vmem:[#allocation5 + $0x770] sm:$0xff]  }
 0x12d   : > { %6503 = vmatprep.subr.bf16.mxu1 %v6867_v57  ;;  %v6907_v57 = vld [vmem:[#allocation5 + $0x7f0] sm:$0xff]  }
 0x12f   : > { %6482 = vmatpush3.bf16.msra.mxu0 %v6868_v58  ;;  %v6908_v58 = vld [vmem:[#allocation5 + $0x730] sm:$0xff]  }
 0x130   : > { %6504 = vmatpush3.bf16.msra.mxu1 %v6869_v59  ;;  %6511 = vmatprep.subr.bf16.mxu0 %v6870_v8  ;;  %v6909_v59 = vld [vmem:[#allocation5 + $0x7b0] sm:$0xff]  }
 0x131   : > { %6533 = vmatprep.subr.bf16.mxu1 %v6871_v9  ;;  %v6922_v8 = vld [vmem:[#allocation5 + $0x750] sm:$0xff]  }
 0x132   : > { %2900 = vmatmul.mubr.bf16.vlgmr.msra.gmra.mxu0 %v390_v6  ;;  %v6920_v6 = vld [vmem:[#allocation5 + $0x718] sm:$0xff]   ;;  %v6923_v9 = vld [vmem:[#allocation5 + $0x7d0] sm:$0xff]  }
 0x133   : > { %2941 = vmatmul.mubr.bf16.vlgmr.msra.gmra.mxu1 %v392_v7  ;;  %6512 = vmatpush3.bf16.msra.mxu0 %v6872_v10  ;;  %v6921_v7 = vld [vmem:[#allocation5 + $0x798] sm:$0xff]   ;;  %v6924_v10 = vld [vmem:[#allocation5 + $0x710] sm:$0xff]  }
 0x134   : > { %6534 = vmatpush3.bf16.msra.mxu1 %v6873_v11  ;;  %6513 = vmatprep.subr.bf16.mxu0 %v6874_v12  ;;  %v6925_v11 = vld [vmem:[#allocation5 + $0x790] sm:$0xff]   ;;  %v6926_v12 = vld [vmem:[#allocation5 + $0x748] sm:$0xff]  }
 0x135   : > { %6535 = vmatprep.subr.bf16.mxu1 %v6875_v13  ;;  %2981 = vmatprep.mubr.bf16.mxu0 %v395_v43  ;;  %v6927_v13 = vld [vmem:[#allocation5 + $0x7c8] sm:$0xff]  }
 0x136   : > { %3022 = vmatprep.mubr.bf16.mxu1 %v397_v47  ;;  %v3309_v43 = vld [vmem:[#allocation7 + $0x608] sm:$0xff]  ;;  %v3292_v47 = vld [vmem:[#allocation7 + $0x580] sm:$0xff] }
 0x137   : > { %6514 = vmatpush3.bf16.msra.mxu0 %v6876_v14  ;;  %v6928_v14 = vld [vmem:[#allocation5 + $0x708] sm:$0xff]   ;;  %v6169_v46 = vcombine.high %v3309_v43, %v3325_v44 }
 0x138   : > { %6536 = vmatpush3.bf16.msra.mxu1 %v6877_v15  ;;  %6515 = vmatprep.subr.bf16.mxu0 %v6878_v16  ;;  %v6929_v15 = vld [vmem:[#allocation5 + $0x788] sm:$0xff]   ;;  %v6930_v16 = vld [vmem:[#allocation5 + $0x740] sm:$0xff]  }
 0x139   : > { %6537 = vmatprep.subr.bf16.mxu1 %v6879_v17  ;;  %v6931_v17 = vld [vmem:[#allocation5 + $0x7c0] sm:$0xff]  }
 0x13b   : > { %6516 = vmatpush3.bf16.msra.mxu0 %v6880_v18  ;;  %v6932_v18 = vld [vmem:[#allocation5 + $0x700] sm:$0xff]  }
 0x13c   : > { %6538 = vmatpush3.bf16.msra.mxu1 %v6881_v19  ;;  %6517 = vmatprep.subr.bf16.mxu0 %v6882_v20  ;;  %v6933_v19 = vld [vmem:[#allocation5 + $0x780] sm:$0xff]   ;;  %v335_v20 = vld [vmem:[%s7307_s10 + $0xe8] sm:$0xff] }
 0x13d   : > { %6539 = vmatprep.subr.bf16.mxu1 %v6883_v21  ;;  %v367_v21 = vld [vmem:[%s7307_s10 + $0x1e8] sm:$0xff] }
 0x13f   : > { %6518 = vmatpush3.bf16.msra.mxu0 %v6884_v22  ;;  %v337_v22 = vld [vmem:[%s7307_s10 + $0xf8] sm:$0xff] }
 0x140   : > { %6540 = vmatpush3.bf16.msra.mxu1 %v6885_v23  ;;  %6519 = vmatprep.subr.bf16.mxu0 %v6886_v24  ;;  %v399_v23 = vpack.c.bf16 %v367_v21, %v335_v20  ;;  %v369_v24 = vld [vmem:[%s7307_s10 + $0x1f8] sm:$0xff]  ;;  %v3165_v20 = vld [vmem:[#allocation7 + $0x188] sm:$0xff] }
 0x141   : > { %6541 = vmatprep.subr.bf16.mxu1 %v6887_v25  ;;  %v334_v25 = vld [vmem:[%s7307_s10 + $0xe0] sm:$0xff] }
 0x143   : > { %6520 = vmatpush3.bf16.msra.mxu0 %v6888_v26  ;;  %v366_v26 = vld [vmem:[%s7307_s10 + $0x1e0] sm:$0xff] }
 0x144   : > { %6542 = vmatpush3.bf16.msra.mxu1 %v6889_v27  ;;  %6521 = vmatprep.subr.bf16.mxu0 %v6890_v28  ;;  %v401_v27 = vpack.c.bf16 %v369_v24, %v337_v22  ;;  %v398_v28 = vpack.c.bf16 %v366_v26, %v334_v25  ;;  %v3116_v24 = vld [vmem:[#allocation7] sm:$0xff]  ;;  %v3117_v26 = vld [vmem:[#allocation7 + $0x8] sm:$0xff] }
 0x145   : > { %6543 = vmatprep.subr.bf16.mxu1 %v6891_v29  ;;  %v336_v29 = vld [vmem:[%s7307_s10 + $0xf0] sm:$0xff]  ;;  %v3132_v25 = vld [vmem:[#allocation7 + $0x80] sm:$0xff] }
 0x147   : > { %6522 = vmatpush3.bf16.msra.mxu0 %v6892_v30  ;;  %v368_v30 = vld [vmem:[%s7307_s10 + $0x1f0] sm:$0xff] }
 0x148   : > { %6544 = vmatpush3.bf16.msra.mxu1 %v6893_v31  ;;  %6523 = vmatprep.subr.bf16.mxu0 %v6894_v32  ;;  %v400_v31 = vpack.c.bf16 %v368_v30, %v336_v29  ;;  %v3340_v32 = vld [vmem:[#allocation7 + $0x700] sm:$0xff]  ;;  %v5974_v29 = vcombine.low %v3116_v24, %v3132_v25 }
 0x149   : > { %6545 = vmatprep.subr.bf16.mxu1 %v6895_v33  ;;  %v3356_v33 = vld [vmem:[#allocation7 + $0x780] sm:$0xff] }
 0x14b   : > { %6524 = vmatpush3.bf16.msra.mxu0 %v6896_v34  ;;  %v3341_v34 = vld [vmem:[#allocation7 + $0x708] sm:$0xff] }
 0x14c   : > { %6546 = vmatpush3.bf16.msra.mxu1 %v6897_v35  ;;  %6525 = vmatprep.subr.bf16.mxu0 %v6898_v36  ;;  %v6198_v35 = vcombine.low %v3340_v32, %v3356_v33  ;;  %v6199_v36 = vcombine.high %v3340_v32, %v3356_v33  ;;  %v7385_v32 = vld [vmem:[#allocation7 + $0x710] sm:$0xff] }
 0x14d   : > { %6547 = vmatprep.subr.bf16.mxu1 %v6899_v37  ;;  %v3357_v37 = vld [vmem:[#allocation7 + $0x788] sm:$0xff]  ;;  %v7387_v33 = vld [vmem:[#allocation7 + $0x790] sm:$0xff] }
 0x14e   : > { %v6200_v40 = vcombine.low %v3341_v34, %v3357_v37  ;;  %v6201_v41 = vcombine.high %v3341_v34, %v3357_v37  ;;  %v7389_v34 = vld [vmem:[#allocation7 + $0x718] sm:$0xff] }
 0x14f   : > { %6526 = vmatpush3.bf16.msra.mxu0 %v6900_v38  ;;  %v3308_v38 = vld [vmem:[#allocation7 + $0x600] sm:$0xff]  ;;  %v7395_v37 = vld [vmem:[#allocation7 + $0x798] sm:$0xff] }
 0x150   : > { %6548 = vmatpush3.bf16.msra.mxu1 %v6901_v39  ;;  %6555 = vmatprep.subr.bf16.mxu0 %v6902_v52  ;;  %v3324_v39 = vld [vmem:[#allocation7 + $0x680] sm:$0xff]  ;;  %v6135_v52 = vcombine.high %v3276_v45, %v3292_v47 }
 0x151   : > { %6577 = vmatprep.subr.bf16.mxu1 %v6903_v53  ;;  %v6167_v42 = vcombine.high %v3308_v38, %v3324_v39  ;;  %v6166_v50 = vcombine.low %v3308_v38, %v3324_v39  ;;  %v7122_v38 = vmov 0   ;;  %v6204_v39 = vcombine.low %v7389_v34, %v7395_v37 }
 0x152   : > { %2982 = vmatmul.mubr.bf16.vlgmr.msra.gmra.mxu0 %v394_v48  ;;  %v3277_v48 = vld [vmem:[#allocation7 + $0x508] sm:$0xff] }
 0x153   : > { %3023 = vmatmul.mubr.bf16.vlgmr.msra.gmra.mxu1 %v396_v51  ;;  %6556 = vmatpush3.bf16.msra.mxu0 %v6904_v54  ;;  %v6168_v51 = vcombine.low %v3309_v43, %v3325_v44  ;;  %v6137_v53 = vcombine.high %v3277_v48, %v3293_v49  ;;  %v3244_v54 = vld [vmem:[#allocation7 + $0x400] sm:$0xff] }
 0x154   : > { %6578 = vmatpush3.bf16.msra.mxu1 %v6905_v55  ;;  %6557 = vmatprep.subr.bf16.mxu0 %v6906_v56  ;;  %v3260_v55 = vld [vmem:[#allocation7 + $0x480] sm:$0xff]  ;;  %v3245_v56 = vld [vmem:[#allocation7 + $0x408] sm:$0xff] }
 0x155   : > { %6579 = vmatprep.subr.bf16.mxu1 %v6907_v57  ;;  %3063 = vmatprep.mubr.bf16.mxu0 %v399_v23  ;;  %v3261_v57 = vld [vmem:[#allocation7 + $0x488] sm:$0xff] }
 0x156   : > { %3104 = vmatprep.mubr.bf16.mxu1 %v401_v27  ;;  %v5975_v27 = vcombine.high %v3116_v24, %v3132_v25 }
 0x157   : > { %6558 = vmatpush3.bf16.msra.mxu0 %v6908_v58  ;;  %v6134_v58 = vcombine.low %v3276_v45, %v3292_v47 }
 0x158   : > { %6580 = vmatpush3.bf16.msra.mxu1 %v6909_v59  ;;  %6559 = vmatprep.subr.bf16.mxu0 %v6910_v60  ;;  %v6136_v59 = vcombine.low %v3277_v48, %v3293_v49  ;;  %v6103_v60 = vcombine.high %v3244_v54, %v3260_v55 }
 0x159   : > { %6581 = vmatprep.subr.bf16.mxu1 %v6911_v61  ;;  %v6105_v61 = vcombine.high %v3245_v56, %v3261_v57 }
 0x15b   : > { %6560 = vmatpush3.bf16.msra.mxu0 %v6912_v62  ;;  %v6102_v62 = vcombine.low %v3244_v54, %v3260_v55 }
 0x15c   : > { %6582 = vmatpush3.bf16.msra.mxu1 %v6913_v63  ;;  %6561 = vmatprep.subr.bf16.mxu0 %v6914_v0  ;;  %v6104_v63 = vcombine.low %v3245_v56, %v3261_v57  ;;  %v3212_v0 = vld [vmem:[#allocation7 + $0x300] sm:$0xff] }
 0x15d   : > { %6583 = vmatprep.subr.bf16.mxu1 %v6915_v1  ;;  %v3228_v1 = vld [vmem:[#allocation7 + $0x380] sm:$0xff] }
 0x15f   : > { %6562 = vmatpush3.bf16.msra.mxu0 %v6916_v2  ;;  %v3213_v2 = vld [vmem:[#allocation7 + $0x308] sm:$0xff] }
 0x160   : > { %6584 = vmatpush3.bf16.msra.mxu1 %v6917_v3  ;;  %6563 = vmatprep.subr.bf16.mxu0 %v6918_v4  ;;  %v6071_v3 = vcombine.high %v3212_v0, %v3228_v1  ;;  %v3229_v4 = vld [vmem:[#allocation7 + $0x388] sm:$0xff] }
 0x161   : > { %6585 = vmatprep.subr.bf16.mxu1 %v6919_v5  ;;  %v6070_v5 = vcombine.low %v3212_v0, %v3228_v1 }
 0x163   : > { %6564 = vmatpush3.bf16.msra.mxu0 %v6920_v6  ;;  %v6072_v6 = vcombine.low %v3213_v2, %v3229_v4 }
 0x164   : > { %6586 = vmatpush3.bf16.msra.mxu1 %v6921_v7  ;;  %6565 = vmatprep.subr.bf16.mxu0 %v6922_v8  ;;  %v6073_v7 = vcombine.high %v3213_v2, %v3229_v4  ;;  %v3180_v8 = vld [vmem:[#allocation7 + $0x200] sm:$0xff] }
 0x165   : > { %6587 = vmatprep.subr.bf16.mxu1 %v6923_v9  ;;  %v3196_v9 = vld [vmem:[#allocation7 + $0x280] sm:$0xff] }
 0x167   : > { %6566 = vmatpush3.bf16.msra.mxu0 %v6924_v10  ;;  %v3181_v10 = vld [vmem:[#allocation7 + $0x208] sm:$0xff] }
 0x168   : > { %6588 = vmatpush3.bf16.msra.mxu1 %v6925_v11  ;;  %6567 = vmatprep.subr.bf16.mxu0 %v6926_v12  ;;  %v6039_v11 = vcombine.high %v3180_v8, %v3196_v9  ;;  %v3197_v12 = vld [vmem:[#allocation7 + $0x288] sm:$0xff] }
 0x169   : > { %6589 = vmatprep.subr.bf16.mxu1 %v6927_v13  ;;  %v6038_v13 = vcombine.low %v3180_v8, %v3196_v9 }
 0x16b   : > { %6568 = vmatpush3.bf16.msra.mxu0 %v6928_v14  ;;  %v6040_v14 = vcombine.low %v3181_v10, %v3197_v12 }
 0x16c   : > { %6590 = vmatpush3.bf16.msra.mxu1 %v6929_v15  ;;  %6569 = vmatprep.subr.bf16.mxu0 %v6930_v16  ;;  %v6041_v15 = vcombine.high %v3181_v10, %v3197_v12  ;;  %v3148_v16 = vld [vmem:[#allocation7 + $0x100] sm:$0xff] }
 0x16d   : > { %6591 = vmatprep.subr.bf16.mxu1 %v6931_v17  ;;  %v3164_v17 = vld [vmem:[#allocation7 + $0x180] sm:$0xff] }
 0x16e   : > { %v6006_v21 = vcombine.low %v3148_v16, %v3164_v17  ;;  %v5717_v12 = vld [vmem:[%s7643_s2] ss:$0 sm:$0xff] }
 0x16f   : > { %6570 = vmatpush3.bf16.msra.mxu0 %v6932_v18  ;;  %v3149_v18 = vld [vmem:[#allocation7 + $0x108] sm:$0xff] }
 0x170   : > { %6592 = vmatpush3.bf16.msra.mxu1 %v6933_v19  ;;  %4820 = vmatprep.subr.bf16.mxu0 %v6199_v36  ;;  %v6007_v19 = vcombine.high %v3148_v16, %v3164_v17  ;;  %v6008_v22 = vcombine.low %v3149_v18, %v3165_v20  ;;  %v6009_v23 = vcombine.high %v3149_v18, %v3165_v20 }
 0x171   : > { %4863 = vmatprep.subr.bf16.mxu1 %v6201_v41  ;;  %v6203_v36 = vcombine.high %v7385_v32, %v7387_v33  ;;  %v6263_v41 = vpop.f32.mrf.mxu0 }
 0x172   : > { %3064 = vmatmul.mubr.bf16.vlgmr.msra.gmra.mxu0 %v398_v28  ;;  %v3133_v28 = vld [vmem:[#allocation7 + $0x88] sm:$0xff] }
 0x173   : > { %3105 = vmatmul.mubr.bf16.vlgmr.msra.gmra.mxu1 %v400_v31  ;;  %4821 = vmatpush1.bf16.msra.mxu0 %v6198_v35  ;;  %v5976_v30 = vcombine.low %v3117_v26, %v3133_v28  ;;  %v5977_v31 = vcombine.high %v3117_v26, %v3133_v28  ;;  %v6202_v35 = vcombine.low %v7385_v32, %v7387_v33  ;;  %v6264_v43 = vpop.f32.mrf.mxu0 }
 0x174   : > { %4864 = vmatpush1.bf16.msra.mxu1 %v6200_v40  ;;  %4822 = vmatprep.subr.bf16.mxu0 %v6167_v42  ;;  %v6205_v40 = vcombine.high %v7389_v34, %v7395_v37  ;;  %v6285_v42 = vpop.f32.mrf.mxu1  ;;  %v6265_v10 = vadd.f32 %v6264_v43, %v6263_v41  ;;  %v3214_v37 = vld [vmem:[#allocation7 + $0x310] sm:$0xff] }
 0x175   : > { %4865 = vmatprep.subr.bf16.mxu1 %v6169_v46  ;;  %4852 = vmatprep.mubr.bf16.mxu0 %v7122_v38  ;;  %v6266_v45 = vpop.f32.mrf.mxu0 }
 0x176   : > { %4895 = vmatprep.mubr.bf16.mxu1 %v7122_v38  ;;  %v6286_v44 = vpop.f32.mrf.mxu1 }
 0x177   : > { %4823 = vmatpush1.bf16.msra.mxu0 %v6166_v50  ;;  %v6267_v47 = vpop.f32.mrf.mxu0 }
 0x178   : > { %4866 = vmatpush1.bf16.msra.mxu1 %v6168_v51  ;;  %4824 = vmatprep.subr.bf16.mxu0 %v6135_v52  ;;  %v6288_v46 = vpop.f32.mrf.mxu1  ;;  %v6268_v16 = vadd.f32 %v6267_v47, %v6266_v45 }
 0x179   : > { %4867 = vmatprep.subr.bf16.mxu1 %v6137_v53  ;;  %v6307_v48 = vpop.f32.mrf.mxu0 }
 0x17a   : > { %v6289_v49 = vpop.f32.mrf.mxu1 }
 0x17b   : > { %4825 = vmatpush1.bf16.msra.mxu0 %v6134_v58  ;;  %v6308_v51 = vpop.f32.mrf.mxu0  ;;  %v6290_v24 = vadd.f32 %v6289_v49, %v6288_v46 }
 0x17c   : > { %4868 = vmatpush1.bf16.msra.mxu1 %v6136_v59  ;;  %4826 = vmatprep.subr.bf16.mxu0 %v6103_v60  ;;  %v6329_v50 = vpop.f32.mrf.mxu1 }
 0x17d   : > { %4869 = vmatprep.subr.bf16.mxu1 %v6105_v61  ;;  %v6310_v53 = vpop.f32.mrf.mxu0 }
 0x17e   : > { %v6330_v52 = vpop.f32.mrf.mxu1 }
 0x17f   : > { %4827 = vmatpush1.bf16.msra.mxu0 %v6102_v62  ;;  %v6311_v55 = vpop.f32.mrf.mxu0  ;;  %v6331_v26 = vadd.f32 %v6330_v52, %v6329_v50 }
 0x180   : > { %4870 = vmatpush1.bf16.msra.mxu1 %v6104_v63  ;;  %4828 = vmatprep.subr.bf16.mxu0 %v6071_v3  ;;  %v6332_v54 = vpop.f32.mrf.mxu1 }
 0x181   : > { %4871 = vmatprep.subr.bf16.mxu1 %v6073_v7 }
 0x182   : > { %v6333_v57 = vpop.f32.mrf.mxu1 }
 0x183   : > { %4829 = vmatpush1.bf16.msra.mxu0 %v6070_v5  ;;  %v6334_v43 = vadd.f32 %v6333_v57, %v6332_v54 }
 0x184   : > { %4872 = vmatpush1.bf16.msra.mxu1 %v6072_v6  ;;  %4830 = vmatprep.subr.bf16.mxu0 %v6039_v11 }
 0x185   : > { %4873 = vmatprep.subr.bf16.mxu1 %v6041_v15  ;;  %v6287_v15 = vadd.f32 %v6286_v44, %v6285_v42 }
 0x187   : > { %4831 = vmatpush1.bf16.msra.mxu0 %v6038_v13 }
 0x188   : > { %4874 = vmatpush1.bf16.msra.mxu1 %v6040_v14  ;;  %4832 = vmatprep.subr.bf16.mxu0 %v6007_v19  ;;  %v2492_v14 = vadd.f32 %v6265_v10, %v5717_v12  ;;  %v6309_v19 = vadd.f32 %v6308_v51, %v6307_v48 }
 0x189   : > { %4875 = vmatprep.subr.bf16.mxu1 %v6009_v23 }
 0x18a   : > { %v2533_v20 = vadd.f32 %v6287_v15, %v2492_v14 }
 0x18b   : > { %4833 = vmatpush1.bf16.msra.mxu0 %v6006_v21  ;;  %v2495_v21 = vadd.f32 %v6268_v16, %v5717_v12 }
 0x18c   : > { %4876 = vmatpush1.bf16.msra.mxu1 %v6008_v22  ;;  %4834 = vmatprep.subr.bf16.mxu0 %v5975_v27  ;;  %v2574_v25 = vadd.f32 %v6309_v19, %v2533_v20  ;;  %v6312_v27 = vadd.f32 %v6311_v55, %v6310_v53 }
 0x18d   : > { %4877 = vmatprep.subr.bf16.mxu1 %v5977_v31 }
 0x18f   : > { %4835 = vmatpush1.bf16.msra.mxu0 %v5974_v29  ;;  %v2536_v29 = vadd.f32 %v6290_v24, %v2495_v21 }
 0x190   : > { %4878 = vmatpush1.bf16.msra.mxu1 %v5976_v30  ;;  %4906 = vmatprep.subr.bf16.mxu0 %v6203_v36  ;;  %v2615_v36 = vadd.f32 %v6331_v26, %v2574_v25 }
 0x191   : > { %4949 = vmatprep.subr.bf16.mxu1 %v6205_v40  ;;  %v2577_v40 = vadd.f32 %v6312_v27, %v2536_v29 }
 0x192   : > { %v6351_v56 = vpop.f32.mrf.mxu0 }
 0x193   : > { %v6373_v58 = vpop.f32.mrf.mxu1  ;;  %v2618_v48 = vadd.f32 %v6334_v43, %v2577_v40 }
 0x194   : > { %v6352_v59 = vpop.f32.mrf.mxu0 }
 0x195   : > { %v6374_v60 = vpop.f32.mrf.mxu1  ;;  %v6353_v30 = vadd.f32 %v6352_v59, %v6351_v56 }
 0x196   : > { %v6354_v61 = vpop.f32.mrf.mxu0  ;;  %v6375_v45 = vadd.f32 %v6374_v60, %v6373_v58 }
 0x197   : > { %v6376_v62 = vpop.f32.mrf.mxu1  ;;  %v2656_v44 = vadd.f32 %v6353_v30, %v2615_v36 }
 0x198   : > { %v6355_v63 = vpop.f32.mrf.mxu0 }
 0x199   : > { %v6377_v1 = vpop.f32.mrf.mxu1  ;;  %v6356_v47 = vadd.f32 %v6355_v63, %v6354_v61  ;;  %v2697_v46 = vadd.f32 %v6375_v45, %v2656_v44 }
 0x19a   : > { %v6378_v50 = vadd.f32 %v6377_v1, %v6376_v62 }
 0x19b   : > { %v2659_v49 = vadd.f32 %v6356_v47, %v2618_v48 }
 0x19d   : > { %v2700_v14 = vadd.f32 %v6378_v50, %v2659_v49 }
 0x1b2   : > { %v6395_v0 = vpop.f32.mrf.mxu0 }
 0x1b3   : > { %v6417_v2 = vpop.f32.mrf.mxu1 }
 0x1b4   : > { %v6396_v3 = vpop.f32.mrf.mxu0 }
 0x1b5   : > { %v6418_v4 = vpop.f32.mrf.mxu1  ;;  %v6397_v51 = vadd.f32 %v6396_v3, %v6395_v0 }
 0x1b6   : > { %v6398_v5 = vpop.f32.mrf.mxu0  ;;  %v6419_v53 = vadd.f32 %v6418_v4, %v6417_v2 }
 0x1b7   : > { %v6420_v6 = vpop.f32.mrf.mxu1  ;;  %v2738_v52 = vadd.f32 %v6397_v51, %v2697_v46 }
 0x1b8   : > { %v6399_v7 = vpop.f32.mrf.mxu0 }
 0x1b9   : > { %v6421_v9 = vpop.f32.mrf.mxu1  ;;  %v6400_v55 = vadd.f32 %v6399_v7, %v6398_v5  ;;  %v2779_v19 = vadd.f32 %v6419_v53, %v2738_v52 }
 0x1ba   : > { %v6422_v58 = vadd.f32 %v6421_v9, %v6420_v6 }
 0x1bb   : > { %v2741_v54 = vadd.f32 %v6400_v55, %v2700_v14  ;;  %v3310_v55 = vld [vmem:[#allocation7 + $0x610] sm:$0xff]  ;;  %v3327_v14 = vld [vmem:[#allocation7 + $0x698] sm:$0xff] }
 0x1bd   : > { %v2782_v20 = vadd.f32 %v6422_v58, %v2741_v54  ;;  %v3278_v58 = vld [vmem:[#allocation7 + $0x510] sm:$0xff] }
 0x1d2   : > { %v6439_v8 = vpop.f32.mrf.mxu0 }
 0x1d3   : > { %v6461_v11 = vpop.f32.mrf.mxu1 }
 0x1d4   : > { %v6440_v13 = vpop.f32.mrf.mxu0 }
 0x1d5   : > { %v6462_v17 = vpop.f32.mrf.mxu1  ;;  %v6441_v15 = vadd.f32 %v6440_v13, %v6439_v8 }
 0x1d6   : > { %v6442_v18 = vpop.f32.mrf.mxu0  ;;  %v6463_v61 = vadd.f32 %v6462_v17, %v6461_v11 }
 0x1d7   : > { %v6464_v22 = vpop.f32.mrf.mxu1  ;;  %v2820_v60 = vadd.f32 %v6441_v15, %v2779_v19 }
 0x1d8   : > { %v6443_v23 = vpop.f32.mrf.mxu0 }
 0x1d9   : > { %v6465_v31 = vpop.f32.mrf.mxu1  ;;  %v6444_v63 = vadd.f32 %v6443_v23, %v6442_v18  ;;  %v2861_v62 = vadd.f32 %v6463_v61, %v2820_v60  ;;  %v3294_v60 = vld [vmem:[#allocation7 + $0x590] sm:$0xff]  ;;  %v3279_v61 = vld [vmem:[#allocation7 + $0x518] sm:$0xff] }
 0x1da   : > { %v6466_v5 = vadd.f32 %v6465_v31, %v6464_v22  ;;  %v6138_v32 = vcombine.low %v3278_v58, %v3294_v60 }
 0x1db   : > { %v2823_v1 = vadd.f32 %v6444_v63, %v2782_v20  ;;  %v3295_v63 = vld [vmem:[#allocation7 + $0x598] sm:$0xff]  ;;  %v6139_v20 = vcombine.high %v3278_v58, %v3294_v60 }
 0x1dc   : > { %v6140_v33 = vcombine.low %v3279_v61, %v3295_v63 }
 0x1dd   : > { %v2864_v13 = vadd.f32 %v6466_v5, %v2823_v1  ;;  %v3262_v1 = vld [vmem:[#allocation7 + $0x490] sm:$0xff]  ;;  %v3215_v5 = vld [vmem:[#allocation7 + $0x318] sm:$0xff] }
 0x1f2   : > { %v6483_v28 = vpop.f32.mrf.mxu0 }
 0x1f3   : > { %v6505_v41 = vpop.f32.mrf.mxu1 }
 0x1f4   : > { %v6484_v42 = vpop.f32.mrf.mxu0 }
 0x1f5   : > { %v6506_v10 = vpop.f32.mrf.mxu1  ;;  %v6485_v21 = vadd.f32 %v6484_v42, %v6483_v28 }
 0x1f6   : > { %v6486_v12 = vpop.f32.mrf.mxu0  ;;  %v6507_v24 = vadd.f32 %v6506_v10, %v6505_v41 }
 0x1f7   : > { %v6508_v56 = vpop.f32.mrf.mxu1  ;;  %v2902_v7 = vadd.f32 %v6485_v21, %v2861_v62  ;;  %v6141_v21 = vcombine.high %v3279_v61, %v3295_v63  ;;  %v3246_v62 = vld [vmem:[#allocation7 + $0x410] sm:$0xff]  ;;  %v3280_v61 = vld [vmem:[#allocation7 + $0x520] sm:$0xff] }
 0x1f8   : > { %v6487_v59 = vpop.f32.mrf.mxu0  ;;  %v6107_v34 = vcombine.high %v3246_v62, %v3262_v1  ;;  %v3296_v63 = vld [vmem:[#allocation7 + $0x5a0] sm:$0xff] }
 0x1f9   : > { %v6509_v57 = vpop.f32.mrf.mxu1  ;;  %v6488_v8 = vadd.f32 %v6487_v59, %v6486_v12  ;;  %v2943_v6 = vadd.f32 %v6507_v24, %v2902_v7  ;;  %v3311_v59 = vld [vmem:[#allocation7 + $0x618] sm:$0xff]  ;;  %v6106_v24 = vcombine.low %v3246_v62, %v3262_v1  ;;  %v6143_v62 = vcombine.high %v3280_v61, %v3296_v63 }
 0x1fa   : > { %v6510_v11 = vadd.f32 %v6509_v57, %v6508_v56  ;;  %v3326_v56 = vld [vmem:[#allocation7 + $0x690] sm:$0xff]  ;;  %v6173_v57 = vcombine.high %v3311_v59, %v3327_v14  ;;  %v3231_v7 = vld [vmem:[#allocation7 + $0x398] sm:$0xff] }
 0x1fb   : > { %v2905_v9 = vadd.f32 %v6488_v8, %v2864_v13  ;;  %v6171_v54 = vcombine.high %v3310_v55, %v3326_v56 }
 0x1fd   : > { %v2946_v30 = vadd.f32 %v6510_v11, %v2905_v9  ;;  %v3199_v9 = vld [vmem:[#allocation7 + $0x298] sm:$0xff] }
 0x212   : > { %v6527_v16 = vpop.f32.mrf.mxu0 }
 0x213   : > { %v6549_v0 = vpop.f32.mrf.mxu1 }
 0x214   : > { %v6528_v3 = vpop.f32.mrf.mxu0 }
 0x215   : > { %v6550_v2 = vpop.f32.mrf.mxu1  ;;  %v6529_v25 = vadd.f32 %v6528_v3, %v6527_v16  ;;  %v6172_v3 = vcombine.low %v3311_v59, %v3327_v14  ;;  %v3312_v59 = vld [vmem:[#allocation7 + $0x620] sm:$0xff] }
 0x216   : > { %v6530_v4 = vpop.f32.mrf.mxu0  ;;  %v6551_v18 = vadd.f32 %v6550_v2, %v6549_v0  ;;  %v6170_v0 = vcombine.low %v3310_v55, %v3326_v56  ;;  %v3247_v2 = vld [vmem:[#allocation7 + $0x418] sm:$0xff]  ;;  %v3328_v14 = vld [vmem:[#allocation7 + $0x6a0] sm:$0xff] }
 0x217   : > { %v6552_v26 = vpop.f32.mrf.mxu1  ;;  %v2984_v17 = vadd.f32 %v6529_v25, %v2943_v6  ;;  %v6077_v25 = vcombine.high %v3215_v5, %v3231_v7  ;;  %v3183_v6 = vld [vmem:[#allocation7 + $0x218] sm:$0xff]  ;;  %v6175_v58 = vcombine.high %v3312_v59, %v3328_v14 }
 0x218   : > { %v6531_v27 = vpop.f32.mrf.mxu0 }
 0x219   : > { %v6532_v23 = vadd.f32 %v6531_v27, %v6530_v4  ;;  %v6553_v29 = vpop.f32.mrf.mxu1  ;;  %v3025_v42 = vadd.f32 %v6551_v18, %v2984_v17  ;;  %v3263_v4 = vld [vmem:[#allocation7 + $0x498] sm:$0xff]  ;;  %v3198_v27 = vld [vmem:[#allocation7 + $0x290] sm:$0xff]  ;;  %v6076_v17 = vcombine.low %v3215_v5, %v3231_v7  ;;  %v3216_v5 = vld [vmem:[#allocation7 + $0x320] sm:$0xff] }
 0x21a   : > { %v6554_v44 = vadd.f32 %v6553_v29, %v6552_v26  ;;  %v6108_v8 = vcombine.low %v3247_v2, %v3263_v4  ;;  %v3182_v26 = vld [vmem:[#allocation7 + $0x210] sm:$0xff]  ;;  %v3232_v7 = vld [vmem:[#allocation7 + $0x3a0] sm:$0xff] }
 0x21b   : > { %v2987_v22 = vadd.f32 %v6532_v23, %v2946_v30  ;;  %v6043_v18 = vcombine.high %v3182_v26, %v3198_v27  ;;  %v6045_v23 = vcombine.high %v3183_v6, %v3199_v9  ;;  %v3150_v29 = vld [vmem:[#allocation7 + $0x110] sm:$0xff]  ;;  %v3151_v30 = vld [vmem:[#allocation7 + $0x118] sm:$0xff] }
 0x21d   : > { %v3028_v51 = vadd.f32 %v6554_v44, %v2987_v22  ;;  %v3119_v44 = vld [vmem:[#allocation7 + $0x18] sm:$0xff] }
 0x232   : > { %v6571_v28 = vpop.f32.mrf.mxu0 }
 0x233   : > { %v6593_v36 = vpop.f32.mrf.mxu1 }
 0x234   : > { %v6572_v40 = vpop.f32.mrf.mxu0 }
 0x235   : > { %v6573_v31 = vadd.f32 %v6572_v40, %v6571_v28  ;;  %v6594_v41 = vpop.f32.mrf.mxu1  ;;  %v3166_v28 = vld [vmem:[#allocation7 + $0x190] sm:$0xff]  ;;  %v6042_v40 = vcombine.low %v3182_v26, %v3198_v27  ;;  %v6079_v26 = vcombine.high %v3216_v5, %v3232_v7 }
 0x236   : > { %v6574_v43 = vpop.f32.mrf.mxu0  ;;  %v6595_v10 = vadd.f32 %v6594_v41, %v6593_v36  ;;  %v3167_v36 = vld [vmem:[#allocation7 + $0x198] sm:$0xff]  ;;  %v6011_v22 = vcombine.high %v3150_v29, %v3166_v28  ;;  %v3118_v41 = vld [vmem:[#allocation7 + $0x10] sm:$0xff] }
 0x237   : > { %v3066_v45 = vadd.f32 %v6573_v31, %v3025_v42  ;;  %v6596_v47 = vpop.f32.mrf.mxu1  ;;  %v6044_v42 = vcombine.low %v3183_v6, %v3199_v9  ;;  %v6013_v31 = vcombine.high %v3151_v30, %v3167_v36  ;;  %v3184_v6 = vld [vmem:[#allocation7 + $0x220] sm:$0xff] }
 0x238   : > { %v6575_v48 = vpop.f32.mrf.mxu0  ;;  %v3200_v9 = vld [vmem:[#allocation7 + $0x2a0] sm:$0xff] }
 0x239   : > { %v6576_v12 = vadd.f32 %v6575_v48, %v6574_v43  ;;  %v6597_v46 = vpop.f32.mrf.mxu1  ;;  %v3107_v49 = vadd.f32 %v6595_v10, %v3066_v45  ;;  %v3134_v43 = vld [vmem:[#allocation7 + $0x90] sm:$0xff]  ;;  %v3135_v45 = vld [vmem:[#allocation7 + $0x98] sm:$0xff]  ;;  %v6012_v48 = vcombine.low %v3151_v30, %v3167_v36  ;;  %v3152_v30 = vld [vmem:[#allocation7 + $0x120] sm:$0xff] }
 0x23a   : > { %v6598_v52 = vadd.f32 %v6597_v46, %v6596_v47  ;;  %v6010_v47 = vcombine.low %v3150_v29, %v3166_v28  ;;  %v5981_v10 = vcombine.high %v3119_v44, %v3135_v45  ;;  %v3360_v46 = vld [vmem:[#allocation7 + $0x7a0] sm:$0xff]  ;;  %v6047_v29 = vcombine.high %v3184_v6, %v3200_v9 }
 0x23b   : > { %v3069_v50 = vadd.f32 %v6576_v12, %v3028_v51  ;;  %v3113_v15 = vmax.f32 %v3107_v49, 0.0  ;;  %v5979_v51 = vcombine.high %v3118_v41, %v3134_v43  ;;  %v3344_v12 = vld [vmem:[#allocation7 + $0x720] sm:$0xff]  ;;  %v3345_v49 = vld [vmem:[#allocation7 + $0x728] sm:$0xff] }
 0x23c   : > { %v6207_v55 = vcombine.high %v3344_v12, %v3360_v46  ;;  %v3168_v36 = vld [vmem:[#allocation7 + $0x1a0] sm:$0xff] }
 0x23d   : > { %v3110_v53 = vadd.f32 %v6598_v52, %v3069_v50  ;;  %v3361_v50 = vld [vmem:[#allocation7 + $0x7a8] sm:$0xff]  ;;  %v5978_v52 = vcombine.low %v3118_v41, %v3134_v43  ;;  %v6015_v41 = vcombine.high %v3152_v30, %v3168_v36 }
 0x23e   : > { %v6209_v56 = vcombine.high %v3345_v49, %v3361_v50 }
 0x23f   : > { %v3114_v16 = vmax.f32 %v3110_v53, 0.0  ;;  %v5980_v53 = vcombine.low %v3119_v44, %v3135_v45  ;;  %v3120_v44 = vld [vmem:[#allocation7 + $0x20] sm:$0xff] }
 0x240   : > { %v3136_v45 = vld [vmem:[#allocation7 + $0xa0] sm:$0xff] }
 0x241   : > { %v7406_v19 = vpack.c.bf16 %v3114_v16, %v3113_v15  ;;  %v3313_v15 = vld [vmem:[#allocation7 + $0x628] sm:$0xff] }
 0x242   : > { %v3329_v16 = vld [vmem:[#allocation7 + $0x6a8] sm:$0xff] }
 0x243   : > { %4853 = vmatmul.mubr.bf16.vlgmr.msra.gmra.mxu0 %v7406_v19  ;;  %4896 = vmatmul.mubr.bf16.vlgmr.msra.gmra.mxu1 %v7406_v19  ;;  %v6177_v60 = vcombine.high %v3313_v15, %v3329_v16 }
 0x244   : > { %4907 = vmatpush1.bf16.msra.mxu0 %v6202_v35  ;;  %4950 = vmatpush1.bf16.msra.mxu1 %v6204_v39  ;;  %v6109_v35 = vcombine.high %v3247_v2, %v3263_v4  ;;  %v3230_v39 = vld [vmem:[#allocation7 + $0x390] sm:$0xff]  ;;  %v3248_v2 = vld [vmem:[#allocation7 + $0x420] sm:$0xff] }
 0x245   : > { %4908 = vmatprep.subr.bf16.mxu0 %v6171_v54  ;;  %4951 = vmatprep.subr.bf16.mxu1 %v6173_v57  ;;  %v6075_v13 = vcombine.high %v3214_v37, %v3230_v39  ;;  %v6074_v11 = vcombine.low %v3214_v37, %v3230_v39  ;;  %v6206_v54 = vcombine.low %v3344_v12, %v3360_v46  ;;  %v3264_v4 = vld [vmem:[#allocation7 + $0x4a0] sm:$0xff] }
 0x246   : > { %4938 = vmatprep.mubr.bf16.mxu0 %v7122_v38  ;;  %4981 = vmatprep.mubr.bf16.mxu1 %v7122_v38  ;;  %v6208_v57 = vcombine.low %v3345_v49, %v3361_v50  ;;  %v6111_v37 = vcombine.high %v3248_v2, %v3264_v4  ;;  %v5983_v12 = vcombine.high %v3120_v44, %v3136_v45  ;;  %v3346_v49 = vld [vmem:[#allocation7 + $0x730] sm:$0xff] }
 0x247   : > { %v3362_v50 = vld [vmem:[#allocation7 + $0x7b0] sm:$0xff] }
 0x248   : > { %4909 = vmatpush1.bf16.msra.mxu0 %v6170_v0  ;;  %4952 = vmatpush1.bf16.msra.mxu1 %v6172_v3  ;;  %v3281_v0 = vld [vmem:[#allocation7 + $0x528] sm:$0xff] }
 0x249   : > { %4910 = vmatprep.subr.bf16.mxu0 %v6139_v20  ;;  %4953 = vmatprep.subr.bf16.mxu1 %v6141_v21  ;;  %v3297_v3 = vld [vmem:[#allocation7 + $0x5a8] sm:$0xff]  ;;  %v6174_v20 = vcombine.low %v3312_v59, %v3328_v14  ;;  %v6176_v21 = vcombine.low %v3313_v15, %v3329_v16  ;;  %v6211_v59 = vcombine.high %v3346_v49, %v3362_v50  ;;  %v3314_v15 = vld [vmem:[#allocation7 + $0x630] sm:$0xff] }
 0x24a   : > { %v6145_v1 = vcombine.high %v3281_v0, %v3297_v3  ;;  %v3330_v16 = vld [vmem:[#allocation7 + $0x6b0] sm:$0xff] }
 0x24c   : > { %4911 = vmatpush1.bf16.msra.mxu0 %v6138_v32  ;;  %4954 = vmatpush1.bf16.msra.mxu1 %v6140_v33  ;;  %v3249_v32 = vld [vmem:[#allocation7 + $0x428] sm:$0xff] }
 0x24d   : > { %4912 = vmatprep.subr.bf16.mxu0 %v6107_v34  ;;  %4955 = vmatprep.subr.bf16.mxu1 %v6109_v35  ;;  %v3265_v33 = vld [vmem:[#allocation7 + $0x4a8] sm:$0xff]  ;;  %v6142_v34 = vcombine.low %v3280_v61, %v3296_v63  ;;  %v6144_v35 = vcombine.low %v3281_v0, %v3297_v3  ;;  %v6179_v61 = vcombine.high %v3314_v15, %v3330_v16  ;;  %v3282_v0 = vld [vmem:[#allocation7 + $0x530] sm:$0xff] }
 0x24e   : > { %v6113_v39 = vcombine.high %v3249_v32, %v3265_v33  ;;  %v3298_v3 = vld [vmem:[#allocation7 + $0x5b0] sm:$0xff] }
 0x250   : > { %4913 = vmatpush1.bf16.msra.mxu0 %v6106_v24  ;;  %4956 = vmatpush1.bf16.msra.mxu1 %v6108_v8  ;;  %v3217_v24 = vld [vmem:[#allocation7 + $0x328] sm:$0xff] }
 0x251   : > { %4914 = vmatprep.subr.bf16.mxu0 %v6075_v13  ;;  %4957 = vmatprep.subr.bf16.mxu1 %v6077_v25  ;;  %v3233_v8 = vld [vmem:[#allocation7 + $0x3a8] sm:$0xff]  ;;  %v6110_v13 = vcombine.low %v3248_v2, %v3264_v4  ;;  %v6112_v25 = vcombine.low %v3249_v32, %v3265_v33  ;;  %v6147_v2 = vcombine.high %v3282_v0, %v3298_v3  ;;  %v3250_v32 = vld [vmem:[#allocation7 + $0x430] sm:$0xff] }
 0x252   : > { %v6081_v27 = vcombine.high %v3217_v24, %v3233_v8  ;;  %v3266_v33 = vld [vmem:[#allocation7 + $0x4b0] sm:$0xff] }
 0x254   : > { %4915 = vmatpush1.bf16.msra.mxu0 %v6074_v11  ;;  %4958 = vmatpush1.bf16.msra.mxu1 %v6076_v17  ;;  %v3185_v11 = vld [vmem:[#allocation7 + $0x228] sm:$0xff] }
 0x255   : > { %4916 = vmatprep.subr.bf16.mxu0 %v6043_v18  ;;  %4959 = vmatprep.subr.bf16.mxu1 %v6045_v23  ;;  %v3201_v17 = vld [vmem:[#allocation7 + $0x2a8] sm:$0xff]  ;;  %v6078_v18 = vcombine.low %v3216_v5, %v3232_v7  ;;  %v6080_v23 = vcombine.low %v3217_v24, %v3233_v8  ;;  %v6115_v5 = vcombine.high %v3250_v32, %v3266_v33  ;;  %v3218_v24 = vld [vmem:[#allocation7 + $0x330] sm:$0xff] }
 0x256   : > { %v6049_v28 = vcombine.high %v3185_v11, %v3201_v17  ;;  %v3234_v8 = vld [vmem:[#allocation7 + $0x3b0] sm:$0xff] }
 0x258   : > { %4917 = vmatpush1.bf16.msra.mxu0 %v6042_v40  ;;  %4960 = vmatpush1.bf16.msra.mxu1 %v6044_v42  ;;  %v3153_v40 = vld [vmem:[#allocation7 + $0x128] sm:$0xff] }
 0x259   : > { %4918 = vmatprep.subr.bf16.mxu0 %v6011_v22  ;;  %4961 = vmatprep.subr.bf16.mxu1 %v6013_v31  ;;  %v3169_v42 = vld [vmem:[#allocation7 + $0x1a8] sm:$0xff]  ;;  %v6046_v22 = vcombine.low %v3184_v6, %v3200_v9  ;;  %v6048_v31 = vcombine.low %v3185_v11, %v3201_v17  ;;  %v6083_v6 = vcombine.high %v3218_v24, %v3234_v8  ;;  %v3186_v11 = vld [vmem:[#allocation7 + $0x230] sm:$0xff] }
 0x25a   : > { %v6017_v43 = vcombine.high %v3153_v40, %v3169_v42  ;;  %v3202_v17 = vld [vmem:[#allocation7 + $0x2b0] sm:$0xff] }
 0x25c   : > { %4919 = vmatpush1.bf16.msra.mxu0 %v6010_v47  ;;  %4962 = vmatpush1.bf16.msra.mxu1 %v6012_v48  ;;  %v3121_v47 = vld [vmem:[#allocation7 + $0x28] sm:$0xff] }
 0x25d   : > { %4920 = vmatprep.subr.bf16.mxu0 %v5979_v51  ;;  %4963 = vmatprep.subr.bf16.mxu1 %v5981_v10  ;;  %v3137_v48 = vld [vmem:[#allocation7 + $0xa8] sm:$0xff]  ;;  %v6014_v51 = vcombine.low %v3152_v30, %v3168_v36  ;;  %v6016_v10 = vcombine.low %v3153_v40, %v3169_v42  ;;  %v6051_v30 = vcombine.high %v3186_v11, %v3202_v17  ;;  %v3154_v40 = vld [vmem:[#allocation7 + $0x130] sm:$0xff] }
 0x25e   : > { %v5985_v46 = vcombine.high %v3121_v47, %v3137_v48  ;;  %v3170_v42 = vld [vmem:[#allocation7 + $0x1b0] sm:$0xff] }
 0x260   : > { %4921 = vmatpush1.bf16.msra.mxu0 %v5978_v52  ;;  %4964 = vmatpush1.bf16.msra.mxu1 %v5980_v53  ;;  %v3347_v52 = vld [vmem:[#allocation7 + $0x738] sm:$0xff] }
 0x261   : > { %4992 = vmatprep.subr.bf16.mxu0 %v6207_v55  ;;  %5035 = vmatprep.subr.bf16.mxu1 %v6209_v56  ;;  %v3363_v53 = vld [vmem:[#allocation7 + $0x7b8] sm:$0xff]  ;;  %v5982_v55 = vcombine.low %v3120_v44, %v3136_v45  ;;  %v5984_v56 = vcombine.low %v3121_v47, %v3137_v48  ;;  %v6019_v44 = vcombine.high %v3154_v40, %v3170_v42  ;;  %v3122_v47 = vld [vmem:[#allocation7 + $0x30] sm:$0xff] }
 0x262   : > { %v6213_v14 = vcombine.high %v3347_v52, %v3363_v53  ;;  %v3138_v48 = vld [vmem:[#allocation7 + $0xb0] sm:$0xff] }
 0x263   : > { %4939 = vmatmul.mubr.bf16.vlgmr.msra.gmra.mxu0 %v7406_v19  ;;  %4982 = vmatmul.mubr.bf16.vlgmr.msra.gmra.mxu1 %v7406_v19 }
 0x264   : > { %4993 = vmatpush1.bf16.msra.mxu0 %v6206_v54  ;;  %5036 = vmatpush1.bf16.msra.mxu1 %v6208_v57  ;;  %v3315_v54 = vld [vmem:[#allocation7 + $0x638] sm:$0xff] }
 0x265   : > { %4994 = vmatprep.subr.bf16.mxu0 %v6175_v58  ;;  %5037 = vmatprep.subr.bf16.mxu1 %v6177_v60  ;;  %v3331_v57 = vld [vmem:[#allocation7 + $0x6b8] sm:$0xff]  ;;  %v6210_v58 = vcombine.low %v3346_v49, %v3362_v50  ;;  %v6212_v60 = vcombine.low %v3347_v52, %v3363_v53  ;;  %v5987_v49 = vcombine.high %v3122_v47, %v3138_v48  ;;  %v3348_v52 = vld [vmem:[#allocation7 + $0x740] sm:$0xff] }
 0x266   : > { %5024 = vmatprep.mubr.bf16.mxu0 %v7122_v38  ;;  %5067 = vmatprep.mubr.bf16.mxu1 %v7122_v38  ;;  %v6181_v63 = vcombine.high %v3315_v54, %v3331_v57  ;;  %v3364_v53 = vld [vmem:[#allocation7 + $0x7c0] sm:$0xff] }
 0x268   : > { %4995 = vmatpush1.bf16.msra.mxu0 %v6174_v20  ;;  %5038 = vmatpush1.bf16.msra.mxu1 %v6176_v21  ;;  %v3283_v20 = vld [vmem:[#allocation7 + $0x538] sm:$0xff] }
 0x269   : > { %4996 = vmatprep.subr.bf16.mxu0 %v6143_v62  ;;  %5039 = vmatprep.subr.bf16.mxu1 %v6145_v1  ;;  %v3299_v21 = vld [vmem:[#allocation7 + $0x5b8] sm:$0xff]  ;;  %v6178_v62 = vcombine.low %v3314_v15, %v3330_v16  ;;  %v6180_v1 = vcombine.low %v3315_v54, %v3331_v57  ;;  %v6215_v15 = vcombine.high %v3348_v52, %v3364_v53  ;;  %v3316_v54 = vld [vmem:[#allocation7 + $0x640] sm:$0xff] }
 0x26a   : > { %v6149_v4 = vcombine.high %v3283_v20, %v3299_v21  ;;  %v3332_v57 = vld [vmem:[#allocation7 + $0x6c0] sm:$0xff] }
 0x26c   : > { %4997 = vmatpush1.bf16.msra.mxu0 %v6142_v34  ;;  %5040 = vmatpush1.bf16.msra.mxu1 %v6144_v35  ;;  %v3251_v34 = vld [vmem:[#allocation7 + $0x438] sm:$0xff] }
 0x26d   : > { %4998 = vmatprep.subr.bf16.mxu0 %v6111_v37  ;;  %5041 = vmatprep.subr.bf16.mxu1 %v6113_v39  ;;  %v3267_v35 = vld [vmem:[#allocation7 + $0x4b8] sm:$0xff]  ;;  %v6146_v37 = vcombine.low %v3282_v0, %v3298_v3  ;;  %v6148_v39 = vcombine.low %v3283_v20, %v3299_v21  ;;  %v6183_v0 = vcombine.high %v3316_v54, %v3332_v57  ;;  %v3284_v20 = vld [vmem:[#allocation7 + $0x540] sm:$0xff] }
 0x26e   : > { %v6117_v7 = vcombine.high %v3251_v34, %v3267_v35  ;;  %v3300_v21 = vld [vmem:[#allocation7 + $0x5c0] sm:$0xff] }
 0x270   : > { %4999 = vmatpush1.bf16.msra.mxu0 %v6110_v13  ;;  %5042 = vmatpush1.bf16.msra.mxu1 %v6112_v25  ;;  %v3219_v13 = vld [vmem:[#allocation7 + $0x338] sm:$0xff] }
 0x271   : > { %5000 = vmatprep.subr.bf16.mxu0 %v6079_v26  ;;  %5043 = vmatprep.subr.bf16.mxu1 %v6081_v27  ;;  %v3235_v25 = vld [vmem:[#allocation7 + $0x3b8] sm:$0xff]  ;;  %v6114_v26 = vcombine.low %v3250_v32, %v3266_v33  ;;  %v6116_v27 = vcombine.low %v3251_v34, %v3267_v35  ;;  %v6151_v32 = vcombine.high %v3284_v20, %v3300_v21  ;;  %v3252_v34 = vld [vmem:[#allocation7 + $0x440] sm:$0xff] }
 0x272   : > { %v6085_v9 = vcombine.high %v3219_v13, %v3235_v25  ;;  %v3268_v35 = vld [vmem:[#allocation7 + $0x4c0] sm:$0xff] }
 0x274   : > { %5001 = vmatpush1.bf16.msra.mxu0 %v6078_v18  ;;  %5044 = vmatpush1.bf16.msra.mxu1 %v6080_v23  ;;  %v3187_v18 = vld [vmem:[#allocation7 + $0x238] sm:$0xff] }
 0x275   : > { %5002 = vmatprep.subr.bf16.mxu0 %v6047_v29  ;;  %5045 = vmatprep.subr.bf16.mxu1 %v6049_v28  ;;  %v3203_v23 = vld [vmem:[#allocation7 + $0x2b8] sm:$0xff]  ;;  %v6082_v29 = vcombine.low %v3218_v24, %v3234_v8  ;;  %v6084_v28 = vcombine.low %v3219_v13, %v3235_v25  ;;  %v6119_v24 = vcombine.high %v3252_v34, %v3268_v35  ;;  %v3220_v13 = vld [vmem:[#allocation7 + $0x340] sm:$0xff] }
 0x276   : > { %v6053_v36 = vcombine.high %v3187_v18, %v3203_v23  ;;  %v3236_v25 = vld [vmem:[#allocation7 + $0x3c0] sm:$0xff] }
 0x278   : > { %5003 = vmatpush1.bf16.msra.mxu0 %v6046_v22  ;;  %5046 = vmatpush1.bf16.msra.mxu1 %v6048_v31  ;;  %v3155_v22 = vld [vmem:[#allocation7 + $0x138] sm:$0xff] }
 0x279   : > { %5004 = vmatprep.subr.bf16.mxu0 %v6015_v41  ;;  %5047 = vmatprep.subr.bf16.mxu1 %v6017_v43  ;;  %v3171_v31 = vld [vmem:[#allocation7 + $0x1b8] sm:$0xff]  ;;  %v6050_v41 = vcombine.low %v3186_v11, %v3202_v17  ;;  %v6052_v43 = vcombine.low %v3187_v18, %v3203_v23  ;;  %v6087_v11 = vcombine.high %v3220_v13, %v3236_v25  ;;  %v3188_v18 = vld [vmem:[#allocation7 + $0x240] sm:$0xff] }
 0x27a   : > { %v6021_v45 = vcombine.high %v3155_v22, %v3171_v31  ;;  %v3204_v23 = vld [vmem:[#allocation7 + $0x2c0] sm:$0xff] }
 0x27c   : > { %5005 = vmatpush1.bf16.msra.mxu0 %v6014_v51  ;;  %5048 = vmatpush1.bf16.msra.mxu1 %v6016_v10  ;;  %v3123_v51 = vld [vmem:[#allocation7 + $0x38] sm:$0xff] }
 0x27d   : > { %5006 = vmatprep.subr.bf16.mxu0 %v5983_v12  ;;  %5049 = vmatprep.subr.bf16.mxu1 %v5985_v46  ;;  %v3139_v10 = vld [vmem:[#allocation7 + $0xb8] sm:$0xff]  ;;  %v6018_v12 = vcombine.low %v3154_v40, %v3170_v42  ;;  %v6020_v46 = vcombine.low %v3155_v22, %v3171_v31  ;;  %v6055_v40 = vcombine.high %v3188_v18, %v3204_v23  ;;  %v3156_v22 = vld [vmem:[#allocation7 + $0x140] sm:$0xff] }
 0x27e   : > { %v5989_v50 = vcombine.high %v3123_v51, %v3139_v10  ;;  %v3172_v31 = vld [vmem:[#allocation7 + $0x1c0] sm:$0xff] }
 0x280   : > { %5007 = vmatpush1.bf16.msra.mxu0 %v5982_v55  ;;  %5050 = vmatpush1.bf16.msra.mxu1 %v5984_v56  ;;  %v3349_v55 = vld [vmem:[#allocation7 + $0x748] sm:$0xff] }
 0x281   : > { %5078 = vmatprep.subr.bf16.mxu0 %v6211_v59  ;;  %5121 = vmatprep.subr.bf16.mxu1 %v6213_v14  ;;  %v3365_v56 = vld [vmem:[#allocation7 + $0x7c8] sm:$0xff]  ;;  %v5986_v59 = vcombine.low %v3122_v47, %v3138_v48  ;;  %v5988_v14 = vcombine.low %v3123_v51, %v3139_v10  ;;  %v6023_v47 = vcombine.high %v3156_v22, %v3172_v31  ;;  %v3124_v51 = vld [vmem:[#allocation7 + $0x40] sm:$0xff] }
 0x282   : > { %v6217_v16 = vcombine.high %v3349_v55, %v3365_v56  ;;  %v3140_v10 = vld [vmem:[#allocation7 + $0xc0] sm:$0xff] }
 0x283   : > { %5025 = vmatmul.mubr.bf16.vlgmr.msra.gmra.mxu0 %v7406_v19  ;;  %5068 = vmatmul.mubr.bf16.vlgmr.msra.gmra.mxu1 %v7406_v19 }
 0x284   : > { %5079 = vmatpush1.bf16.msra.mxu0 %v6210_v58  ;;  %5122 = vmatpush1.bf16.msra.mxu1 %v6212_v60  ;;  %v3317_v58 = vld [vmem:[#allocation7 + $0x648] sm:$0xff] }
 0x285   : > { %5080 = vmatprep.subr.bf16.mxu0 %v6179_v61  ;;  %5123 = vmatprep.subr.bf16.mxu1 %v6181_v63  ;;  %v3333_v60 = vld [vmem:[#allocation7 + $0x6c8] sm:$0xff]  ;;  %v6214_v61 = vcombine.low %v3348_v52, %v3364_v53  ;;  %v6216_v63 = vcombine.low %v3349_v55, %v3365_v56  ;;  %v5991_v52 = vcombine.high %v3124_v51, %v3140_v10  ;;  %v3350_v55 = vld [vmem:[#allocation7 + $0x750] sm:$0xff] }
 0x286   : > { %5110 = vmatprep.mubr.bf16.mxu0 %v7122_v38  ;;  %5153 = vmatprep.mubr.bf16.mxu1 %v7122_v38  ;;  %v6185_v3 = vcombine.high %v3317_v58, %v3333_v60  ;;  %v3366_v56 = vld [vmem:[#allocation7 + $0x7d0] sm:$0xff] }
 0x288   : > { %5081 = vmatpush1.bf16.msra.mxu0 %v6178_v62  ;;  %5124 = vmatpush1.bf16.msra.mxu1 %v6180_v1  ;;  %v3285_v62 = vld [vmem:[#allocation7 + $0x548] sm:$0xff] }
 0x289   : > { %5082 = vmatprep.subr.bf16.mxu0 %v6147_v2  ;;  %5125 = vmatprep.subr.bf16.mxu1 %v6149_v4  ;;  %v3301_v1 = vld [vmem:[#allocation7 + $0x5c8] sm:$0xff]  ;;  %v6182_v2 = vcombine.low %v3316_v54, %v3332_v57  ;;  %v6184_v4 = vcombine.low %v3317_v58, %v3333_v60  ;;  %v6219_v54 = vcombine.high %v3350_v55, %v3366_v56  ;;  %v3318_v58 = vld [vmem:[#allocation7 + $0x650] sm:$0xff] }
 0x28a   : > { %v6153_v33 = vcombine.high %v3285_v62, %v3301_v1  ;;  %v3334_v60 = vld [vmem:[#allocation7 + $0x6d0] sm:$0xff] }
 0x28c   : > { %5083 = vmatpush1.bf16.msra.mxu0 %v6146_v37  ;;  %5126 = vmatpush1.bf16.msra.mxu1 %v6148_v39  ;;  %v3253_v37 = vld [vmem:[#allocation7 + $0x448] sm:$0xff] }
 0x28d   : > { %5084 = vmatprep.subr.bf16.mxu0 %v6115_v5  ;;  %5127 = vmatprep.subr.bf16.mxu1 %v6117_v7  ;;  %v3269_v39 = vld [vmem:[#allocation7 + $0x4c8] sm:$0xff]  ;;  %v6150_v5 = vcombine.low %v3284_v20, %v3300_v21  ;;  %v6152_v7 = vcombine.low %v3285_v62, %v3301_v1  ;;  %v6187_v20 = vcombine.high %v3318_v58, %v3334_v60  ;;  %v3286_v62 = vld [vmem:[#allocation7 + $0x550] sm:$0xff] }
 0x28e   : > { %v6121_v8 = vcombine.high %v3253_v37, %v3269_v39  ;;  %v3302_v1 = vld [vmem:[#allocation7 + $0x5d0] sm:$0xff] }
 0x290   : > { %5085 = vmatpush1.bf16.msra.mxu0 %v6114_v26  ;;  %5128 = vmatpush1.bf16.msra.mxu1 %v6116_v27  ;;  %v3221_v26 = vld [vmem:[#allocation7 + $0x348] sm:$0xff] }
 0x291   : > { %5086 = vmatprep.subr.bf16.mxu0 %v6083_v6  ;;  %5129 = vmatprep.subr.bf16.mxu1 %v6085_v9  ;;  %v3237_v27 = vld [vmem:[#allocation7 + $0x3c8] sm:$0xff]  ;;  %v6118_v6 = vcombine.low %v3252_v34, %v3268_v35  ;;  %v6120_v9 = vcombine.low %v3253_v37, %v3269_v39  ;;  %v6155_v34 = vcombine.high %v3286_v62, %v3302_v1  ;;  %v3254_v37 = vld [vmem:[#allocation7 + $0x450] sm:$0xff] }
 0x292   : > { %v6089_v17 = vcombine.high %v3221_v26, %v3237_v27  ;;  %v3270_v39 = vld [vmem:[#allocation7 + $0x4d0] sm:$0xff] }
 0x294   : > { %5087 = vmatpush1.bf16.msra.mxu0 %v6082_v29  ;;  %5130 = vmatpush1.bf16.msra.mxu1 %v6084_v28  ;;  %v3189_v29 = vld [vmem:[#allocation7 + $0x248] sm:$0xff] }
 0x295   : > { %5088 = vmatprep.subr.bf16.mxu0 %v6051_v30  ;;  %5131 = vmatprep.subr.bf16.mxu1 %v6053_v36  ;;  %v3205_v28 = vld [vmem:[#allocation7 + $0x2c8] sm:$0xff]  ;;  %v6086_v30 = vcombine.low %v3220_v13, %v3236_v25  ;;  %v6088_v36 = vcombine.low %v3221_v26, %v3237_v27  ;;  %v6123_v13 = vcombine.high %v3254_v37, %v3270_v39  ;;  %v3222_v26 = vld [vmem:[#allocation7 + $0x350] sm:$0xff] }
 0x296   : > { %v6057_v42 = vcombine.high %v3189_v29, %v3205_v28  ;;  %v3238_v27 = vld [vmem:[#allocation7 + $0x3d0] sm:$0xff] }
 0x298   : > { %5089 = vmatpush1.bf16.msra.mxu0 %v6050_v41  ;;  %5132 = vmatpush1.bf16.msra.mxu1 %v6052_v43  ;;  %v3157_v41 = vld [vmem:[#allocation7 + $0x148] sm:$0xff] }
 0x299   : > { %5090 = vmatprep.subr.bf16.mxu0 %v6019_v44  ;;  %5133 = vmatprep.subr.bf16.mxu1 %v6021_v45  ;;  %v3173_v43 = vld [vmem:[#allocation7 + $0x1c8] sm:$0xff]  ;;  %v6054_v44 = vcombine.low %v3188_v18, %v3204_v23  ;;  %v6056_v45 = vcombine.low %v3189_v29, %v3205_v28  ;;  %v6091_v18 = vcombine.high %v3222_v26, %v3238_v27  ;;  %v3190_v29 = vld [vmem:[#allocation7 + $0x250] sm:$0xff] }
 0x29a   : > { %v6025_v48 = vcombine.high %v3157_v41, %v3173_v43  ;;  %v3206_v28 = vld [vmem:[#allocation7 + $0x2d0] sm:$0xff] }
 0x29c   : > { %5091 = vmatpush1.bf16.msra.mxu0 %v6018_v12  ;;  %5134 = vmatpush1.bf16.msra.mxu1 %v6020_v46  ;;  %v3125_v12 = vld [vmem:[#allocation7 + $0x48] sm:$0xff] }
 0x29d   : > { %5092 = vmatprep.subr.bf16.mxu0 %v5987_v49  ;;  %5135 = vmatprep.subr.bf16.mxu1 %v5989_v50  ;;  %v3141_v46 = vld [vmem:[#allocation7 + $0xc8] sm:$0xff]  ;;  %v6022_v49 = vcombine.low %v3156_v22, %v3172_v31  ;;  %v6024_v50 = vcombine.low %v3157_v41, %v3173_v43  ;;  %v6059_v22 = vcombine.high %v3190_v29, %v3206_v28  ;;  %v3158_v41 = vld [vmem:[#allocation7 + $0x150] sm:$0xff] }
 0x29e   : > { %v5993_v53 = vcombine.high %v3125_v12, %v3141_v46  ;;  %v3174_v43 = vld [vmem:[#allocation7 + $0x1d0] sm:$0xff] }
 0x2a0   : > { %5093 = vmatpush1.bf16.msra.mxu0 %v5986_v59  ;;  %5136 = vmatpush1.bf16.msra.mxu1 %v5988_v14  ;;  %v3351_v59 = vld [vmem:[#allocation7 + $0x758] sm:$0xff] }
 0x2a1   : > { %5164 = vmatprep.subr.bf16.mxu0 %v6215_v15  ;;  %5207 = vmatprep.subr.bf16.mxu1 %v6217_v16  ;;  %v3367_v14 = vld [vmem:[#allocation7 + $0x7d8] sm:$0xff]  ;;  %v5990_v15 = vcombine.low %v3124_v51, %v3140_v10  ;;  %v5992_v16 = vcombine.low %v3125_v12, %v3141_v46  ;;  %v6027_v51 = vcombine.high %v3158_v41, %v3174_v43  ;;  %v3126_v12 = vld [vmem:[#allocation7 + $0x50] sm:$0xff] }
 0x2a2   : > { %v6221_v57 = vcombine.high %v3351_v59, %v3367_v14  ;;  %v3142_v46 = vld [vmem:[#allocation7 + $0xd0] sm:$0xff] }
 0x2a3   : > { %5111 = vmatmul.mubr.bf16.vlgmr.msra.gmra.mxu0 %v7406_v19  ;;  %5154 = vmatmul.mubr.bf16.vlgmr.msra.gmra.mxu1 %v7406_v19 }
 0x2a4   : > { %5165 = vmatpush1.bf16.msra.mxu0 %v6214_v61  ;;  %5208 = vmatpush1.bf16.msra.mxu1 %v6216_v63  ;;  %v3319_v61 = vld [vmem:[#allocation7 + $0x658] sm:$0xff] }
 0x2a5   : > { %5166 = vmatprep.subr.bf16.mxu0 %v6183_v0  ;;  %5209 = vmatprep.subr.bf16.mxu1 %v6185_v3  ;;  %v3335_v63 = vld [vmem:[#allocation7 + $0x6d8] sm:$0xff]  ;;  %v6218_v0 = vcombine.low %v3350_v55, %v3366_v56  ;;  %v6220_v3 = vcombine.low %v3351_v59, %v3367_v14  ;;  %v5995_v55 = vcombine.high %v3126_v12, %v3142_v46  ;;  %v3352_v59 = vld [vmem:[#allocation7 + $0x760] sm:$0xff] }
 0x2a6   : > { %5196 = vmatprep.mubr.bf16.mxu0 %v7122_v38  ;;  %5239 = vmatprep.mubr.bf16.mxu1 %v7122_v38  ;;  %v6189_v21 = vcombine.high %v3319_v61, %v3335_v63  ;;  %v3368_v14 = vld [vmem:[#allocation7 + $0x7e0] sm:$0xff] }
 0x2a8   : > { %5167 = vmatpush1.bf16.msra.mxu0 %v6182_v2  ;;  %5210 = vmatpush1.bf16.msra.mxu1 %v6184_v4  ;;  %v3287_v2 = vld [vmem:[#allocation7 + $0x558] sm:$0xff] }
 0x2a9   : > { %5168 = vmatprep.subr.bf16.mxu0 %v6151_v32  ;;  %5211 = vmatprep.subr.bf16.mxu1 %v6153_v33  ;;  %v3303_v4 = vld [vmem:[#allocation7 + $0x5d8] sm:$0xff]  ;;  %v6186_v32 = vcombine.low %v3318_v58, %v3334_v60  ;;  %v6188_v33 = vcombine.low %v3319_v61, %v3335_v63  ;;  %v6223_v58 = vcombine.high %v3352_v59, %v3368_v14  ;;  %v3320_v61 = vld [vmem:[#allocation7 + $0x660] sm:$0xff] }
 0x2aa   : > { %v6157_v35 = vcombine.high %v3287_v2, %v3303_v4  ;;  %v3336_v63 = vld [vmem:[#allocation7 + $0x6e0] sm:$0xff] }
 0x2ac   : > { %5169 = vmatpush1.bf16.msra.mxu0 %v6150_v5  ;;  %5212 = vmatpush1.bf16.msra.mxu1 %v6152_v7  ;;  %v3255_v5 = vld [vmem:[#allocation7 + $0x458] sm:$0xff] }
 0x2ad   : > { %5170 = vmatprep.subr.bf16.mxu0 %v6119_v24  ;;  %5213 = vmatprep.subr.bf16.mxu1 %v6121_v8  ;;  %v3271_v7 = vld [vmem:[#allocation7 + $0x4d8] sm:$0xff]  ;;  %v6154_v24 = vcombine.low %v3286_v62, %v3302_v1  ;;  %v6156_v8 = vcombine.low %v3287_v2, %v3303_v4  ;;  %v6191_v62 = vcombine.high %v3320_v61, %v3336_v63  ;;  %v3288_v2 = vld [vmem:[#allocation7 + $0x560] sm:$0xff] }
 0x2ae   : > { %v6125_v25 = vcombine.high %v3255_v5, %v3271_v7  ;;  %v3304_v4 = vld [vmem:[#allocation7 + $0x5e0] sm:$0xff] }
 0x2b0   : > { %5171 = vmatpush1.bf16.msra.mxu0 %v6118_v6  ;;  %5214 = vmatpush1.bf16.msra.mxu1 %v6120_v9  ;;  %v3223_v6 = vld [vmem:[#allocation7 + $0x358] sm:$0xff] }
 0x2b1   : > { %5172 = vmatprep.subr.bf16.mxu0 %v6087_v11  ;;  %5215 = vmatprep.subr.bf16.mxu1 %v6089_v17  ;;  %v3239_v9 = vld [vmem:[#allocation7 + $0x3d8] sm:$0xff]  ;;  %v6122_v11 = vcombine.low %v3254_v37, %v3270_v39  ;;  %v6124_v17 = vcombine.low %v3255_v5, %v3271_v7  ;;  %v6159_v37 = vcombine.high %v3288_v2, %v3304_v4  ;;  %v3256_v5 = vld [vmem:[#allocation7 + $0x460] sm:$0xff] }
 0x2b2   : > { %v6093_v23 = vcombine.high %v3223_v6, %v3239_v9  ;;  %v3272_v7 = vld [vmem:[#allocation7 + $0x4e0] sm:$0xff] }
 0x2b4   : > { %5173 = vmatpush1.bf16.msra.mxu0 %v6086_v30  ;;  %5216 = vmatpush1.bf16.msra.mxu1 %v6088_v36  ;;  %v3191_v30 = vld [vmem:[#allocation7 + $0x258] sm:$0xff] }
 0x2b5   : > { %5174 = vmatprep.subr.bf16.mxu0 %v6055_v40  ;;  %5217 = vmatprep.subr.bf16.mxu1 %v6057_v42  ;;  %v3207_v36 = vld [vmem:[#allocation7 + $0x2d8] sm:$0xff]  ;;  %v6090_v40 = vcombine.low %v3222_v26, %v3238_v27  ;;  %v6092_v42 = vcombine.low %v3223_v6, %v3239_v9  ;;  %v6127_v26 = vcombine.high %v3256_v5, %v3272_v7  ;;  %v3224_v6 = vld [vmem:[#allocation7 + $0x360] sm:$0xff] }
 0x2b6   : > { %v6061_v31 = vcombine.high %v3191_v30, %v3207_v36  ;;  %v3240_v9 = vld [vmem:[#allocation7 + $0x3e0] sm:$0xff] }
 0x2b8   : > { %5175 = vmatpush1.bf16.msra.mxu0 %v6054_v44  ;;  %5218 = vmatpush1.bf16.msra.mxu1 %v6056_v45  ;;  %v3159_v44 = vld [vmem:[#allocation7 + $0x158] sm:$0xff] }
 0x2b9   : > { %5176 = vmatprep.subr.bf16.mxu0 %v6023_v47  ;;  %5219 = vmatprep.subr.bf16.mxu1 %v6025_v48  ;;  %v3175_v45 = vld [vmem:[#allocation7 + $0x1d8] sm:$0xff]  ;;  %v6058_v47 = vcombine.low %v3190_v29, %v3206_v28  ;;  %v6060_v48 = vcombine.low %v3191_v30, %v3207_v36  ;;  %v6095_v29 = vcombine.high %v3224_v6, %v3240_v9  ;;  %v3192_v30 = vld [vmem:[#allocation7 + $0x260] sm:$0xff] }
 0x2ba   : > { %v6029_v10 = vcombine.high %v3159_v44, %v3175_v45  ;;  %v3208_v36 = vld [vmem:[#allocation7 + $0x2e0] sm:$0xff] }
 0x2bc   : > { %5177 = vmatpush1.bf16.msra.mxu0 %v6022_v49  ;;  %5220 = vmatpush1.bf16.msra.mxu1 %v6024_v50  ;;  %v3127_v49 = vld [vmem:[#allocation7 + $0x58] sm:$0xff] }
 0x2bd   : > { %5178 = vmatprep.subr.bf16.mxu0 %v5991_v52  ;;  %5221 = vmatprep.subr.bf16.mxu1 %v5993_v53  ;;  %v3143_v50 = vld [vmem:[#allocation7 + $0xd8] sm:$0xff]  ;;  %v6026_v52 = vcombine.low %v3158_v41, %v3174_v43  ;;  %v6028_v53 = vcombine.low %v3159_v44, %v3175_v45  ;;  %v6063_v41 = vcombine.high %v3192_v30, %v3208_v36  ;;  %v3160_v44 = vld [vmem:[#allocation7 + $0x160] sm:$0xff] }
 0x2be   : > { %v5997_v56 = vcombine.high %v3127_v49, %v3143_v50  ;;  %v3176_v45 = vld [vmem:[#allocation7 + $0x1e0] sm:$0xff] }
 0x2c0   : > { %5179 = vmatpush1.bf16.msra.mxu0 %v5990_v15  ;;  %5222 = vmatpush1.bf16.msra.mxu1 %v5992_v16  ;;  %v3353_v15 = vld [vmem:[#allocation7 + $0x768] sm:$0xff] }
 0x2c1   : > { %5250 = vmatprep.subr.bf16.mxu0 %v6219_v54  ;;  %5293 = vmatprep.subr.bf16.mxu1 %v6221_v57  ;;  %v3369_v16 = vld [vmem:[#allocation7 + $0x7e8] sm:$0xff]  ;;  %v5994_v54 = vcombine.low %v3126_v12, %v3142_v46  ;;  %v5996_v57 = vcombine.low %v3127_v49, %v3143_v50  ;;  %v3380_v12 = vlaneseq  ;;  %v6031_v46 = vcombine.high %v3160_v44, %v3176_v45  ;;  %v3128_v50 = vld [vmem:[#allocation7 + $0x60] sm:$0xff] }
 0x2c2   : > { %v6225_v60 = vcombine.high %v3353_v15, %v3369_v16 }
 0x2c3   : > { %5197 = vmatmul.mubr.bf16.vlgmr.msra.gmra.mxu0 %v7406_v19  ;;  %5240 = vmatmul.mubr.bf16.vlgmr.msra.gmra.mxu1 %v7406_v19 }
 0x2c4   : > { %5251 = vmatpush1.bf16.msra.mxu0 %v6218_v0  ;;  %5294 = vmatpush1.bf16.msra.mxu1 %v6220_v3  ;;  %v3321_v0 = vld [vmem:[#allocation7 + $0x668] sm:$0xff] }
 0x2c5   : > { %5252 = vmatprep.subr.bf16.mxu0 %v6187_v20  ;;  %5295 = vmatprep.subr.bf16.mxu1 %v6189_v21  ;;  %v3337_v3 = vld [vmem:[#allocation7 + $0x6e8] sm:$0xff]  ;;  %v6222_v20 = vcombine.low %v3352_v59, %v3368_v14  ;;  %v6224_v21 = vcombine.low %v3353_v15, %v3369_v16  ;;  %v7438_v14 = vshrl.u32 %v3380_v12, 7 }
 0x2c6   : > { %5282 = vmatprep.mubr.bf16.mxu0 %v7122_v38  ;;  %5325 = vmatprep.mubr.bf16.mxu1 %v7122_v38  ;;  %v6193_v1 = vcombine.high %v3321_v0, %v3337_v3 }
 0x2c8   : > { %5253 = vmatpush1.bf16.msra.mxu0 %v6186_v32  ;;  %5296 = vmatpush1.bf16.msra.mxu1 %v6188_v33  ;;  %v3289_v32 = vld [vmem:[#allocation7 + $0x568] sm:$0xff] }
 0x2c9   : > { %5254 = vmatprep.subr.bf16.mxu0 %v6155_v34  ;;  %5297 = vmatprep.subr.bf16.mxu1 %v6157_v35  ;;  %v3305_v33 = vld [vmem:[#allocation7 + $0x5e8] sm:$0xff]  ;;  %v6190_v34 = vcombine.low %v3320_v61, %v3336_v63  ;;  %v6192_v35 = vcombine.low %v3321_v0, %v3337_v3  ;;  %v7441_v0 = vsub.s32 0, %v7438_v14  ;;  %v7444_v3 = vsub.s32 2, %v7438_v14 }
 0x2ca   : > { %v6161_v39 = vcombine.high %v3289_v32, %v3305_v33 }
 0x2cc   : > { %5255 = vmatpush1.bf16.msra.mxu0 %v6154_v24  ;;  %5298 = vmatpush1.bf16.msra.mxu1 %v6156_v8  ;;  %v3257_v24 = vld [vmem:[#allocation7 + $0x468] sm:$0xff] }
 0x2cd   : > { %5256 = vmatprep.subr.bf16.mxu0 %v6123_v13  ;;  %5299 = vmatprep.subr.bf16.mxu1 %v6125_v25  ;;  %v3273_v8 = vld [vmem:[#allocation7 + $0x4e8] sm:$0xff]  ;;  %v6158_v13 = vcombine.low %v3288_v2, %v3304_v4  ;;  %v6160_v25 = vcombine.low %v3289_v32, %v3305_v33  ;;  %v7449_v2 = vsub.s32 1, %v7438_v14  ;;  %v7452_v4 = vsub.s32 3, %v7438_v14  ;;  %v3338_v32 = vld [vmem:[#allocation7 + $0x6f0] sm:$0xff]  ;;  %v3323_v33 = vld [vmem:[#allocation7 + $0x678] sm:$0xff] }
 0x2ce   : > { %v6129_v27 = vcombine.high %v3257_v24, %v3273_v8 }
 0x2d0   : > { %5257 = vmatpush1.bf16.msra.mxu0 %v6122_v11  ;;  %5300 = vmatpush1.bf16.msra.mxu1 %v6124_v17  ;;  %v3225_v11 = vld [vmem:[#allocation7 + $0x368] sm:$0xff] }
 0x2d1   : > { %5258 = vmatprep.subr.bf16.mxu0 %v6091_v18  ;;  %5301 = vmatprep.subr.bf16.mxu1 %v6093_v23  ;;  %v3241_v17 = vld [vmem:[#allocation7 + $0x3e8] sm:$0xff]  ;;  %v6126_v18 = vcombine.low %v3256_v5, %v3272_v7  ;;  %v6128_v23 = vcombine.low %v3257_v24, %v3273_v8  ;;  %v3290_v8 = vld [vmem:[#allocation7 + $0x570] sm:$0xff] }
 0x2d2   : > { %v6097_v28 = vcombine.high %v3225_v11, %v3241_v17 }
 0x2d4   : > { %5259 = vmatpush1.bf16.msra.mxu0 %v6090_v40  ;;  %5302 = vmatpush1.bf16.msra.mxu1 %v6092_v42  ;;  %v3193_v40 = vld [vmem:[#allocation7 + $0x268] sm:$0xff] }
 0x2d5   : > { %5260 = vmatprep.subr.bf16.mxu0 %v6059_v22  ;;  %5303 = vmatprep.subr.bf16.mxu1 %v6061_v31  ;;  %v3209_v42 = vld [vmem:[#allocation7 + $0x2e8] sm:$0xff]  ;;  %v6094_v22 = vcombine.low %v3224_v6, %v3240_v9  ;;  %v6096_v31 = vcombine.low %v3225_v11, %v3241_v17  ;;  %v3307_v6 = vld [vmem:[#allocation7 + $0x5f8] sm:$0xff] }
 0x2d6   : > { %v6065_v43 = vcombine.high %v3193_v40, %v3209_v42 }
 0x2d8   : > { %5261 = vmatpush1.bf16.msra.mxu0 %v6058_v47  ;;  %5304 = vmatpush1.bf16.msra.mxu1 %v6060_v48  ;;  %v3161_v47 = vld [vmem:[#allocation7 + $0x168] sm:$0xff] }
 0x2d9   : > { %5262 = vmatprep.subr.bf16.mxu0 %v6027_v51  ;;  %5305 = vmatprep.subr.bf16.mxu1 %v6029_v10  ;;  %v3177_v48 = vld [vmem:[#allocation7 + $0x1e8] sm:$0xff]  ;;  %v6062_v51 = vcombine.low %v3192_v30, %v3208_v36  ;;  %v6064_v10 = vcombine.low %v3193_v40, %v3209_v42  ;;  %v3258_v42 = vld [vmem:[#allocation7 + $0x470] sm:$0xff] }
 0x2da   : > { %v6033_v49 = vcombine.high %v3161_v47, %v3177_v48  ;;  %v6032_v59 = vcombine.low %v3161_v47, %v3177_v48 }
 0x2dc   : > { %5263 = vmatpush1.bf16.msra.mxu0 %v6026_v52  ;;  %5306 = vmatpush1.bf16.msra.mxu1 %v6028_v53  ;;  %v3144_v52 = vld [vmem:[#allocation7 + $0xe0] sm:$0xff]  ;;  %v3129_v53 = vld [vmem:[#allocation7 + $0x68] sm:$0xff] }
 0x2dd   : > { %5264 = vmatprep.subr.bf16.mxu0 %v5995_v55  ;;  %5307 = vmatprep.subr.bf16.mxu1 %v5997_v56  ;;  %v3145_v55 = vld [vmem:[#allocation7 + $0xe8] sm:$0xff]  ;;  %v6030_v56 = vcombine.low %v3160_v44, %v3176_v45  ;;  %v5999_v15 = vcombine.high %v3128_v50, %v3144_v52  ;;  %v5998_v61 = vcombine.low %v3128_v50, %v3144_v52  ;;  %v3275_v44 = vld [vmem:[#allocation7 + $0x4f8] sm:$0xff]  ;;  %v3226_v52 = vld [vmem:[#allocation7 + $0x370] sm:$0xff] }
 0x2de   : > { %v6001_v16 = vcombine.high %v3129_v53, %v3145_v55  ;;  %v6000_v63 = vcombine.low %v3129_v53, %v3145_v55 }
 0x2e0   : > { %5265 = vmatpush1.bf16.msra.mxu0 %v5994_v54  ;;  %5308 = vmatpush1.bf16.msra.mxu1 %v5996_v57  ;;  %v3354_v54 = vld [vmem:[#allocation7 + $0x770] sm:$0xff] }
 0x2e1   : > { %5336 = vmatprep.subr.bf16.mxu0 %v6223_v58  ;;  %5379 = vmatprep.subr.bf16.mxu1 %v6225_v60  ;;  %v3370_v57 = vld [vmem:[#allocation7 + $0x7f0] sm:$0xff]  ;;  %v3355_v58 = vld [vmem:[#allocation7 + $0x778] sm:$0xff] }
 0x2e2   : > { %v3371_v60 = vld [vmem:[#allocation7 + $0x7f8] sm:$0xff] }
 0x2e3   : > { %5283 = vmatmul.mubr.bf16.vlgmr.msra.gmra.mxu0 %v7406_v19  ;;  %5326 = vmatmul.mubr.bf16.vlgmr.msra.gmra.mxu1 %v7406_v19 }
 0x2e4   : > { %5337 = vmatpush1.bf16.msra.mxu0 %v6222_v20  ;;  %5380 = vmatpush1.bf16.msra.mxu1 %v6224_v21  ;;  %v6227_v20 = vcombine.high %v3354_v54, %v3370_v57  ;;  %v6229_v21 = vcombine.high %v3355_v58, %v3371_v60 }
 0x2e5   : > { %5338 = vmatprep.subr.bf16.mxu0 %v6191_v62  ;;  %5381 = vmatprep.subr.bf16.mxu1 %v6193_v1  ;;  %v7446_v62 = vld [vmem:[#allocation8] sm:$0xff]  ;;  %v3322_v1 = vld [vmem:[#allocation7 + $0x670] sm:$0xff] }
 0x2e6   : > { %5368 = vmatprep.mubr.bf16.mxu0 %v7122_v38  ;;  %5411 = vmatprep.mubr.bf16.mxu1 %v7122_v38  ;;  %v3391_v5 = vrot.slane %v7446_v62, %v7444_v3  ;;  %v6195_v7 = vcombine.high %v3322_v1, %v3338_v32  ;;  %v6194_v17 = vcombine.low %v3322_v1, %v3338_v32 }
 0x2e8   : > { %5339 = vmatpush1.bf16.msra.mxu0 %v6190_v34  ;;  %5382 = vmatpush1.bf16.msra.mxu1 %v6192_v35  ;;  %v3339_v34 = vld [vmem:[#allocation7 + $0x6f8] sm:$0xff]  ;;  %v6226_v35 = vcombine.low %v3354_v54, %v3370_v57 }
 0x2e9   : > { %5340 = vmatprep.subr.bf16.mxu0 %v6159_v37  ;;  %5383 = vmatprep.subr.bf16.mxu1 %v6161_v39  ;;  %v6228_v37 = vcombine.low %v3355_v58, %v3371_v60  ;;  %v3383_v39 = vrot.slane %v7446_v62, %v7441_v0  ;;  %v6197_v24 = vcombine.high %v3323_v33, %v3339_v34  ;;  %v3194_v60 = vld [vmem:[#allocation7 + $0x270] sm:$0xff] }
 0x2ec   : > { %5341 = vmatpush1.bf16.msra.mxu0 %v6158_v13  ;;  %5384 = vmatpush1.bf16.msra.mxu1 %v6160_v25  ;;  %v3387_v13 = vrot.slane %v7446_v62, %v7449_v2  ;;  %v3395_v25 = vrot.slane %v7446_v62, %v7452_v4 }
 0x2ed   : > { %5342 = vmatprep.subr.bf16.mxu0 %v6127_v26  ;;  %5385 = vmatprep.subr.bf16.mxu1 %v6129_v27  ;;  %v3306_v26 = vld [vmem:[#allocation7 + $0x5f0] sm:$0xff]  ;;  %v3291_v27 = vld [vmem:[#allocation7 + $0x578] sm:$0xff] }
 0x2ee   : > { %v6163_v36 = vcombine.high %v3290_v8, %v3306_v26  ;;  %v6165_v40 = vcombine.high %v3291_v27, %v3307_v6  ;;  %v6162_v48 = vcombine.low %v3290_v8, %v3306_v26  ;;  %v6164_v12 = vcombine.low %v3291_v27, %v3307_v6  ;;  %v3131_v26 = vld [vmem:[#allocation7 + $0x78] sm:$0xff] }
 0x2ef   : > { %v3147_v27 = vld [vmem:[#allocation7 + $0xf8] sm:$0xff] }
 0x2f0   : > { %5343 = vmatpush1.bf16.msra.mxu0 %v6126_v18  ;;  %5386 = vmatpush1.bf16.msra.mxu1 %v6128_v23 }
 0x2f1   : > { %5344 = vmatprep.subr.bf16.mxu0 %v6095_v29  ;;  %5387 = vmatprep.subr.bf16.mxu1 %v6097_v28  ;;  %v6196_v29 = vcombine.low %v3323_v33, %v3339_v34  ;;  %v3162_v34 = vld [vmem:[#allocation7 + $0x170] sm:$0xff] }
 0x2f4   : > { %5345 = vmatpush1.bf16.msra.mxu0 %v6094_v22  ;;  %5388 = vmatpush1.bf16.msra.mxu1 %v6096_v31 }
 0x2f5   : > { %5346 = vmatprep.subr.bf16.mxu0 %v6063_v41  ;;  %5389 = vmatprep.subr.bf16.mxu1 %v6065_v43  ;;  %v3274_v41 = vld [vmem:[#allocation7 + $0x4f0] sm:$0xff]  ;;  %v3259_v43 = vld [vmem:[#allocation7 + $0x478] sm:$0xff] }
 0x2f6   : > { %v6131_v50 = vcombine.high %v3258_v42, %v3274_v41  ;;  %v6132_v54 = vcombine.low %v3259_v43, %v3275_v44 }
 0x2f8   : > { %5347 = vmatpush1.bf16.msra.mxu0 %v6062_v51  ;;  %5390 = vmatpush1.bf16.msra.mxu1 %v6064_v10 }
 0x2f9   : > { %5348 = vmatprep.subr.bf16.mxu0 %v6031_v46  ;;  %5391 = vmatprep.subr.bf16.mxu1 %v6033_v49 }
 0x2fc   : > { %5349 = vmatpush1.bf16.msra.mxu0 %v6030_v56  ;;  %5392 = vmatpush1.bf16.msra.mxu1 %v6032_v59  ;;  %v3242_v56 = vld [vmem:[#allocation7 + $0x3f0] sm:$0xff]  ;;  %v3227_v59 = vld [vmem:[#allocation7 + $0x378] sm:$0xff] }
 0x2fd   : > { %5350 = vmatprep.subr.bf16.mxu0 %v5999_v15  ;;  %5393 = vmatprep.subr.bf16.mxu1 %v6001_v16  ;;  %v3243_v15 = vld [vmem:[#allocation7 + $0x3f8] sm:$0xff]  ;;  %v6130_v16 = vcombine.low %v3258_v42, %v3274_v41  ;;  %v6099_v57 = vcombine.high %v3226_v52, %v3242_v56 }
 0x2fe   : > { %v6101_v58 = vcombine.high %v3227_v59, %v3243_v15  ;;  %v6100_v1 = vcombine.low %v3227_v59, %v3243_v15 }
 0x300   : > { %5351 = vmatpush1.bf16.msra.mxu0 %v5998_v61  ;;  %5394 = vmatpush1.bf16.msra.mxu1 %v6000_v63  ;;  %v3210_v61 = vld [vmem:[#allocation7 + $0x2f0] sm:$0xff]  ;;  %v3195_v63 = vld [vmem:[#allocation7 + $0x278] sm:$0xff] }
 0x301   : > { %5422 = vmatprep.subr.bf16.mxu0 %v6227_v20  ;;  %5465 = vmatprep.subr.bf16.mxu1 %v6229_v21  ;;  %v3211_v20 = vld [vmem:[#allocation7 + $0x2f8] sm:$0xff]  ;;  %v6098_v21 = vcombine.low %v3226_v52, %v3242_v56  ;;  %v6067_v32 = vcombine.high %v3194_v60, %v3210_v61  ;;  %v3373_v52 = vld [vmem:[#allocation8 + $0x8] sm:$0xff] }
 0x302   : > { %v6069_v33 = vcombine.high %v3195_v63, %v3211_v20  ;;  %v3419_v56 = vrot.slane %v3373_v52, %v7449_v2  ;;  %v3427_v59 = vrot.slane %v3373_v52, %v7452_v4 }
 0x303   : > { %5369 = vmatmul.mubr.bf16.vlgmr.msra.gmra.mxu0 %v7406_v19  ;;  %5412 = vmatmul.mubr.bf16.vlgmr.msra.gmra.mxu1 %v7406_v19  ;;  %v4854_v9 = vpop.f32.mrf.mxu0  ;;  %v4897_v11 = vpop.f32.mrf.mxu1 }
 0x304   : > { %v4855_v18 = vadd.f32 %v4854_v9, %v3383_v39  ;;  %v4898_v23 = vadd.f32 %v4897_v11, %v3391_v5  ;;  %5423 = vmatpush1.bf16.msra.mxu0 %v6226_v35  ;;  %5466 = vmatpush1.bf16.msra.mxu1 %v6228_v37  ;;  %v3178_v35 = vld [vmem:[#allocation7 + $0x1f0] sm:$0xff]  ;;  %v3163_v37 = vld [vmem:[#allocation7 + $0x178] sm:$0xff] }
 0x305   : > { %v4856_v28 = vpop.f32.mrf.mxu0  ;;  %v4899_v30 = vpop.f32.mrf.mxu1  ;;  %5424 = vmatprep.subr.bf16.mxu0 %v6195_v7  ;;  %5467 = vmatprep.subr.bf16.mxu1 %v6197_v24  ;;  %v6068_v7 = vcombine.low %v3195_v63, %v3211_v20  ;;  %v6035_v24 = vcombine.high %v3162_v34, %v3178_v35  ;;  %v6034_v6 = vcombine.low %v3162_v34, %v3178_v35 }
 0x306   : > { %5508 = vst [vmem:[%s7466_s26] sm:$0xff] %v4855_v18  ;;  %5510 = vst [vmem:[%s7466_s26 + $0x10] sm:$0xff] %v4898_v23  ;;  %v4857_v22 = vadd.f32 %v4856_v28, %v3387_v13  ;;  %v4900_v31 = vadd.f32 %v4899_v30, %v3395_v25  ;;  %5454 = vmatprep.mubr.bf16.mxu0 %v7122_v38  ;;  %5497 = vmatprep.mubr.bf16.mxu1 %v7122_v38  ;;  %v7482_v28 = vsub.s32 6, %v7438_v14 }
 0x307   : > { %v4858_v45 = vpop.f32.mrf.mxu0  ;;  %v4901_v47 = vpop.f32.mrf.mxu1  ;;  %v6133_v38 = vcombine.high %v3259_v43, %v3275_v44  ;;  %v6004_v23 = vcombine.low %v3131_v26, %v3147_v27  ;;  %v7485_v30 = vsub.s32 5, %v7438_v14 }
 0x308   : > { %5509 = vst [vmem:[%s7466_s26 + $0x8] sm:$0xff] %v4857_v22  ;;  %5511 = vst [vmem:[%s7466_s26 + $0x18] sm:$0xff] %v4900_v31  ;;  %v4859_v51 = vadd.f32 %v4858_v45, %v3383_v39  ;;  %v4902_v10 = vadd.f32 %v4901_v47, %v3391_v5  ;;  %5425 = vmatpush1.bf16.msra.mxu0 %v6194_v17  ;;  %5468 = vmatpush1.bf16.msra.mxu1 %v6196_v29  ;;  %v3179_v39 = vld [vmem:[#allocation7 + $0x1f8] sm:$0xff]  ;;  %v7479_v29 = vsub.s32 4, %v7438_v14 }
 0x309   : > { %v4860_v46 = vpop.f32.mrf.mxu0  ;;  %v4903_v49 = vpop.f32.mrf.mxu1  ;;  %5426 = vmatprep.subr.bf16.mxu0 %v6163_v36  ;;  %5469 = vmatprep.subr.bf16.mxu1 %v6165_v40  ;;  %v6066_v5 = vcombine.low %v3194_v60, %v3210_v61  ;;  %v6037_v8 = vcombine.high %v3163_v37, %v3179_v39  ;;  %v6036_v9 = vcombine.low %v3163_v37, %v3179_v39  ;;  %v7488_v36 = vsub.s32 7, %v7438_v14 }
 0x30a   : > { %5540 = vst [vmem:[%s7466_s26 + $0x100] sm:$0xff] %v4859_v51  ;;  %5542 = vst [vmem:[%s7466_s26 + $0x110] sm:$0xff] %v4902_v10  ;;  %v4861_v53 = vadd.f32 %v4860_v46, %v3387_v13  ;;  %v4904_v55 = vadd.f32 %v4903_v49, %v3395_v25  ;;  %v3130_v13 = vld [vmem:[#allocation7 + $0x70] sm:$0xff]  ;;  %v6005_v17 = vcombine.high %v3131_v26, %v3147_v27 }
 0x30b   : > { %v3146_v25 = vld [vmem:[#allocation7 + $0xf0] sm:$0xff]  ;;  %v3399_v40 = vrot.slane %v7446_v62, %v7479_v29  ;;  %v3407_v42 = vrot.slane %v7446_v62, %v7482_v28  ;;  %v3403_v22 = vrot.slane %v7446_v62, %v7485_v30  ;;  %v3411_v31 = vrot.slane %v7446_v62, %v7488_v36 }
 0x30c   : > { %5541 = vst [vmem:[%s7466_s26 + $0x108] sm:$0xff] %v4861_v53  ;;  %5543 = vst [vmem:[%s7466_s26 + $0x118] sm:$0xff] %v4904_v55  ;;  %5427 = vmatpush1.bf16.msra.mxu0 %v6162_v48  ;;  %5470 = vmatpush1.bf16.msra.mxu1 %v6164_v12  ;;  %v6003_v11 = vcombine.high %v3130_v13, %v3146_v25  ;;  %v6002_v18 = vcombine.low %v3130_v13, %v3146_v25 }
 0x30d   : > { %5428 = vmatprep.subr.bf16.mxu0 %v6131_v50  ;;  %5471 = vmatprep.subr.bf16.mxu1 %v6133_v38  ;;  %v3415_v53 = vrot.slane %v3373_v52, %v7441_v0  ;;  %v3423_v55 = vrot.slane %v3373_v52, %v7444_v3  ;;  %v3431_v39 = vrot.slane %v3373_v52, %v7479_v29 }
 0x310   : > { %5429 = vmatpush1.bf16.msra.mxu0 %v6130_v16  ;;  %5472 = vmatpush1.bf16.msra.mxu1 %v6132_v54 }
 0x311   : > { %5430 = vmatprep.subr.bf16.mxu0 %v6099_v57  ;;  %5473 = vmatprep.subr.bf16.mxu1 %v6101_v58 }
 0x314   : > { %5431 = vmatpush1.bf16.msra.mxu0 %v6098_v21  ;;  %5474 = vmatpush1.bf16.msra.mxu1 %v6100_v1 }
 0x315   : > { %5432 = vmatprep.subr.bf16.mxu0 %v6067_v32  ;;  %5475 = vmatprep.subr.bf16.mxu1 %v6069_v33 }
 0x318   : > { %5433 = vmatpush1.bf16.msra.mxu0 %v6066_v5  ;;  %5476 = vmatpush1.bf16.msra.mxu1 %v6068_v7  ;;  %v3439_v5 = vrot.slane %v3373_v52, %v7482_v28  ;;  %v3435_v7 = vrot.slane %v3373_v52, %v7485_v30 }
 0x319   : > { %5434 = vmatprep.subr.bf16.mxu0 %v6035_v24  ;;  %5477 = vmatprep.subr.bf16.mxu1 %v6037_v8  ;;  %v3443_v24 = vrot.slane %v3373_v52, %v7488_v36 }
 0x31c   : > { %5435 = vmatpush1.bf16.msra.mxu0 %v6034_v6  ;;  %5478 = vmatpush1.bf16.msra.mxu1 %v6036_v9 }
 0x31d   : > { %5436 = vmatprep.subr.bf16.mxu0 %v6003_v11  ;;  %5479 = vmatprep.subr.bf16.mxu1 %v6005_v17 }
 0x320   : > { %5437 = vmatpush1.bf16.msra.mxu0 %v6002_v18  ;;  %5480 = vmatpush1.bf16.msra.mxu1 %v6004_v23 }
 0x323   : > { %v4940_v41 = vpop.f32.mrf.mxu0  ;;  %v4983_v14 = vpop.f32.mrf.mxu1  ;;  %5455 = vmatmul.mubr.bf16.vlgmr.msra.gmra.mxu0 %v7406_v19  ;;  %5498 = vmatmul.mubr.bf16.vlgmr.msra.gmra.mxu1 %v7406_v19 }
 0x324   : > { %v4941_v43 = vadd.f32 %v4940_v41, %v3399_v40  ;;  %v4984_v44 = vadd.f32 %v4983_v14, %v3407_v42  ;;  %v3374_v14 = vld [vmem:[#allocation8 + $0x10] sm:$0xff] }
 0x325   : > { %v4942_v45 = vpop.f32.mrf.mxu0  ;;  %v4985_v47 = vpop.f32.mrf.mxu1 }
 0x326   : > { %5512 = vst [vmem:[%s7466_s26 + $0x20] sm:$0xff] %v4941_v43  ;;  %5514 = vst [vmem:[%s7466_s26 + $0x30] sm:$0xff] %v4984_v44  ;;  %v4943_v48 = vadd.f32 %v4942_v45, %v3403_v22  ;;  %v4986_v51 = vadd.f32 %v4985_v47, %v3411_v31  ;;  %v3447_v43 = vrot.slane %v3374_v14, %v7441_v0 }
 0x327   : > { %v4944_v62 = vpop.f32.mrf.mxu0  ;;  %v4987_v10 = vpop.f32.mrf.mxu1  ;;  %v3455_v44 = vrot.slane %v3374_v14, %v7444_v3  ;;  %v3451_v45 = vrot.slane %v3374_v14, %v7449_v2  ;;  %v3459_v47 = vrot.slane %v3374_v14, %v7452_v4 }
 0x328   : > { %5513 = vst [vmem:[%s7466_s26 + $0x28] sm:$0xff] %v4943_v48  ;;  %5515 = vst [vmem:[%s7466_s26 + $0x38] sm:$0xff] %v4986_v51  ;;  %v4945_v12 = vadd.f32 %v4944_v62, %v3399_v40  ;;  %v4988_v46 = vadd.f32 %v4987_v10, %v3407_v42 }
 0x329   : > { %v4946_v49 = vpop.f32.mrf.mxu0  ;;  %v4989_v19 = vpop.f32.mrf.mxu1 }
 0x32a   : > { %5544 = vst [vmem:[%s7466_s26 + $0x120] sm:$0xff] %v4945_v12  ;;  %5546 = vst [vmem:[%s7466_s26 + $0x130] sm:$0xff] %v4988_v46  ;;  %v4947_v50 = vadd.f32 %v4946_v49, %v3403_v22  ;;  %v4990_v38 = vadd.f32 %v4989_v19, %v3411_v31 }
 0x32c   : > { %5545 = vst [vmem:[%s7466_s26 + $0x128] sm:$0xff] %v4947_v50  ;;  %5547 = vst [vmem:[%s7466_s26 + $0x138] sm:$0xff] %v4990_v38 }
 0x343   : > { %v5026_v15 = vpop.f32.mrf.mxu0  ;;  %v5069_v16 = vpop.f32.mrf.mxu1 }
 0x344   : > { %v5027_v54 = vadd.f32 %v5026_v15, %v3415_v53  ;;  %v5070_v57 = vadd.f32 %v5069_v16, %v3423_v55  ;;  %v3463_v16 = vrot.slane %v3374_v14, %v7479_v29 }
 0x345   : > { %v5028_v58 = vpop.f32.mrf.mxu0  ;;  %v5071_v60 = vpop.f32.mrf.mxu1 }
 0x346   : > { %5516 = vst [vmem:[%s7466_s26 + $0x40] sm:$0xff] %v5027_v54  ;;  %5518 = vst [vmem:[%s7466_s26 + $0x50] sm:$0xff] %v5070_v57  ;;  %v5029_v61 = vadd.f32 %v5028_v58, %v3419_v56  ;;  %v5072_v63 = vadd.f32 %v5071_v60, %v3427_v59  ;;  %v3471_v54 = vrot.slane %v3374_v14, %v7482_v28 }
 0x347   : > { %v5030_v20 = vpop.f32.mrf.mxu0  ;;  %v5073_v21 = vpop.f32.mrf.mxu1  ;;  %v3467_v57 = vrot.slane %v3374_v14, %v7485_v30  ;;  %v3475_v58 = vrot.slane %v3374_v14, %v7488_v36 }
 0x348   : > { %5517 = vst [vmem:[%s7466_s26 + $0x48] sm:$0xff] %v5029_v61  ;;  %5519 = vst [vmem:[%s7466_s26 + $0x58] sm:$0xff] %v5072_v63  ;;  %v5031_v1 = vadd.f32 %v5030_v20, %v3415_v53  ;;  %v5074_v32 = vadd.f32 %v5073_v21, %v3423_v55 }
 0x349   : > { %v5032_v33 = vpop.f32.mrf.mxu0  ;;  %v5075_v34 = vpop.f32.mrf.mxu1 }
 0x34a   : > { %5548 = vst [vmem:[%s7466_s26 + $0x140] sm:$0xff] %v5031_v1  ;;  %5550 = vst [vmem:[%s7466_s26 + $0x150] sm:$0xff] %v5074_v32  ;;  %v5033_v35 = vadd.f32 %v5032_v33, %v3419_v56  ;;  %v5076_v37 = vadd.f32 %v5075_v34, %v3427_v59 }
 0x34c   : > { %5549 = vst [vmem:[%s7466_s26 + $0x148] sm:$0xff] %v5033_v35  ;;  %5551 = vst [vmem:[%s7466_s26 + $0x158] sm:$0xff] %v5076_v37 }
 0x363   : > { %v5112_v8 = vpop.f32.mrf.mxu0  ;;  %v5155_v13 = vpop.f32.mrf.mxu1 }
 0x364   : > { %v5113_v25 = vadd.f32 %v5112_v8, %v3431_v39  ;;  %v5156_v26 = vadd.f32 %v5155_v13, %v3439_v5  ;;  %v3375_v13 = vld [vmem:[#allocation8 + $0x18] sm:$0xff] }
 0x365   : > { %v5114_v27 = vpop.f32.mrf.mxu0  ;;  %v5157_v6 = vpop.f32.mrf.mxu1 }
 0x366   : > { %5520 = vst [vmem:[%s7466_s26 + $0x60] sm:$0xff] %v5113_v25  ;;  %5522 = vst [vmem:[%s7466_s26 + $0x70] sm:$0xff] %v5156_v26  ;;  %v5115_v9 = vadd.f32 %v5114_v27, %v3435_v7  ;;  %v5158_v11 = vadd.f32 %v5157_v6, %v3443_v24  ;;  %v3479_v25 = vrot.slane %v3375_v13, %v7441_v0 }
 0x367   : > { %v5116_v17 = vpop.f32.mrf.mxu0  ;;  %v5159_v18 = vpop.f32.mrf.mxu1  ;;  %v3487_v26 = vrot.slane %v3375_v13, %v7444_v3  ;;  %v3483_v27 = vrot.slane %v3375_v13, %v7449_v2  ;;  %v3491_v6 = vrot.slane %v3375_v13, %v7452_v4 }
 0x368   : > { %5521 = vst [vmem:[%s7466_s26 + $0x68] sm:$0xff] %v5115_v9  ;;  %5523 = vst [vmem:[%s7466_s26 + $0x78] sm:$0xff] %v5158_v11  ;;  %v5117_v23 = vadd.f32 %v5116_v17, %v3431_v39  ;;  %v5160_v40 = vadd.f32 %v5159_v18, %v3439_v5 }
 0x369   : > { %v5118_v42 = vpop.f32.mrf.mxu0  ;;  %v5161_v22 = vpop.f32.mrf.mxu1 }
 0x36a   : > { %5552 = vst [vmem:[%s7466_s26 + $0x160] sm:$0xff] %v5117_v23  ;;  %5554 = vst [vmem:[%s7466_s26 + $0x170] sm:$0xff] %v5160_v40  ;;  %v5119_v31 = vadd.f32 %v5118_v42, %v3435_v7  ;;  %v5162_v41 = vadd.f32 %v5161_v22, %v3443_v24 }
 0x36c   : > { %5553 = vst [vmem:[%s7466_s26 + $0x168] sm:$0xff] %v5119_v31  ;;  %5555 = vst [vmem:[%s7466_s26 + $0x178] sm:$0xff] %v5162_v41 }
 0x383   : > { %v5198_v48 = vpop.f32.mrf.mxu0  ;;  %v5241_v51 = vpop.f32.mrf.mxu1 }
 0x384   : > { %v5199_v62 = vadd.f32 %v5198_v48, %v3447_v43  ;;  %v5242_v10 = vadd.f32 %v5241_v51, %v3455_v44  ;;  %v3507_v48 = vrot.slane %v3375_v13, %v7488_v36 }
 0x385   : > { %v5200_v12 = vpop.f32.mrf.mxu0  ;;  %v5243_v46 = vpop.f32.mrf.mxu1 }
 0x386   : > { %5524 = vst [vmem:[%s7466_s26 + $0x80] sm:$0xff] %v5199_v62  ;;  %5526 = vst [vmem:[%s7466_s26 + $0x90] sm:$0xff] %v5242_v10  ;;  %v5201_v49 = vadd.f32 %v5200_v12, %v3451_v45  ;;  %v5244_v19 = vadd.f32 %v5243_v46, %v3459_v47 }
 0x387   : > { %v5202_v50 = vpop.f32.mrf.mxu0  ;;  %v5245_v38 = vpop.f32.mrf.mxu1 }
 0x388   : > { %5525 = vst [vmem:[%s7466_s26 + $0x88] sm:$0xff] %v5201_v49  ;;  %5527 = vst [vmem:[%s7466_s26 + $0x98] sm:$0xff] %v5244_v19  ;;  %v5203_v52 = vadd.f32 %v5202_v50, %v3447_v43  ;;  %v5246_v53 = vadd.f32 %v5245_v38, %v3455_v44  ;;  %v3495_v44 = vrot.slane %v3375_v13, %v7479_v29 }
 0x389   : > { %v5204_v55 = vpop.f32.mrf.mxu0  ;;  %v5247_v56 = vpop.f32.mrf.mxu1 }
 0x38a   : > { %5556 = vst [vmem:[%s7466_s26 + $0x180] sm:$0xff] %v5203_v52  ;;  %5558 = vst [vmem:[%s7466_s26 + $0x190] sm:$0xff] %v5246_v53  ;;  %v5205_v59 = vadd.f32 %v5204_v55, %v3451_v45  ;;  %v5248_v15 = vadd.f32 %v5247_v56, %v3459_v47  ;;  %v3503_v45 = vrot.slane %v3375_v13, %v7482_v28 }
 0x38b   : > { %v3499_v47 = vrot.slane %v3375_v13, %v7485_v30 }
 0x38c   : > { %5557 = vst [vmem:[%s7466_s26 + $0x188] sm:$0xff] %v5205_v59  ;;  %5559 = vst [vmem:[%s7466_s26 + $0x198] sm:$0xff] %v5248_v15 }
 0x3a3   : > { %v5284_v60 = vpop.f32.mrf.mxu0  ;;  %v5327_v61 = vpop.f32.mrf.mxu1 }
 0x3a4   : > { %v5285_v63 = vadd.f32 %v5284_v60, %v3463_v16  ;;  %v5328_v20 = vadd.f32 %v5327_v61, %v3471_v54 }
 0x3a5   : > { %v5286_v21 = vpop.f32.mrf.mxu0  ;;  %v5329_v1 = vpop.f32.mrf.mxu1 }
 0x3a6   : > { %5528 = vst [vmem:[%s7466_s26 + $0xa0] sm:$0xff] %v5285_v63  ;;  %5530 = vst [vmem:[%s7466_s26 + $0xb0] sm:$0xff] %v5328_v20  ;;  %v5287_v32 = vadd.f32 %v5286_v21, %v3467_v57  ;;  %v5330_v33 = vadd.f32 %v5329_v1, %v3475_v58 }
 0x3a7   : > { %v5288_v34 = vpop.f32.mrf.mxu0  ;;  %v5331_v35 = vpop.f32.mrf.mxu1 }
 0x3a8   : > { %5529 = vst [vmem:[%s7466_s26 + $0xa8] sm:$0xff] %v5287_v32  ;;  %5531 = vst [vmem:[%s7466_s26 + $0xb8] sm:$0xff] %v5330_v33  ;;  %v5289_v37 = vadd.f32 %v5288_v34, %v3463_v16  ;;  %v5332_v39 = vadd.f32 %v5331_v35, %v3471_v54 }
 0x3a9   : > { %v5290_v5 = vpop.f32.mrf.mxu0  ;;  %v5333_v7 = vpop.f32.mrf.mxu1 }
 0x3aa   : > { %5560 = vst [vmem:[%s7466_s26 + $0x1a0] sm:$0xff] %v5289_v37  ;;  %5562 = vst [vmem:[%s7466_s26 + $0x1b0] sm:$0xff] %v5332_v39  ;;  %v5291_v24 = vadd.f32 %v5290_v5, %v3467_v57  ;;  %v5334_v8 = vadd.f32 %v5333_v7, %v3475_v58 }
 0x3ac   : > { %5561 = vst [vmem:[%s7466_s26 + $0x1a8] sm:$0xff] %v5291_v24  ;;  %5563 = vst [vmem:[%s7466_s26 + $0x1b8] sm:$0xff] %v5334_v8 }
 0x3c3   : > { %v5370_v9 = vpop.f32.mrf.mxu0  ;;  %v5413_v11 = vpop.f32.mrf.mxu1 }
 0x3c4   : > { %v5371_v17 = vadd.f32 %v5370_v9, %v3479_v25  ;;  %v5414_v18 = vadd.f32 %v5413_v11, %v3487_v26 }
 0x3c5   : > { %v5372_v23 = vpop.f32.mrf.mxu0  ;;  %v5415_v40 = vpop.f32.mrf.mxu1 }
 0x3c6   : > { %5532 = vst [vmem:[%s7466_s26 + $0xc0] sm:$0xff] %v5371_v17  ;;  %5534 = vst [vmem:[%s7466_s26 + $0xd0] sm:$0xff] %v5414_v18  ;;  %v5373_v0 = vadd.f32 %v5372_v23, %v3483_v27  ;;  %v5416_v42 = vadd.f32 %v5415_v40, %v3491_v6 }
 0x3c7   : > { %v5374_v3 = vpop.f32.mrf.mxu0  ;;  %v5417_v22 = vpop.f32.mrf.mxu1 }
 0x3c8   : > { %5533 = vst [vmem:[%s7466_s26 + $0xc8] sm:$0xff] %v5373_v0  ;;  %5535 = vst [vmem:[%s7466_s26 + $0xd8] sm:$0xff] %v5416_v42  ;;  %v5375_v2 = vadd.f32 %v5374_v3, %v3479_v25  ;;  %v5418_v4 = vadd.f32 %v5417_v22, %v3487_v26 }
 0x3c9   : > { %v5376_v31 = vpop.f32.mrf.mxu0  ;;  %v5419_v41 = vpop.f32.mrf.mxu1 }
 0x3ca   : > { %5564 = vst [vmem:[%s7466_s26 + $0x1c0] sm:$0xff] %v5375_v2  ;;  %5566 = vst [vmem:[%s7466_s26 + $0x1d0] sm:$0xff] %v5418_v4  ;;  %v5377_v14 = vadd.f32 %v5376_v31, %v3483_v27  ;;  %v5420_v43 = vadd.f32 %v5419_v41, %v3491_v6 }
 0x3cc   : > { %5565 = vst [vmem:[%s7466_s26 + $0x1c8] sm:$0xff] %v5377_v14  ;;  %5567 = vst [vmem:[%s7466_s26 + $0x1d8] sm:$0xff] %v5420_v43 }
 0x3e3   : > { %v5456_v51 = vpop.f32.mrf.mxu0  ;;  %v5499_v62 = vpop.f32.mrf.mxu1 }
 0x3e4   : > { %v5457_v10 = vadd.f32 %v5456_v51, %v3495_v44  ;;  %v5500_v12 = vadd.f32 %v5499_v62, %v3503_v45 }
 0x3e5   : > { %v5458_v46 = vpop.f32.mrf.mxu0  ;;  %v5501_v49 = vpop.f32.mrf.mxu1 }
 0x3e6   : > { %5536 = vst [vmem:[%s7466_s26 + $0xe0] sm:$0xff] %v5457_v10  ;;  %5538 = vst [vmem:[%s7466_s26 + $0xf0] sm:$0xff] %v5500_v12  ;;  %v5459_v29 = vadd.f32 %v5458_v46, %v3499_v47  ;;  %v5502_v28 = vadd.f32 %v5501_v49, %v3507_v48 }
 0x3e7   : > { %v5460_v19 = vpop.f32.mrf.mxu0  ;;  %v5503_v50 = vpop.f32.mrf.mxu1 }
 0x3e8   : > { %5537 = vst [vmem:[%s7466_s26 + $0xe8] sm:$0xff] %v5459_v29  ;;  %5539 = vst [vmem:[%s7466_s26 + $0xf8] sm:$0xff] %v5502_v28  ;;  %v5461_v30 = vadd.f32 %v5460_v19, %v3495_v44  ;;  %v5504_v36 = vadd.f32 %v5503_v50, %v3503_v45  ;;  %5579 = sbr.rel (!%p7660_p6) target bundleno = 1032 (0x408), region = 60 }
 0x3e9   : > { %v5462_v38 = vpop.f32.mrf.mxu0  ;;  %v5505_v52 = vpop.f32.mrf.mxu1 }
 0x3ea   : > { %5568 = vst [vmem:[%s7466_s26 + $0x1e0] sm:$0xff] %v5461_v30  ;;  %5570 = vst [vmem:[%s7466_s26 + $0x1f0] sm:$0xff] %v5504_v36  ;;  %v5463_v53 = vadd.f32 %v5462_v38, %v3499_v47  ;;  %v5506_v55 = vadd.f32 %v5505_v52, %v3507_v48 }
 0x3ec   : > { %5569 = vst [vmem:[%s7466_s26 + $0x1e8] sm:$0xff] %v5463_v53  ;;  %5571 = vst [vmem:[%s7466_s26 + $0x1f8] sm:$0xff] %v5506_v55 }
 0x3ed   : > { %s7669_s15 = smov (!%p5582_p11, %s5581_s15), 2 }
 0x3ee   : > { %s7584_s11 = sshll.u32 %s7669_s15, 12 }
 0x3ef   : > { %s5587_s28 = ssub.s32 8192, %s7584_s11 }
 0x3f0   : > { %5588 = vsyncadd %s5573_s8, %s5587_s28  ;;  %p6234_p10 = scmp.ne.s32.totalorder %s7584_s11, 0  ;;  %s6246_s30 = sshll.u32 %s7177_s22, 13 }
 0x3f1   : > { %s7594_s16 = scalar_lea.hbm %s7646_s5, %s6246_s30  ;;  %s5594_s12 = sshll.u32 %s7466_s26, 4  ;;  %s7597_s12 = int_to_ptr.vmem [resolvable:$true] %s5594_s12 }
 0x3f2   : > { %s7038_s23 = scalar_lea.vmem %s7597_s12, %s7584_s11  ;;  %s7123_s25 = smov [#allocation10]  }
 0x3f3   : > { %p7039_p1 = scmp.ne.s32.totalorder %s7597_s12, %s7038_s23  ;;  %s7042_s10 = sshll.u32 %s7123_s25, 4  ;;  %s7043_s10 = int_to_ptr.vmem [resolvable:$false] %s7042_s10 }
 0x3f4   : > { %s7044_s22 = scalar_lea.vmem %s7043_s10, 16384  ;;  %p7045_p0 = scmp.lt.s32.totalorder %s7597_s12, %s7043_s10 }
 0x3f5   : > { %p7040_p3 = pnand %p7039_p1, %p6234_p10  ;;  %p7046_p2 = scmp.lt.s32.totalorder %s7044_s22, %s7038_s23 }
 0x3f7   : > { %p7041_p7 = pneg %p7040_p3  ;;  %p7047_p9 = por %p7046_p2, %p7045_p0 }
 0x3f9   : > { %p7048_p12 = pnand %p7047_p9, %p7041_p7 }
 0x3fb   : > { %7051 = shalt.err (!%p7048_p12)
}
 0x3fc   : > { %s7052_s29 = scalar_lea.hbm %s7594_s16, %s7584_s11  ;;  %s7056_s14 = scalar_lea.hbm %s7646_s5, 28672 }
 0x3fd   : > { %p7053_p5 = scmp.ne.s32.totalorder %s7594_s16, %s7052_s29  ;;  %p7057_p8 = scmp.lt.s32.totalorder %s7594_s16, %s7646_s5 }
 0x3fe   : > { %p7058_p6 = scmp.lt.s32.totalorder %s7056_s14, %s7052_s29 }
 0x3ff   : > { %p7054_p13 = pnand %p7053_p5, %p6234_p10 }
 0x400   : > { %p7059_p11 = por %p7058_p6, %p7057_p8 }
 0x401   : > { %p7055_p4 = pneg %p7054_p13 }
 0x403   : > { %p7060_p1 = pnand %p7059_p11, %p7055_p4 }
 0x405   : > { %7063 = shalt.err (!%p7060_p1)
}
 0x406   : > { %s7124_s30 = smov 4096   ;;  %s7125_s9 = smov 256  }
 0x407   : > { %5600 = dma.vmem_to_hbm [thread:$0]  (%p6234_p10), %s7597_s12, %s7584_s11, %s7594_s16, %s5573_s8, %s7124_s30, %s7124_s30, %s7125_s9  }
 0x408 PF: > { %p6633_p3 = scmp.ge.s32.totalorder %s7110_s21, 2  ;;  %s5609_s13 = sand.u32 1, %s7098_s18  }
 0x409   : > { %p7661_p7 = scmp.ne.s32.totalorder %s7652_s6, 0  ;;  %s5610_s23 = scalar_lea.sflag [#allocation4], %s5609_s13 }
 0x40b   : > { %p6624_p0 = pnand %p6633_p3, %p7661_p7 }
 0x40d   : > { %p6625_p2 = pneg %p6624_p0 }
 0x40f   : > { %7093 = dma.done.wait (%p6625_p2), %s5610_s23, 8192  }
 0x410   : > { %7095 = vsyncadd (%p6625_p2), %s5610_s23, 4294959104  ;;  %p20_p9 = scmp.ge.s32.totalorder %s7181_s24, 6   ;;  %s7662_s18 = smov %s7102_s19 }
 0x411   : > { %s7663_s19 = smov %s7106_s20  ;;  %s7664_s20 = smov %s7193_s27 }
 0x412   : > { %s7665_s21 = smov %s7181_s24  ;;  %22 = sbr.rel (!%p20_p9) target bundleno = 7 (0x7), region = 97 }
 0x417   :  { %5615 = vsyncpa [#allocation3], 1 }
 0x418   :  { %5617 = vsyncpa [#allocation3 + $0x1], 1 }
 0x419   :  { %5618 = vsyncpa [#allocation6], 1 }
 0x41a   :  { %5619 = vsyncpa [#allocation9], 1 }
 0x41b   :  { %5620 = vsyncpa [#allocation4], 1 }
 0x41c   :  { %5622 = vsyncpa [#allocation4 + $0x1], 1 }

// kernel: tpu_custom_call.1
= control target key start
LH: loop header
LB: loop body
LE: loop exit
PB: predicated region body
PF: predicated region fallthrough
CT: control target
= control target key end

     0   :  { %10 = vsyncpa [#allocation3], 0  ;;  %s7641_s0 = inlined_call_operand.hbm [shape: f32[50,4096], index: 0, kind: input, shape index: {}]   ;;  %s7642_s1 = inlined_call_operand.hbm [shape: bf16[4096,128], index: 1, kind: input, shape index: {}]   ;;  %s7643_s2 = inlined_call_operand.vmem [shape: f32[1,128], index: 2, kind: input, shape index: {}]   ;;  %s7644_s3 = inlined_call_operand.hbm [shape: bf16[128,4096], index: 3, kind: input, shape index: {}]   ;;  %s7645_s4 = inlined_call_operand.hbm [shape: f32[1,4096], index: 4, kind: input, shape index: {}]   ;;  %s7646_s5 = inlined_call_operand.hbm [shape: f32[50,4096], index: 5, kind: output, shape index: {}]  }
   0x1   :  { %12 = vsyncpa [#allocation3 + $0x1], 0 }
   0x2   :  { %13 = vsyncpa [#allocation6], 0 }
   0x3   :  { %14 = vsyncpa [#allocation9], 0 }
   0x4   :  { %15 = vsyncpa [#allocation4], 0 }
   0x5   :  { %17 = vsyncpa [#allocation4 + $0x1], 0  ;;  %s7156_s18 = smov 0   ;;  %s7158_s19 = smov 0  }
   0x6   :  { %s7160_s20 = smov 0   ;;  %s7162_s21 = smov 0  }
   0x7 LB: > { %s7177_s22 = sadd.s32 4294967295, %s7110_s21   ;;  %s5696_s23 = sadd.s32 4294967294, %s7110_s21   ;;  %s7110_s21 = sphi %s7162_s21, %s7665_s21   ;;  %s7106_s20 = sphi %s7160_s20, %s7664_s20   ;;  %s7102_s19 = sphi %s7158_s19, %s7663_s19   ;;  %s7098_s18 = sphi %s7156_s18, %s7662_s18  }
   0x8   : > { %s7181_s24 = sadd.s32 1, %s7110_s21   ;;  %s30_s25 = sadd.s32 1, %s7106_s20 }
   0x9   : > { %s27_s26 = ssub.s32 %s7110_s21, %s7181_s24  ;;  %p37_p0 = scmp.ne.s32.totalorder %s7106_s20, %s7102_s19 }
   0xa   : > { %p28_p1 = scmp.eq.s32.totalorder %s27_s26, 0  ;;  %p38_p2 = scmp.eq.s32.totalorder %s7110_s21, 0 }
   0xb   : > { %p43_p3 = scmp.ne.s32.totalorder %s7102_s19, %s7098_s18  ;;  %p7647_p4 = scmp.eq.s32.totalorder %s7177_s22, 0 }
   0xc   : > { %s7193_s27 = scalar_select %p28_p1, %s7106_s20, %s30_s25  }
   0xd   : > { %p7195_p5 = por %p38_p2, %p37_p0  ;;  %p7201_p6 = por %p7647_p4, %p43_p3 }
   0xe   : > { %p151_p7 = scmp.eq.s32.totalorder %s7177_s22, 3  ;;  %p157_p8 = scmp.eq.s32.totalorder %s5696_s23, 3 }
   0xf   : > { %s7650_s29 = scalar_select %p7201_p6, 1, 0 }
  0x10   : > { %p5697_p9 = scmp.ge.s32.totalorder %s7110_s21, 1  ;;  %p164_p10 = scmp.lt.s32.totalorder %s7110_s21, 5 }
  0x11   : > { %p7208_p11 = por %p151_p7, %p37_p0  ;;  %p7212_p12 = por %p157_p8, %p43_p3 }
  0x12   : > { %p7216_p13 = pnand %p5697_p9, %p164_p10  ;;  %s7112_s8 = smov [#allocation5]  }
  0x13   : > { %s7651_s30 = scalar_select %p7208_p11, 1, 0 }
  0x14   : > { %s7652_s6 = scalar_select %p7212_p12, 1, 0 }
  0x15   : > { %p6613_p1 = pneg %p7216_p13  ;;  %s176_s9 = sshll.u32 %s7112_s8, 4  ;;  %s177_s9 = int_to_ptr.vmem [resolvable:$true] %s176_s9 }
  0x16   : > { %s7113_s11 = smov [#allocation7]   ;;  %s6945_s13 = scalar_lea.vmem %s177_s9, 32768 }
  0x17   : > { %p7224_p2 = pnand %p6613_p1, %p7647_p4  ;;  %s192_s12 = sshll.u32 %s7113_s11, 4  ;;  %s193_s12 = int_to_ptr.vmem [resolvable:$true] %s192_s12 }
  0x18   : > { %p6946_p3 = scmp.ne.s32.totalorder %s177_s9, %s6945_s13  ;;  %p6953_p9 = scmp.lt.s32.totalorder %s177_s9, %s177_s9 }
  0x19   : > { %p6936_p0 = pneg %p7224_p2  ;;  %p6954_p10 = scmp.lt.s32.totalorder %s6945_s13, %s6945_s13 }
  0x1b   : > { %p6948_p7 = pnand %p6946_p3, %p6936_p0  ;;  %p6955_p12 = por %p6954_p10, %p6953_p9 }
  0x1d   : > { %p6949_p8 = pneg %p6948_p7 }
  0x1f   : > { %p6956_p1 = pnand %p6955_p12, %p6949_p8 }
  0x21   : > { %6959 = shalt.err (!%p6956_p1)
}
  0x22   : > { %s7114_s14 = smov 64   ;;  %s7115_s15 = smov 4  }
  0x23   : > { %6616 = dma.hbm_to_vmem [thread:$0]  (!%p7224_p2), %s7642_s1, 32768, %s177_s9, [#allocation6], %s7114_s14, %s7114_s14, %s7115_s15  }
  0x24   : > { %s6971_s23 = scalar_lea.vmem %s193_s12, 32768  ;;  %p6979_p11 = scmp.lt.s32.totalorder %s193_s12, %s193_s12 }
  0x25   : > { %p6972_p4 = scmp.ne.s32.totalorder %s193_s12, %s6971_s23  ;;  %p6980_p6 = scmp.lt.s32.totalorder %s6971_s23, %s6971_s23 }
  0x27   : > { %p6974_p3 = pnand %p6972_p4, %p6936_p0  ;;  %p6981_p9 = por %p6980_p6, %p6979_p11 }
  0x29   : > { %p6975_p7 = pneg %p6974_p3 }
  0x2b   : > { %p6982_p12 = pnand %p6981_p9, %p6975_p7 }
  0x2d   : > { %6985 = shalt.err (!%p6982_p12)
}
  0x2e   : > { %s7116_s25 = smov 2048   ;;  %s7117_s26 = smov 128  }
  0x2f   : > { %6619 = dma.hbm_to_vmem [thread:$0]  (!%p7224_p2), %s7644_s3, 32768, %s193_s12, [#allocation6], %s7116_s25, %s7116_s25, %s7117_s26  }
  0x30   : > { %s7118_s9 = smov [#allocation8]  }
  0x31   : > { %s206_s13 = sshll.u32 %s7118_s9, 4  ;;  %s207_s13 = int_to_ptr.vmem [resolvable:$true] %s206_s13 }
  0x32   : > { %s6997_s14 = scalar_lea.vmem %s207_s13, 512  ;;  %p7005_p11 = scmp.lt.s32.totalorder %s207_s13, %s207_s13 }
  0x33   : > { %p6998_p4 = scmp.ne.s32.totalorder %s207_s13, %s6997_s14  ;;  %p7006_p10 = scmp.lt.s32.totalorder %s6997_s14, %s6997_s14 }
  0x35   : > { %p7000_p8 = pnand %p6998_p4, %p6936_p0  ;;  %p7007_p1 = por %p7006_p10, %p7005_p11 }
  0x37   : > { %p7001_p6 = pneg %p7000_p8 }
  0x39   : > { %p7008_p3 = pnand %p7007_p1, %p7001_p6 }
  0x3b   : > { %7011 = shalt.err (!%p7008_p3)
}
  0x3c   : > { %6622 = dma.hbm_to_vmem [thread:$0]  (!%p7224_p2), %s7645_s4, 512, %s207_s13, [#allocation9]  }
  0x3d   : > { %p5701_p7 = scmp.ge.s32.totalorder %s7110_s21, 4 }
  0x3f   : > { %213 = sbr.rel (%p5701_p7) target bundleno = 100 (0x64), region = 32 }
  0x44   : > { %216 = sbr.rel (!%p7195_p5) target bundleno = 100 (0x64), region = 36  ;;  %s217_s12 = sand.u32 (%p7195_p5), 1, %s7106_s20  }
  0x45   : > { %s5703_s17 = sshll.u32 (%p7195_p5), %s7110_s21, 1  ;;  %s5702_s23 = sshll.u32 (%p7195_p5), %s217_s12, 9 }
  0x46   : > { %s223_s25 = ssub.s32 (%p7195_p5), 7, %s5703_s17  ;;  %s7262_s8 = scalar_lea.sflag (%p7195_p5), [#allocation3], %s217_s12 }
  0x47   : > { %p224_p0 = scmp.lt.s32.totalorder (%p7195_p5), %s223_s25, 2  ;;  %s221_s11 = scalar_lea.vmem (%p7195_p5), [#allocation2], %s5702_s23 }
  0x49   : > { %s7667_s25 = smov (!%p224_p0, %s223_s25), 2 }
  0x4a   : > { %s7259_s26 = sshll.u32 %s7667_s25, 12 }
  0x4b   : > { %s229_s10 = ssub.s32 8192, %s7259_s26 }
  0x4c   : > { %230 = vsyncadd %s7262_s8, %s229_s10  ;;  %p5706_p5 = scmp.ne.s32.totalorder %s7259_s26, 0  ;;  %s6243_s28 = sshll.u32 %s7110_s21, 13 }
  0x4d   : > { %s7270_s14 = scalar_lea.hbm %s7641_s0, %s6243_s28  ;;  %s236_s15 = sshll.u32 %s221_s11, 4  ;;  %s7272_s15 = int_to_ptr.vmem [resolvable:$true] %s236_s15 }
  0x4e   : > { %s7012_s16 = scalar_lea.hbm %s7270_s14, %s7259_s26  ;;  %s7016_s23 = scalar_lea.hbm %s7641_s0, 28672 }
  0x4f   : > { %p7013_p2 = scmp.ne.s32.totalorder %s7270_s14, %s7012_s16  ;;  %p7017_p4 = scmp.lt.s32.totalorder %s7270_s14, %s7641_s0 }
  0x50   : > { %p7018_p8 = scmp.lt.s32.totalorder %s7016_s23, %s7012_s16 }
  0x51   : > { %p7014_p9 = pnand %p7013_p2, %p5706_p5 }
  0x52   : > { %p7019_p6 = por %p7018_p8, %p7017_p4 }
  0x53   : > { %p7015_p12 = pneg %p7014_p9 }
  0x55   : > { %p7020_p11 = pnand %p7019_p6, %p7015_p12 }
  0x57   : > { %7023 = shalt.err (!%p7020_p11)
}
  0x58   : > { %s7024_s11 = scalar_lea.vmem %s7272_s15, %s7259_s26  ;;  %s7119_s28 = smov [#allocation2]  }
  0x59   : > { %p7025_p10 = scmp.ne.s32.totalorder %s7272_s15, %s7024_s11  ;;  %s7028_s9 = sshll.u32 %s7119_s28, 4  ;;  %s7029_s9 = int_to_ptr.vmem [resolvable:$false] %s7028_s9 }
  0x5a   : > { %s7030_s13 = scalar_lea.vmem %s7029_s9, 16384  ;;  %p7031_p7 = scmp.lt.s32.totalorder %s7272_s15, %s7029_s9 }
  0x5b   : > { %p7026_p1 = pnand %p7025_p10, %p5706_p5  ;;  %p7032_p0 = scmp.lt.s32.totalorder %s7030_s13, %s7024_s11 }
  0x5d   : > { %p7027_p3 = pneg %p7026_p1  ;;  %p7033_p2 = por %p7032_p0, %p7031_p7 }
  0x5f   : > { %p7034_p9 = pnand %p7033_p2, %p7027_p3 }
  0x61   : > { %7037 = shalt.err (!%p7034_p9)
}
  0x62   : > { %s7120_s16 = smov 4096   ;;  %s7121_s12 = smov 256  }
  0x63   : > { %242 = dma.hbm_to_vmem [thread:$0]  (%p5706_p5), %s7270_s14, %s7259_s26, %s7272_s15, %s7262_s8, %s7120_s16, %s7120_s16, %s7121_s12  }
  0x64 PF: > { %248 = sbr.rel (%p7216_p13) target bundleno = 1032 (0x408), region = 40  ;;  %s7301_s17 = sand.u32 (!%p7216_p13), 1, %s7102_s19  }
  0x65   : > { %s5712_s23 = sshll.u32 (!%p7216_p13), %s7301_s17, 9  ;;  %s251_s25 = scalar_lea.sflag (!%p7216_p13), [#allocation3], %s7301_s17 }
  0x66   : > { %s7307_s10 = scalar_lea.vmem (!%p7216_p13), [#allocation2], %s5712_s23  ;;  %p7655_p12 = scmp.ne.s32.totalorder (!%p7216_p13), %s7650_s29, 0 }
  0x69   : > { %7081 = dma.done.wait (%p7655_p12), %s251_s25, 8192  }
  0x6a   : > { %7083 = vsyncadd (%p7655_p12), %s251_s25, 4294959104  ;;  %p7656_p5 = scmp.eq.s32.totalorder %s7177_s22, 0 }
  0x6c   : > { %7085 = dma.done.wait (%p7656_p5), [#allocation6], 65536   ;;  %p7657_p13 = pmov %p7656_p5 }
  0x6d   : > { %p7658_p4 = pmov %p7656_p5 }
  0x6e   : > { %7087 = vsyncadd (%p7657_p13), [#allocation6], 4294901760 }
  0x6f   : > { %7089 = dma.done.wait (%p7658_p4), [#allocation9], 512   ;;  %p7659_p8 = pmov %p7658_p4 }
  0x70   : > { %v6678_v0 = vld [vmem:[#allocation5 + $0x78] sm:$0xff]   ;;  %v6682_v4 = vld [vmem:[#allocation5 + $0x70] sm:$0xff]   ;;  %v6686_v8 = vld [vmem:[#allocation5 + $0x68] sm:$0xff]   ;;  %s7466_s26 = scalar_lea.vmem [#allocation10], %s5712_s23  ;;  %s5573_s8 = scalar_lea.sflag [#allocation4], %s7301_s17 }
  0x71   : > { %7091 = vsyncadd (%p7659_p8), [#allocation9], 4294966784  ;;  %v6679_v1 = vld [vmem:[#allocation5 + $0xf8] sm:$0xff]   ;;  %6247 = vmatprep.subr.bf16.mxu0 %v6678_v0  ;;  %v6683_v5 = vld [vmem:[#allocation5 + $0xf0] sm:$0xff]   ;;  %p7660_p6 = scmp.ne.s32.totalorder %s7651_s30, 0 }
  0x72   : > { %v6680_v2 = vld [vmem:[#allocation5 + $0x38] sm:$0xff]   ;;  %6269 = vmatprep.subr.bf16.mxu1 %v6679_v1  ;;  %v6684_v6 = vld [vmem:[#allocation5 + $0x30] sm:$0xff]   ;;  %v6687_v9 = vld [vmem:[#allocation5 + $0xe8] sm:$0xff]   ;;  %s6231_s14 = sshll.u32 (%p7660_p6), %s7177_s22, 1 }
  0x73   : > { %v6681_v3 = vld [vmem:[#allocation5 + $0xb8] sm:$0xff]   ;;  %6248 = vmatpush3.bf16.msra.mxu0 %v6680_v2  ;;  %v6685_v7 = vld [vmem:[#allocation5 + $0xb0] sm:$0xff]   ;;  %v6688_v10 = vld [vmem:[#allocation5 + $0x28] sm:$0xff]   ;;  %s5581_s15 = ssub.s32 (%p7660_p6), 7, %s6231_s14 }
  0x74   : > { %6270 = vmatpush3.bf16.msra.mxu1 %v6681_v3  ;;  %6249 = vmatprep.subr.bf16.mxu0 %v6682_v4  ;;  %v6689_v11 = vld [vmem:[#allocation5 + $0xa8] sm:$0xff]   ;;  %v6690_v12 = vld [vmem:[#allocation5 + $0x60] sm:$0xff]   ;;  %v6694_v16 = vld [vmem:[#allocation5 + $0x58] sm:$0xff]   ;;  %p5582_p11 = scmp.lt.s32.totalorder (%p7660_p6), %s5581_s15, 2 }
  0x75   : > { %6271 = vmatprep.subr.bf16.mxu1 %v6683_v5  ;;  %v6691_v13 = vld [vmem:[#allocation5 + $0xe0] sm:$0xff]   ;;  %v6695_v17 = vld [vmem:[#allocation5 + $0xd8] sm:$0xff]   ;;  %v6698_v20 = vld [vmem:[#allocation5 + $0x50] sm:$0xff]  }
  0x76   : > { %v6692_v14 = vld [vmem:[#allocation5 + $0x20] sm:$0xff]   ;;  %v6696_v18 = vld [vmem:[#allocation5 + $0x18] sm:$0xff]   ;;  %v6699_v21 = vld [vmem:[#allocation5 + $0xd0] sm:$0xff]  }
  0x77   : > { %6250 = vmatpush3.bf16.msra.mxu0 %v6684_v6  ;;  %v6693_v15 = vld [vmem:[#allocation5 + $0xa0] sm:$0xff]   ;;  %v6697_v19 = vld [vmem:[#allocation5 + $0x98] sm:$0xff]   ;;  %v6700_v22 = vld [vmem:[#allocation5 + $0x10] sm:$0xff]  }
  0x78   : > { %6272 = vmatpush3.bf16.msra.mxu1 %v6685_v7  ;;  %6251 = vmatprep.subr.bf16.mxu0 %v6686_v8  ;;  %v6701_v23 = vld [vmem:[#allocation5 + $0x90] sm:$0xff]   ;;  %v6702_v24 = vld [vmem:[#allocation5 + $0x48] sm:$0xff]   ;;  %v6706_v28 = vld [vmem:[#allocation5 + $0x40] sm:$0xff]  }
  0x79   : > { %6273 = vmatprep.subr.bf16.mxu1 %v6687_v9  ;;  %v6703_v25 = vld [vmem:[#allocation5 + $0xc8] sm:$0xff]   ;;  %v6707_v29 = vld [vmem:[#allocation5 + $0xc0] sm:$0xff]   ;;  %v309_v34 = vld [vmem:[%s7307_s10 + $0x18] sm:$0xff] }
  0x7a   : > { %v6704_v26 = vld [vmem:[#allocation5 + $0x8] sm:$0xff]   ;;  %v6708_v30 = vld [vmem:[#allocation5] sm:$0xff]   ;;  %v341_v36 = vld [vmem:[%s7307_s10 + $0x118] sm:$0xff] }
  0x7b   : > { %6252 = vmatpush3.bf16.msra.mxu0 %v6688_v10  ;;  %v6705_v27 = vld [vmem:[#allocation5 + $0x88] sm:$0xff]   ;;  %v6709_v31 = vld [vmem:[#allocation5 + $0x80] sm:$0xff]   ;;  %v373_v39 = vpack.c.bf16 %v341_v36, %v309_v34  ;;  %v308_v41 = vld [vmem:[%s7307_s10 + $0x10] sm:$0xff] }
  0x7c   : > { %6274 = vmatpush3.bf16.msra.mxu1 %v6689_v11  ;;  %6253 = vmatprep.subr.bf16.mxu0 %v6690_v12  ;;  %v307_v32 = vld [vmem:[%s7307_s10 + $0x8] sm:$0xff]  ;;  %v306_v37 = vld [vmem:[%s7307_s10] sm:$0xff]  ;;  %v340_v42 = vld [vmem:[%s7307_s10 + $0x110] sm:$0xff] }
  0x7d   : > { %6275 = vmatprep.subr.bf16.mxu1 %v6691_v13  ;;  %v339_v33 = vld [vmem:[%s7307_s10 + $0x108] sm:$0xff]  ;;  %v338_v38 = vld [vmem:[%s7307_s10 + $0x100] sm:$0xff]  ;;  %v372_v43 = vpack.c.bf16 %v340_v42, %v308_v41  ;;  %v6710_v44 = vld [vmem:[#allocation5 + $0x178] sm:$0xff]   ;;  %2530 = vmatprep.mubr.bf16.mxu1 %v373_v39 }
  0x7e   : > { %v371_v35 = vpack.c.bf16 %v339_v33, %v307_v32  ;;  %v370_v40 = vpack.c.bf16 %v338_v38, %v306_v37  ;;  %v6711_v45 = vld [vmem:[#allocation5 + $0x1f8] sm:$0xff]   ;;  %v6714_v48 = vld [vmem:[#allocation5 + $0x170] sm:$0xff]   ;;  %v6718_v52 = vld [vmem:[#allocation5 + $0x168] sm:$0xff]  }
  0x7f   : > { %6254 = vmatpush3.bf16.msra.mxu0 %v6692_v14  ;;  %v6712_v46 = vld [vmem:[#allocation5 + $0x138] sm:$0xff]   ;;  %v6715_v49 = vld [vmem:[#allocation5 + $0x1f0] sm:$0xff]   ;;  %v6719_v53 = vld [vmem:[#allocation5 + $0x1e8] sm:$0xff]  }
  0x80   : > { %6276 = vmatpush3.bf16.msra.mxu1 %v6693_v15  ;;  %6255 = vmatprep.subr.bf16.mxu0 %v6694_v16  ;;  %v6713_v47 = vld [vmem:[#allocation5 + $0x1b8] sm:$0xff]   ;;  %v6716_v50 = vld [vmem:[#allocation5 + $0x130] sm:$0xff]   ;;  %v6720_v54 = vld [vmem:[#allocation5 + $0x128] sm:$0xff]  }
  0x81   : > { %6277 = vmatprep.subr.bf16.mxu1 %v6695_v17  ;;  %2489 = vmatprep.mubr.bf16.mxu0 %v371_v35  ;;  %v6717_v51 = vld [vmem:[#allocation5 + $0x1b0] sm:$0xff]   ;;  %v6721_v55 = vld [vmem:[#allocation5 + $0x1a8] sm:$0xff]   ;;  %v6722_v56 = vld [vmem:[#allocation5 + $0x160] sm:$0xff]  }
  0x82   : > { %v6723_v57 = vld [vmem:[#allocation5 + $0x1e0] sm:$0xff]   ;;  %v6726_v60 = vld [vmem:[#allocation5 + $0x158] sm:$0xff]   ;;  %v6730_v0 = vld [vmem:[#allocation5 + $0x150] sm:$0xff]  }
  0x83   : > { %6256 = vmatpush3.bf16.msra.mxu0 %v6696_v18  ;;  %v6724_v58 = vld [vmem:[#allocation5 + $0x120] sm:$0xff]   ;;  %v6727_v61 = vld [vmem:[#allocation5 + $0x1d8] sm:$0xff]   ;;  %v6731_v1 = vld [vmem:[#allocation5 + $0x1d0] sm:$0xff]  }
  0x84   : > { %6278 = vmatpush3.bf16.msra.mxu1 %v6697_v19  ;;  %6257 = vmatprep.subr.bf16.mxu0 %v6698_v20  ;;  %v6725_v59 = vld [vmem:[#allocation5 + $0x1a0] sm:$0xff]   ;;  %v6728_v62 = vld [vmem:[#allocation5 + $0x118] sm:$0xff]   ;;  %v6732_v2 = vld [vmem:[#allocation5 + $0x110] sm:$0xff]  }
  0x85   : > { %6279 = vmatprep.subr.bf16.mxu1 %v6699_v21  ;;  %v6729_v63 = vld [vmem:[#allocation5 + $0x198] sm:$0xff]   ;;  %v6733_v3 = vld [vmem:[#allocation5 + $0x190] sm:$0xff]   ;;  %v6734_v4 = vld [vmem:[#allocation5 + $0x148] sm:$0xff]  }
  0x86   : > { %v6735_v5 = vld [vmem:[#allocation5 + $0x1c8] sm:$0xff]   ;;  %v6738_v8 = vld [vmem:[#allocation5 + $0x140] sm:$0xff]   ;;  %v313_v14 = vld [vmem:[%s7307_s10 + $0x38] sm:$0xff] }
  0x87   : > { %6258 = vmatpush3.bf16.msra.mxu0 %v6700_v22  ;;  %v6736_v6 = vld [vmem:[#allocation5 + $0x108] sm:$0xff]   ;;  %v6739_v9 = vld [vmem:[#allocation5 + $0x1c0] sm:$0xff]   ;;  %v345_v15 = vld [vmem:[%s7307_s10 + $0x138] sm:$0xff] }
  0x88   : > { %6280 = vmatpush3.bf16.msra.mxu1 %v6701_v23  ;;  %6259 = vmatprep.subr.bf16.mxu0 %v6702_v24  ;;  %v6737_v7 = vld [vmem:[#allocation5 + $0x188] sm:$0xff]   ;;  %v6740_v10 = vld [vmem:[#allocation5 + $0x100] sm:$0xff]   ;;  %v377_v17 = vpack.c.bf16 %v345_v15, %v313_v14  ;;  %v312_v20 = vld [vmem:[%s7307_s10 + $0x30] sm:$0xff] }
  0x89   : > { %6281 = vmatprep.subr.bf16.mxu1 %v6703_v25  ;;  %v6741_v11 = vld [vmem:[#allocation5 + $0x180] sm:$0xff]   ;;  %v311_v12 = vld [vmem:[%s7307_s10 + $0x28] sm:$0xff]  ;;  %v344_v22 = vld [vmem:[%s7307_s10 + $0x130] sm:$0xff] }
  0x8a   : > { %v343_v13 = vld [vmem:[%s7307_s10 + $0x128] sm:$0xff]  ;;  %v310_v18 = vld [vmem:[%s7307_s10 + $0x20] sm:$0xff]  ;;  %v376_v23 = vpack.c.bf16 %v344_v22, %v312_v20  ;;  %v6742_v24 = vld [vmem:[#allocation5 + $0x278] sm:$0xff]  }
  0x8b   : > { %6260 = vmatpush3.bf16.msra.mxu0 %v6704_v26  ;;  %v375_v16 = vpack.c.bf16 %v343_v13, %v311_v12  ;;  %v342_v19 = vld [vmem:[%s7307_s10 + $0x120] sm:$0xff]  ;;  %v6743_v25 = vld [vmem:[#allocation5 + $0x2f8] sm:$0xff]   ;;  %v6750_v32 = vld [vmem:[#allocation5 + $0x268] sm:$0xff]  }
  0x8c   : > { %6282 = vmatpush3.bf16.msra.mxu1 %v6705_v27  ;;  %6261 = vmatprep.subr.bf16.mxu0 %v6706_v28  ;;  %v374_v21 = vpack.c.bf16 %v342_v19, %v310_v18  ;;  %v6744_v26 = vld [vmem:[#allocation5 + $0x238] sm:$0xff]   ;;  %v6746_v28 = vld [vmem:[#allocation5 + $0x270] sm:$0xff]   ;;  %v6751_v33 = vld [vmem:[#allocation5 + $0x2e8] sm:$0xff]  }
  0x8d   : > { %6283 = vmatprep.subr.bf16.mxu1 %v6707_v29  ;;  %v6745_v27 = vld [vmem:[#allocation5 + $0x2b8] sm:$0xff]   ;;  %v6747_v29 = vld [vmem:[#allocation5 + $0x2f0] sm:$0xff]   ;;  %v6752_v34 = vld [vmem:[#allocation5 + $0x228] sm:$0xff]  }
  0x8e   : > { %v6753_v35 = vld [vmem:[#allocation5 + $0x2a8] sm:$0xff]   ;;  %v6754_v36 = vld [vmem:[#allocation5 + $0x260] sm:$0xff]   ;;  %v6759_v41 = vld [vmem:[#allocation5 + $0x2d8] sm:$0xff]  }
  0x8f   : > { %6262 = vmatpush3.bf16.msra.mxu0 %v6708_v30  ;;  %v6748_v30 = vld [vmem:[#allocation5 + $0x230] sm:$0xff]   ;;  %v6755_v37 = vld [vmem:[#allocation5 + $0x2e0] sm:$0xff]   ;;  %v6760_v42 = vld [vmem:[#allocation5 + $0x218] sm:$0xff]  }
  0x90   : > { %6284 = vmatpush3.bf16.msra.mxu1 %v6709_v31  ;;  %6291 = vmatprep.subr.bf16.mxu0 %v6710_v44  ;;  %v6749_v31 = vld [vmem:[#allocation5 + $0x2b0] sm:$0xff]   ;;  %v6756_v38 = vld [vmem:[#allocation5 + $0x220] sm:$0xff]   ;;  %v6782_v12 = vld [vmem:[#allocation5 + $0x368] sm:$0xff]  }
  0x91   : > { %6313 = vmatprep.subr.bf16.mxu1 %v6711_v45  ;;  %v6757_v39 = vld [vmem:[#allocation5 + $0x2a0] sm:$0xff]   ;;  %v6762_v44 = vld [vmem:[#allocation5 + $0x250] sm:$0xff]   ;;  %v6783_v13 = vld [vmem:[#allocation5 + $0x3e8] sm:$0xff]  }
  0x92   : > { %2490 = vmatmul.mubr.bf16.vlgmr.msra.gmra.mxu0 %v370_v40  ;;  %v6758_v40 = vld [vmem:[#allocation5 + $0x258] sm:$0xff]   ;;  %v6763_v45 = vld [vmem:[#allocation5 + $0x2d0] sm:$0xff]   ;;  %v6784_v14 = vld [vmem:[#allocation5 + $0x328] sm:$0xff]  }
  0x93   : > { %2531 = vmatmul.mubr.bf16.vlgmr.msra.gmra.mxu1 %v372_v43  ;;  %6292 = vmatpush3.bf16.msra.mxu0 %v6712_v46  ;;  %v6761_v43 = vld [vmem:[#allocation5 + $0x298] sm:$0xff]   ;;  %v6764_v46 = vld [vmem:[#allocation5 + $0x210] sm:$0xff]   ;;  %v6785_v15 = vld [vmem:[#allocation5 + $0x3a8] sm:$0xff]  }
  0x94   : > { %6314 = vmatpush3.bf16.msra.mxu1 %v6713_v47  ;;  %6293 = vmatprep.subr.bf16.mxu0 %v6714_v48  ;;  %v6765_v47 = vld [vmem:[#allocation5 + $0x290] sm:$0xff]   ;;  %v6766_v48 = vld [vmem:[#allocation5 + $0x248] sm:$0xff]   ;;  %v6788_v18 = vld [vmem:[#allocation5 + $0x320] sm:$0xff]  }
  0x95   : > { %6315 = vmatprep.subr.bf16.mxu1 %v6715_v49  ;;  %2571 = vmatprep.mubr.bf16.mxu0 %v375_v16  ;;  %v6767_v49 = vld [vmem:[#allocation5 + $0x2c8] sm:$0xff]   ;;  %v6786_v16 = vld [vmem:[#allocation5 + $0x360] sm:$0xff]   ;;  %v6790_v20 = vld [vmem:[#allocation5 + $0x358] sm:$0xff]  }
  0x96   : > { %2612 = vmatprep.mubr.bf16.mxu1 %v377_v17  ;;  %v6787_v17 = vld [vmem:[#allocation5 + $0x3e0] sm:$0xff]   ;;  %v6792_v22 = vld [vmem:[#allocation5 + $0x318] sm:$0xff]  }
  0x97   : > { %6294 = vmatpush3.bf16.msra.mxu0 %v6716_v50  ;;  %v6768_v50 = vld [vmem:[#allocation5 + $0x208] sm:$0xff]   ;;  %v6789_v19 = vld [vmem:[#allocation5 + $0x3a0] sm:$0xff]  }
  0x98   : > { %6316 = vmatpush3.bf16.msra.mxu1 %v6717_v51  ;;  %6295 = vmatprep.subr.bf16.mxu0 %v6718_v52  ;;  %v6769_v51 = vld [vmem:[#allocation5 + $0x288] sm:$0xff]   ;;  %v6770_v52 = vld [vmem:[#allocation5 + $0x240] sm:$0xff]  }
  0x99   : > { %6317 = vmatprep.subr.bf16.mxu1 %v6719_v53  ;;  %v6771_v53 = vld [vmem:[#allocation5 + $0x2c0] sm:$0xff]  }
  0x9b   : > { %6296 = vmatpush3.bf16.msra.mxu0 %v6720_v54  ;;  %v6772_v54 = vld [vmem:[#allocation5 + $0x200] sm:$0xff]  }
  0x9c   : > { %6318 = vmatpush3.bf16.msra.mxu1 %v6721_v55  ;;  %6297 = vmatprep.subr.bf16.mxu0 %v6722_v56  ;;  %v6773_v55 = vld [vmem:[#allocation5 + $0x280] sm:$0xff]   ;;  %v315_v56 = vld [vmem:[%s7307_s10 + $0x48] sm:$0xff] }
  0x9d   : > { %6319 = vmatprep.subr.bf16.mxu1 %v6723_v57  ;;  %v347_v57 = vld [vmem:[%s7307_s10 + $0x148] sm:$0xff] }
  0x9f   : > { %6298 = vmatpush3.bf16.msra.mxu0 %v6724_v58  ;;  %v379_v58 = vpack.c.bf16 %v347_v57, %v315_v56  ;;  %v6814_v56 = vld [vmem:[#allocation5 + $0x468] sm:$0xff]  }
  0xa0   : > { %6320 = vmatpush3.bf16.msra.mxu1 %v6725_v59  ;;  %6299 = vmatprep.subr.bf16.mxu0 %v6726_v60  ;;  %v317_v59 = vld [vmem:[%s7307_s10 + $0x58] sm:$0xff]  ;;  %v6815_v57 = vld [vmem:[#allocation5 + $0x4e8] sm:$0xff]  }
  0xa1   : > { %6321 = vmatprep.subr.bf16.mxu1 %v6727_v61  ;;  %v349_v60 = vld [vmem:[%s7307_s10 + $0x158] sm:$0xff]  ;;  %v314_v61 = vld [vmem:[%s7307_s10 + $0x40] sm:$0xff] }
  0xa3   : > { %6300 = vmatpush3.bf16.msra.mxu0 %v6728_v62  ;;  %v381_v62 = vpack.c.bf16 %v349_v60, %v317_v59  ;;  %v6817_v59 = vld [vmem:[#allocation5 + $0x4a8] sm:$0xff]   ;;  %v6818_v60 = vld [vmem:[#allocation5 + $0x460] sm:$0xff]  }
  0xa4   : > { %6322 = vmatpush3.bf16.msra.mxu1 %v6729_v63  ;;  %6301 = vmatprep.subr.bf16.mxu0 %v6730_v0  ;;  %v346_v63 = vld [vmem:[%s7307_s10 + $0x140] sm:$0xff]  ;;  %v316_v0 = vld [vmem:[%s7307_s10 + $0x50] sm:$0xff] }
  0xa5   : > { %6323 = vmatprep.subr.bf16.mxu1 %v6731_v1  ;;  %v348_v1 = vld [vmem:[%s7307_s10 + $0x150] sm:$0xff] }
  0xa7   : > { %6302 = vmatpush3.bf16.msra.mxu0 %v6732_v2  ;;  %v378_v2 = vpack.c.bf16 %v346_v63, %v314_v61  ;;  %v6819_v61 = vld [vmem:[#allocation5 + $0x4e0] sm:$0xff]  }
  0xa8   : > { %6324 = vmatpush3.bf16.msra.mxu1 %v6733_v3  ;;  %6303 = vmatprep.subr.bf16.mxu0 %v6734_v4  ;;  %v380_v3 = vpack.c.bf16 %v348_v1, %v316_v0  ;;  %v6774_v4 = vld [vmem:[#allocation5 + $0x378] sm:$0xff]   ;;  %v6821_v63 = vld [vmem:[#allocation5 + $0x4a0] sm:$0xff]  }
  0xa9   : > { %6325 = vmatprep.subr.bf16.mxu1 %v6735_v5  ;;  %v6775_v5 = vld [vmem:[#allocation5 + $0x3f8] sm:$0xff]  }
  0xaa   : > { %v6822_v0 = vld [vmem:[#allocation5 + $0x458] sm:$0xff]  }
  0xab   : > { %6304 = vmatpush3.bf16.msra.mxu0 %v6736_v6  ;;  %v6776_v6 = vld [vmem:[#allocation5 + $0x338] sm:$0xff]  }
  0xac   : > { %6326 = vmatpush3.bf16.msra.mxu1 %v6737_v7  ;;  %6305 = vmatprep.subr.bf16.mxu0 %v6738_v8  ;;  %v6777_v7 = vld [vmem:[#allocation5 + $0x3b8] sm:$0xff]   ;;  %v6778_v8 = vld [vmem:[#allocation5 + $0x370] sm:$0xff]  }
  0xad   : > { %6327 = vmatprep.subr.bf16.mxu1 %v6739_v9  ;;  %v6779_v9 = vld [vmem:[#allocation5 + $0x3f0] sm:$0xff]   ;;  %v6823_v1 = vld [vmem:[#allocation5 + $0x4d8] sm:$0xff]  }
  0xaf   : > { %6306 = vmatpush3.bf16.msra.mxu0 %v6740_v10  ;;  %v6780_v10 = vld [vmem:[#allocation5 + $0x330] sm:$0xff]  }
  0xb0   : > { %6328 = vmatpush3.bf16.msra.mxu1 %v6741_v11  ;;  %6335 = vmatprep.subr.bf16.mxu0 %v6742_v24  ;;  %v6781_v11 = vld [vmem:[#allocation5 + $0x3b0] sm:$0xff]  }
  0xb1   : > { %6357 = vmatprep.subr.bf16.mxu1 %v6743_v25  ;;  %v6794_v24 = vld [vmem:[#allocation5 + $0x350] sm:$0xff]  }
  0xb2   : > { %2572 = vmatmul.mubr.bf16.vlgmr.msra.gmra.mxu0 %v374_v21  ;;  %v6791_v21 = vld [vmem:[#allocation5 + $0x3d8] sm:$0xff]   ;;  %v6795_v25 = vld [vmem:[#allocation5 + $0x3d0] sm:$0xff]  }
  0xb3   : > { %2613 = vmatmul.mubr.bf16.vlgmr.msra.gmra.mxu1 %v376_v23  ;;  %6336 = vmatpush3.bf16.msra.mxu0 %v6744_v26  ;;  %v6793_v23 = vld [vmem:[#allocation5 + $0x398] sm:$0xff]   ;;  %v6796_v26 = vld [vmem:[#allocation5 + $0x310] sm:$0xff]  }
  0xb4   : > { %6358 = vmatpush3.bf16.msra.mxu1 %v6745_v27  ;;  %6337 = vmatprep.subr.bf16.mxu0 %v6746_v28  ;;  %v6797_v27 = vld [vmem:[#allocation5 + $0x390] sm:$0xff]   ;;  %v6798_v28 = vld [vmem:[#allocation5 + $0x348] sm:$0xff]  }
  0xb5   : > { %6359 = vmatprep.subr.bf16.mxu1 %v6747_v29  ;;  %2653 = vmatprep.mubr.bf16.mxu0 %v379_v58  ;;  %v6799_v29 = vld [vmem:[#allocation5 + $0x3c8] sm:$0xff]  }
  0xb6   : > { %2694 = vmatprep.mubr.bf16.mxu1 %v381_v62  ;;  %v6816_v58 = vld [vmem:[#allocation5 + $0x428] sm:$0xff]   ;;  %v6820_v62 = vld [vmem:[#allocation5 + $0x420] sm:$0xff]  }
  0xb7   : > { %6338 = vmatpush3.bf16.msra.mxu0 %v6748_v30  ;;  %v6800_v30 = vld [vmem:[#allocation5 + $0x308] sm:$0xff]  }
  0xb8   : > { %6360 = vmatpush3.bf16.msra.mxu1 %v6749_v31  ;;  %6339 = vmatprep.subr.bf16.mxu0 %v6750_v32  ;;  %v6801_v31 = vld [vmem:[#allocation5 + $0x388] sm:$0xff]   ;;  %v6802_v32 = vld [vmem:[#allocation5 + $0x340] sm:$0xff]  }
  0xb9   : > { %6361 = vmatprep.subr.bf16.mxu1 %v6751_v33  ;;  %v6803_v33 = vld [vmem:[#allocation5 + $0x3c0] sm:$0xff]  }
  0xbb   : > { %6340 = vmatpush3.bf16.msra.mxu0 %v6752_v34  ;;  %v6804_v34 = vld [vmem:[#allocation5 + $0x300] sm:$0xff]  }
  0xbc   : > { %6362 = vmatpush3.bf16.msra.mxu1 %v6753_v35  ;;  %6341 = vmatprep.subr.bf16.mxu0 %v6754_v36  ;;  %v6805_v35 = vld [vmem:[#allocation5 + $0x380] sm:$0xff]   ;;  %v319_v36 = vld [vmem:[%s7307_s10 + $0x68] sm:$0xff] }
  0xbd   : > { %6363 = vmatprep.subr.bf16.mxu1 %v6755_v37  ;;  %v351_v37 = vld [vmem:[%s7307_s10 + $0x168] sm:$0xff] }
  0xbf   : > { %6342 = vmatpush3.bf16.msra.mxu0 %v6756_v38  ;;  %v321_v38 = vld [vmem:[%s7307_s10 + $0x78] sm:$0xff] }
  0xc0   : > { %6364 = vmatpush3.bf16.msra.mxu1 %v6757_v39  ;;  %6343 = vmatprep.subr.bf16.mxu0 %v6758_v40  ;;  %v383_v39 = vpack.c.bf16 %v351_v37, %v319_v36  ;;  %v353_v40 = vld [vmem:[%s7307_s10 + $0x178] sm:$0xff]  ;;  %v6846_v36 = vld [vmem:[#allocation5 + $0x568] sm:$0xff]  }
  0xc1   : > { %6365 = vmatprep.subr.bf16.mxu1 %v6759_v41  ;;  %v318_v41 = vld [vmem:[%s7307_s10 + $0x60] sm:$0xff]  ;;  %v6847_v37 = vld [vmem:[#allocation5 + $0x5e8] sm:$0xff]  }
  0xc3   : > { %6344 = vmatpush3.bf16.msra.mxu0 %v6760_v42  ;;  %v350_v42 = vld [vmem:[%s7307_s10 + $0x160] sm:$0xff] }
  0xc4   : > { %6366 = vmatpush3.bf16.msra.mxu1 %v6761_v43  ;;  %6345 = vmatprep.subr.bf16.mxu0 %v6762_v44  ;;  %v385_v43 = vpack.c.bf16 %v353_v40, %v321_v38  ;;  %v382_v44 = vpack.c.bf16 %v350_v42, %v318_v41  ;;  %v6848_v38 = vld [vmem:[#allocation5 + $0x528] sm:$0xff]   ;;  %v6850_v40 = vld [vmem:[#allocation5 + $0x560] sm:$0xff]  }
  0xc5   : > { %6367 = vmatprep.subr.bf16.mxu1 %v6763_v45  ;;  %v320_v45 = vld [vmem:[%s7307_s10 + $0x70] sm:$0xff]  ;;  %v6851_v41 = vld [vmem:[#allocation5 + $0x5e0] sm:$0xff]  }
  0xc6   : > { %v6852_v42 = vld [vmem:[#allocation5 + $0x520] sm:$0xff]  }
  0xc7   : > { %6346 = vmatpush3.bf16.msra.mxu0 %v6764_v46  ;;  %v352_v46 = vld [vmem:[%s7307_s10 + $0x170] sm:$0xff] }
  0xc8   : > { %6368 = vmatpush3.bf16.msra.mxu1 %v6765_v47  ;;  %6347 = vmatprep.subr.bf16.mxu0 %v6766_v48  ;;  %v384_v47 = vpack.c.bf16 %v352_v46, %v320_v45  ;;  %v6806_v48 = vld [vmem:[#allocation5 + $0x478] sm:$0xff]  }
  0xc9   : > { %6369 = vmatprep.subr.bf16.mxu1 %v6767_v49  ;;  %v6807_v49 = vld [vmem:[#allocation5 + $0x4f8] sm:$0xff]  }
  0xca   : > { %v6855_v45 = vld [vmem:[#allocation5 + $0x5d8] sm:$0xff]  }
  0xcb   : > { %6348 = vmatpush3.bf16.msra.mxu0 %v6768_v50  ;;  %v6808_v50 = vld [vmem:[#allocation5 + $0x438] sm:$0xff]  }
  0xcc   : > { %6370 = vmatpush3.bf16.msra.mxu1 %v6769_v51  ;;  %6349 = vmatprep.subr.bf16.mxu0 %v6770_v52  ;;  %v6809_v51 = vld [vmem:[#allocation5 + $0x4b8] sm:$0xff]   ;;  %v6810_v52 = vld [vmem:[#allocation5 + $0x470] sm:$0xff]  }
  0xcd   : > { %6371 = vmatprep.subr.bf16.mxu1 %v6771_v53  ;;  %v6811_v53 = vld [vmem:[#allocation5 + $0x4f0] sm:$0xff]   ;;  %v6856_v46 = vld [vmem:[#allocation5 + $0x518] sm:$0xff]  }
  0xcf   : > { %6350 = vmatpush3.bf16.msra.mxu0 %v6772_v54  ;;  %v6812_v54 = vld [vmem:[#allocation5 + $0x430] sm:$0xff]  }
  0xd0   : > { %6372 = vmatpush3.bf16.msra.mxu1 %v6773_v55  ;;  %6379 = vmatprep.subr.bf16.mxu0 %v6774_v4  ;;  %v6813_v55 = vld [vmem:[#allocation5 + $0x4b0] sm:$0xff]  }
  0xd1   : > { %6401 = vmatprep.subr.bf16.mxu1 %v6775_v5  ;;  %v6826_v4 = vld [vmem:[#allocation5 + $0x450] sm:$0xff]  }
  0xd2   : > { %2654 = vmatmul.mubr.bf16.vlgmr.msra.gmra.mxu0 %v378_v2  ;;  %v6824_v2 = vld [vmem:[#allocation5 + $0x418] sm:$0xff]   ;;  %v6827_v5 = vld [vmem:[#allocation5 + $0x4d0] sm:$0xff]  }
  0xd3   : > { %2695 = vmatmul.mubr.bf16.vlgmr.msra.gmra.mxu1 %v380_v3  ;;  %6380 = vmatpush3.bf16.msra.mxu0 %v6776_v6  ;;  %v6825_v3 = vld [vmem:[#allocation5 + $0x498] sm:$0xff]   ;;  %v6828_v6 = vld [vmem:[#allocation5 + $0x410] sm:$0xff]  }
  0xd4   : > { %6402 = vmatpush3.bf16.msra.mxu1 %v6777_v7  ;;  %6381 = vmatprep.subr.bf16.mxu0 %v6778_v8  ;;  %v6829_v7 = vld [vmem:[#allocation5 + $0x490] sm:$0xff]   ;;  %v6830_v8 = vld [vmem:[#allocation5 + $0x448] sm:$0xff]  }
  0xd5   : > { %6403 = vmatprep.subr.bf16.mxu1 %v6779_v9  ;;  %2735 = vmatprep.mubr.bf16.mxu0 %v383_v39  ;;  %v6831_v9 = vld [vmem:[#allocation5 + $0x4c8] sm:$0xff]  }
  0xd6   : > { %2776 = vmatprep.mubr.bf16.mxu1 %v385_v43  ;;  %v6849_v39 = vld [vmem:[#allocation5 + $0x5a8] sm:$0xff]   ;;  %v6853_v43 = vld [vmem:[#allocation5 + $0x5a0] sm:$0xff]  }
  0xd7   : > { %6382 = vmatpush3.bf16.msra.mxu0 %v6780_v10  ;;  %v6832_v10 = vld [vmem:[#allocation5 + $0x408] sm:$0xff]  }
  0xd8   : > { %6404 = vmatpush3.bf16.msra.mxu1 %v6781_v11  ;;  %6383 = vmatprep.subr.bf16.mxu0 %v6782_v12  ;;  %v6833_v11 = vld [vmem:[#allocation5 + $0x488] sm:$0xff]   ;;  %v6834_v12 = vld [vmem:[#allocation5 + $0x440] sm:$0xff]  }
  0xd9   : > { %6405 = vmatprep.subr.bf16.mxu1 %v6783_v13  ;;  %v6835_v13 = vld [vmem:[#allocation5 + $0x4c0] sm:$0xff]  }
  0xdb   : > { %6384 = vmatpush3.bf16.msra.mxu0 %v6784_v14  ;;  %v6836_v14 = vld [vmem:[#allocation5 + $0x400] sm:$0xff]  }
  0xdc   : > { %6406 = vmatpush3.bf16.msra.mxu1 %v6785_v15  ;;  %6385 = vmatprep.subr.bf16.mxu0 %v6786_v16  ;;  %v6837_v15 = vld [vmem:[#allocation5 + $0x480] sm:$0xff]   ;;  %v323_v16 = vld [vmem:[%s7307_s10 + $0x88] sm:$0xff] }
  0xdd   : > { %6407 = vmatprep.subr.bf16.mxu1 %v6787_v17  ;;  %v355_v17 = vld [vmem:[%s7307_s10 + $0x188] sm:$0xff] }
  0xdf   : > { %6386 = vmatpush3.bf16.msra.mxu0 %v6788_v18  ;;  %v325_v18 = vld [vmem:[%s7307_s10 + $0x98] sm:$0xff] }
  0xe0   : > { %6408 = vmatpush3.bf16.msra.mxu1 %v6789_v19  ;;  %6387 = vmatprep.subr.bf16.mxu0 %v6790_v20  ;;  %v357_v19 = vld [vmem:[%s7307_s10 + $0x198] sm:$0xff]  ;;  %v387_v20 = vpack.c.bf16 %v355_v17, %v323_v16  ;;  %v6878_v16 = vld [vmem:[#allocation5 + $0x668] sm:$0xff]  }
  0xe1   : > { %6409 = vmatprep.subr.bf16.mxu1 %v6791_v21  ;;  %v389_v21 = vpack.c.bf16 %v357_v19, %v325_v18  ;;  %v6879_v17 = vld [vmem:[#allocation5 + $0x6e8] sm:$0xff]  }
  0xe2   : > { %v6880_v18 = vld [vmem:[#allocation5 + $0x628] sm:$0xff]  }
  0xe3   : > { %6388 = vmatpush3.bf16.msra.mxu0 %v6792_v22  ;;  %v322_v22 = vld [vmem:[%s7307_s10 + $0x80] sm:$0xff]  ;;  %v6881_v19 = vld [vmem:[#allocation5 + $0x6a8] sm:$0xff]  }
  0xe4   : > { %6410 = vmatpush3.bf16.msra.mxu1 %v6793_v23  ;;  %6389 = vmatprep.subr.bf16.mxu0 %v6794_v24  ;;  %v354_v23 = vld [vmem:[%s7307_s10 + $0x180] sm:$0xff]  ;;  %v324_v24 = vld [vmem:[%s7307_s10 + $0x90] sm:$0xff] }
  0xe5   : > { %6411 = vmatprep.subr.bf16.mxu1 %v6795_v25  ;;  %v386_v25 = vpack.c.bf16 %v354_v23, %v322_v22  ;;  %v6884_v22 = vld [vmem:[#allocation5 + $0x620] sm:$0xff]  }
  0xe6   : > { %v6885_v23 = vld [vmem:[#allocation5 + $0x6a0] sm:$0xff]  }
  0xe7   : > { %6390 = vmatpush3.bf16.msra.mxu0 %v6796_v26  ;;  %v356_v26 = vld [vmem:[%s7307_s10 + $0x190] sm:$0xff] }
  0xe8   : > { %6412 = vmatpush3.bf16.msra.mxu1 %v6797_v27  ;;  %6391 = vmatprep.subr.bf16.mxu0 %v6798_v28  ;;  %v388_v27 = vpack.c.bf16 %v356_v26, %v324_v24  ;;  %v6838_v28 = vld [vmem:[#allocation5 + $0x578] sm:$0xff]  }
  0xe9   : > { %6413 = vmatprep.subr.bf16.mxu1 %v6799_v29  ;;  %v6839_v29 = vld [vmem:[#allocation5 + $0x5f8] sm:$0xff]  }
  0xea   : > { %v6886_v24 = vld [vmem:[#allocation5 + $0x658] sm:$0xff]  }
  0xeb   : > { %6392 = vmatpush3.bf16.msra.mxu0 %v6800_v30  ;;  %v6840_v30 = vld [vmem:[#allocation5 + $0x538] sm:$0xff]  }
  0xec   : > { %6414 = vmatpush3.bf16.msra.mxu1 %v6801_v31  ;;  %6393 = vmatprep.subr.bf16.mxu0 %v6802_v32  ;;  %v6841_v31 = vld [vmem:[#allocation5 + $0x5b8] sm:$0xff]   ;;  %v6842_v32 = vld [vmem:[#allocation5 + $0x570] sm:$0xff]  }
  0xed   : > { %6415 = vmatprep.subr.bf16.mxu1 %v6803_v33  ;;  %v6843_v33 = vld [vmem:[#allocation5 + $0x5f0] sm:$0xff]   ;;  %v6888_v26 = vld [vmem:[#allocation5 + $0x618] sm:$0xff]  }
  0xef   : > { %6394 = vmatpush3.bf16.msra.mxu0 %v6804_v34  ;;  %v6844_v34 = vld [vmem:[#allocation5 + $0x530] sm:$0xff]  }
  0xf0   : > { %6416 = vmatpush3.bf16.msra.mxu1 %v6805_v35  ;;  %6423 = vmatprep.subr.bf16.mxu0 %v6806_v48  ;;  %v6845_v35 = vld [vmem:[#allocation5 + $0x5b0] sm:$0xff]  }
  0xf1   : > { %6445 = vmatprep.subr.bf16.mxu1 %v6807_v49  ;;  %v6858_v48 = vld [vmem:[#allocation5 + $0x550] sm:$0xff]  }
  0xf2   : > { %2736 = vmatmul.mubr.bf16.vlgmr.msra.gmra.mxu0 %v382_v44  ;;  %v6854_v44 = vld [vmem:[#allocation5 + $0x558] sm:$0xff]   ;;  %v6859_v49 = vld [vmem:[#allocation5 + $0x5d0] sm:$0xff]  }
  0xf3   : > { %2777 = vmatmul.mubr.bf16.vlgmr.msra.gmra.mxu1 %v384_v47  ;;  %6424 = vmatpush3.bf16.msra.mxu0 %v6808_v50  ;;  %v6857_v47 = vld [vmem:[#allocation5 + $0x598] sm:$0xff]   ;;  %v6860_v50 = vld [vmem:[#allocation5 + $0x510] sm:$0xff]  }
  0xf4   : > { %6446 = vmatpush3.bf16.msra.mxu1 %v6809_v51  ;;  %6425 = vmatprep.subr.bf16.mxu0 %v6810_v52  ;;  %v6861_v51 = vld [vmem:[#allocation5 + $0x590] sm:$0xff]   ;;  %v6862_v52 = vld [vmem:[#allocation5 + $0x548] sm:$0xff]  }
  0xf5   : > { %6447 = vmatprep.subr.bf16.mxu1 %v6811_v53  ;;  %2817 = vmatprep.mubr.bf16.mxu0 %v387_v20  ;;  %v6863_v53 = vld [vmem:[#allocation5 + $0x5c8] sm:$0xff]   ;;  %v6882_v20 = vld [vmem:[#allocation5 + $0x660] sm:$0xff]  }
  0xf6   : > { %2858 = vmatprep.mubr.bf16.mxu1 %v389_v21  ;;  %v6883_v21 = vld [vmem:[#allocation5 + $0x6e0] sm:$0xff]  }
  0xf7   : > { %6426 = vmatpush3.bf16.msra.mxu0 %v6812_v54  ;;  %v6864_v54 = vld [vmem:[#allocation5 + $0x508] sm:$0xff]  }
  0xf8   : > { %6448 = vmatpush3.bf16.msra.mxu1 %v6813_v55  ;;  %6427 = vmatprep.subr.bf16.mxu0 %v6814_v56  ;;  %v6865_v55 = vld [vmem:[#allocation5 + $0x588] sm:$0xff]   ;;  %v6866_v56 = vld [vmem:[#allocation5 + $0x540] sm:$0xff]  }
  0xf9   : > { %6449 = vmatprep.subr.bf16.mxu1 %v6815_v57  ;;  %v6867_v57 = vld [vmem:[#allocation5 + $0x5c0] sm:$0xff]  }
  0xfb   : > { %6428 = vmatpush3.bf16.msra.mxu0 %v6816_v58  ;;  %v6868_v58 = vld [vmem:[#allocation5 + $0x500] sm:$0xff]  }
  0xfc   : > { %6450 = vmatpush3.bf16.msra.mxu1 %v6817_v59  ;;  %6429 = vmatprep.subr.bf16.mxu0 %v6818_v60  ;;  %v6869_v59 = vld [vmem:[#allocation5 + $0x580] sm:$0xff]   ;;  %v327_v60 = vld [vmem:[%s7307_s10 + $0xa8] sm:$0xff] }
  0xfd   : > { %6451 = vmatprep.subr.bf16.mxu1 %v6819_v61  ;;  %v359_v61 = vld [vmem:[%s7307_s10 + $0x1a8] sm:$0xff] }
  0xff   : > { %6430 = vmatpush3.bf16.msra.mxu0 %v6820_v62  ;;  %v391_v62 = vpack.c.bf16 %v359_v61, %v327_v60  ;;  %v6910_v60 = vld [vmem:[#allocation5 + $0x768] sm:$0xff]  }
 0x100   : > { %6452 = vmatpush3.bf16.msra.mxu1 %v6821_v63  ;;  %6431 = vmatprep.subr.bf16.mxu0 %v6822_v0  ;;  %v329_v63 = vld [vmem:[%s7307_s10 + $0xb8] sm:$0xff]  ;;  %v6911_v61 = vld [vmem:[#allocation5 + $0x7e8] sm:$0xff]  }
 0x101   : > { %6453 = vmatprep.subr.bf16.mxu1 %v6823_v1  ;;  %v361_v0 = vld [vmem:[%s7307_s10 + $0x1b8] sm:$0xff]  ;;  %v326_v1 = vld [vmem:[%s7307_s10 + $0xa0] sm:$0xff] }
 0x103   : > { %6432 = vmatpush3.bf16.msra.mxu0 %v6824_v2  ;;  %v393_v2 = vpack.c.bf16 %v361_v0, %v329_v63  ;;  %v6913_v63 = vld [vmem:[#allocation5 + $0x7a8] sm:$0xff]   ;;  %v6914_v0 = vld [vmem:[#allocation5 + $0x760] sm:$0xff]  }
 0x104   : > { %6454 = vmatpush3.bf16.msra.mxu1 %v6825_v3  ;;  %6433 = vmatprep.subr.bf16.mxu0 %v6826_v4  ;;  %v358_v3 = vld [vmem:[%s7307_s10 + $0x1a0] sm:$0xff]  ;;  %v328_v4 = vld [vmem:[%s7307_s10 + $0xb0] sm:$0xff] }
 0x105   : > { %6455 = vmatprep.subr.bf16.mxu1 %v6827_v5  ;;  %v360_v5 = vld [vmem:[%s7307_s10 + $0x1b0] sm:$0xff] }
 0x107   : > { %6434 = vmatpush3.bf16.msra.mxu0 %v6828_v6  ;;  %v390_v6 = vpack.c.bf16 %v358_v3, %v326_v1  ;;  %v6915_v1 = vld [vmem:[#allocation5 + $0x7e0] sm:$0xff]  }
 0x108   : > { %6456 = vmatpush3.bf16.msra.mxu1 %v6829_v7  ;;  %6435 = vmatprep.subr.bf16.mxu0 %v6830_v8  ;;  %v392_v7 = vpack.c.bf16 %v360_v5, %v328_v4  ;;  %v6870_v8 = vld [vmem:[#allocation5 + $0x678] sm:$0xff]   ;;  %v6917_v3 = vld [vmem:[#allocation5 + $0x7a0] sm:$0xff]  }
 0x109   : > { %6457 = vmatprep.subr.bf16.mxu1 %v6831_v9  ;;  %v6871_v9 = vld [vmem:[#allocation5 + $0x6f8] sm:$0xff]  }
 0x10a   : > { %v6918_v4 = vld [vmem:[#allocation5 + $0x758] sm:$0xff]  }
 0x10b   : > { %6436 = vmatpush3.bf16.msra.mxu0 %v6832_v10  ;;  %v6872_v10 = vld [vmem:[#allocation5 + $0x638] sm:$0xff]  }
 0x10c   : > { %6458 = vmatpush3.bf16.msra.mxu1 %v6833_v11  ;;  %6437 = vmatprep.subr.bf16.mxu0 %v6834_v12  ;;  %v6873_v11 = vld [vmem:[#allocation5 + $0x6b8] sm:$0xff]   ;;  %v6874_v12 = vld [vmem:[#allocation5 + $0x670] sm:$0xff]  }
 0x10d   : > { %6459 = vmatprep.subr.bf16.mxu1 %v6835_v13  ;;  %v6875_v13 = vld [vmem:[#allocation5 + $0x6f0] sm:$0xff]   ;;  %v6919_v5 = vld [vmem:[#allocation5 + $0x7d8] sm:$0xff]  }
 0x10f   : > { %6438 = vmatpush3.bf16.msra.mxu0 %v6836_v14  ;;  %v6876_v14 = vld [vmem:[#allocation5 + $0x630] sm:$0xff]  }
 0x110   : > { %6460 = vmatpush3.bf16.msra.mxu1 %v6837_v15  ;;  %6467 = vmatprep.subr.bf16.mxu0 %v6838_v28  ;;  %v6877_v15 = vld [vmem:[#allocation5 + $0x6b0] sm:$0xff]  }
 0x111   : > { %6489 = vmatprep.subr.bf16.mxu1 %v6839_v29  ;;  %v6890_v28 = vld [vmem:[#allocation5 + $0x650] sm:$0xff]  }
 0x112   : > { %2818 = vmatmul.mubr.bf16.vlgmr.msra.gmra.mxu0 %v386_v25  ;;  %v6887_v25 = vld [vmem:[#allocation5 + $0x6d8] sm:$0xff]   ;;  %v6891_v29 = vld [vmem:[#allocation5 + $0x6d0] sm:$0xff]  }
 0x113   : > { %2859 = vmatmul.mubr.bf16.vlgmr.msra.gmra.mxu1 %v388_v27  ;;  %6468 = vmatpush3.bf16.msra.mxu0 %v6840_v30  ;;  %v6889_v27 = vld [vmem:[#allocation5 + $0x698] sm:$0xff]   ;;  %v6892_v30 = vld [vmem:[#allocation5 + $0x610] sm:$0xff]  }
 0x114   : > { %6490 = vmatpush3.bf16.msra.mxu1 %v6841_v31  ;;  %6469 = vmatprep.subr.bf16.mxu0 %v6842_v32  ;;  %v6893_v31 = vld [vmem:[#allocation5 + $0x690] sm:$0xff]   ;;  %v6894_v32 = vld [vmem:[#allocation5 + $0x648] sm:$0xff]  }
 0x115   : > { %6491 = vmatprep.subr.bf16.mxu1 %v6843_v33  ;;  %2899 = vmatprep.mubr.bf16.mxu0 %v391_v62  ;;  %v6895_v33 = vld [vmem:[#allocation5 + $0x6c8] sm:$0xff]  }
 0x116   : > { %2940 = vmatprep.mubr.bf16.mxu1 %v393_v2  ;;  %v6912_v62 = vld [vmem:[#allocation5 + $0x728] sm:$0xff]   ;;  %v6916_v2 = vld [vmem:[#allocation5 + $0x720] sm:$0xff]  }
 0x117   : > { %6470 = vmatpush3.bf16.msra.mxu0 %v6844_v34  ;;  %v6896_v34 = vld [vmem:[#allocation5 + $0x608] sm:$0xff]  }
 0x118   : > { %6492 = vmatpush3.bf16.msra.mxu1 %v6845_v35  ;;  %6471 = vmatprep.subr.bf16.mxu0 %v6846_v36  ;;  %v6897_v35 = vld [vmem:[#allocation5 + $0x688] sm:$0xff]   ;;  %v6898_v36 = vld [vmem:[#allocation5 + $0x640] sm:$0xff]  }
 0x119   : > { %6493 = vmatprep.subr.bf16.mxu1 %v6847_v37  ;;  %v6899_v37 = vld [vmem:[#allocation5 + $0x6c0] sm:$0xff]  }
 0x11b   : > { %6472 = vmatpush3.bf16.msra.mxu0 %v6848_v38  ;;  %v6900_v38 = vld [vmem:[#allocation5 + $0x600] sm:$0xff]  }
 0x11c   : > { %6494 = vmatpush3.bf16.msra.mxu1 %v6849_v39  ;;  %6473 = vmatprep.subr.bf16.mxu0 %v6850_v40  ;;  %v6901_v39 = vld [vmem:[#allocation5 + $0x680] sm:$0xff]   ;;  %v331_v40 = vld [vmem:[%s7307_s10 + $0xc8] sm:$0xff] }
 0x11d   : > { %6495 = vmatprep.subr.bf16.mxu1 %v6851_v41  ;;  %v363_v41 = vld [vmem:[%s7307_s10 + $0x1c8] sm:$0xff] }
 0x11f   : > { %6474 = vmatpush3.bf16.msra.mxu0 %v6852_v42  ;;  %v333_v42 = vld [vmem:[%s7307_s10 + $0xd8] sm:$0xff] }
 0x120   : > { %6496 = vmatpush3.bf16.msra.mxu1 %v6853_v43  ;;  %6475 = vmatprep.subr.bf16.mxu0 %v6854_v44  ;;  %v395_v43 = vpack.c.bf16 %v363_v41, %v331_v40  ;;  %v365_v44 = vld [vmem:[%s7307_s10 + $0x1d8] sm:$0xff] }
 0x121   : > { %6497 = vmatprep.subr.bf16.mxu1 %v6855_v45  ;;  %v330_v45 = vld [vmem:[%s7307_s10 + $0xc0] sm:$0xff] }
 0x123   : > { %6476 = vmatpush3.bf16.msra.mxu0 %v6856_v46  ;;  %v362_v46 = vld [vmem:[%s7307_s10 + $0x1c0] sm:$0xff] }
 0x124   : > { %6498 = vmatpush3.bf16.msra.mxu1 %v6857_v47  ;;  %6477 = vmatprep.subr.bf16.mxu0 %v6858_v48  ;;  %v397_v47 = vpack.c.bf16 %v365_v44, %v333_v42  ;;  %v394_v48 = vpack.c.bf16 %v362_v46, %v330_v45  ;;  %v3325_v44 = vld [vmem:[#allocation7 + $0x688] sm:$0xff]  ;;  %v3276_v45 = vld [vmem:[#allocation7 + $0x500] sm:$0xff] }
 0x125   : > { %6499 = vmatprep.subr.bf16.mxu1 %v6859_v49  ;;  %v332_v49 = vld [vmem:[%s7307_s10 + $0xd0] sm:$0xff] }
 0x127   : > { %6478 = vmatpush3.bf16.msra.mxu0 %v6860_v50  ;;  %v364_v50 = vld [vmem:[%s7307_s10 + $0x1d0] sm:$0xff] }
 0x128   : > { %6500 = vmatpush3.bf16.msra.mxu1 %v6861_v51  ;;  %6479 = vmatprep.subr.bf16.mxu0 %v6862_v52  ;;  %v396_v51 = vpack.c.bf16 %v364_v50, %v332_v49  ;;  %v6902_v52 = vld [vmem:[#allocation5 + $0x778] sm:$0xff]   ;;  %v3293_v49 = vld [vmem:[#allocation7 + $0x588] sm:$0xff] }
 0x129   : > { %6501 = vmatprep.subr.bf16.mxu1 %v6863_v53  ;;  %v6903_v53 = vld [vmem:[#allocation5 + $0x7f8] sm:$0xff]  }
 0x12b   : > { %6480 = vmatpush3.bf16.msra.mxu0 %v6864_v54  ;;  %v6904_v54 = vld [vmem:[#allocation5 + $0x738] sm:$0xff]  }
 0x12c   : > { %6502 = vmatpush3.bf16.msra.mxu1 %v6865_v55  ;;  %6481 = vmatprep.subr.bf16.mxu0 %v6866_v56  ;;  %v6905_v55 = vld [vmem:[#allocation5 + $0x7b8] sm:$0xff]   ;;  %v6906_v56 = vld [vmem:[#allocation5 + $0x770] sm:$0xff]  }
 0x12d   : > { %6503 = vmatprep.subr.bf16.mxu1 %v6867_v57  ;;  %v6907_v57 = vld [vmem:[#allocation5 + $0x7f0] sm:$0xff]  }
 0x12f   : > { %6482 = vmatpush3.bf16.msra.mxu0 %v6868_v58  ;;  %v6908_v58 = vld [vmem:[#allocation5 + $0x730] sm:$0xff]  }
 0x130   : > { %6504 = vmatpush3.bf16.msra.mxu1 %v6869_v59  ;;  %6511 = vmatprep.subr.bf16.mxu0 %v6870_v8  ;;  %v6909_v59 = vld [vmem:[#allocation5 + $0x7b0] sm:$0xff]  }
 0x131   : > { %6533 = vmatprep.subr.bf16.mxu1 %v6871_v9  ;;  %v6922_v8 = vld [vmem:[#allocation5 + $0x750] sm:$0xff]  }
 0x132   : > { %2900 = vmatmul.mubr.bf16.vlgmr.msra.gmra.mxu0 %v390_v6  ;;  %v6920_v6 = vld [vmem:[#allocation5 + $0x718] sm:$0xff]   ;;  %v6923_v9 = vld [vmem:[#allocation5 + $0x7d0] sm:$0xff]  }
 0x133   : > { %2941 = vmatmul.mubr.bf16.vlgmr.msra.gmra.mxu1 %v392_v7  ;;  %6512 = vmatpush3.bf16.msra.mxu0 %v6872_v10  ;;  %v6921_v7 = vld [vmem:[#allocation5 + $0x798] sm:$0xff]   ;;  %v6924_v10 = vld [vmem:[#allocation5 + $0x710] sm:$0xff]  }
 0x134   : > { %6534 = vmatpush3.bf16.msra.mxu1 %v6873_v11  ;;  %6513 = vmatprep.subr.bf16.mxu0 %v6874_v12  ;;  %v6925_v11 = vld [vmem:[#allocation5 + $0x790] sm:$0xff]   ;;  %v6926_v12 = vld [vmem:[#allocation5 + $0x748] sm:$0xff]  }
 0x135   : > { %6535 = vmatprep.subr.bf16.mxu1 %v6875_v13  ;;  %2981 = vmatprep.mubr.bf16.mxu0 %v395_v43  ;;  %v6927_v13 = vld [vmem:[#allocation5 + $0x7c8] sm:$0xff]  }
 0x136   : > { %3022 = vmatprep.mubr.bf16.mxu1 %v397_v47  ;;  %v3309_v43 = vld [vmem:[#allocation7 + $0x608] sm:$0xff]  ;;  %v3292_v47 = vld [vmem:[#allocation7 + $0x580] sm:$0xff] }
 0x137   : > { %6514 = vmatpush3.bf16.msra.mxu0 %v6876_v14  ;;  %v6928_v14 = vld [vmem:[#allocation5 + $0x708] sm:$0xff]   ;;  %v6169_v46 = vcombine.high %v3309_v43, %v3325_v44 }
 0x138   : > { %6536 = vmatpush3.bf16.msra.mxu1 %v6877_v15  ;;  %6515 = vmatprep.subr.bf16.mxu0 %v6878_v16  ;;  %v6929_v15 = vld [vmem:[#allocation5 + $0x788] sm:$0xff]   ;;  %v6930_v16 = vld [vmem:[#allocation5 + $0x740] sm:$0xff]  }
 0x139   : > { %6537 = vmatprep.subr.bf16.mxu1 %v6879_v17  ;;  %v6931_v17 = vld [vmem:[#allocation5 + $0x7c0] sm:$0xff]  }
 0x13b   : > { %6516 = vmatpush3.bf16.msra.mxu0 %v6880_v18  ;;  %v6932_v18 = vld [vmem:[#allocation5 + $0x700] sm:$0xff]  }
 0x13c   : > { %6538 = vmatpush3.bf16.msra.mxu1 %v6881_v19  ;;  %6517 = vmatprep.subr.bf16.mxu0 %v6882_v20  ;;  %v6933_v19 = vld [vmem:[#allocation5 + $0x780] sm:$0xff]   ;;  %v335_v20 = vld [vmem:[%s7307_s10 + $0xe8] sm:$0xff] }
 0x13d   : > { %6539 = vmatprep.subr.bf16.mxu1 %v6883_v21  ;;  %v367_v21 = vld [vmem:[%s7307_s10 + $0x1e8] sm:$0xff] }
 0x13f   : > { %6518 = vmatpush3.bf16.msra.mxu0 %v6884_v22  ;;  %v337_v22 = vld [vmem:[%s7307_s10 + $0xf8] sm:$0xff] }
 0x140   : > { %6540 = vmatpush3.bf16.msra.mxu1 %v6885_v23  ;;  %6519 = vmatprep.subr.bf16.mxu0 %v6886_v24  ;;  %v399_v23 = vpack.c.bf16 %v367_v21, %v335_v20  ;;  %v369_v24 = vld [vmem:[%s7307_s10 + $0x1f8] sm:$0xff]  ;;  %v3165_v20 = vld [vmem:[#allocation7 + $0x188] sm:$0xff] }
 0x141   : > { %6541 = vmatprep.subr.bf16.mxu1 %v6887_v25  ;;  %v334_v25 = vld [vmem:[%s7307_s10 + $0xe0] sm:$0xff] }
 0x143   : > { %6520 = vmatpush3.bf16.msra.mxu0 %v6888_v26  ;;  %v366_v26 = vld [vmem:[%s7307_s10 + $0x1e0] sm:$0xff] }
 0x144   : > { %6542 = vmatpush3.bf16.msra.mxu1 %v6889_v27  ;;  %6521 = vmatprep.subr.bf16.mxu0 %v6890_v28  ;;  %v401_v27 = vpack.c.bf16 %v369_v24, %v337_v22  ;;  %v398_v28 = vpack.c.bf16 %v366_v26, %v334_v25  ;;  %v3116_v24 = vld [vmem:[#allocation7] sm:$0xff]  ;;  %v3117_v26 = vld [vmem:[#allocation7 + $0x8] sm:$0xff] }
 0x145   : > { %6543 = vmatprep.subr.bf16.mxu1 %v6891_v29  ;;  %v336_v29 = vld [vmem:[%s7307_s10 + $0xf0] sm:$0xff]  ;;  %v3132_v25 = vld [vmem:[#allocation7 + $0x80] sm:$0xff] }
 0x147   : > { %6522 = vmatpush3.bf16.msra.mxu0 %v6892_v30  ;;  %v368_v30 = vld [vmem:[%s7307_s10 + $0x1f0] sm:$0xff] }
 0x148   : > { %6544 = vmatpush3.bf16.msra.mxu1 %v6893_v31  ;;  %6523 = vmatprep.subr.bf16.mxu0 %v6894_v32  ;;  %v400_v31 = vpack.c.bf16 %v368_v30, %v336_v29  ;;  %v3340_v32 = vld [vmem:[#allocation7 + $0x700] sm:$0xff]  ;;  %v5974_v29 = vcombine.low %v3116_v24, %v3132_v25 }
 0x149   : > { %6545 = vmatprep.subr.bf16.mxu1 %v6895_v33  ;;  %v3356_v33 = vld [vmem:[#allocation7 + $0x780] sm:$0xff] }
 0x14b   : > { %6524 = vmatpush3.bf16.msra.mxu0 %v6896_v34  ;;  %v3341_v34 = vld [vmem:[#allocation7 + $0x708] sm:$0xff] }
 0x14c   : > { %6546 = vmatpush3.bf16.msra.mxu1 %v6897_v35  ;;  %6525 = vmatprep.subr.bf16.mxu0 %v6898_v36  ;;  %v6198_v35 = vcombine.low %v3340_v32, %v3356_v33  ;;  %v6199_v36 = vcombine.high %v3340_v32, %v3356_v33  ;;  %v7385_v32 = vld [vmem:[#allocation7 + $0x710] sm:$0xff] }
 0x14d   : > { %6547 = vmatprep.subr.bf16.mxu1 %v6899_v37  ;;  %v3357_v37 = vld [vmem:[#allocation7 + $0x788] sm:$0xff]  ;;  %v7387_v33 = vld [vmem:[#allocation7 + $0x790] sm:$0xff] }
 0x14e   : > { %v6200_v40 = vcombine.low %v3341_v34, %v3357_v37  ;;  %v6201_v41 = vcombine.high %v3341_v34, %v3357_v37  ;;  %v7389_v34 = vld [vmem:[#allocation7 + $0x718] sm:$0xff] }
 0x14f   : > { %6526 = vmatpush3.bf16.msra.mxu0 %v6900_v38  ;;  %v3308_v38 = vld [vmem:[#allocation7 + $0x600] sm:$0xff]  ;;  %v7395_v37 = vld [vmem:[#allocation7 + $0x798] sm:$0xff] }
 0x150   : > { %6548 = vmatpush3.bf16.msra.mxu1 %v6901_v39  ;;  %6555 = vmatprep.subr.bf16.mxu0 %v6902_v52  ;;  %v3324_v39 = vld [vmem:[#allocation7 + $0x680] sm:$0xff]  ;;  %v6135_v52 = vcombine.high %v3276_v45, %v3292_v47 }
 0x151   : > { %6577 = vmatprep.subr.bf16.mxu1 %v6903_v53  ;;  %v6167_v42 = vcombine.high %v3308_v38, %v3324_v39  ;;  %v6166_v50 = vcombine.low %v3308_v38, %v3324_v39  ;;  %v7122_v38 = vmov 0   ;;  %v6204_v39 = vcombine.low %v7389_v34, %v7395_v37 }
 0x152   : > { %2982 = vmatmul.mubr.bf16.vlgmr.msra.gmra.mxu0 %v394_v48  ;;  %v3277_v48 = vld [vmem:[#allocation7 + $0x508] sm:$0xff] }
 0x153   : > { %3023 = vmatmul.mubr.bf16.vlgmr.msra.gmra.mxu1 %v396_v51  ;;  %6556 = vmatpush3.bf16.msra.mxu0 %v6904_v54  ;;  %v6168_v51 = vcombine.low %v3309_v43, %v3325_v44  ;;  %v6137_v53 = vcombine.high %v3277_v48, %v3293_v49  ;;  %v3244_v54 = vld [vmem:[#allocation7 + $0x400] sm:$0xff] }
 0x154   : > { %6578 = vmatpush3.bf16.msra.mxu1 %v6905_v55  ;;  %6557 = vmatprep.subr.bf16.mxu0 %v6906_v56  ;;  %v3260_v55 = vld [vmem:[#allocation7 + $0x480] sm:$0xff]  ;;  %v3245_v56 = vld [vmem:[#allocation7 + $0x408] sm:$0xff] }
 0x155   : > { %6579 = vmatprep.subr.bf16.mxu1 %v6907_v57  ;;  %3063 = vmatprep.mubr.bf16.mxu0 %v399_v23  ;;  %v3261_v57 = vld [vmem:[#allocation7 + $0x488] sm:$0xff] }
 0x156   : > { %3104 = vmatprep.mubr.bf16.mxu1 %v401_v27  ;;  %v5975_v27 = vcombine.high %v3116_v24, %v3132_v25 }
 0x157   : > { %6558 = vmatpush3.bf16.msra.mxu0 %v6908_v58  ;;  %v6134_v58 = vcombine.low %v3276_v45, %v3292_v47 }
 0x158   : > { %6580 = vmatpush3.bf16.msra.mxu1 %v6909_v59  ;;  %6559 = vmatprep.subr.bf16.mxu0 %v6910_v60  ;;  %v6136_v59 = vcombine.low %v3277_v48, %v3293_v49  ;;  %v6103_v60 = vcombine.high %v3244_v54, %v3260_v55 }
 0x159   : > { %6581 = vmatprep.subr.bf16.mxu1 %v6911_v61  ;;  %v6105_v61 = vcombine.high %v3245_v56, %v3261_v57 }
 0x15b   : > { %6560 = vmatpush3.bf16.msra.mxu0 %v6912_v62  ;;  %v6102_v62 = vcombine.low %v3244_v54, %v3260_v55 }
 0x15c   : > { %6582 = vmatpush3.bf16.msra.mxu1 %v6913_v63  ;;  %6561 = vmatprep.subr.bf16.mxu0 %v6914_v0  ;;  %v6104_v63 = vcombine.low %v3245_v56, %v3261_v57  ;;  %v3212_v0 = vld [vmem:[#allocation7 + $0x300] sm:$0xff] }
 0x15d   : > { %6583 = vmatprep.subr.bf16.mxu1 %v6915_v1  ;;  %v3228_v1 = vld [vmem:[#allocation7 + $0x380] sm:$0xff] }
 0x15f   : > { %6562 = vmatpush3.bf16.msra.mxu0 %v6916_v2  ;;  %v3213_v2 = vld [vmem:[#allocation7 + $0x308] sm:$0xff] }
 0x160   : > { %6584 = vmatpush3.bf16.msra.mxu1 %v6917_v3  ;;  %6563 = vmatprep.subr.bf16.mxu0 %v6918_v4  ;;  %v6071_v3 = vcombine.high %v3212_v0, %v3228_v1  ;;  %v3229_v4 = vld [vmem:[#allocation7 + $0x388] sm:$0xff] }
 0x161   : > { %6585 = vmatprep.subr.bf16.mxu1 %v6919_v5  ;;  %v6070_v5 = vcombine.low %v3212_v0, %v3228_v1 }
 0x163   : > { %6564 = vmatpush3.bf16.msra.mxu0 %v6920_v6  ;;  %v6072_v6 = vcombine.low %v3213_v2, %v3229_v4 }
 0x164   : > { %6586 = vmatpush3.bf16.msra.mxu1 %v6921_v7  ;;  %6565 = vmatprep.subr.bf16.mxu0 %v6922_v8  ;;  %v6073_v7 = vcombine.high %v3213_v2, %v3229_v4  ;;  %v3180_v8 = vld [vmem:[#allocation7 + $0x200] sm:$0xff] }
 0x165   : > { %6587 = vmatprep.subr.bf16.mxu1 %v6923_v9  ;;  %v3196_v9 = vld [vmem:[#allocation7 + $0x280] sm:$0xff] }
 0x167   : > { %6566 = vmatpush3.bf16.msra.mxu0 %v6924_v10  ;;  %v3181_v10 = vld [vmem:[#allocation7 + $0x208] sm:$0xff] }
 0x168   : > { %6588 = vmatpush3.bf16.msra.mxu1 %v6925_v11  ;;  %6567 = vmatprep.subr.bf16.mxu0 %v6926_v12  ;;  %v6039_v11 = vcombine.high %v3180_v8, %v3196_v9  ;;  %v3197_v12 = vld [vmem:[#allocation7 + $0x288] sm:$0xff] }
 0x169   : > { %6589 = vmatprep.subr.bf16.mxu1 %v6927_v13  ;;  %v6038_v13 = vcombine.low %v3180_v8, %v3196_v9 }
 0x16b   : > { %6568 = vmatpush3.bf16.msra.mxu0 %v6928_v14  ;;  %v6040_v14 = vcombine.low %v3181_v10, %v3197_v12 }
 0x16c   : > { %6590 = vmatpush3.bf16.msra.mxu1 %v6929_v15  ;;  %6569 = vmatprep.subr.bf16.mxu0 %v6930_v16  ;;  %v6041_v15 = vcombine.high %v3181_v10, %v3197_v12  ;;  %v3148_v16 = vld [vmem:[#allocation7 + $0x100] sm:$0xff] }
 0x16d   : > { %6591 = vmatprep.subr.bf16.mxu1 %v6931_v17  ;;  %v3164_v17 = vld [vmem:[#allocation7 + $0x180] sm:$0xff] }
 0x16e   : > { %v6006_v21 = vcombine.low %v3148_v16, %v3164_v17  ;;  %v5717_v12 = vld [vmem:[%s7643_s2] ss:$0 sm:$0xff] }
 0x16f   : > { %6570 = vmatpush3.bf16.msra.mxu0 %v6932_v18  ;;  %v3149_v18 = vld [vmem:[#allocation7 + $0x108] sm:$0xff] }
 0x170   : > { %6592 = vmatpush3.bf16.msra.mxu1 %v6933_v19  ;;  %4820 = vmatprep.subr.bf16.mxu0 %v6199_v36  ;;  %v6007_v19 = vcombine.high %v3148_v16, %v3164_v17  ;;  %v6008_v22 = vcombine.low %v3149_v18, %v3165_v20  ;;  %v6009_v23 = vcombine.high %v3149_v18, %v3165_v20 }
 0x171   : > { %4863 = vmatprep.subr.bf16.mxu1 %v6201_v41  ;;  %v6203_v36 = vcombine.high %v7385_v32, %v7387_v33  ;;  %v6263_v41 = vpop.f32.mrf.mxu0 }
 0x172   : > { %3064 = vmatmul.mubr.bf16.vlgmr.msra.gmra.mxu0 %v398_v28  ;;  %v3133_v28 = vld [vmem:[#allocation7 + $0x88] sm:$0xff] }
 0x173   : > { %3105 = vmatmul.mubr.bf16.vlgmr.msra.gmra.mxu1 %v400_v31  ;;  %4821 = vmatpush1.bf16.msra.mxu0 %v6198_v35  ;;  %v5976_v30 = vcombine.low %v3117_v26, %v3133_v28  ;;  %v5977_v31 = vcombine.high %v3117_v26, %v3133_v28  ;;  %v6202_v35 = vcombine.low %v7385_v32, %v7387_v33  ;;  %v6264_v43 = vpop.f32.mrf.mxu0 }
 0x174   : > { %4864 = vmatpush1.bf16.msra.mxu1 %v6200_v40  ;;  %4822 = vmatprep.subr.bf16.mxu0 %v6167_v42  ;;  %v6205_v40 = vcombine.high %v7389_v34, %v7395_v37  ;;  %v6285_v42 = vpop.f32.mrf.mxu1  ;;  %v6265_v10 = vadd.f32 %v6264_v43, %v6263_v41  ;;  %v3214_v37 = vld [vmem:[#allocation7 + $0x310] sm:$0xff] }
 0x175   : > { %4865 = vmatprep.subr.bf16.mxu1 %v6169_v46  ;;  %4852 = vmatprep.mubr.bf16.mxu0 %v7122_v38  ;;  %v6266_v45 = vpop.f32.mrf.mxu0 }
 0x176   : > { %4895 = vmatprep.mubr.bf16.mxu1 %v7122_v38  ;;  %v6286_v44 = vpop.f32.mrf.mxu1 }
 0x177   : > { %4823 = vmatpush1.bf16.msra.mxu0 %v6166_v50  ;;  %v6267_v47 = vpop.f32.mrf.mxu0 }
 0x178   : > { %4866 = vmatpush1.bf16.msra.mxu1 %v6168_v51  ;;  %4824 = vmatprep.subr.bf16.mxu0 %v6135_v52  ;;  %v6288_v46 = vpop.f32.mrf.mxu1  ;;  %v6268_v16 = vadd.f32 %v6267_v47, %v6266_v45 }
 0x179   : > { %4867 = vmatprep.subr.bf16.mxu1 %v6137_v53  ;;  %v6307_v48 = vpop.f32.mrf.mxu0 }
 0x17a   : > { %v6289_v49 = vpop.f32.mrf.mxu1 }
 0x17b   : > { %4825 = vmatpush1.bf16.msra.mxu0 %v6134_v58  ;;  %v6308_v51 = vpop.f32.mrf.mxu0  ;;  %v6290_v24 = vadd.f32 %v6289_v49, %v6288_v46 }
 0x17c   : > { %4868 = vmatpush1.bf16.msra.mxu1 %v6136_v59  ;;  %4826 = vmatprep.subr.bf16.mxu0 %v6103_v60  ;;  %v6329_v50 = vpop.f32.mrf.mxu1 }
 0x17d   : > { %4869 = vmatprep.subr.bf16.mxu1 %v6105_v61  ;;  %v6310_v53 = vpop.f32.mrf.mxu0 }
 0x17e   : > { %v6330_v52 = vpop.f32.mrf.mxu1 }
 0x17f   : > { %4827 = vmatpush1.bf16.msra.mxu0 %v6102_v62  ;;  %v6311_v55 = vpop.f32.mrf.mxu0  ;;  %v6331_v26 = vadd.f32 %v6330_v52, %v6329_v50 }
 0x180   : > { %4870 = vmatpush1.bf16.msra.mxu1 %v6104_v63  ;;  %4828 = vmatprep.subr.bf16.mxu0 %v6071_v3  ;;  %v6332_v54 = vpop.f32.mrf.mxu1 }
 0x181   : > { %4871 = vmatprep.subr.bf16.mxu1 %v6073_v7 }
 0x182   : > { %v6333_v57 = vpop.f32.mrf.mxu1 }
 0x183   : > { %4829 = vmatpush1.bf16.msra.mxu0 %v6070_v5  ;;  %v6334_v43 = vadd.f32 %v6333_v57, %v6332_v54 }
 0x184   : > { %4872 = vmatpush1.bf16.msra.mxu1 %v6072_v6  ;;  %4830 = vmatprep.subr.bf16.mxu0 %v6039_v11 }
 0x185   : > { %4873 = vmatprep.subr.bf16.mxu1 %v6041_v15  ;;  %v6287_v15 = vadd.f32 %v6286_v44, %v6285_v42 }
 0x187   : > { %4831 = vmatpush1.bf16.msra.mxu0 %v6038_v13 }
 0x188   : > { %4874 = vmatpush1.bf16.msra.mxu1 %v6040_v14  ;;  %4832 = vmatprep.subr.bf16.mxu0 %v6007_v19  ;;  %v2492_v14 = vadd.f32 %v6265_v10, %v5717_v12  ;;  %v6309_v19 = vadd.f32 %v6308_v51, %v6307_v48 }
 0x189   : > { %4875 = vmatprep.subr.bf16.mxu1 %v6009_v23 }
 0x18a   : > { %v2533_v20 = vadd.f32 %v6287_v15, %v2492_v14 }
 0x18b   : > { %4833 = vmatpush1.bf16.msra.mxu0 %v6006_v21  ;;  %v2495_v21 = vadd.f32 %v6268_v16, %v5717_v12 }
 0x18c   : > { %4876 = vmatpush1.bf16.msra.mxu1 %v6008_v22  ;;  %4834 = vmatprep.subr.bf16.mxu0 %v5975_v27  ;;  %v2574_v25 = vadd.f32 %v6309_v19, %v2533_v20  ;;  %v6312_v27 = vadd.f32 %v6311_v55, %v6310_v53 }
 0x18d   : > { %4877 = vmatprep.subr.bf16.mxu1 %v5977_v31 }
 0x18f   : > { %4835 = vmatpush1.bf16.msra.mxu0 %v5974_v29  ;;  %v2536_v29 = vadd.f32 %v6290_v24, %v2495_v21 }
 0x190   : > { %4878 = vmatpush1.bf16.msra.mxu1 %v5976_v30  ;;  %4906 = vmatprep.subr.bf16.mxu0 %v6203_v36  ;;  %v2615_v36 = vadd.f32 %v6331_v26, %v2574_v25 }
 0x191   : > { %4949 = vmatprep.subr.bf16.mxu1 %v6205_v40  ;;  %v2577_v40 = vadd.f32 %v6312_v27, %v2536_v29 }
 0x192   : > { %v6351_v56 = vpop.f32.mrf.mxu0 }
 0x193   : > { %v6373_v58 = vpop.f32.mrf.mxu1  ;;  %v2618_v48 = vadd.f32 %v6334_v43, %v2577_v40 }
 0x194   : > { %v6352_v59 = vpop.f32.mrf.mxu0 }
 0x195   : > { %v6374_v60 = vpop.f32.mrf.mxu1  ;;  %v6353_v30 = vadd.f32 %v6352_v59, %v6351_v56 }
 0x196   : > { %v6354_v61 = vpop.f32.mrf.mxu0  ;;  %v6375_v45 = vadd.f32 %v6374_v60, %v6373_v58 }
 0x197   : > { %v6376_v62 = vpop.f32.mrf.mxu1  ;;  %v2656_v44 = vadd.f32 %v6353_v30, %v2615_v36 }
 0x198   : > { %v6355_v63 = vpop.f32.mrf.mxu0 }
 0x199   : > { %v6377_v1 = vpop.f32.mrf.mxu1  ;;  %v6356_v47 = vadd.f32 %v6355_v63, %v6354_v61  ;;  %v2697_v46 = vadd.f32 %v6375_v45, %v2656_v44 }
 0x19a   : > { %v6378_v50 = vadd.f32 %v6377_v1, %v6376_v62 }
 0x19b   : > { %v2659_v49 = vadd.f32 %v6356_v47, %v2618_v48 }
 0x19d   : > { %v2700_v14 = vadd.f32 %v6378_v50, %v2659_v49 }
 0x1b2   : > { %v6395_v0 = vpop.f32.mrf.mxu0 }
 0x1b3   : > { %v6417_v2 = vpop.f32.mrf.mxu1 }
 0x1b4   : > { %v6396_v3 = vpop.f32.mrf.mxu0 }
 0x1b5   : > { %v6418_v4 = vpop.f32.mrf.mxu1  ;;  %v6397_v51 = vadd.f32 %v6396_v3, %v6395_v0 }
 0x1b6   : > { %v6398_v5 = vpop.f32.mrf.mxu0  ;;  %v6419_v53 = vadd.f32 %v6418_v4, %v6417_v2 }
 0x1b7   : > { %v6420_v6 = vpop.f32.mrf.mxu1  ;;  %v2738_v52 = vadd.f32 %v6397_v51, %v2697_v46 }
 0x1b8   : > { %v6399_v7 = vpop.f32.mrf.mxu0 }
 0x1b9   : > { %v6421_v9 = vpop.f32.mrf.mxu1  ;;  %v6400_v55 = vadd.f32 %v6399_v7, %v6398_v5  ;;  %v2779_v19 = vadd.f32 %v6419_v53, %v2738_v52 }
 0x1ba   : > { %v6422_v58 = vadd.f32 %v6421_v9, %v6420_v6 }
 0x1bb   : > { %v2741_v54 = vadd.f32 %v6400_v55, %v2700_v14  ;;  %v3310_v55 = vld [vmem:[#allocation7 + $0x610] sm:$0xff]  ;;  %v3327_v14 = vld [vmem:[#allocation7 + $0x698] sm:$0xff] }
 0x1bd   : > { %v2782_v20 = vadd.f32 %v6422_v58, %v2741_v54  ;;  %v3278_v58 = vld [vmem:[#allocation7 + $0x510] sm:$0xff] }
 0x1d2   : > { %v6439_v8 = vpop.f32.mrf.mxu0 }
 0x1d3   : > { %v6461_v11 = vpop.f32.mrf.mxu1 }
 0x1d4   : > { %v6440_v13 = vpop.f32.mrf.mxu0 }
 0x1d5   : > { %v6462_v17 = vpop.f32.mrf.mxu1  ;;  %v6441_v15 = vadd.f32 %v6440_v13, %v6439_v8 }
 0x1d6   : > { %v6442_v18 = vpop.f32.mrf.mxu0  ;;  %v6463_v61 = vadd.f32 %v6462_v17, %v6461_v11 }
 0x1d7   : > { %v6464_v22 = vpop.f32.mrf.mxu1  ;;  %v2820_v60 = vadd.f32 %v6441_v15, %v2779_v19 }
 0x1d8   : > { %v6443_v23 = vpop.f32.mrf.mxu0 }
 0x1d9   : > { %v6465_v31 = vpop.f32.mrf.mxu1  ;;  %v6444_v63 = vadd.f32 %v6443_v23, %v6442_v18  ;;  %v2861_v62 = vadd.f32 %v6463_v61, %v2820_v60  ;;  %v3294_v60 = vld [vmem:[#allocation7 + $0x590] sm:$0xff]  ;;  %v3279_v61 = vld [vmem:[#allocation7 + $0x518] sm:$0xff] }
 0x1da   : > { %v6466_v5 = vadd.f32 %v6465_v31, %v6464_v22  ;;  %v6138_v32 = vcombine.low %v3278_v58, %v3294_v60 }
 0x1db   : > { %v2823_v1 = vadd.f32 %v6444_v63, %v2782_v20  ;;  %v3295_v63 = vld [vmem:[#allocation7 + $0x598] sm:$0xff]  ;;  %v6139_v20 = vcombine.high %v3278_v58, %v3294_v60 }
 0x1dc   : > { %v6140_v33 = vcombine.low %v3279_v61, %v3295_v63 }
 0x1dd   : > { %v2864_v13 = vadd.f32 %v6466_v5, %v2823_v1  ;;  %v3262_v1 = vld [vmem:[#allocation7 + $0x490] sm:$0xff]  ;;  %v3215_v5 = vld [vmem:[#allocation7 + $0x318] sm:$0xff] }
 0x1f2   : > { %v6483_v28 = vpop.f32.mrf.mxu0 }
 0x1f3   : > { %v6505_v41 = vpop.f32.mrf.mxu1 }
 0x1f4   : > { %v6484_v42 = vpop.f32.mrf.mxu0 }
 0x1f5   : > { %v6506_v10 = vpop.f32.mrf.mxu1  ;;  %v6485_v21 = vadd.f32 %v6484_v42, %v6483_v28 }
 0x1f6   : > { %v6486_v12 = vpop.f32.mrf.mxu0  ;;  %v6507_v24 = vadd.f32 %v6506_v10, %v6505_v41 }
 0x1f7   : > { %v6508_v56 = vpop.f32.mrf.mxu1  ;;  %v2902_v7 = vadd.f32 %v6485_v21, %v2861_v62  ;;  %v6141_v21 = vcombine.high %v3279_v61, %v3295_v63  ;;  %v3246_v62 = vld [vmem:[#allocation7 + $0x410] sm:$0xff]  ;;  %v3280_v61 = vld [vmem:[#allocation7 + $0x520] sm:$0xff] }
 0x1f8   : > { %v6487_v59 = vpop.f32.mrf.mxu0  ;;  %v6107_v34 = vcombine.high %v3246_v62, %v3262_v1  ;;  %v3296_v63 = vld [vmem:[#allocation7 + $0x5a0] sm:$0xff] }
 0x1f9   : > { %v6509_v57 = vpop.f32.mrf.mxu1  ;;  %v6488_v8 = vadd.f32 %v6487_v59, %v6486_v12  ;;  %v2943_v6 = vadd.f32 %v6507_v24, %v2902_v7  ;;  %v3311_v59 = vld [vmem:[#allocation7 + $0x618] sm:$0xff]  ;;  %v6106_v24 = vcombine.low %v3246_v62, %v3262_v1  ;;  %v6143_v62 = vcombine.high %v3280_v61, %v3296_v63 }
 0x1fa   : > { %v6510_v11 = vadd.f32 %v6509_v57, %v6508_v56  ;;  %v3326_v56 = vld [vmem:[#allocation7 + $0x690] sm:$0xff]  ;;  %v6173_v57 = vcombine.high %v3311_v59, %v3327_v14  ;;  %v3231_v7 = vld [vmem:[#allocation7 + $0x398] sm:$0xff] }
 0x1fb   : > { %v2905_v9 = vadd.f32 %v6488_v8, %v2864_v13  ;;  %v6171_v54 = vcombine.high %v3310_v55, %v3326_v56 }
 0x1fd   : > { %v2946_v30 = vadd.f32 %v6510_v11, %v2905_v9  ;;  %v3199_v9 = vld [vmem:[#allocation7 + $0x298] sm:$0xff] }
 0x212   : > { %v6527_v16 = vpop.f32.mrf.mxu0 }
 0x213   : > { %v6549_v0 = vpop.f32.mrf.mxu1 }
 0x214   : > { %v6528_v3 = vpop.f32.mrf.mxu0 }
 0x215   : > { %v6550_v2 = vpop.f32.mrf.mxu1  ;;  %v6529_v25 = vadd.f32 %v6528_v3, %v6527_v16  ;;  %v6172_v3 = vcombine.low %v3311_v59, %v3327_v14  ;;  %v3312_v59 = vld [vmem:[#allocation7 + $0x620] sm:$0xff] }
 0x216   : > { %v6530_v4 = vpop.f32.mrf.mxu0  ;;  %v6551_v18 = vadd.f32 %v6550_v2, %v6549_v0  ;;  %v6170_v0 = vcombine.low %v3310_v55, %v3326_v56  ;;  %v3247_v2 = vld [vmem:[#allocation7 + $0x418] sm:$0xff]  ;;  %v3328_v14 = vld [vmem:[#allocation7 + $0x6a0] sm:$0xff] }
 0x217   : > { %v6552_v26 = vpop.f32.mrf.mxu1  ;;  %v2984_v17 = vadd.f32 %v6529_v25, %v2943_v6  ;;  %v6077_v25 = vcombine.high %v3215_v5, %v3231_v7  ;;  %v3183_v6 = vld [vmem:[#allocation7 + $0x218] sm:$0xff]  ;;  %v6175_v58 = vcombine.high %v3312_v59, %v3328_v14 }
 0x218   : > { %v6531_v27 = vpop.f32.mrf.mxu0 }
 0x219   : > { %v6532_v23 = vadd.f32 %v6531_v27, %v6530_v4  ;;  %v6553_v29 = vpop.f32.mrf.mxu1  ;;  %v3025_v42 = vadd.f32 %v6551_v18, %v2984_v17  ;;  %v3263_v4 = vld [vmem:[#allocation7 + $0x498] sm:$0xff]  ;;  %v3198_v27 = vld [vmem:[#allocation7 + $0x290] sm:$0xff]  ;;  %v6076_v17 = vcombine.low %v3215_v5, %v3231_v7  ;;  %v3216_v5 = vld [vmem:[#allocation7 + $0x320] sm:$0xff] }
 0x21a   : > { %v6554_v44 = vadd.f32 %v6553_v29, %v6552_v26  ;;  %v6108_v8 = vcombine.low %v3247_v2, %v3263_v4  ;;  %v3182_v26 = vld [vmem:[#allocation7 + $0x210] sm:$0xff]  ;;  %v3232_v7 = vld [vmem:[#allocation7 + $0x3a0] sm:$0xff] }
 0x21b   : > { %v2987_v22 = vadd.f32 %v6532_v23, %v2946_v30  ;;  %v6043_v18 = vcombine.high %v3182_v26, %v3198_v27  ;;  %v6045_v23 = vcombine.high %v3183_v6, %v3199_v9  ;;  %v3150_v29 = vld [vmem:[#allocation7 + $0x110] sm:$0xff]  ;;  %v3151_v30 = vld [vmem:[#allocation7 + $0x118] sm:$0xff] }
 0x21d   : > { %v3028_v51 = vadd.f32 %v6554_v44, %v2987_v22  ;;  %v3119_v44 = vld [vmem:[#allocation7 + $0x18] sm:$0xff] }
 0x232   : > { %v6571_v28 = vpop.f32.mrf.mxu0 }
 0x233   : > { %v6593_v36 = vpop.f32.mrf.mxu1 }
 0x234   : > { %v6572_v40 = vpop.f32.mrf.mxu0 }
 0x235   : > { %v6573_v31 = vadd.f32 %v6572_v40, %v6571_v28  ;;  %v6594_v41 = vpop.f32.mrf.mxu1  ;;  %v3166_v28 = vld [vmem:[#allocation7 + $0x190] sm:$0xff]  ;;  %v6042_v40 = vcombine.low %v3182_v26, %v3198_v27  ;;  %v6079_v26 = vcombine.high %v3216_v5, %v3232_v7 }
 0x236   : > { %v6574_v43 = vpop.f32.mrf.mxu0  ;;  %v6595_v10 = vadd.f32 %v6594_v41, %v6593_v36  ;;  %v3167_v36 = vld [vmem:[#allocation7 + $0x198] sm:$0xff]  ;;  %v6011_v22 = vcombine.high %v3150_v29, %v3166_v28  ;;  %v3118_v41 = vld [vmem:[#allocation7 + $0x10] sm:$0xff] }
 0x237   : > { %v3066_v45 = vadd.f32 %v6573_v31, %v3025_v42  ;;  %v6596_v47 = vpop.f32.mrf.mxu1  ;;  %v6044_v42 = vcombine.low %v3183_v6, %v3199_v9  ;;  %v6013_v31 = vcombine.high %v3151_v30, %v3167_v36  ;;  %v3184_v6 = vld [vmem:[#allocation7 + $0x220] sm:$0xff] }
 0x238   : > { %v6575_v48 = vpop.f32.mrf.mxu0  ;;  %v3200_v9 = vld [vmem:[#allocation7 + $0x2a0] sm:$0xff] }
 0x239   : > { %v6576_v12 = vadd.f32 %v6575_v48, %v6574_v43  ;;  %v6597_v46 = vpop.f32.mrf.mxu1  ;;  %v3107_v49 = vadd.f32 %v6595_v10, %v3066_v45  ;;  %v3134_v43 = vld [vmem:[#allocation7 + $0x90] sm:$0xff]  ;;  %v3135_v45 = vld [vmem:[#allocation7 + $0x98] sm:$0xff]  ;;  %v6012_v48 = vcombine.low %v3151_v30, %v3167_v36  ;;  %v3152_v30 = vld [vmem:[#allocation7 + $0x120] sm:$0xff] }
 0x23a   : > { %v6598_v52 = vadd.f32 %v6597_v46, %v6596_v47  ;;  %v6010_v47 = vcombine.low %v3150_v29, %v3166_v28  ;;  %v5981_v10 = vcombine.high %v3119_v44, %v3135_v45  ;;  %v3360_v46 = vld [vmem:[#allocation7 + $0x7a0] sm:$0xff]  ;;  %v6047_v29 = vcombine.high %v3184_v6, %v3200_v9 }
 0x23b   : > { %v3069_v50 = vadd.f32 %v6576_v12, %v3028_v51  ;;  %v3113_v15 = vmax.f32 %v3107_v49, 0.0  ;;  %v5979_v51 = vcombine.high %v3118_v41, %v3134_v43  ;;  %v3344_v12 = vld [vmem:[#allocation7 + $0x720] sm:$0xff]  ;;  %v3345_v49 = vld [vmem:[#allocation7 + $0x728] sm:$0xff] }
 0x23c   : > { %v6207_v55 = vcombine.high %v3344_v12, %v3360_v46  ;;  %v3168_v36 = vld [vmem:[#allocation7 + $0x1a0] sm:$0xff] }
 0x23d   : > { %v3110_v53 = vadd.f32 %v6598_v52, %v3069_v50  ;;  %v3361_v50 = vld [vmem:[#allocation7 + $0x7a8] sm:$0xff]  ;;  %v5978_v52 = vcombine.low %v3118_v41, %v3134_v43  ;;  %v6015_v41 = vcombine.high %v3152_v30, %v3168_v36 }
 0x23e   : > { %v6209_v56 = vcombine.high %v3345_v49, %v3361_v50 }
 0x23f   : > { %v3114_v16 = vmax.f32 %v3110_v53, 0.0  ;;  %v5980_v53 = vcombine.low %v3119_v44, %v3135_v45  ;;  %v3120_v44 = vld [vmem:[#allocation7 + $0x20] sm:$0xff] }
 0x240   : > { %v3136_v45 = vld [vmem:[#allocation7 + $0xa0] sm:$0xff] }
 0x241   : > { %v7406_v19 = vpack.c.bf16 %v3114_v16, %v3113_v15  ;;  %v3313_v15 = vld [vmem:[#allocation7 + $0x628] sm:$0xff] }
 0x242   : > { %v3329_v16 = vld [vmem:[#allocation7 + $0x6a8] sm:$0xff] }
 0x243   : > { %4853 = vmatmul.mubr.bf16.vlgmr.msra.gmra.mxu0 %v7406_v19  ;;  %4896 = vmatmul.mubr.bf16.vlgmr.msra.gmra.mxu1 %v7406_v19  ;;  %v6177_v60 = vcombine.high %v3313_v15, %v3329_v16 }
 0x244   : > { %4907 = vmatpush1.bf16.msra.mxu0 %v6202_v35  ;;  %4950 = vmatpush1.bf16.msra.mxu1 %v6204_v39  ;;  %v6109_v35 = vcombine.high %v3247_v2, %v3263_v4  ;;  %v3230_v39 = vld [vmem:[#allocation7 + $0x390] sm:$0xff]  ;;  %v3248_v2 = vld [vmem:[#allocation7 + $0x420] sm:$0xff] }
 0x245   : > { %4908 = vmatprep.subr.bf16.mxu0 %v6171_v54  ;;  %4951 = vmatprep.subr.bf16.mxu1 %v6173_v57  ;;  %v6075_v13 = vcombine.high %v3214_v37, %v3230_v39  ;;  %v6074_v11 = vcombine.low %v3214_v37, %v3230_v39  ;;  %v6206_v54 = vcombine.low %v3344_v12, %v3360_v46  ;;  %v3264_v4 = vld [vmem:[#allocation7 + $0x4a0] sm:$0xff] }
 0x246   : > { %4938 = vmatprep.mubr.bf16.mxu0 %v7122_v38  ;;  %4981 = vmatprep.mubr.bf16.mxu1 %v7122_v38  ;;  %v6208_v57 = vcombine.low %v3345_v49, %v3361_v50  ;;  %v6111_v37 = vcombine.high %v3248_v2, %v3264_v4  ;;  %v5983_v12 = vcombine.high %v3120_v44, %v3136_v45  ;;  %v3346_v49 = vld [vmem:[#allocation7 + $0x730] sm:$0xff] }
 0x247   : > { %v3362_v50 = vld [vmem:[#allocation7 + $0x7b0] sm:$0xff] }
 0x248   : > { %4909 = vmatpush1.bf16.msra.mxu0 %v6170_v0  ;;  %4952 = vmatpush1.bf16.msra.mxu1 %v6172_v3  ;;  %v3281_v0 = vld [vmem:[#allocation7 + $0x528] sm:$0xff] }
 0x249   : > { %4910 = vmatprep.subr.bf16.mxu0 %v6139_v20  ;;  %4953 = vmatprep.subr.bf16.mxu1 %v6141_v21  ;;  %v3297_v3 = vld [vmem:[#allocation7 + $0x5a8] sm:$0xff]  ;;  %v6174_v20 = vcombine.low %v3312_v59, %v3328_v14  ;;  %v6176_v21 = vcombine.low %v3313_v15, %v3329_v16  ;;  %v6211_v59 = vcombine.high %v3346_v49, %v3362_v50  ;;  %v3314_v15 = vld [vmem:[#allocation7 + $0x630] sm:$0xff] }
 0x24a   : > { %v6145_v1 = vcombine.high %v3281_v0, %v3297_v3  ;;  %v3330_v16 = vld [vmem:[#allocation7 + $0x6b0] sm:$0xff] }
 0x24c   : > { %4911 = vmatpush1.bf16.msra.mxu0 %v6138_v32  ;;  %4954 = vmatpush1.bf16.msra.mxu1 %v6140_v33  ;;  %v3249_v32 = vld [vmem:[#allocation7 + $0x428] sm:$0xff] }
 0x24d   : > { %4912 = vmatprep.subr.bf16.mxu0 %v6107_v34  ;;  %4955 = vmatprep.subr.bf16.mxu1 %v6109_v35  ;;  %v3265_v33 = vld [vmem:[#allocation7 + $0x4a8] sm:$0xff]  ;;  %v6142_v34 = vcombine.low %v3280_v61, %v3296_v63  ;;  %v6144_v35 = vcombine.low %v3281_v0, %v3297_v3  ;;  %v6179_v61 = vcombine.high %v3314_v15, %v3330_v16  ;;  %v3282_v0 = vld [vmem:[#allocation7 + $0x530] sm:$0xff] }
 0x24e   : > { %v6113_v39 = vcombine.high %v3249_v32, %v3265_v33  ;;  %v3298_v3 = vld [vmem:[#allocation7 + $0x5b0] sm:$0xff] }
 0x250   : > { %4913 = vmatpush1.bf16.msra.mxu0 %v6106_v24  ;;  %4956 = vmatpush1.bf16.msra.mxu1 %v6108_v8  ;;  %v3217_v24 = vld [vmem:[#allocation7 + $0x328] sm:$0xff] }
 0x251   : > { %4914 = vmatprep.subr.bf16.mxu0 %v6075_v13  ;;  %4957 = vmatprep.subr.bf16.mxu1 %v6077_v25  ;;  %v3233_v8 = vld [vmem:[#allocation7 + $0x3a8] sm:$0xff]  ;;  %v6110_v13 = vcombine.low %v3248_v2, %v3264_v4  ;;  %v6112_v25 = vcombine.low %v3249_v32, %v3265_v33  ;;  %v6147_v2 = vcombine.high %v3282_v0, %v3298_v3  ;;  %v3250_v32 = vld [vmem:[#allocation7 + $0x430] sm:$0xff] }
 0x252   : > { %v6081_v27 = vcombine.high %v3217_v24, %v3233_v8  ;;  %v3266_v33 = vld [vmem:[#allocation7 + $0x4b0] sm:$0xff] }
 0x254   : > { %4915 = vmatpush1.bf16.msra.mxu0 %v6074_v11  ;;  %4958 = vmatpush1.bf16.msra.mxu1 %v6076_v17  ;;  %v3185_v11 = vld [vmem:[#allocation7 + $0x228] sm:$0xff] }
 0x255   : > { %4916 = vmatprep.subr.bf16.mxu0 %v6043_v18  ;;  %4959 = vmatprep.subr.bf16.mxu1 %v6045_v23  ;;  %v3201_v17 = vld [vmem:[#allocation7 + $0x2a8] sm:$0xff]  ;;  %v6078_v18 = vcombine.low %v3216_v5, %v3232_v7  ;;  %v6080_v23 = vcombine.low %v3217_v24, %v3233_v8  ;;  %v6115_v5 = vcombine.high %v3250_v32, %v3266_v33  ;;  %v3218_v24 = vld [vmem:[#allocation7 + $0x330] sm:$0xff] }
 0x256   : > { %v6049_v28 = vcombine.high %v3185_v11, %v3201_v17  ;;  %v3234_v8 = vld [vmem:[#allocation7 + $0x3b0] sm:$0xff] }
 0x258   : > { %4917 = vmatpush1.bf16.msra.mxu0 %v6042_v40  ;;  %4960 = vmatpush1.bf16.msra.mxu1 %v6044_v42  ;;  %v3153_v40 = vld [vmem:[#allocation7 + $0x128] sm:$0xff] }
 0x259   : > { %4918 = vmatprep.subr.bf16.mxu0 %v6011_v22  ;;  %4961 = vmatprep.subr.bf16.mxu1 %v6013_v31  ;;  %v3169_v42 = vld [vmem:[#allocation7 + $0x1a8] sm:$0xff]  ;;  %v6046_v22 = vcombine.low %v3184_v6, %v3200_v9  ;;  %v6048_v31 = vcombine.low %v3185_v11, %v3201_v17  ;;  %v6083_v6 = vcombine.high %v3218_v24, %v3234_v8  ;;  %v3186_v11 = vld [vmem:[#allocation7 + $0x230] sm:$0xff] }
 0x25a   : > { %v6017_v43 = vcombine.high %v3153_v40, %v3169_v42  ;;  %v3202_v17 = vld [vmem:[#allocation7 + $0x2b0] sm:$0xff] }
 0x25c   : > { %4919 = vmatpush1.bf16.msra.mxu0 %v6010_v47  ;;  %4962 = vmatpush1.bf16.msra.mxu1 %v6012_v48  ;;  %v3121_v47 = vld [vmem:[#allocation7 + $0x28] sm:$0xff] }
 0x25d   : > { %4920 = vmatprep.subr.bf16.mxu0 %v5979_v51  ;;  %4963 = vmatprep.subr.bf16.mxu1 %v5981_v10  ;;  %v3137_v48 = vld [vmem:[#allocation7 + $0xa8] sm:$0xff]  ;;  %v6014_v51 = vcombine.low %v3152_v30, %v3168_v36  ;;  %v6016_v10 = vcombine.low %v3153_v40, %v3169_v42  ;;  %v6051_v30 = vcombine.high %v3186_v11, %v3202_v17  ;;  %v3154_v40 = vld [vmem:[#allocation7 + $0x130] sm:$0xff] }
 0x25e   : > { %v5985_v46 = vcombine.high %v3121_v47, %v3137_v48  ;;  %v3170_v42 = vld [vmem:[#allocation7 + $0x1b0] sm:$0xff] }
 0x260   : > { %4921 = vmatpush1.bf16.msra.mxu0 %v5978_v52  ;;  %4964 = vmatpush1.bf16.msra.mxu1 %v5980_v53  ;;  %v3347_v52 = vld [vmem:[#allocation7 + $0x738] sm:$0xff] }
 0x261   : > { %4992 = vmatprep.subr.bf16.mxu0 %v6207_v55  ;;  %5035 = vmatprep.subr.bf16.mxu1 %v6209_v56  ;;  %v3363_v53 = vld [vmem:[#allocation7 + $0x7b8] sm:$0xff]  ;;  %v5982_v55 = vcombine.low %v3120_v44, %v3136_v45  ;;  %v5984_v56 = vcombine.low %v3121_v47, %v3137_v48  ;;  %v6019_v44 = vcombine.high %v3154_v40, %v3170_v42  ;;  %v3122_v47 = vld [vmem:[#allocation7 + $0x30] sm:$0xff] }
 0x262   : > { %v6213_v14 = vcombine.high %v3347_v52, %v3363_v53  ;;  %v3138_v48 = vld [vmem:[#allocation7 + $0xb0] sm:$0xff] }
 0x263   : > { %4939 = vmatmul.mubr.bf16.vlgmr.msra.gmra.mxu0 %v7406_v19  ;;  %4982 = vmatmul.mubr.bf16.vlgmr.msra.gmra.mxu1 %v7406_v19 }
 0x264   : > { %4993 = vmatpush1.bf16.msra.mxu0 %v6206_v54  ;;  %5036 = vmatpush1.bf16.msra.mxu1 %v6208_v57  ;;  %v3315_v54 = vld [vmem:[#allocation7 + $0x638] sm:$0xff] }
 0x265   : > { %4994 = vmatprep.subr.bf16.mxu0 %v6175_v58  ;;  %5037 = vmatprep.subr.bf16.mxu1 %v6177_v60  ;;  %v3331_v57 = vld [vmem:[#allocation7 + $0x6b8] sm:$0xff]  ;;  %v6210_v58 = vcombine.low %v3346_v49, %v3362_v50  ;;  %v6212_v60 = vcombine.low %v3347_v52, %v3363_v53  ;;  %v5987_v49 = vcombine.high %v3122_v47, %v3138_v48  ;;  %v3348_v52 = vld [vmem:[#allocation7 + $0x740] sm:$0xff] }
 0x266   : > { %5024 = vmatprep.mubr.bf16.mxu0 %v7122_v38  ;;  %5067 = vmatprep.mubr.bf16.mxu1 %v7122_v38  ;;  %v6181_v63 = vcombine.high %v3315_v54, %v3331_v57  ;;  %v3364_v53 = vld [vmem:[#allocation7 + $0x7c0] sm:$0xff] }
 0x268   : > { %4995 = vmatpush1.bf16.msra.mxu0 %v6174_v20  ;;  %5038 = vmatpush1.bf16.msra.mxu1 %v6176_v21  ;;  %v3283_v20 = vld [vmem:[#allocation7 + $0x538] sm:$0xff] }
 0x269   : > { %4996 = vmatprep.subr.bf16.mxu0 %v6143_v62  ;;  %5039 = vmatprep.subr.bf16.mxu1 %v6145_v1  ;;  %v3299_v21 = vld [vmem:[#allocation7 + $0x5b8] sm:$0xff]  ;;  %v6178_v62 = vcombine.low %v3314_v15, %v3330_v16  ;;  %v6180_v1 = vcombine.low %v3315_v54, %v3331_v57  ;;  %v6215_v15 = vcombine.high %v3348_v52, %v3364_v53  ;;  %v3316_v54 = vld [vmem:[#allocation7 + $0x640] sm:$0xff] }
 0x26a   : > { %v6149_v4 = vcombine.high %v3283_v20, %v3299_v21  ;;  %v3332_v57 = vld [vmem:[#allocation7 + $0x6c0] sm:$0xff] }
 0x26c   : > { %4997 = vmatpush1.bf16.msra.mxu0 %v6142_v34  ;;  %5040 = vmatpush1.bf16.msra.mxu1 %v6144_v35  ;;  %v3251_v34 = vld [vmem:[#allocation7 + $0x438] sm:$0xff] }
 0x26d   : > { %4998 = vmatprep.subr.bf16.mxu0 %v6111_v37  ;;  %5041 = vmatprep.subr.bf16.mxu1 %v6113_v39  ;;  %v3267_v35 = vld [vmem:[#allocation7 + $0x4b8] sm:$0xff]  ;;  %v6146_v37 = vcombine.low %v3282_v0, %v3298_v3  ;;  %v6148_v39 = vcombine.low %v3283_v20, %v3299_v21  ;;  %v6183_v0 = vcombine.high %v3316_v54, %v3332_v57  ;;  %v3284_v20 = vld [vmem:[#allocation7 + $0x540] sm:$0xff] }
 0x26e   : > { %v6117_v7 = vcombine.high %v3251_v34, %v3267_v35  ;;  %v3300_v21 = vld [vmem:[#allocation7 + $0x5c0] sm:$0xff] }
 0x270   : > { %4999 = vmatpush1.bf16.msra.mxu0 %v6110_v13  ;;  %5042 = vmatpush1.bf16.msra.mxu1 %v6112_v25  ;;  %v3219_v13 = vld [vmem:[#allocation7 + $0x338] sm:$0xff] }
 0x271   : > { %5000 = vmatprep.subr.bf16.mxu0 %v6079_v26  ;;  %5043 = vmatprep.subr.bf16.mxu1 %v6081_v27  ;;  %v3235_v25 = vld [vmem:[#allocation7 + $0x3b8] sm:$0xff]  ;;  %v6114_v26 = vcombine.low %v3250_v32, %v3266_v33  ;;  %v6116_v27 = vcombine.low %v3251_v34, %v3267_v35  ;;  %v6151_v32 = vcombine.high %v3284_v20, %v3300_v21  ;;  %v3252_v34 = vld [vmem:[#allocation7 + $0x440] sm:$0xff] }
 0x272   : > { %v6085_v9 = vcombine.high %v3219_v13, %v3235_v25  ;;  %v3268_v35 = vld [vmem:[#allocation7 + $0x4c0] sm:$0xff] }
 0x274   : > { %5001 = vmatpush1.bf16.msra.mxu0 %v6078_v18  ;;  %5044 = vmatpush1.bf16.msra.mxu1 %v6080_v23  ;;  %v3187_v18 = vld [vmem:[#allocation7 + $0x238] sm:$0xff] }
 0x275   : > { %5002 = vmatprep.subr.bf16.mxu0 %v6047_v29  ;;  %5045 = vmatprep.subr.bf16.mxu1 %v6049_v28  ;;  %v3203_v23 = vld [vmem:[#allocation7 + $0x2b8] sm:$0xff]  ;;  %v6082_v29 = vcombine.low %v3218_v24, %v3234_v8  ;;  %v6084_v28 = vcombine.low %v3219_v13, %v3235_v25  ;;  %v6119_v24 = vcombine.high %v3252_v34, %v3268_v35  ;;  %v3220_v13 = vld [vmem:[#allocation7 + $0x340] sm:$0xff] }
 0x276   : > { %v6053_v36 = vcombine.high %v3187_v18, %v3203_v23  ;;  %v3236_v25 = vld [vmem:[#allocation7 + $0x3c0] sm:$0xff] }
 0x278   : > { %5003 = vmatpush1.bf16.msra.mxu0 %v6046_v22  ;;  %5046 = vmatpush1.bf16.msra.mxu1 %v6048_v31  ;;  %v3155_v22 = vld [vmem:[#allocation7 + $0x138] sm:$0xff] }
 0x279   : > { %5004 = vmatprep.subr.bf16.mxu0 %v6015_v41  ;;  %5047 = vmatprep.subr.bf16.mxu1 %v6017_v43  ;;  %v3171_v31 = vld [vmem:[#allocation7 + $0x1b8] sm:$0xff]  ;;  %v6050_v41 = vcombine.low %v3186_v11, %v3202_v17  ;;  %v6052_v43 = vcombine.low %v3187_v18, %v3203_v23  ;;  %v6087_v11 = vcombine.high %v3220_v13, %v3236_v25  ;;  %v3188_v18 = vld [vmem:[#allocation7 + $0x240] sm:$0xff] }
 0x27a   : > { %v6021_v45 = vcombine.high %v3155_v22, %v3171_v31  ;;  %v3204_v23 = vld [vmem:[#allocation7 + $0x2c0] sm:$0xff] }
 0x27c   : > { %5005 = vmatpush1.bf16.msra.mxu0 %v6014_v51  ;;  %5048 = vmatpush1.bf16.msra.mxu1 %v6016_v10  ;;  %v3123_v51 = vld [vmem:[#allocation7 + $0x38] sm:$0xff] }
 0x27d   : > { %5006 = vmatprep.subr.bf16.mxu0 %v5983_v12  ;;  %5049 = vmatprep.subr.bf16.mxu1 %v5985_v46  ;;  %v3139_v10 = vld [vmem:[#allocation7 + $0xb8] sm:$0xff]  ;;  %v6018_v12 = vcombine.low %v3154_v40, %v3170_v42  ;;  %v6020_v46 = vcombine.low %v3155_v22, %v3171_v31  ;;  %v6055_v40 = vcombine.high %v3188_v18, %v3204_v23  ;;  %v3156_v22 = vld [vmem:[#allocation7 + $0x140] sm:$0xff] }
 0x27e   : > { %v5989_v50 = vcombine.high %v3123_v51, %v3139_v10  ;;  %v3172_v31 = vld [vmem:[#allocation7 + $0x1c0] sm:$0xff] }
 0x280   : > { %5007 = vmatpush1.bf16.msra.mxu0 %v5982_v55  ;;  %5050 = vmatpush1.bf16.msra.mxu1 %v5984_v56  ;;  %v3349_v55 = vld [vmem:[#allocation7 + $0x748] sm:$0xff] }
 0x281   : > { %5078 = vmatprep.subr.bf16.mxu0 %v6211_v59  ;;  %5121 = vmatprep.subr.bf16.mxu1 %v6213_v14  ;;  %v3365_v56 = vld [vmem:[#allocation7 + $0x7c8] sm:$0xff]  ;;  %v5986_v59 = vcombine.low %v3122_v47, %v3138_v48  ;;  %v5988_v14 = vcombine.low %v3123_v51, %v3139_v10  ;;  %v6023_v47 = vcombine.high %v3156_v22, %v3172_v31  ;;  %v3124_v51 = vld [vmem:[#allocation7 + $0x40] sm:$0xff] }
 0x282   : > { %v6217_v16 = vcombine.high %v3349_v55, %v3365_v56  ;;  %v3140_v10 = vld [vmem:[#allocation7 + $0xc0] sm:$0xff] }
 0x283   : > { %5025 = vmatmul.mubr.bf16.vlgmr.msra.gmra.mxu0 %v7406_v19  ;;  %5068 = vmatmul.mubr.bf16.vlgmr.msra.gmra.mxu1 %v7406_v19 }
 0x284   : > { %5079 = vmatpush1.bf16.msra.mxu0 %v6210_v58  ;;  %5122 = vmatpush1.bf16.msra.mxu1 %v6212_v60  ;;  %v3317_v58 = vld [vmem:[#allocation7 + $0x648] sm:$0xff] }
 0x285   : > { %5080 = vmatprep.subr.bf16.mxu0 %v6179_v61  ;;  %5123 = vmatprep.subr.bf16.mxu1 %v6181_v63  ;;  %v3333_v60 = vld [vmem:[#allocation7 + $0x6c8] sm:$0xff]  ;;  %v6214_v61 = vcombine.low %v3348_v52, %v3364_v53  ;;  %v6216_v63 = vcombine.low %v3349_v55, %v3365_v56  ;;  %v5991_v52 = vcombine.high %v3124_v51, %v3140_v10  ;;  %v3350_v55 = vld [vmem:[#allocation7 + $0x750] sm:$0xff] }
 0x286   : > { %5110 = vmatprep.mubr.bf16.mxu0 %v7122_v38  ;;  %5153 = vmatprep.mubr.bf16.mxu1 %v7122_v38  ;;  %v6185_v3 = vcombine.high %v3317_v58, %v3333_v60  ;;  %v3366_v56 = vld [vmem:[#allocation7 + $0x7d0] sm:$0xff] }
 0x288   : > { %5081 = vmatpush1.bf16.msra.mxu0 %v6178_v62  ;;  %5124 = vmatpush1.bf16.msra.mxu1 %v6180_v1  ;;  %v3285_v62 = vld [vmem:[#allocation7 + $0x548] sm:$0xff] }
 0x289   : > { %5082 = vmatprep.subr.bf16.mxu0 %v6147_v2  ;;  %5125 = vmatprep.subr.bf16.mxu1 %v6149_v4  ;;  %v3301_v1 = vld [vmem:[#allocation7 + $0x5c8] sm:$0xff]  ;;  %v6182_v2 = vcombine.low %v3316_v54, %v3332_v57  ;;  %v6184_v4 = vcombine.low %v3317_v58, %v3333_v60  ;;  %v6219_v54 = vcombine.high %v3350_v55, %v3366_v56  ;;  %v3318_v58 = vld [vmem:[#allocation7 + $0x650] sm:$0xff] }
 0x28a   : > { %v6153_v33 = vcombine.high %v3285_v62, %v3301_v1  ;;  %v3334_v60 = vld [vmem:[#allocation7 + $0x6d0] sm:$0xff] }
 0x28c   : > { %5083 = vmatpush1.bf16.msra.mxu0 %v6146_v37  ;;  %5126 = vmatpush1.bf16.msra.mxu1 %v6148_v39  ;;  %v3253_v37 = vld [vmem:[#allocation7 + $0x448] sm:$0xff] }
 0x28d   : > { %5084 = vmatprep.subr.bf16.mxu0 %v6115_v5  ;;  %5127 = vmatprep.subr.bf16.mxu1 %v6117_v7  ;;  %v3269_v39 = vld [vmem:[#allocation7 + $0x4c8] sm:$0xff]  ;;  %v6150_v5 = vcombine.low %v3284_v20, %v3300_v21  ;;  %v6152_v7 = vcombine.low %v3285_v62, %v3301_v1  ;;  %v6187_v20 = vcombine.high %v3318_v58, %v3334_v60  ;;  %v3286_v62 = vld [vmem:[#allocation7 + $0x550] sm:$0xff] }
 0x28e   : > { %v6121_v8 = vcombine.high %v3253_v37, %v3269_v39  ;;  %v3302_v1 = vld [vmem:[#allocation7 + $0x5d0] sm:$0xff] }
 0x290   : > { %5085 = vmatpush1.bf16.msra.mxu0 %v6114_v26  ;;  %5128 = vmatpush1.bf16.msra.mxu1 %v6116_v27  ;;  %v3221_v26 = vld [vmem:[#allocation7 + $0x348] sm:$0xff] }
 0x291   : > { %5086 = vmatprep.subr.bf16.mxu0 %v6083_v6  ;;  %5129 = vmatprep.subr.bf16.mxu1 %v6085_v9  ;;  %v3237_v27 = vld [vmem:[#allocation7 + $0x3c8] sm:$0xff]  ;;  %v6118_v6 = vcombine.low %v3252_v34, %v3268_v35  ;;  %v6120_v9 = vcombine.low %v3253_v37, %v3269_v39  ;;  %v6155_v34 = vcombine.high %v3286_v62, %v3302_v1  ;;  %v3254_v37 = vld [vmem:[#allocation7 + $0x450] sm:$0xff] }
 0x292   : > { %v6089_v17 = vcombine.high %v3221_v26, %v3237_v27  ;;  %v3270_v39 = vld [vmem:[#allocation7 + $0x4d0] sm:$0xff] }
 0x294   : > { %5087 = vmatpush1.bf16.msra.mxu0 %v6082_v29  ;;  %5130 = vmatpush1.bf16.msra.mxu1 %v6084_v28  ;;  %v3189_v29 = vld [vmem:[#allocation7 + $0x248] sm:$0xff] }
 0x295   : > { %5088 = vmatprep.subr.bf16.mxu0 %v6051_v30  ;;  %5131 = vmatprep.subr.bf16.mxu1 %v6053_v36  ;;  %v3205_v28 = vld [vmem:[#allocation7 + $0x2c8] sm:$0xff]  ;;  %v6086_v30 = vcombine.low %v3220_v13, %v3236_v25  ;;  %v6088_v36 = vcombine.low %v3221_v26, %v3237_v27  ;;  %v6123_v13 = vcombine.high %v3254_v37, %v3270_v39  ;;  %v3222_v26 = vld [vmem:[#allocation7 + $0x350] sm:$0xff] }
 0x296   : > { %v6057_v42 = vcombine.high %v3189_v29, %v3205_v28  ;;  %v3238_v27 = vld [vmem:[#allocation7 + $0x3d0] sm:$0xff] }
 0x298   : > { %5089 = vmatpush1.bf16.msra.mxu0 %v6050_v41  ;;  %5132 = vmatpush1.bf16.msra.mxu1 %v6052_v43  ;;  %v3157_v41 = vld [vmem:[#allocation7 + $0x148] sm:$0xff] }
 0x299   : > { %5090 = vmatprep.subr.bf16.mxu0 %v6019_v44  ;;  %5133 = vmatprep.subr.bf16.mxu1 %v6021_v45  ;;  %v3173_v43 = vld [vmem:[#allocation7 + $0x1c8] sm:$0xff]  ;;  %v6054_v44 = vcombine.low %v3188_v18, %v3204_v23  ;;  %v6056_v45 = vcombine.low %v3189_v29, %v3205_v28  ;;  %v6091_v18 = vcombine.high %v3222_v26, %v3238_v27  ;;  %v3190_v29 = vld [vmem:[#allocation7 + $0x250] sm:$0xff] }
 0x29a   : > { %v6025_v48 = vcombine.high %v3157_v41, %v3173_v43  ;;  %v3206_v28 = vld [vmem:[#allocation7 + $0x2d0] sm:$0xff] }
 0x29c   : > { %5091 = vmatpush1.bf16.msra.mxu0 %v6018_v12  ;;  %5134 = vmatpush1.bf16.msra.mxu1 %v6020_v46  ;;  %v3125_v12 = vld [vmem:[#allocation7 + $0x48] sm:$0xff] }
 0x29d   : > { %5092 = vmatprep.subr.bf16.mxu0 %v5987_v49  ;;  %5135 = vmatprep.subr.bf16.mxu1 %v5989_v50  ;;  %v3141_v46 = vld [vmem:[#allocation7 + $0xc8] sm:$0xff]  ;;  %v6022_v49 = vcombine.low %v3156_v22, %v3172_v31  ;;  %v6024_v50 = vcombine.low %v3157_v41, %v3173_v43  ;;  %v6059_v22 = vcombine.high %v3190_v29, %v3206_v28  ;;  %v3158_v41 = vld [vmem:[#allocation7 + $0x150] sm:$0xff] }
 0x29e   : > { %v5993_v53 = vcombine.high %v3125_v12, %v3141_v46  ;;  %v3174_v43 = vld [vmem:[#allocation7 + $0x1d0] sm:$0xff] }
 0x2a0   : > { %5093 = vmatpush1.bf16.msra.mxu0 %v5986_v59  ;;  %5136 = vmatpush1.bf16.msra.mxu1 %v5988_v14  ;;  %v3351_v59 = vld [vmem:[#allocation7 + $0x758] sm:$0xff] }
 0x2a1   : > { %5164 = vmatprep.subr.bf16.mxu0 %v6215_v15  ;;  %5207 = vmatprep.subr.bf16.mxu1 %v6217_v16  ;;  %v3367_v14 = vld [vmem:[#allocation7 + $0x7d8] sm:$0xff]  ;;  %v5990_v15 = vcombine.low %v3124_v51, %v3140_v10  ;;  %v5992_v16 = vcombine.low %v3125_v12, %v3141_v46  ;;  %v6027_v51 = vcombine.high %v3158_v41, %v3174_v43  ;;  %v3126_v12 = vld [vmem:[#allocation7 + $0x50] sm:$0xff] }
 0x2a2   : > { %v6221_v57 = vcombine.high %v3351_v59, %v3367_v14  ;;  %v3142_v46 = vld [vmem:[#allocation7 + $0xd0] sm:$0xff] }
 0x2a3   : > { %5111 = vmatmul.mubr.bf16.vlgmr.msra.gmra.mxu0 %v7406_v19  ;;  %5154 = vmatmul.mubr.bf16.vlgmr.msra.gmra.mxu1 %v7406_v19 }
 0x2a4   : > { %5165 = vmatpush1.bf16.msra.mxu0 %v6214_v61  ;;  %5208 = vmatpush1.bf16.msra.mxu1 %v6216_v63  ;;  %v3319_v61 = vld [vmem:[#allocation7 + $0x658] sm:$0xff] }
 0x2a5   : > { %5166 = vmatprep.subr.bf16.mxu0 %v6183_v0  ;;  %5209 = vmatprep.subr.bf16.mxu1 %v6185_v3  ;;  %v3335_v63 = vld [vmem:[#allocation7 + $0x6d8] sm:$0xff]  ;;  %v6218_v0 = vcombine.low %v3350_v55, %v3366_v56  ;;  %v6220_v3 = vcombine.low %v3351_v59, %v3367_v14  ;;  %v5995_v55 = vcombine.high %v3126_v12, %v3142_v46  ;;  %v3352_v59 = vld [vmem:[#allocation7 + $0x760] sm:$0xff] }
 0x2a6   : > { %5196 = vmatprep.mubr.bf16.mxu0 %v7122_v38  ;;  %5239 = vmatprep.mubr.bf16.mxu1 %v7122_v38  ;;  %v6189_v21 = vcombine.high %v3319_v61, %v3335_v63  ;;  %v3368_v14 = vld [vmem:[#allocation7 + $0x7e0] sm:$0xff] }
 0x2a8   : > { %5167 = vmatpush1.bf16.msra.mxu0 %v6182_v2  ;;  %5210 = vmatpush1.bf16.msra.mxu1 %v6184_v4  ;;  %v3287_v2 = vld [vmem:[#allocation7 + $0x558] sm:$0xff] }
 0x2a9   : > { %5168 = vmatprep.subr.bf16.mxu0 %v6151_v32  ;;  %5211 = vmatprep.subr.bf16.mxu1 %v6153_v33  ;;  %v3303_v4 = vld [vmem:[#allocation7 + $0x5d8] sm:$0xff]  ;;  %v6186_v32 = vcombine.low %v3318_v58, %v3334_v60  ;;  %v6188_v33 = vcombine.low %v3319_v61, %v3335_v63  ;;  %v6223_v58 = vcombine.high %v3352_v59, %v3368_v14  ;;  %v3320_v61 = vld [vmem:[#allocation7 + $0x660] sm:$0xff] }
 0x2aa   : > { %v6157_v35 = vcombine.high %v3287_v2, %v3303_v4  ;;  %v3336_v63 = vld [vmem:[#allocation7 + $0x6e0] sm:$0xff] }
 0x2ac   : > { %5169 = vmatpush1.bf16.msra.mxu0 %v6150_v5  ;;  %5212 = vmatpush1.bf16.msra.mxu1 %v6152_v7  ;;  %v3255_v5 = vld [vmem:[#allocation7 + $0x458] sm:$0xff] }
 0x2ad   : > { %5170 = vmatprep.subr.bf16.mxu0 %v6119_v24  ;;  %5213 = vmatprep.subr.bf16.mxu1 %v6121_v8  ;;  %v3271_v7 = vld [vmem:[#allocation7 + $0x4d8] sm:$0xff]  ;;  %v6154_v24 = vcombine.low %v3286_v62, %v3302_v1  ;;  %v6156_v8 = vcombine.low %v3287_v2, %v3303_v4  ;;  %v6191_v62 = vcombine.high %v3320_v61, %v3336_v63  ;;  %v3288_v2 = vld [vmem:[#allocation7 + $0x560] sm:$0xff] }
 0x2ae   : > { %v6125_v25 = vcombine.high %v3255_v5, %v3271_v7  ;;  %v3304_v4 = vld [vmem:[#allocation7 + $0x5e0] sm:$0xff] }
 0x2b0   : > { %5171 = vmatpush1.bf16.msra.mxu0 %v6118_v6  ;;  %5214 = vmatpush1.bf16.msra.mxu1 %v6120_v9  ;;  %v3223_v6 = vld [vmem:[#allocation7 + $0x358] sm:$0xff] }
 0x2b1   : > { %5172 = vmatprep.subr.bf16.mxu0 %v6087_v11  ;;  %5215 = vmatprep.subr.bf16.mxu1 %v6089_v17  ;;  %v3239_v9 = vld [vmem:[#allocation7 + $0x3d8] sm:$0xff]  ;;  %v6122_v11 = vcombine.low %v3254_v37, %v3270_v39  ;;  %v6124_v17 = vcombine.low %v3255_v5, %v3271_v7  ;;  %v6159_v37 = vcombine.high %v3288_v2, %v3304_v4  ;;  %v3256_v5 = vld [vmem:[#allocation7 + $0x460] sm:$0xff] }
 0x2b2   : > { %v6093_v23 = vcombine.high %v3223_v6, %v3239_v9  ;;  %v3272_v7 = vld [vmem:[#allocation7 + $0x4e0] sm:$0xff] }
 0x2b4   : > { %5173 = vmatpush1.bf16.msra.mxu0 %v6086_v30  ;;  %5216 = vmatpush1.bf16.msra.mxu1 %v6088_v36  ;;  %v3191_v30 = vld [vmem:[#allocation7 + $0x258] sm:$0xff] }
 0x2b5   : > { %5174 = vmatprep.subr.bf16.mxu0 %v6055_v40  ;;  %5217 = vmatprep.subr.bf16.mxu1 %v6057_v42  ;;  %v3207_v36 = vld [vmem:[#allocation7 + $0x2d8] sm:$0xff]  ;;  %v6090_v40 = vcombine.low %v3222_v26, %v3238_v27  ;;  %v6092_v42 = vcombine.low %v3223_v6, %v3239_v9  ;;  %v6127_v26 = vcombine.high %v3256_v5, %v3272_v7  ;;  %v3224_v6 = vld [vmem:[#allocation7 + $0x360] sm:$0xff] }
 0x2b6   : > { %v6061_v31 = vcombine.high %v3191_v30, %v3207_v36  ;;  %v3240_v9 = vld [vmem:[#allocation7 + $0x3e0] sm:$0xff] }
 0x2b8   : > { %5175 = vmatpush1.bf16.msra.mxu0 %v6054_v44  ;;  %5218 = vmatpush1.bf16.msra.mxu1 %v6056_v45  ;;  %v3159_v44 = vld [vmem:[#allocation7 + $0x158] sm:$0xff] }
 0x2b9   : > { %5176 = vmatprep.subr.bf16.mxu0 %v6023_v47  ;;  %5219 = vmatprep.subr.bf16.mxu1 %v6025_v48  ;;  %v3175_v45 = vld [vmem:[#allocation7 + $0x1d8] sm:$0xff]  ;;  %v6058_v47 = vcombine.low %v3190_v29, %v3206_v28  ;;  %v6060_v48 = vcombine.low %v3191_v30, %v3207_v36  ;;  %v6095_v29 = vcombine.high %v3224_v6, %v3240_v9  ;;  %v3192_v30 = vld [vmem:[#allocation7 + $0x260] sm:$0xff] }
 0x2ba   : > { %v6029_v10 = vcombine.high %v3159_v44, %v3175_v45  ;;  %v3208_v36 = vld [vmem:[#allocation7 + $0x2e0] sm:$0xff] }
 0x2bc   : > { %5177 = vmatpush1.bf16.msra.mxu0 %v6022_v49  ;;  %5220 = vmatpush1.bf16.msra.mxu1 %v6024_v50  ;;  %v3127_v49 = vld [vmem:[#allocation7 + $0x58] sm:$0xff] }
 0x2bd   : > { %5178 = vmatprep.subr.bf16.mxu0 %v5991_v52  ;;  %5221 = vmatprep.subr.bf16.mxu1 %v5993_v53  ;;  %v3143_v50 = vld [vmem:[#allocation7 + $0xd8] sm:$0xff]  ;;  %v6026_v52 = vcombine.low %v3158_v41, %v3174_v43  ;;  %v6028_v53 = vcombine.low %v3159_v44, %v3175_v45  ;;  %v6063_v41 = vcombine.high %v3192_v30, %v3208_v36  ;;  %v3160_v44 = vld [vmem:[#allocation7 + $0x160] sm:$0xff] }
 0x2be   : > { %v5997_v56 = vcombine.high %v3127_v49, %v3143_v50  ;;  %v3176_v45 = vld [vmem:[#allocation7 + $0x1e0] sm:$0xff] }
 0x2c0   : > { %5179 = vmatpush1.bf16.msra.mxu0 %v5990_v15  ;;  %5222 = vmatpush1.bf16.msra.mxu1 %v5992_v16  ;;  %v3353_v15 = vld [vmem:[#allocation7 + $0x768] sm:$0xff] }
 0x2c1   : > { %5250 = vmatprep.subr.bf16.mxu0 %v6219_v54  ;;  %5293 = vmatprep.subr.bf16.mxu1 %v6221_v57  ;;  %v3369_v16 = vld [vmem:[#allocation7 + $0x7e8] sm:$0xff]  ;;  %v5994_v54 = vcombine.low %v3126_v12, %v3142_v46  ;;  %v5996_v57 = vcombine.low %v3127_v49, %v3143_v50  ;;  %v3380_v12 = vlaneseq  ;;  %v6031_v46 = vcombine.high %v3160_v44, %v3176_v45  ;;  %v3128_v50 = vld [vmem:[#allocation7 + $0x60] sm:$0xff] }
 0x2c2   : > { %v6225_v60 = vcombine.high %v3353_v15, %v3369_v16 }
 0x2c3   : > { %5197 = vmatmul.mubr.bf16.vlgmr.msra.gmra.mxu0 %v7406_v19  ;;  %5240 = vmatmul.mubr.bf16.vlgmr.msra.gmra.mxu1 %v7406_v19 }
 0x2c4   : > { %5251 = vmatpush1.bf16.msra.mxu0 %v6218_v0  ;;  %5294 = vmatpush1.bf16.msra.mxu1 %v6220_v3  ;;  %v3321_v0 = vld [vmem:[#allocation7 + $0x668] sm:$0xff] }
 0x2c5   : > { %5252 = vmatprep.subr.bf16.mxu0 %v6187_v20  ;;  %5295 = vmatprep.subr.bf16.mxu1 %v6189_v21  ;;  %v3337_v3 = vld [vmem:[#allocation7 + $0x6e8] sm:$0xff]  ;;  %v6222_v20 = vcombine.low %v3352_v59, %v3368_v14  ;;  %v6224_v21 = vcombine.low %v3353_v15, %v3369_v16  ;;  %v7438_v14 = vshrl.u32 %v3380_v12, 7 }
 0x2c6   : > { %5282 = vmatprep.mubr.bf16.mxu0 %v7122_v38  ;;  %5325 = vmatprep.mubr.bf16.mxu1 %v7122_v38  ;;  %v6193_v1 = vcombine.high %v3321_v0, %v3337_v3 }
 0x2c8   : > { %5253 = vmatpush1.bf16.msra.mxu0 %v6186_v32  ;;  %5296 = vmatpush1.bf16.msra.mxu1 %v6188_v33  ;;  %v3289_v32 = vld [vmem:[#allocation7 + $0x568] sm:$0xff] }
 0x2c9   : > { %5254 = vmatprep.subr.bf16.mxu0 %v6155_v34  ;;  %5297 = vmatprep.subr.bf16.mxu1 %v6157_v35  ;;  %v3305_v33 = vld [vmem:[#allocation7 + $0x5e8] sm:$0xff]  ;;  %v6190_v34 = vcombine.low %v3320_v61, %v3336_v63  ;;  %v6192_v35 = vcombine.low %v3321_v0, %v3337_v3  ;;  %v7441_v0 = vsub.s32 0, %v7438_v14  ;;  %v7444_v3 = vsub.s32 2, %v7438_v14 }
 0x2ca   : > { %v6161_v39 = vcombine.high %v3289_v32, %v3305_v33 }
 0x2cc   : > { %5255 = vmatpush1.bf16.msra.mxu0 %v6154_v24  ;;  %5298 = vmatpush1.bf16.msra.mxu1 %v6156_v8  ;;  %v3257_v24 = vld [vmem:[#allocation7 + $0x468] sm:$0xff] }
 0x2cd   : > { %5256 = vmatprep.subr.bf16.mxu0 %v6123_v13  ;;  %5299 = vmatprep.subr.bf16.mxu1 %v6125_v25  ;;  %v3273_v8 = vld [vmem:[#allocation7 + $0x4e8] sm:$0xff]  ;;  %v6158_v13 = vcombine.low %v3288_v2, %v3304_v4  ;;  %v6160_v25 = vcombine.low %v3289_v32, %v3305_v33  ;;  %v7449_v2 = vsub.s32 1, %v7438_v14  ;;  %v7452_v4 = vsub.s32 3, %v7438_v14  ;;  %v3338_v32 = vld [vmem:[#allocation7 + $0x6f0] sm:$0xff]  ;;  %v3323_v33 = vld [vmem:[#allocation7 + $0x678] sm:$0xff] }
 0x2ce   : > { %v6129_v27 = vcombine.high %v3257_v24, %v3273_v8 }
 0x2d0   : > { %5257 = vmatpush1.bf16.msra.mxu0 %v6122_v11  ;;  %5300 = vmatpush1.bf16.msra.mxu1 %v6124_v17  ;;  %v3225_v11 = vld [vmem:[#allocation7 + $0x368] sm:$0xff] }
 0x2d1   : > { %5258 = vmatprep.subr.bf16.mxu0 %v6091_v18  ;;  %5301 = vmatprep.subr.bf16.mxu1 %v6093_v23  ;;  %v3241_v17 = vld [vmem:[#allocation7 + $0x3e8] sm:$0xff]  ;;  %v6126_v18 = vcombine.low %v3256_v5, %v3272_v7  ;;  %v6128_v23 = vcombine.low %v3257_v24, %v3273_v8  ;;  %v3290_v8 = vld [vmem:[#allocation7 + $0x570] sm:$0xff] }
 0x2d2   : > { %v6097_v28 = vcombine.high %v3225_v11, %v3241_v17 }
 0x2d4   : > { %5259 = vmatpush1.bf16.msra.mxu0 %v6090_v40  ;;  %5302 = vmatpush1.bf16.msra.mxu1 %v6092_v42  ;;  %v3193_v40 = vld [vmem:[#allocation7 + $0x268] sm:$0xff] }
 0x2d5   : > { %5260 = vmatprep.subr.bf16.mxu0 %v6059_v22  ;;  %5303 = vmatprep.subr.bf16.mxu1 %v6061_v31  ;;  %v3209_v42 = vld [vmem:[#allocation7 + $0x2e8] sm:$0xff]  ;;  %v6094_v22 = vcombine.low %v3224_v6, %v3240_v9  ;;  %v6096_v31 = vcombine.low %v3225_v11, %v3241_v17  ;;  %v3307_v6 = vld [vmem:[#allocation7 + $0x5f8] sm:$0xff] }
 0x2d6   : > { %v6065_v43 = vcombine.high %v3193_v40, %v3209_v42 }
 0x2d8   : > { %5261 = vmatpush1.bf16.msra.mxu0 %v6058_v47  ;;  %5304 = vmatpush1.bf16.msra.mxu1 %v6060_v48  ;;  %v3161_v47 = vld [vmem:[#allocation7 + $0x168] sm:$0xff] }
 0x2d9   : > { %5262 = vmatprep.subr.bf16.mxu0 %v6027_v51  ;;  %5305 = vmatprep.subr.bf16.mxu1 %v6029_v10  ;;  %v3177_v48 = vld [vmem:[#allocation7 + $0x1e8] sm:$0xff]  ;;  %v6062_v51 = vcombine.low %v3192_v30, %v3208_v36  ;;  %v6064_v10 = vcombine.low %v3193_v40, %v3209_v42  ;;  %v3258_v42 = vld [vmem:[#allocation7 + $0x470] sm:$0xff] }
 0x2da   : > { %v6033_v49 = vcombine.high %v3161_v47, %v3177_v48  ;;  %v6032_v59 = vcombine.low %v3161_v47, %v3177_v48 }
 0x2dc   : > { %5263 = vmatpush1.bf16.msra.mxu0 %v6026_v52  ;;  %5306 = vmatpush1.bf16.msra.mxu1 %v6028_v53  ;;  %v3144_v52 = vld [vmem:[#allocation7 + $0xe0] sm:$0xff]  ;;  %v3129_v53 = vld [vmem:[#allocation7 + $0x68] sm:$0xff] }
 0x2dd   : > { %5264 = vmatprep.subr.bf16.mxu0 %v5995_v55  ;;  %5307 = vmatprep.subr.bf16.mxu1 %v5997_v56  ;;  %v3145_v55 = vld [vmem:[#allocation7 + $0xe8] sm:$0xff]  ;;  %v6030_v56 = vcombine.low %v3160_v44, %v3176_v45  ;;  %v5999_v15 = vcombine.high %v3128_v50, %v3144_v52  ;;  %v5998_v61 = vcombine.low %v3128_v50, %v3144_v52  ;;  %v3275_v44 = vld [vmem:[#allocation7 + $0x4f8] sm:$0xff]  ;;  %v3226_v52 = vld [vmem:[#allocation7 + $0x370] sm:$0xff] }
 0x2de   : > { %v6001_v16 = vcombine.high %v3129_v53, %v3145_v55  ;;  %v6000_v63 = vcombine.low %v3129_v53, %v3145_v55 }
 0x2e0   : > { %5265 = vmatpush1.bf16.msra.mxu0 %v5994_v54  ;;  %5308 = vmatpush1.bf16.msra.mxu1 %v5996_v57  ;;  %v3354_v54 = vld [vmem:[#allocation7 + $0x770] sm:$0xff] }
 0x2e1   : > { %5336 = vmatprep.subr.bf16.mxu0 %v6223_v58  ;;  %5379 = vmatprep.subr.bf16.mxu1 %v6225_v60  ;;  %v3370_v57 = vld [vmem:[#allocation7 + $0x7f0] sm:$0xff]  ;;  %v3355_v58 = vld [vmem:[#allocation7 + $0x778] sm:$0xff] }
 0x2e2   : > { %v3371_v60 = vld [vmem:[#allocation7 + $0x7f8] sm:$0xff] }
 0x2e3   : > { %5283 = vmatmul.mubr.bf16.vlgmr.msra.gmra.mxu0 %v7406_v19  ;;  %5326 = vmatmul.mubr.bf16.vlgmr.msra.gmra.mxu1 %v7406_v19 }
 0x2e4   : > { %5337 = vmatpush1.bf16.msra.mxu0 %v6222_v20  ;;  %5380 = vmatpush1.bf16.msra.mxu1 %v6224_v21  ;;  %v6227_v20 = vcombine.high %v3354_v54, %v3370_v57  ;;  %v6229_v21 = vcombine.high %v3355_v58, %v3371_v60 }
 0x2e5   : > { %5338 = vmatprep.subr.bf16.mxu0 %v6191_v62  ;;  %5381 = vmatprep.subr.bf16.mxu1 %v6193_v1  ;;  %v7446_v62 = vld [vmem:[#allocation8] sm:$0xff]  ;;  %v3322_v1 = vld [vmem:[#allocation7 + $0x670] sm:$0xff] }
 0x2e6   : > { %5368 = vmatprep.mubr.bf16.mxu0 %v7122_v38  ;;  %5411 = vmatprep.mubr.bf16.mxu1 %v7122_v38  ;;  %v3391_v5 = vrot.slane %v7446_v62, %v7444_v3  ;;  %v6195_v7 = vcombine.high %v3322_v1, %v3338_v32  ;;  %v6194_v17 = vcombine.low %v3322_v1, %v3338_v32 }
 0x2e8   : > { %5339 = vmatpush1.bf16.msra.mxu0 %v6190_v34  ;;  %5382 = vmatpush1.bf16.msra.mxu1 %v6192_v35  ;;  %v3339_v34 = vld [vmem:[#allocation7 + $0x6f8] sm:$0xff]  ;;  %v6226_v35 = vcombine.low %v3354_v54, %v3370_v57 }
 0x2e9   : > { %5340 = vmatprep.subr.bf16.mxu0 %v6159_v37  ;;  %5383 = vmatprep.subr.bf16.mxu1 %v6161_v39  ;;  %v6228_v37 = vcombine.low %v3355_v58, %v3371_v60  ;;  %v3383_v39 = vrot.slane %v7446_v62, %v7441_v0  ;;  %v6197_v24 = vcombine.high %v3323_v33, %v3339_v34  ;;  %v3194_v60 = vld [vmem:[#allocation7 + $0x270] sm:$0xff] }
 0x2ec   : > { %5341 = vmatpush1.bf16.msra.mxu0 %v6158_v13  ;;  %5384 = vmatpush1.bf16.msra.mxu1 %v6160_v25  ;;  %v3387_v13 = vrot.slane %v7446_v62, %v7449_v2  ;;  %v3395_v25 = vrot.slane %v7446_v62, %v7452_v4 }
 0x2ed   : > { %5342 = vmatprep.subr.bf16.mxu0 %v6127_v26  ;;  %5385 = vmatprep.subr.bf16.mxu1 %v6129_v27  ;;  %v3306_v26 = vld [vmem:[#allocation7 + $0x5f0] sm:$0xff]  ;;  %v3291_v27 = vld [vmem:[#allocation7 + $0x578] sm:$0xff] }
 0x2ee   : > { %v6163_v36 = vcombine.high %v3290_v8, %v3306_v26  ;;  %v6165_v40 = vcombine.high %v3291_v27, %v3307_v6  ;;  %v6162_v48 = vcombine.low %v3290_v8, %v3306_v26  ;;  %v6164_v12 = vcombine.low %v3291_v27, %v3307_v6  ;;  %v3131_v26 = vld [vmem:[#allocation7 + $0x78] sm:$0xff] }
 0x2ef   : > { %v3147_v27 = vld [vmem:[#allocation7 + $0xf8] sm:$0xff] }
 0x2f0   : > { %5343 = vmatpush1.bf16.msra.mxu0 %v6126_v18  ;;  %5386 = vmatpush1.bf16.msra.mxu1 %v6128_v23 }
 0x2f1   : > { %5344 = vmatprep.subr.bf16.mxu0 %v6095_v29  ;;  %5387 = vmatprep.subr.bf16.mxu1 %v6097_v28  ;;  %v6196_v29 = vcombine.low %v3323_v33, %v3339_v34  ;;  %v3162_v34 = vld [vmem:[#allocation7 + $0x170] sm:$0xff] }
 0x2f4   : > { %5345 = vmatpush1.bf16.msra.mxu0 %v6094_v22  ;;  %5388 = vmatpush1.bf16.msra.mxu1 %v6096_v31 }
 0x2f5   : > { %5346 = vmatprep.subr.bf16.mxu0 %v6063_v41  ;;  %5389 = vmatprep.subr.bf16.mxu1 %v6065_v43  ;;  %v3274_v41 = vld [vmem:[#allocation7 + $0x4f0] sm:$0xff]  ;;  %v3259_v43 = vld [vmem:[#allocation7 + $0x478] sm:$0xff] }
 0x2f6   : > { %v6131_v50 = vcombine.high %v3258_v42, %v3274_v41  ;;  %v6132_v54 = vcombine.low %v3259_v43, %v3275_v44 }
 0x2f8   : > { %5347 = vmatpush1.bf16.msra.mxu0 %v6062_v51  ;;  %5390 = vmatpush1.bf16.msra.mxu1 %v6064_v10 }
 0x2f9   : > { %5348 = vmatprep.subr.bf16.mxu0 %v6031_v46  ;;  %5391 = vmatprep.subr.bf16.mxu1 %v6033_v49 }
 0x2fc   : > { %5349 = vmatpush1.bf16.msra.mxu0 %v6030_v56  ;;  %5392 = vmatpush1.bf16.msra.mxu1 %v6032_v59  ;;  %v3242_v56 = vld [vmem:[#allocation7 + $0x3f0] sm:$0xff]  ;;  %v3227_v59 = vld [vmem:[#allocation7 + $0x378] sm:$0xff] }
 0x2fd   : > { %5350 = vmatprep.subr.bf16.mxu0 %v5999_v15  ;;  %5393 = vmatprep.subr.bf16.mxu1 %v6001_v16  ;;  %v3243_v15 = vld [vmem:[#allocation7 + $0x3f8] sm:$0xff]  ;;  %v6130_v16 = vcombine.low %v3258_v42, %v3274_v41  ;;  %v6099_v57 = vcombine.high %v3226_v52, %v3242_v56 }
 0x2fe   : > { %v6101_v58 = vcombine.high %v3227_v59, %v3243_v15  ;;  %v6100_v1 = vcombine.low %v3227_v59, %v3243_v15 }
 0x300   : > { %5351 = vmatpush1.bf16.msra.mxu0 %v5998_v61  ;;  %5394 = vmatpush1.bf16.msra.mxu1 %v6000_v63  ;;  %v3210_v61 = vld [vmem:[#allocation7 + $0x2f0] sm:$0xff]  ;;  %v3195_v63 = vld [vmem:[#allocation7 + $0x278] sm:$0xff] }
 0x301   : > { %5422 = vmatprep.subr.bf16.mxu0 %v6227_v20  ;;  %5465 = vmatprep.subr.bf16.mxu1 %v6229_v21  ;;  %v3211_v20 = vld [vmem:[#allocation7 + $0x2f8] sm:$0xff]  ;;  %v6098_v21 = vcombine.low %v3226_v52, %v3242_v56  ;;  %v6067_v32 = vcombine.high %v3194_v60, %v3210_v61  ;;  %v3373_v52 = vld [vmem:[#allocation8 + $0x8] sm:$0xff] }
 0x302   : > { %v6069_v33 = vcombine.high %v3195_v63, %v3211_v20  ;;  %v3419_v56 = vrot.slane %v3373_v52, %v7449_v2  ;;  %v3427_v59 = vrot.slane %v3373_v52, %v7452_v4 }
 0x303   : > { %5369 = vmatmul.mubr.bf16.vlgmr.msra.gmra.mxu0 %v7406_v19  ;;  %5412 = vmatmul.mubr.bf16.vlgmr.msra.gmra.mxu1 %v7406_v19  ;;  %v4854_v9 = vpop.f32.mrf.mxu0  ;;  %v4897_v11 = vpop.f32.mrf.mxu1 }
 0x304   : > { %v4855_v18 = vadd.f32 %v4854_v9, %v3383_v39  ;;  %v4898_v23 = vadd.f32 %v4897_v11, %v3391_v5  ;;  %5423 = vmatpush1.bf16.msra.mxu0 %v6226_v35  ;;  %5466 = vmatpush1.bf16.msra.mxu1 %v6228_v37  ;;  %v3178_v35 = vld [vmem:[#allocation7 + $0x1f0] sm:$0xff]  ;;  %v3163_v37 = vld [vmem:[#allocation7 + $0x178] sm:$0xff] }
 0x305   : > { %v4856_v28 = vpop.f32.mrf.mxu0  ;;  %v4899_v30 = vpop.f32.mrf.mxu1  ;;  %5424 = vmatprep.subr.bf16.mxu0 %v6195_v7  ;;  %5467 = vmatprep.subr.bf16.mxu1 %v6197_v24  ;;  %v6068_v7 = vcombine.low %v3195_v63, %v3211_v20  ;;  %v6035_v24 = vcombine.high %v3162_v34, %v3178_v35  ;;  %v6034_v6 = vcombine.low %v3162_v34, %v3178_v35 }
 0x306   : > { %5508 = vst [vmem:[%s7466_s26] sm:$0xff] %v4855_v18  ;;  %5510 = vst [vmem:[%s7466_s26 + $0x10] sm:$0xff] %v4898_v23  ;;  %v4857_v22 = vadd.f32 %v4856_v28, %v3387_v13  ;;  %v4900_v31 = vadd.f32 %v4899_v30, %v3395_v25  ;;  %5454 = vmatprep.mubr.bf16.mxu0 %v7122_v38  ;;  %5497 = vmatprep.mubr.bf16.mxu1 %v7122_v38  ;;  %v7482_v28 = vsub.s32 6, %v7438_v14 }
 0x307   : > { %v4858_v45 = vpop.f32.mrf.mxu0  ;;  %v4901_v47 = vpop.f32.mrf.mxu1  ;;  %v6133_v38 = vcombine.high %v3259_v43, %v3275_v44  ;;  %v6004_v23 = vcombine.low %v3131_v26, %v3147_v27  ;;  %v7485_v30 = vsub.s32 5, %v7438_v14 }
 0x308   : > { %5509 = vst [vmem:[%s7466_s26 + $0x8] sm:$0xff] %v4857_v22  ;;  %5511 = vst [vmem:[%s7466_s26 + $0x18] sm:$0xff] %v4900_v31  ;;  %v4859_v51 = vadd.f32 %v4858_v45, %v3383_v39  ;;  %v4902_v10 = vadd.f32 %v4901_v47, %v3391_v5  ;;  %5425 = vmatpush1.bf16.msra.mxu0 %v6194_v17  ;;  %5468 = vmatpush1.bf16.msra.mxu1 %v6196_v29  ;;  %v3179_v39 = vld [vmem:[#allocation7 + $0x1f8] sm:$0xff]  ;;  %v7479_v29 = vsub.s32 4, %v7438_v14 }
 0x309   : > { %v4860_v46 = vpop.f32.mrf.mxu0  ;;  %v4903_v49 = vpop.f32.mrf.mxu1  ;;  %5426 = vmatprep.subr.bf16.mxu0 %v6163_v36  ;;  %5469 = vmatprep.subr.bf16.mxu1 %v6165_v40  ;;  %v6066_v5 = vcombine.low %v3194_v60, %v3210_v61  ;;  %v6037_v8 = vcombine.high %v3163_v37, %v3179_v39  ;;  %v6036_v9 = vcombine.low %v3163_v37, %v3179_v39  ;;  %v7488_v36 = vsub.s32 7, %v7438_v14 }
 0x30a   : > { %5540 = vst [vmem:[%s7466_s26 + $0x100] sm:$0xff] %v4859_v51  ;;  %5542 = vst [vmem:[%s7466_s26 + $0x110] sm:$0xff] %v4902_v10  ;;  %v4861_v53 = vadd.f32 %v4860_v46, %v3387_v13  ;;  %v4904_v55 = vadd.f32 %v4903_v49, %v3395_v25  ;;  %v3130_v13 = vld [vmem:[#allocation7 + $0x70] sm:$0xff]  ;;  %v6005_v17 = vcombine.high %v3131_v26, %v3147_v27 }
 0x30b   : > { %v3146_v25 = vld [vmem:[#allocation7 + $0xf0] sm:$0xff]  ;;  %v3399_v40 = vrot.slane %v7446_v62, %v7479_v29  ;;  %v3407_v42 = vrot.slane %v7446_v62, %v7482_v28  ;;  %v3403_v22 = vrot.slane %v7446_v62, %v7485_v30  ;;  %v3411_v31 = vrot.slane %v7446_v62, %v7488_v36 }
 0x30c   : > { %5541 = vst [vmem:[%s7466_s26 + $0x108] sm:$0xff] %v4861_v53  ;;  %5543 = vst [vmem:[%s7466_s26 + $0x118] sm:$0xff] %v4904_v55  ;;  %5427 = vmatpush1.bf16.msra.mxu0 %v6162_v48  ;;  %5470 = vmatpush1.bf16.msra.mxu1 %v6164_v12  ;;  %v6003_v11 = vcombine.high %v3130_v13, %v3146_v25  ;;  %v6002_v18 = vcombine.low %v3130_v13, %v3146_v25 }
 0x30d   : > { %5428 = vmatprep.subr.bf16.mxu0 %v6131_v50  ;;  %5471 = vmatprep.subr.bf16.mxu1 %v6133_v38  ;;  %v3415_v53 = vrot.slane %v3373_v52, %v7441_v0  ;;  %v3423_v55 = vrot.slane %v3373_v52, %v7444_v3  ;;  %v3431_v39 = vrot.slane %v3373_v52, %v7479_v29 }
 0x310   : > { %5429 = vmatpush1.bf16.msra.mxu0 %v6130_v16  ;;  %5472 = vmatpush1.bf16.msra.mxu1 %v6132_v54 }
 0x311   : > { %5430 = vmatprep.subr.bf16.mxu0 %v6099_v57  ;;  %5473 = vmatprep.subr.bf16.mxu1 %v6101_v58 }
 0x314   : > { %5431 = vmatpush1.bf16.msra.mxu0 %v6098_v21  ;;  %5474 = vmatpush1.bf16.msra.mxu1 %v6100_v1 }
 0x315   : > { %5432 = vmatprep.subr.bf16.mxu0 %v6067_v32  ;;  %5475 = vmatprep.subr.bf16.mxu1 %v6069_v33 }
 0x318   : > { %5433 = vmatpush1.bf16.msra.mxu0 %v6066_v5  ;;  %5476 = vmatpush1.bf16.msra.mxu1 %v6068_v7  ;;  %v3439_v5 = vrot.slane %v3373_v52, %v7482_v28  ;;  %v3435_v7 = vrot.slane %v3373_v52, %v7485_v30 }
 0x319   : > { %5434 = vmatprep.subr.bf16.mxu0 %v6035_v24  ;;  %5477 = vmatprep.subr.bf16.mxu1 %v6037_v8  ;;  %v3443_v24 = vrot.slane %v3373_v52, %v7488_v36 }
 0x31c   : > { %5435 = vmatpush1.bf16.msra.mxu0 %v6034_v6  ;;  %5478 = vmatpush1.bf16.msra.mxu1 %v6036_v9 }
 0x31d   : > { %5436 = vmatprep.subr.bf16.mxu0 %v6003_v11  ;;  %5479 = vmatprep.subr.bf16.mxu1 %v6005_v17 }
 0x320   : > { %5437 = vmatpush1.bf16.msra.mxu0 %v6002_v18  ;;  %5480 = vmatpush1.bf16.msra.mxu1 %v6004_v23 }
 0x323   : > { %v4940_v41 = vpop.f32.mrf.mxu0  ;;  %v4983_v14 = vpop.f32.mrf.mxu1  ;;  %5455 = vmatmul.mubr.bf16.vlgmr.msra.gmra.mxu0 %v7406_v19  ;;  %5498 = vmatmul.mubr.bf16.vlgmr.msra.gmra.mxu1 %v7406_v19 }
 0x324   : > { %v4941_v43 = vadd.f32 %v4940_v41, %v3399_v40  ;;  %v4984_v44 = vadd.f32 %v4983_v14, %v3407_v42  ;;  %v3374_v14 = vld [vmem:[#allocation8 + $0x10] sm:$0xff] }
 0x325   : > { %v4942_v45 = vpop.f32.mrf.mxu0  ;;  %v4985_v47 = vpop.f32.mrf.mxu1 }
 0x326   : > { %5512 = vst [vmem:[%s7466_s26 + $0x20] sm:$0xff] %v4941_v43  ;;  %5514 = vst [vmem:[%s7466_s26 + $0x30] sm:$0xff] %v4984_v44  ;;  %v4943_v48 = vadd.f32 %v4942_v45, %v3403_v22  ;;  %v4986_v51 = vadd.f32 %v4985_v47, %v3411_v31  ;;  %v3447_v43 = vrot.slane %v3374_v14, %v7441_v0 }
 0x327   : > { %v4944_v62 = vpop.f32.mrf.mxu0  ;;  %v4987_v10 = vpop.f32.mrf.mxu1  ;;  %v3455_v44 = vrot.slane %v3374_v14, %v7444_v3  ;;  %v3451_v45 = vrot.slane %v3374_v14, %v7449_v2  ;;  %v3459_v47 = vrot.slane %v3374_v14, %v7452_v4 }
 0x328   : > { %5513 = vst [vmem:[%s7466_s26 + $0x28] sm:$0xff] %v4943_v48  ;;  %5515 = vst [vmem:[%s7466_s26 + $0x38] sm:$0xff] %v4986_v51  ;;  %v4945_v12 = vadd.f32 %v4944_v62, %v3399_v40  ;;  %v4988_v46 = vadd.f32 %v4987_v10, %v3407_v42 }
 0x329   : > { %v4946_v49 = vpop.f32.mrf.mxu0  ;;  %v4989_v19 = vpop.f32.mrf.mxu1 }
 0x32a   : > { %5544 = vst [vmem:[%s7466_s26 + $0x120] sm:$0xff] %v4945_v12  ;;  %5546 = vst [vmem:[%s7466_s26 + $0x130] sm:$0xff] %v4988_v46  ;;  %v4947_v50 = vadd.f32 %v4946_v49, %v3403_v22  ;;  %v4990_v38 = vadd.f32 %v4989_v19, %v3411_v31 }
 0x32c   : > { %5545 = vst [vmem:[%s7466_s26 + $0x128] sm:$0xff] %v4947_v50  ;;  %5547 = vst [vmem:[%s7466_s26 + $0x138] sm:$0xff] %v4990_v38 }
 0x343   : > { %v5026_v15 = vpop.f32.mrf.mxu0  ;;  %v5069_v16 = vpop.f32.mrf.mxu1 }
 0x344   : > { %v5027_v54 = vadd.f32 %v5026_v15, %v3415_v53  ;;  %v5070_v57 = vadd.f32 %v5069_v16, %v3423_v55  ;;  %v3463_v16 = vrot.slane %v3374_v14, %v7479_v29 }
 0x345   : > { %v5028_v58 = vpop.f32.mrf.mxu0  ;;  %v5071_v60 = vpop.f32.mrf.mxu1 }
 0x346   : > { %5516 = vst [vmem:[%s7466_s26 + $0x40] sm:$0xff] %v5027_v54  ;;  %5518 = vst [vmem:[%s7466_s26 + $0x50] sm:$0xff] %v5070_v57  ;;  %v5029_v61 = vadd.f32 %v5028_v58, %v3419_v56  ;;  %v5072_v63 = vadd.f32 %v5071_v60, %v3427_v59  ;;  %v3471_v54 = vrot.slane %v3374_v14, %v7482_v28 }
 0x347   : > { %v5030_v20 = vpop.f32.mrf.mxu0  ;;  %v5073_v21 = vpop.f32.mrf.mxu1  ;;  %v3467_v57 = vrot.slane %v3374_v14, %v7485_v30  ;;  %v3475_v58 = vrot.slane %v3374_v14, %v7488_v36 }
 0x348   : > { %5517 = vst [vmem:[%s7466_s26 + $0x48] sm:$0xff] %v5029_v61  ;;  %5519 = vst [vmem:[%s7466_s26 + $0x58] sm:$0xff] %v5072_v63  ;;  %v5031_v1 = vadd.f32 %v5030_v20, %v3415_v53  ;;  %v5074_v32 = vadd.f32 %v5073_v21, %v3423_v55 }
 0x349   : > { %v5032_v33 = vpop.f32.mrf.mxu0  ;;  %v5075_v34 = vpop.f32.mrf.mxu1 }
 0x34a   : > { %5548 = vst [vmem:[%s7466_s26 + $0x140] sm:$0xff] %v5031_v1  ;;  %5550 = vst [vmem:[%s7466_s26 + $0x150] sm:$0xff] %v5074_v32  ;;  %v5033_v35 = vadd.f32 %v5032_v33, %v3419_v56  ;;  %v5076_v37 = vadd.f32 %v5075_v34, %v3427_v59 }
 0x34c   : > { %5549 = vst [vmem:[%s7466_s26 + $0x148] sm:$0xff] %v5033_v35  ;;  %5551 = vst [vmem:[%s7466_s26 + $0x158] sm:$0xff] %v5076_v37 }
 0x363   : > { %v5112_v8 = vpop.f32.mrf.mxu0  ;;  %v5155_v13 = vpop.f32.mrf.mxu1 }
 0x364   : > { %v5113_v25 = vadd.f32 %v5112_v8, %v3431_v39  ;;  %v5156_v26 = vadd.f32 %v5155_v13, %v3439_v5  ;;  %v3375_v13 = vld [vmem:[#allocation8 + $0x18] sm:$0xff] }
 0x365   : > { %v5114_v27 = vpop.f32.mrf.mxu0  ;;  %v5157_v6 = vpop.f32.mrf.mxu1 }
 0x366   : > { %5520 = vst [vmem:[%s7466_s26 + $0x60] sm:$0xff] %v5113_v25  ;;  %5522 = vst [vmem:[%s7466_s26 + $0x70] sm:$0xff] %v5156_v26  ;;  %v5115_v9 = vadd.f32 %v5114_v27, %v3435_v7  ;;  %v5158_v11 = vadd.f32 %v5157_v6, %v3443_v24  ;;  %v3479_v25 = vrot.slane %v3375_v13, %v7441_v0 }
 0x367   : > { %v5116_v17 = vpop.f32.mrf.mxu0  ;;  %v5159_v18 = vpop.f32.mrf.mxu1  ;;  %v3487_v26 = vrot.slane %v3375_v13, %v7444_v3  ;;  %v3483_v27 = vrot.slane %v3375_v13, %v7449_v2  ;;  %v3491_v6 = vrot.slane %v3375_v13, %v7452_v4 }
 0x368   : > { %5521 = vst [vmem:[%s7466_s26 + $0x68] sm:$0xff] %v5115_v9  ;;  %5523 = vst [vmem:[%s7466_s26 + $0x78] sm:$0xff] %v5158_v11  ;;  %v5117_v23 = vadd.f32 %v5116_v17, %v3431_v39  ;;  %v5160_v40 = vadd.f32 %v5159_v18, %v3439_v5 }
 0x369   : > { %v5118_v42 = vpop.f32.mrf.mxu0  ;;  %v5161_v22 = vpop.f32.mrf.mxu1 }
 0x36a   : > { %5552 = vst [vmem:[%s7466_s26 + $0x160] sm:$0xff] %v5117_v23  ;;  %5554 = vst [vmem:[%s7466_s26 + $0x170] sm:$0xff] %v5160_v40  ;;  %v5119_v31 = vadd.f32 %v5118_v42, %v3435_v7  ;;  %v5162_v41 = vadd.f32 %v5161_v22, %v3443_v24 }
 0x36c   : > { %5553 = vst [vmem:[%s7466_s26 + $0x168] sm:$0xff] %v5119_v31  ;;  %5555 = vst [vmem:[%s7466_s26 + $0x178] sm:$0xff] %v5162_v41 }
 0x383   : > { %v5198_v48 = vpop.f32.mrf.mxu0  ;;  %v5241_v51 = vpop.f32.mrf.mxu1 }
 0x384   : > { %v5199_v62 = vadd.f32 %v5198_v48, %v3447_v43  ;;  %v5242_v10 = vadd.f32 %v5241_v51, %v3455_v44  ;;  %v3507_v48 = vrot.slane %v3375_v13, %v7488_v36 }
 0x385   : > { %v5200_v12 = vpop.f32.mrf.mxu0  ;;  %v5243_v46 = vpop.f32.mrf.mxu1 }
 0x386   : > { %5524 = vst [vmem:[%s7466_s26 + $0x80] sm:$0xff] %v5199_v62  ;;  %5526 = vst [vmem:[%s7466_s26 + $0x90] sm:$0xff] %v5242_v10  ;;  %v5201_v49 = vadd.f32 %v5200_v12, %v3451_v45  ;;  %v5244_v19 = vadd.f32 %v5243_v46, %v3459_v47 }
 0x387   : > { %v5202_v50 = vpop.f32.mrf.mxu0  ;;  %v5245_v38 = vpop.f32.mrf.mxu1 }
 0x388   : > { %5525 = vst [vmem:[%s7466_s26 + $0x88] sm:$0xff] %v5201_v49  ;;  %5527 = vst [vmem:[%s7466_s26 + $0x98] sm:$0xff] %v5244_v19  ;;  %v5203_v52 = vadd.f32 %v5202_v50, %v3447_v43  ;;  %v5246_v53 = vadd.f32 %v5245_v38, %v3455_v44  ;;  %v3495_v44 = vrot.slane %v3375_v13, %v7479_v29 }
 0x389   : > { %v5204_v55 = vpop.f32.mrf.mxu0  ;;  %v5247_v56 = vpop.f32.mrf.mxu1 }
 0x38a   : > { %5556 = vst [vmem:[%s7466_s26 + $0x180] sm:$0xff] %v5203_v52  ;;  %5558 = vst [vmem:[%s7466_s26 + $0x190] sm:$0xff] %v5246_v53  ;;  %v5205_v59 = vadd.f32 %v5204_v55, %v3451_v45  ;;  %v5248_v15 = vadd.f32 %v5247_v56, %v3459_v47  ;;  %v3503_v45 = vrot.slane %v3375_v13, %v7482_v28 }
 0x38b   : > { %v3499_v47 = vrot.slane %v3375_v13, %v7485_v30 }
 0x38c   : > { %5557 = vst [vmem:[%s7466_s26 + $0x188] sm:$0xff] %v5205_v59  ;;  %5559 = vst [vmem:[%s7466_s26 + $0x198] sm:$0xff] %v5248_v15 }
 0x3a3   : > { %v5284_v60 = vpop.f32.mrf.mxu0  ;;  %v5327_v61 = vpop.f32.mrf.mxu1 }
 0x3a4   : > { %v5285_v63 = vadd.f32 %v5284_v60, %v3463_v16  ;;  %v5328_v20 = vadd.f32 %v5327_v61, %v3471_v54 }
 0x3a5   : > { %v5286_v21 = vpop.f32.mrf.mxu0  ;;  %v5329_v1 = vpop.f32.mrf.mxu1 }
 0x3a6   : > { %5528 = vst [vmem:[%s7466_s26 + $0xa0] sm:$0xff] %v5285_v63  ;;  %5530 = vst [vmem:[%s7466_s26 + $0xb0] sm:$0xff] %v5328_v20  ;;  %v5287_v32 = vadd.f32 %v5286_v21, %v3467_v57  ;;  %v5330_v33 = vadd.f32 %v5329_v1, %v3475_v58 }
 0x3a7   : > { %v5288_v34 = vpop.f32.mrf.mxu0  ;;  %v5331_v35 = vpop.f32.mrf.mxu1 }
 0x3a8   : > { %5529 = vst [vmem:[%s7466_s26 + $0xa8] sm:$0xff] %v5287_v32  ;;  %5531 = vst [vmem:[%s7466_s26 + $0xb8] sm:$0xff] %v5330_v33  ;;  %v5289_v37 = vadd.f32 %v5288_v34, %v3463_v16  ;;  %v5332_v39 = vadd.f32 %v5331_v35, %v3471_v54 }
 0x3a9   : > { %v5290_v5 = vpop.f32.mrf.mxu0  ;;  %v5333_v7 = vpop.f32.mrf.mxu1 }
 0x3aa   : > { %5560 = vst [vmem:[%s7466_s26 + $0x1a0] sm:$0xff] %v5289_v37  ;;  %5562 = vst [vmem:[%s7466_s26 + $0x1b0] sm:$0xff] %v5332_v39  ;;  %v5291_v24 = vadd.f32 %v5290_v5, %v3467_v57  ;;  %v5334_v8 = vadd.f32 %v5333_v7, %v3475_v58 }
 0x3ac   : > { %5561 = vst [vmem:[%s7466_s26 + $0x1a8] sm:$0xff] %v5291_v24  ;;  %5563 = vst [vmem:[%s7466_s26 + $0x1b8] sm:$0xff] %v5334_v8 }
 0x3c3   : > { %v5370_v9 = vpop.f32.mrf.mxu0  ;;  %v5413_v11 = vpop.f32.mrf.mxu1 }
 0x3c4   : > { %v5371_v17 = vadd.f32 %v5370_v9, %v3479_v25  ;;  %v5414_v18 = vadd.f32 %v5413_v11, %v3487_v26 }
 0x3c5   : > { %v5372_v23 = vpop.f32.mrf.mxu0  ;;  %v5415_v40 = vpop.f32.mrf.mxu1 }
 0x3c6   : > { %5532 = vst [vmem:[%s7466_s26 + $0xc0] sm:$0xff] %v5371_v17  ;;  %5534 = vst [vmem:[%s7466_s26 + $0xd0] sm:$0xff] %v5414_v18  ;;  %v5373_v0 = vadd.f32 %v5372_v23, %v3483_v27  ;;  %v5416_v42 = vadd.f32 %v5415_v40, %v3491_v6 }
 0x3c7   : > { %v5374_v3 = vpop.f32.mrf.mxu0  ;;  %v5417_v22 = vpop.f32.mrf.mxu1 }
 0x3c8   : > { %5533 = vst [vmem:[%s7466_s26 + $0xc8] sm:$0xff] %v5373_v0  ;;  %5535 = vst [vmem:[%s7466_s26 + $0xd8] sm:$0xff] %v5416_v42  ;;  %v5375_v2 = vadd.f32 %v5374_v3, %v3479_v25  ;;  %v5418_v4 = vadd.f32 %v5417_v22, %v3487_v26 }
 0x3c9   : > { %v5376_v31 = vpop.f32.mrf.mxu0  ;;  %v5419_v41 = vpop.f32.mrf.mxu1 }
 0x3ca   : > { %5564 = vst [vmem:[%s7466_s26 + $0x1c0] sm:$0xff] %v5375_v2  ;;  %5566 = vst [vmem:[%s7466_s26 + $0x1d0] sm:$0xff] %v5418_v4  ;;  %v5377_v14 = vadd.f32 %v5376_v31, %v3483_v27  ;;  %v5420_v43 = vadd.f32 %v5419_v41, %v3491_v6 }
 0x3cc   : > { %5565 = vst [vmem:[%s7466_s26 + $0x1c8] sm:$0xff] %v5377_v14  ;;  %5567 = vst [vmem:[%s7466_s26 + $0x1d8] sm:$0xff] %v5420_v43 }
 0x3e3   : > { %v5456_v51 = vpop.f32.mrf.mxu0  ;;  %v5499_v62 = vpop.f32.mrf.mxu1 }
 0x3e4   : > { %v5457_v10 = vadd.f32 %v5456_v51, %v3495_v44  ;;  %v5500_v12 = vadd.f32 %v5499_v62, %v3503_v45 }
 0x3e5   : > { %v5458_v46 = vpop.f32.mrf.mxu0  ;;  %v5501_v49 = vpop.f32.mrf.mxu1 }
 0x3e6   : > { %5536 = vst [vmem:[%s7466_s26 + $0xe0] sm:$0xff] %v5457_v10  ;;  %5538 = vst [vmem:[%s7466_s26 + $0xf0] sm:$0xff] %v5500_v12  ;;  %v5459_v29 = vadd.f32 %v5458_v46, %v3499_v47  ;;  %v5502_v28 = vadd.f32 %v5501_v49, %v3507_v48 }
 0x3e7   : > { %v5460_v19 = vpop.f32.mrf.mxu0  ;;  %v5503_v50 = vpop.f32.mrf.mxu1 }
 0x3e8   : > { %5537 = vst [vmem:[%s7466_s26 + $0xe8] sm:$0xff] %v5459_v29  ;;  %5539 = vst [vmem:[%s7466_s26 + $0xf8] sm:$0xff] %v5502_v28  ;;  %v5461_v30 = vadd.f32 %v5460_v19, %v3495_v44  ;;  %v5504_v36 = vadd.f32 %v5503_v50, %v3503_v45  ;;  %5579 = sbr.rel (!%p7660_p6) target bundleno = 1032 (0x408), region = 60 }
 0x3e9   : > { %v5462_v38 = vpop.f32.mrf.mxu0  ;;  %v5505_v52 = vpop.f32.mrf.mxu1 }
 0x3ea   : > { %5568 = vst [vmem:[%s7466_s26 + $0x1e0] sm:$0xff] %v5461_v30  ;;  %5570 = vst [vmem:[%s7466_s26 + $0x1f0] sm:$0xff] %v5504_v36  ;;  %v5463_v53 = vadd.f32 %v5462_v38, %v3499_v47  ;;  %v5506_v55 = vadd.f32 %v5505_v52, %v3507_v48 }
 0x3ec   : > { %5569 = vst [vmem:[%s7466_s26 + $0x1e8] sm:$0xff] %v5463_v53  ;;  %5571 = vst [vmem:[%s7466_s26 + $0x1f8] sm:$0xff] %v5506_v55 }
 0x3ed   : > { %s7669_s15 = smov (!%p5582_p11, %s5581_s15), 2 }
 0x3ee   : > { %s7584_s11 = sshll.u32 %s7669_s15, 12 }
 0x3ef   : > { %s5587_s28 = ssub.s32 8192, %s7584_s11 }
 0x3f0   : > { %5588 = vsyncadd %s5573_s8, %s5587_s28  ;;  %p6234_p10 = scmp.ne.s32.totalorder %s7584_s11, 0  ;;  %s6246_s30 = sshll.u32 %s7177_s22, 13 }
 0x3f1   : > { %s7594_s16 = scalar_lea.hbm %s7646_s5, %s6246_s30  ;;  %s5594_s12 = sshll.u32 %s7466_s26, 4  ;;  %s7597_s12 = int_to_ptr.vmem [resolvable:$true] %s5594_s12 }
 0x3f2   : > { %s7038_s23 = scalar_lea.vmem %s7597_s12, %s7584_s11  ;;  %s7123_s25 = smov [#allocation10]  }
 0x3f3   : > { %p7039_p1 = scmp.ne.s32.totalorder %s7597_s12, %s7038_s23  ;;  %s7042_s10 = sshll.u32 %s7123_s25, 4  ;;  %s7043_s10 = int_to_ptr.vmem [resolvable:$false] %s7042_s10 }
 0x3f4   : > { %s7044_s22 = scalar_lea.vmem %s7043_s10, 16384  ;;  %p7045_p0 = scmp.lt.s32.totalorder %s7597_s12, %s7043_s10 }
 0x3f5   : > { %p7040_p3 = pnand %p7039_p1, %p6234_p10  ;;  %p7046_p2 = scmp.lt.s32.totalorder %s7044_s22, %s7038_s23 }
 0x3f7   : > { %p7041_p7 = pneg %p7040_p3  ;;  %p7047_p9 = por %p7046_p2, %p7045_p0 }
 0x3f9   : > { %p7048_p12 = pnand %p7047_p9, %p7041_p7 }
 0x3fb   : > { %7051 = shalt.err (!%p7048_p12)
}
 0x3fc   : > { %s7052_s29 = scalar_lea.hbm %s7594_s16, %s7584_s11  ;;  %s7056_s14 = scalar_lea.hbm %s7646_s5, 28672 }
 0x3fd   : > { %p7053_p5 = scmp.ne.s32.totalorder %s7594_s16, %s7052_s29  ;;  %p7057_p8 = scmp.lt.s32.totalorder %s7594_s16, %s7646_s5 }
 0x3fe   : > { %p7058_p6 = scmp.lt.s32.totalorder %s7056_s14, %s7052_s29 }
 0x3ff   : > { %p7054_p13 = pnand %p7053_p5, %p6234_p10 }
 0x400   : > { %p7059_p11 = por %p7058_p6, %p7057_p8 }
 0x401   : > { %p7055_p4 = pneg %p7054_p13 }
 0x403   : > { %p7060_p1 = pnand %p7059_p11, %p7055_p4 }
 0x405   : > { %7063 = shalt.err (!%p7060_p1)
}
 0x406   : > { %s7124_s30 = smov 4096   ;;  %s7125_s9 = smov 256  }
 0x407   : > { %5600 = dma.vmem_to_hbm [thread:$0]  (%p6234_p10), %s7597_s12, %s7584_s11, %s7594_s16, %s5573_s8, %s7124_s30, %s7124_s30, %s7125_s9  }
 0x408 PF: > { %p6633_p3 = scmp.ge.s32.totalorder %s7110_s21, 2  ;;  %s5609_s13 = sand.u32 1, %s7098_s18  }
 0x409   : > { %p7661_p7 = scmp.ne.s32.totalorder %s7652_s6, 0  ;;  %s5610_s23 = scalar_lea.sflag [#allocation4], %s5609_s13 }
 0x40b   : > { %p6624_p0 = pnand %p6633_p3, %p7661_p7 }
 0x40d   : > { %p6625_p2 = pneg %p6624_p0 }
 0x40f   : > { %7093 = dma.done.wait (%p6625_p2), %s5610_s23, 8192  }
 0x410   : > { %7095 = vsyncadd (%p6625_p2), %s5610_s23, 4294959104  ;;  %p20_p9 = scmp.ge.s32.totalorder %s7181_s24, 6   ;;  %s7662_s18 = smov %s7102_s19 }
 0x411   : > { %s7663_s19 = smov %s7106_s20  ;;  %s7664_s20 = smov %s7193_s27 }
 0x412   : > { %s7665_s21 = smov %s7181_s24  ;;  %22 = sbr.rel (!%p20_p9) target bundleno = 7 (0x7), region = 97 }
 0x417   :  { %5615 = vsyncpa [#allocation3], 1 }
 0x418   :  { %5617 = vsyncpa [#allocation3 + $0x1], 1 }
 0x419   :  { %5618 = vsyncpa [#allocation6], 1 }
 0x41a   :  { %5619 = vsyncpa [#allocation9], 1 }
 0x41b   :  { %5620 = vsyncpa [#allocation4], 1 }
 0x41c   :  { %5622 = vsyncpa [#allocation4 + $0x1], 1 }

</bundles_post_ra>
